<compile_context>
chip_gen: v5e
topology: v5e:2x2
jax: 0.10.0
libtpu: 0.0.40
codegen_flags: <defaults>
</compile_context>

<pallas_src>
import math
from functools import partial

import jax
import jax.numpy as jnp
from jax.experimental import pallas as pl
from jax.experimental.pallas import tpu as pltpu

LN_EPS = 1e-5  # torch.nn.LayerNorm default eps


# ------------------------------ fused kernel --------------------------------

def _fused_cnn_kernel(*refs, plan, T, M, lpad, matmul_dtype):
    """Whole CNNInnerModel forward for Bt batch elements, entirely in VMEM.

    refs = [x_ref, (w, b, gamma, beta) per layer ..., o_ref, pad_ref, slab_ref]
      x_ref    : (M, C0)         flattened (Bt*T, C) channels-last input, MXU dtype
      w        : (K*C_in, C_out) im2col conv weight, MXU dtype
      b/g/be   : (1, C_out)      f32 bias / LayerNorm gamma / beta
      o_ref    : (M, C_final)    f32 output (== module output after permute)
      pad_ref  : (Bt, lpad+T+r_max, C_pad) per-element padded activations (scratch)
      slab_ref : (M, K_max*C_max)          im2col slab fed to the MXU (scratch)

    plan: static tuple of (radius, c_in, c_out, block_start, block_end).
    """
    x_ref = refs[0]
    o_ref = refs[-3]
    pad_ref = refs[-2]
    slab_ref = refs[-1]
    prefs = refs[1:-3]
    Bt = M // T

    # Zero the padded-activation scratch once per grid step.  Only its halo
    # rows are ever read as zeros and they are never written afterwards, so
    # this single ~tens-of-KiB fill replaces the per-layer jnp.pad/concat of
    # the previous revision.
    if any(r > 0 for r, *_ in plan):
        pad_ref[...] = jnp.zeros(pad_ref.shape, pad_ref.dtype)

    h = None       # previous layer's activations, f32, shape (M, c)
    res = None     # residual-block input
    pi = 0
    for li, (radius, c_in, c_out, block_start, block_end) in enumerate(plan):
        w_ref, b_ref, g_ref, be_ref = prefs[pi:pi + 4]
        pi += 4
        if block_start:          # CNNResidualBlock input
            res = h
        K = 2 * radius + 1

        if radius == 0:
            # No taps needed.  The entrance layer feeds the input block to the
            # MXU in its storage dtype directly (no bf16->f32->bf16 round trip).
            src = x_ref[...] if li == 0 else h
            slab = src.astype(matmul_dtype)
        else:
            # im2col via persistent VMEM scratch:
            #   1) store this layer's activations (cast once to the MXU dtype)
            #      into the per-batch-element padded buffer at the
            #      sublane-aligned offset `lpad`;
            #   2) copy each of the K statically-shifted windows into its
            #      column group of the slab buffer (all offsets are static
            #      Python ints, so the compiler sees the alignment).
            # Padding is per batch element (3-D pad buffer), so conv taps
            # never leak across batch boundaries of the folded Bt*T rows.
            src = (x_ref[...] if li == 0 else h).astype(matmul_dtype)
            pad_ref[:, lpad:lpad + T, :c_in] = src.reshape(Bt, T, c_in)
            for k in range(K):
                off = lpad - radius + k
                tap = pad_ref[:, off:off + T, :c_in]           # (Bt, T, c_in)
                slab_ref[:, k * c_in:(k + 1) * c_in] = tap.reshape(M, c_in)
            slab = slab_ref[:, :K * c_in]

        # Conv1d(padding=radius) as ONE im2col MXU matmul with M = Bt*T rows.
        acc = jnp.dot(slab, w_ref[...], preferred_element_type=jnp.float32)
        acc = acc + b_ref[...]

        # LayerNorm over channels (f32) + ReLU.
        # TODO(synk): training-mode torch.nn.Dropout (stochastic masking) is
        # not implemented; dropout=0.0 (inference) => identity, which is what
        # runs here.
        mean = jnp.mean(acc, axis=-1, keepdims=True)
        var = jnp.mean(jnp.square(acc - mean), axis=-1, keepdims=True)
        y = (acc - mean) * jax.lax.rsqrt(var + LN_EPS)
        y = y * g_ref[...] + be_ref[...]
        y = jnp.maximum(y, 0.0)

        if block_end:            # x + sequential(x)
            y = y + res
        h = y

    # NOTE: C_final (=32) < 128 lanes so this is a masked store; at T=64 the
    # lane-dense output-reshape trick buys nothing.  Lane-packing 4 batch
    # elements along channels (32 -> 128 lanes, block-diagonal weights) would
    # speed up the VPU/LN side ~4x but is intentionally not done here to keep
    # weight and IO layouts unchanged.
    o_ref[...] = h.astype(o_ref.dtype)


# ------------------------------ wrapper --------------------------------------

def _pick_batch_tile(B, T, target_rows=256):
    """Batch elements folded into one grid step.

    Prefers the smallest divisor Bt of B with Bt*T >= target_rows (fills the
    256-row v6e/v7x MXU; use target_rows=128 on v5e) while keeping the grid
    length EVEN so v7x's two TensorCores stay balanced.
    """
    divisors = [d for d in range(1, B + 1) if B % d == 0]
    for want_even in (True, False):
        for d in divisors:
            if d * T >= target_rows and (not want_even or (B // d) % 2 == 0):
                return d
    return divisors[-1]          # whole batch in one step (grid=(1,))


def cnn_inner_model(x, params, blocks, matmul_dtype=jnp.bfloat16,
                    batch_tile=None):
    """CNNInnerModel.forward.  x: (B, 2, n_pitches, T) -> (B, T, C_final)."""
    B, n_ch, P, T = x.shape
    assert n_ch == 2
    C0 = 2 * P

    Bt = _pick_batch_tile(B, T) if batch_tile is None else batch_tile
    assert B % Bt == 0, (B, Bt)
    M = Bt * T
    n_steps = B // Bt

    # view(B, 2*n_pitches, T) -> channels-last -> flat (B*T, C0) rows.  Rows
    # are batch-major, so a (Bt*T, C0) block covers Bt whole batch elements.
    xc = x.reshape(B, C0, T)
    xc = jnp.transpose(xc, (0, 2, 1)).reshape(B * T, C0).astype(matmul_dtype)

    plan = []
    args = [xc]
    in_specs = [pl.BlockSpec((M, C0), lambda i: (i, 0))]
    flops = 0
    transcendentals = 0

    def add_layer(w, b, g, be, radius, c_in, c_out, block_start, block_end):
        nonlocal flops, transcendentals
        K = 2 * radius + 1
        w_flat = w.reshape(K * c_in, c_out).astype(matmul_dtype)   # im2col layout
        args.extend([w_flat,
                     b.reshape(1, c_out).astype(jnp.float32),
                     g.reshape(1, c_out).astype(jnp.float32),
                     be.reshape(1, c_out).astype(jnp.float32)])
        # NOTE: pipeline_mode=pl.Buffered(1) on these constant-index specs
        # would halve their (tiny) VMEM reservation; left at the default for
        # maximum portability across jax versions.
        in_specs.append(pl.BlockSpec((K * c_in, c_out), lambda i: (0, 0)))
        in_specs.extend([pl.BlockSpec((1, c_out), lambda i: (0, 0))] * 3)
        plan.append((radius, c_in, c_out, block_start, block_end))
        flops += 2 * B * T * (K * c_in) * c_out
        transcendentals += B * T                   # one rsqrt per row per layer

    w, b, g, be = params["entrance"]
    cur = w.shape[2]
    add_layer(w, b, g, be, 0, C0, cur, False, False)
    for bi, block_hp in enumerate(blocks):
        for li, (radius, n_channel) in enumerate(block_hp):
            w, b, g, be = params["blocks"][bi][li]
            add_layer(w, b, g, be, radius, cur, n_channel,
                      li == 0, li == len(block_hp) - 1)
            cur = n_channel
    C_final = cur

    # Static scratch sizing: per-element padded activations + im2col slab.
    r_max = max((r for r, *_ in plan), default=0)
    c_pad = max((ci for r, ci, *_ in plan if r > 0), default=8)
    slab_cols = max(((2 * r + 1) * ci for r, ci, *_ in plan if r > 0),
                    default=C0)
    lpad = 8 * max(1, -(-r_max // 8))        # left halo rounded up to sublanes
    t_pad = lpad + T + r_max

    bytes_accessed = int(sum(a.size * a.dtype.itemsize for a in args)
                         + B * T * C_final * 4)

    kernel = partial(_fused_cnn_kernel, plan=tuple(plan), T=T, M=M, lpad=lpad,
                     matmul_dtype=matmul_dtype)

    # VMEM per step (defaults here): 2x (256,16)bf16 input + 2x (256,32)f32
    # output + weights + (4,74,32) pad + (256,160) slab scratch — a few hundred
    # KiB, far under the 32 MiB limit and under v7x's 64 MiB physical VMEM.
    out_flat = pl.pallas_call(
        kernel,
        out_shape=jax.ShapeDtypeStruct((B * T, C_final), jnp.float32),
        grid=(n_steps,),
        in_specs=in_specs,
        out_specs=pl.BlockSpec((M, C_final), lambda i: (i, 0)),
        scratch_shapes=[pltpu.VMEM((Bt, t_pad, c_pad), matmul_dtype),
                        pltpu.VMEM((M, slab_cols), matmul_dtype)],
        compiler_params=pltpu.CompilerParams(
            dimension_semantics=("parallel",),        # megacore / v7x 2-TC
            vmem_limit_bytes=32 * 1024 * 1024),
        cost_estimate=pl.CostEstimate(flops=int(flops),
                                      transcendentals=int(transcendentals),
                                      bytes_accessed=bytes_accessed),
    )(*args)
    return out_flat.reshape(B, T, C_final)


# ------------------------------ params ---------------------------------------

def init_params(key, in_channels, entrance_n_channel, blocks):
    def conv_block_params(k, c_in, c_out, ksize):
        k1, k2, k3, k4 = jax.random.split(k, 4)
        scale = 1.0 / math.sqrt(c_in * ksize)
        w = jax.random.uniform(k1, (ksize, c_in, c_out), jnp.float32, -scale, scale)
        b = jax.random.uniform(k2, (c_out,), jnp.float32, -scale, scale)
        gamma = 1.0 + 0.1 * jax.random.normal(k3, (c_out,), jnp.float32)
        beta = 0.1 * jax.random.normal(k4, (c_out,), jnp.float32)
        return (w, b, gamma, beta)

    keys = jax.random.split(key, 1 + sum(len(bl) for bl in blocks))
    ki = 0
    params = {"entrance": conv_block_params(keys[ki], in_channels,
                                            entrance_n_channel, 1)}
    ki += 1
    cur = entrance_n_channel
    params["blocks"] = []
    for block_hp in blocks:
        layer_params = []
        block_in = cur
        for radius, n_channel in block_hp:
            layer_params.append(
                conv_block_params(keys[ki], cur, n_channel, 2 * radius + 1))
            ki += 1
            cur = n_channel
        assert cur == block_in  # CNNResidualBlock: out_n_channel == in_n_channel
        params["blocks"].append(layer_params)
    return params


# ------------------------------ pure-JAX reference ---------------------------

def _ref_conv_block(x, w, b, gamma, beta, radius, matmul_dtype):
    B, T, C_in = x.shape
    K = w.shape[0]
    xm = x.astype(matmul_dtype)
    wm = w.astype(matmul_dtype)
    xp = jnp.pad(xm, ((0, 0), (radius, radius), (0, 0)))
    acc = jnp.zeros((B, T, w.shape[2]), jnp.float32)
    for k in range(K):
        acc = acc + jnp.einsum("bti,io->bto", xp[:, k:k + T, :], wm[k],
                               preferred_element_type=jnp.float32)
    acc = acc + b[None, None, :]
    mean = acc.mean(-1, keepdims=True)
    var = ((acc - mean) ** 2).mean(-1, keepdims=True)
    y = (acc - mean) / jnp.sqrt(var + LN_EPS)
    y = y * gamma + beta
    return jnp.maximum(y, 0.0)


def ref_model(x, params, blocks, matmul_dtype=jnp.float32):
    B, n_ch, P, T = x.shape
    x = x.reshape(B, 2 * P, T)
    x = jnp.transpose(x, (0, 2, 1))
    w, b, g, be = params["entrance"]
    x = _ref_conv_block(x, w, b, g, be, 0, matmul_dtype)
    for bi, block_hp in enumerate(blocks):
        h = x
        for li, (radius, _) in enumerate(block_hp):
            w, b, g, be = params["blocks"][bi][li]
            h = _ref_conv_block(h, w, b, g, be, radius, matmul_dtype)
        x = x + h
    return x


# ------------------------------ main ------------------------------------------

if __name__ == "__main__":
    # Small synthetic hyper-params consistent with the module's structure.
    PIANO_RANGE = (0, 8)                 # n_pitches = 8 -> in channels = 16
    N_FRAMES_PER_DATAPOINT = 64
    ENTRANCE_N_CHANNEL = 32
    BLOCKS = [[(1, 32), (2, 32)]]        # one residual block: radii 1 and 2
    BATCH = 8                            # -> Bt=4 (M=256 MXU rows), grid=(2,) (even)

    n_pitches = PIANO_RANGE[1] - PIANO_RANGE[0]
    key = jax.random.PRNGKey(0)
    kx, kp = jax.random.split(key)
    x = jax.random.normal(
        kx, (BATCH, 2, n_pitches, N_FRAMES_PER_DATAPOINT), jnp.float32)
    params = init_params(kp, 2 * n_pitches, ENTRANCE_N_CHANNEL, BLOCKS)

    # f32 MXU path — tight check against the pure-JAX reference.
    out = cnn_inner_model(x, params, BLOCKS, matmul_dtype=jnp.float32)
    out = jax.block_until_ready(out)
    assert out.shape == (BATCH, N_FRAMES_PER_DATAPOINT, ENTRANCE_N_CHANNEL)
    ref = ref_model(x, params, BLOCKS, matmul_dtype=jnp.float32)
    err = float(jnp.max(jnp.abs(out - ref)))
    assert jnp.allclose(out, ref, atol=2e-4, rtol=2e-4), err

    # Default path (bf16 MXU inputs, f32 LN/accumulation) vs identically-cast ref.
    out_bf = cnn_inner_model(x, params, BLOCKS)
    out_bf = jax.block_until_ready(out_bf)
    ref_bf = ref_model(x, params, BLOCKS, matmul_dtype=jnp.bfloat16)
    err_bf = float(jnp.max(jnp.abs(out_bf - ref_bf)))
    assert jnp.allclose(out_bf, ref_bf, atol=2e-2, rtol=2e-2), err_bf

    print("KERNEL_OK")
</pallas_src>

<mosaic_0001>
module attributes {stable_mosaic.version = 11 : i64} {
  func.func @_fused_cnn_kernel(%arg0: i32, %arg1: memref<256x16xf32, #tpu.memory_space<vmem>>, %arg2: memref<16x32xf32, #tpu.memory_space<vmem>>, %arg3: memref<1x32xf32, #tpu.memory_space<vmem>>, %arg4: memref<1x32xf32, #tpu.memory_space<vmem>>, %arg5: memref<1x32xf32, #tpu.memory_space<vmem>>, %arg6: memref<96x32xf32, #tpu.memory_space<vmem>>, %arg7: memref<1x32xf32, #tpu.memory_space<vmem>>, %arg8: memref<1x32xf32, #tpu.memory_space<vmem>>, %arg9: memref<1x32xf32, #tpu.memory_space<vmem>>, %arg10: memref<160x32xf32, #tpu.memory_space<vmem>>, %arg11: memref<1x32xf32, #tpu.memory_space<vmem>>, %arg12: memref<1x32xf32, #tpu.memory_space<vmem>>, %arg13: memref<1x32xf32, #tpu.memory_space<vmem>>, %arg14: memref<256x32xf32, #tpu.memory_space<vmem>>, %arg15: memref<4x74x32xf32, #tpu.memory_space<vmem>>, %arg16: memref<256x160xf32, #tpu.memory_space<vmem>>) attributes {dimension_semantics = [#tpu.dimension_semantics<parallel>], iteration_bounds = array<i64: 2>, scalar_prefetch = 0 : i64, scratch_operands = 2 : i64, tpu.core_type = #tpu.core_type<tc>, window_params = [{transform_indices = @transform_0, window_bounds = array<i64: 256, 16>}, {pipeline_mode = #tpu.pipeline_mode<synchronous>, transform_indices = @transform_1, window_bounds = array<i64: 16, 32>}, {pipeline_mode = #tpu.pipeline_mode<synchronous>, transform_indices = @transform_2, window_bounds = array<i64: 1, 32>}, {pipeline_mode = #tpu.pipeline_mode<synchronous>, transform_indices = @transform_3, window_bounds = array<i64: 1, 32>}, {pipeline_mode = #tpu.pipeline_mode<synchronous>, transform_indices = @transform_4, window_bounds = array<i64: 1, 32>}, {pipeline_mode = #tpu.pipeline_mode<synchronous>, transform_indices = @transform_5, window_bounds = array<i64: 96, 32>}, {pipeline_mode = #tpu.pipeline_mode<synchronous>, transform_indices = @transform_6, window_bounds = array<i64: 1, 32>}, {pipeline_mode = #tpu.pipeline_mode<synchronous>, transform_indices = @transform_7, window_bounds = array<i64: 1, 32>}, {pipeline_mode = #tpu.pipeline_mode<synchronous>, transform_indices = @transform_8, window_bounds = array<i64: 1, 32>}, {pipeline_mode = #tpu.pipeline_mode<synchronous>, transform_indices = @transform_9, window_bounds = array<i64: 160, 32>}, {pipeline_mode = #tpu.pipeline_mode<synchronous>, transform_indices = @transform_10, window_bounds = array<i64: 1, 32>}, {pipeline_mode = #tpu.pipeline_mode<synchronous>, transform_indices = @transform_11, window_bounds = array<i64: 1, 32>}, {pipeline_mode = #tpu.pipeline_mode<synchronous>, transform_indices = @transform_12, window_bounds = array<i64: 1, 32>}, {transform_indices = @transform_13, window_bounds = array<i64: 256, 32>}]} {
    %cst = arith.constant 0.000000e+00 : f32
    %0 = vector.broadcast %cst : f32 to vector<4x74x32xf32>
    %c0 = arith.constant 0 : index
    %c0_0 = arith.constant 0 : index
    %c0_1 = arith.constant 0 : index
    %1 = vector.load %arg15[%c0, %c0_0, %c0_1] : memref<4x74x32xf32, #tpu.memory_space<vmem>>, vector<4x74x32xf32>
    tpu.vector_store %arg15[%c0, %c0_0, %c0_1], %0 {strides = array<i32>} : memref<4x74x32xf32, #tpu.memory_space<vmem>>, vector<4x74x32xf32>,
    %c0_2 = arith.constant 0 : index
    %c0_3 = arith.constant 0 : index
    %2 = vector.load %arg1[%c0_2, %c0_3] : memref<256x16xf32, #tpu.memory_space<vmem>>, vector<256x16xf32>
    %c0_4 = arith.constant 0 : index
    %c0_5 = arith.constant 0 : index
    %3 = vector.load %arg2[%c0_4, %c0_5] : memref<16x32xf32, #tpu.memory_space<vmem>>, vector<16x32xf32>
    %cst_6 = arith.constant dense<0.000000e+00> : vector<256x32xf32>
    %4 = tpu.matmul %2, %3, %cst_6 {dimension_numbers = #tpu.dot_dimension_numbers<[1], [0], [0], [1], [0, 0, 1, 1], [], []>} : vector<256x16xf32>, vector<16x32xf32>, vector<256x32xf32> -> vector<256x32xf32>
    %c0_7 = arith.constant 0 : index
    %c0_8 = arith.constant 0 : index
    %5 = vector.load %arg3[%c0_7, %c0_8] : memref<1x32xf32, #tpu.memory_space<vmem>>, vector<1x32xf32>
    %6 = vector.broadcast %5 : vector<1x32xf32> to vector<256x32xf32>
    %7 = arith.addf %4, %6 : vector<256x32xf32>
    %cst_9 = arith.constant dense<0.000000e+00> : vector<256xf32>
    %8 = vector.multi_reduction <add>, %7, %cst_9 [1] : vector<256x32xf32> to vector<256xf32>
    %9 = vector.shape_cast %8 : vector<256xf32> to vector<256x1xf32>
    %cst_10 = arith.constant 3.200000e+01 : f32
    %10 = vector.broadcast %cst_10 : f32 to vector<256x1xf32>
    %11 = arith.divf %9, %10 : vector<256x1xf32>
    %12 = vector.broadcast %11 : vector<256x1xf32> to vector<256x32xf32>
    %13 = arith.subf %7, %12 : vector<256x32xf32>
    %14 = arith.mulf %13, %13 : vector<256x32xf32>
    %cst_11 = arith.constant dense<0.000000e+00> : vector<256xf32>
    %15 = vector.multi_reduction <add>, %14, %cst_11 [1] : vector<256x32xf32> to vector<256xf32>
    %16 = vector.shape_cast %15 : vector<256xf32> to vector<256x1xf32>
    %cst_12 = arith.constant 3.200000e+01 : f32
    %17 = vector.broadcast %cst_12 : f32 to vector<256x1xf32>
    %18 = arith.divf %16, %17 : vector<256x1xf32>
    %19 = vector.broadcast %11 : vector<256x1xf32> to vector<256x32xf32>
    %20 = arith.subf %7, %19 : vector<256x32xf32>
    %cst_13 = arith.constant 9.99999974E-6 : f32
    %21 = vector.broadcast %cst_13 : f32 to vector<256x1xf32>
    %22 = arith.addf %18, %21 : vector<256x1xf32>
    %23 = math.rsqrt %22 : vector<256x1xf32>
    %24 = vector.broadcast %23 : vector<256x1xf32> to vector<256x32xf32>
    %25 = arith.mulf %20, %24 : vector<256x32xf32>
    %c0_14 = arith.constant 0 : index
    %c0_15 = arith.constant 0 : index
    %26 = vector.load %arg4[%c0_14, %c0_15] : memref<1x32xf32, #tpu.memory_space<vmem>>, vector<1x32xf32>
    %27 = vector.broadcast %26 : vector<1x32xf32> to vector<256x32xf32>
    %28 = arith.mulf %25, %27 : vector<256x32xf32>
    %c0_16 = arith.constant 0 : index
    %c0_17 = arith.constant 0 : index
    %29 = vector.load %arg5[%c0_16, %c0_17] : memref<1x32xf32, #tpu.memory_space<vmem>>, vector<1x32xf32>
    %30 = vector.broadcast %29 : vector<1x32xf32> to vector<256x32xf32>
    %31 = arith.addf %28, %30 : vector<256x32xf32>
    %cst_18 = arith.constant 0.000000e+00 : f32
    %32 = vector.broadcast %cst_18 : f32 to vector<256x32xf32>
    %33 = arith.maximumf %31, %32 : vector<256x32xf32>
    %34 = vector.shape_cast %33 : vector<256x32xf32> to vector<4x64x32xf32>
    %c0_19 = arith.constant 0 : index
    %c8 = arith.constant 8 : index
    %c0_20 = arith.constant 0 : index
    %35 = vector.load %arg15[%c0_19, %c8, %c0_20] : memref<4x74x32xf32, #tpu.memory_space<vmem>>, vector<4x64x32xf32>
    tpu.vector_store %arg15[%c0_19, %c8, %c0_20], %34 {strides = array<i32>} : memref<4x74x32xf32, #tpu.memory_space<vmem>>, vector<4x64x32xf32>,
    %c0_21 = arith.constant 0 : index
    %c7 = arith.constant 7 : index
    %c0_22 = arith.constant 0 : index
    %36 = vector.load %arg15[%c0_21, %c7, %c0_22] : memref<4x74x32xf32, #tpu.memory_space<vmem>>, vector<4x64x32xf32>
    %37 = vector.shape_cast %36 : vector<4x64x32xf32> to vector<256x32xf32>
    %c0_23 = arith.constant 0 : index
    %c0_24 = arith.constant 0 : index
    %38 = vector.load %arg16[%c0_23, %c0_24] : memref<256x160xf32, #tpu.memory_space<vmem>>, vector<256x32xf32>
    tpu.vector_store %arg16[%c0_23, %c0_24], %37 {strides = array<i32>} : memref<256x160xf32, #tpu.memory_space<vmem>>, vector<256x32xf32>,
    %c0_25 = arith.constant 0 : index
    %c8_26 = arith.constant 8 : index
    %c0_27 = arith.constant 0 : index
    %39 = vector.load %arg15[%c0_25, %c8_26, %c0_27] : memref<4x74x32xf32, #tpu.memory_space<vmem>>, vector<4x64x32xf32>
    %40 = vector.shape_cast %39 : vector<4x64x32xf32> to vector<256x32xf32>
    %c0_28 = arith.constant 0 : index
    %c32 = arith.constant 32 : index
    %41 = vector.load %arg16[%c0_28, %c32] : memref<256x160xf32, #tpu.memory_space<vmem>>, vector<256x32xf32>
    tpu.vector_store %arg16[%c0_28, %c32], %40 {strides = array<i32>} : memref<256x160xf32, #tpu.memory_space<vmem>>, vector<256x32xf32>,
    %c0_29 = arith.constant 0 : index
    %c9 = arith.constant 9 : index
    %c0_30 = arith.constant 0 : index
    %42 = vector.load %arg15[%c0_29, %c9, %c0_30] : memref<4x74x32xf32, #tpu.memory_space<vmem>>, vector<4x64x32xf32>
    %43 = vector.shape_cast %42 : vector<4x64x32xf32> to vector<256x32xf32>
    %c0_31 = arith.constant 0 : index
    %c64 = arith.constant 64 : index
    %44 = vector.load %arg16[%c0_31, %c64] : memref<256x160xf32, #tpu.memory_space<vmem>>, vector<256x32xf32>
    tpu.vector_store %arg16[%c0_31, %c64], %43 {strides = array<i32>} : memref<256x160xf32, #tpu.memory_space<vmem>>, vector<256x32xf32>,
    %c0_32 = arith.constant 0 : index
    %c0_33 = arith.constant 0 : index
    %45 = vector.load %arg16[%c0_32, %c0_33] : memref<256x160xf32, #tpu.memory_space<vmem>>, vector<256x96xf32>
    %c0_34 = arith.constant 0 : index
    %c0_35 = arith.constant 0 : index
    %46 = vector.load %arg6[%c0_34, %c0_35] : memref<96x32xf32, #tpu.memory_space<vmem>>, vector<96x32xf32>
    %cst_36 = arith.constant dense<0.000000e+00> : vector<256x32xf32>
    %47 = tpu.matmul %45, %46, %cst_36 {dimension_numbers = #tpu.dot_dimension_numbers<[1], [0], [0], [1], [0, 0, 1, 1], [], []>} : vector<256x96xf32>, vector<96x32xf32>, vector<256x32xf32> -> vector<256x32xf32>
    %c0_37 = arith.constant 0 : index
    %c0_38 = arith.constant 0 : index
    %48 = vector.load %arg7[%c0_37, %c0_38] : memref<1x32xf32, #tpu.memory_space<vmem>>, vector<1x32xf32>
    %49 = vector.broadcast %48 : vector<1x32xf32> to vector<256x32xf32>
    %50 = arith.addf %47, %49 : vector<256x32xf32>
    %cst_39 = arith.constant dense<0.000000e+00> : vector<256xf32>
    %51 = vector.multi_reduction <add>, %50, %cst_39 [1] : vector<256x32xf32> to vector<256xf32>
    %52 = vector.shape_cast %51 : vector<256xf32> to vector<256x1xf32>
    %cst_40 = arith.constant 3.200000e+01 : f32
    %53 = vector.broadcast %cst_40 : f32 to vector<256x1xf32>
    %54 = arith.divf %52, %53 : vector<256x1xf32>
    %55 = vector.broadcast %54 : vector<256x1xf32> to vector<256x32xf32>
    %56 = arith.subf %50, %55 : vector<256x32xf32>
    %57 = arith.mulf %56, %56 : vector<256x32xf32>
    %cst_41 = arith.constant dense<0.000000e+00> : vector<256xf32>
    %58 = vector.multi_reduction <add>, %57, %cst_41 [1] : vector<256x32xf32> to vector<256xf32>
    %59 = vector.shape_cast %58 : vector<256xf32> to vector<256x1xf32>
    %cst_42 = arith.constant 3.200000e+01 : f32
    %60 = vector.broadcast %cst_42 : f32 to vector<256x1xf32>
    %61 = arith.divf %59, %60 : vector<256x1xf32>
    %62 = vector.broadcast %54 : vector<256x1xf32> to vector<256x32xf32>
    %63 = arith.subf %50, %62 : vector<256x32xf32>
    %cst_43 = arith.constant 9.99999974E-6 : f32
    %64 = vector.broadcast %cst_43 : f32 to vector<256x1xf32>
    %65 = arith.addf %61, %64 : vector<256x1xf32>
    %66 = math.rsqrt %65 : vector<256x1xf32>
    %67 = vector.broadcast %66 : vector<256x1xf32> to vector<256x32xf32>
    %68 = arith.mulf %63, %67 : vector<256x32xf32>
    %c0_44 = arith.constant 0 : index
    %c0_45 = arith.constant 0 : index
    %69 = vector.load %arg8[%c0_44, %c0_45] : memref<1x32xf32, #tpu.memory_space<vmem>>, vector<1x32xf32>
    %70 = vector.broadcast %69 : vector<1x32xf32> to vector<256x32xf32>
    %71 = arith.mulf %68, %70 : vector<256x32xf32>
    %c0_46 = arith.constant 0 : index
    %c0_47 = arith.constant 0 : index
    %72 = vector.load %arg9[%c0_46, %c0_47] : memref<1x32xf32, #tpu.memory_space<vmem>>, vector<1x32xf32>
    %73 = vector.broadcast %72 : vector<1x32xf32> to vector<256x32xf32>
    %74 = arith.addf %71, %73 : vector<256x32xf32>
    %cst_48 = arith.constant 0.000000e+00 : f32
    %75 = vector.broadcast %cst_48 : f32 to vector<256x32xf32>
    %76 = arith.maximumf %74, %75 : vector<256x32xf32>
    %77 = vector.shape_cast %76 : vector<256x32xf32> to vector<4x64x32xf32>
    %c0_49 = arith.constant 0 : index
    %c8_50 = arith.constant 8 : index
    %c0_51 = arith.constant 0 : index
    %78 = vector.load %arg15[%c0_49, %c8_50, %c0_51] : memref<4x74x32xf32, #tpu.memory_space<vmem>>, vector<4x64x32xf32>
    tpu.vector_store %arg15[%c0_49, %c8_50, %c0_51], %77 {strides = array<i32>} : memref<4x74x32xf32, #tpu.memory_space<vmem>>, vector<4x64x32xf32>,
    %c0_52 = arith.constant 0 : index
    %c6 = arith.constant 6 : index
    %c0_53 = arith.constant 0 : index
    %79 = vector.load %arg15[%c0_52, %c6, %c0_53] : memref<4x74x32xf32, #tpu.memory_space<vmem>>, vector<4x64x32xf32>
    %80 = vector.shape_cast %79 : vector<4x64x32xf32> to vector<256x32xf32>
    %c0_54 = arith.constant 0 : index
    %c0_55 = arith.constant 0 : index
    %81 = vector.load %arg16[%c0_54, %c0_55] : memref<256x160xf32, #tpu.memory_space<vmem>>, vector<256x32xf32>
    tpu.vector_store %arg16[%c0_54, %c0_55], %80 {strides = array<i32>} : memref<256x160xf32, #tpu.memory_space<vmem>>, vector<256x32xf32>,
    %c0_56 = arith.constant 0 : index
    %c7_57 = arith.constant 7 : index
    %c0_58 = arith.constant 0 : index
    %82 = vector.load %arg15[%c0_56, %c7_57, %c0_58] : memref<4x74x32xf32, #tpu.memory_space<vmem>>, vector<4x64x32xf32>
    %83 = vector.shape_cast %82 : vector<4x64x32xf32> to vector<256x32xf32>
    %c0_59 = arith.constant 0 : index
    %c32_60 = arith.constant 32 : index
    %84 = vector.load %arg16[%c0_59, %c32_60] : memref<256x160xf32, #tpu.memory_space<vmem>>, vector<256x32xf32>
    tpu.vector_store %arg16[%c0_59, %c32_60], %83 {strides = array<i32>} : memref<256x160xf32, #tpu.memory_space<vmem>>, vector<256x32xf32>,
    %c0_61 = arith.constant 0 : index
    %c8_62 = arith.constant 8 : index
    %c0_63 = arith.constant 0 : index
    %85 = vector.load %arg15[%c0_61, %c8_62, %c0_63] : memref<4x74x32xf32, #tpu.memory_space<vmem>>, vector<4x64x32xf32>
    %86 = vector.shape_cast %85 : vector<4x64x32xf32> to vector<256x32xf32>
    %c0_64 = arith.constant 0 : index
    %c64_65 = arith.constant 64 : index
    %87 = vector.load %arg16[%c0_64, %c64_65] : memref<256x160xf32, #tpu.memory_space<vmem>>, vector<256x32xf32>
    tpu.vector_store %arg16[%c0_64, %c64_65], %86 {strides = array<i32>} : memref<256x160xf32, #tpu.memory_space<vmem>>, vector<256x32xf32>,
    %c0_66 = arith.constant 0 : index
    %c9_67 = arith.constant 9 : index
    %c0_68 = arith.constant 0 : index
    %88 = vector.load %arg15[%c0_66, %c9_67, %c0_68] : memref<4x74x32xf32, #tpu.memory_space<vmem>>, vector<4x64x32xf32>
    %89 = vector.shape_cast %88 : vector<4x64x32xf32> to vector<256x32xf32>
    %c0_69 = arith.constant 0 : index
    %c96 = arith.constant 96 : index
    %90 = vector.load %arg16[%c0_69, %c96] : memref<256x160xf32, #tpu.memory_space<vmem>>, vector<256x32xf32>
    tpu.vector_store %arg16[%c0_69, %c96], %89 {strides = array<i32>} : memref<256x160xf32, #tpu.memory_space<vmem>>, vector<256x32xf32>,
    %c0_70 = arith.constant 0 : index
    %c10 = arith.constant 10 : index
    %c0_71 = arith.constant 0 : index
    %91 = vector.load %arg15[%c0_70, %c10, %c0_71] : memref<4x74x32xf32, #tpu.memory_space<vmem>>, vector<4x64x32xf32>
    %92 = vector.shape_cast %91 : vector<4x64x32xf32> to vector<256x32xf32>
    %c0_72 = arith.constant 0 : index
    %c128 = arith.constant 128 : index
    %93 = vector.load %arg16[%c0_72, %c128] : memref<256x160xf32, #tpu.memory_space<vmem>>, vector<256x32xf32>
    tpu.vector_store %arg16[%c0_72, %c128], %92 {strides = array<i32>} : memref<256x160xf32, #tpu.memory_space<vmem>>, vector<256x32xf32>,
    %c0_73 = arith.constant 0 : index
    %c0_74 = arith.constant 0 : index
    %94 = vector.load %arg16[%c0_73, %c0_74] : memref<256x160xf32, #tpu.memory_space<vmem>>, vector<256x160xf32>
    %c0_75 = arith.constant 0 : index
    %c0_76 = arith.constant 0 : index
    %95 = vector.load %arg10[%c0_75, %c0_76] : memref<160x32xf32, #tpu.memory_space<vmem>>, vector<160x32xf32>
    %cst_77 = arith.constant dense<0.000000e+00> : vector<256x32xf32>
    %96 = tpu.matmul %94, %95, %cst_77 {dimension_numbers = #tpu.dot_dimension_numbers<[1], [0], [0], [1], [0, 0, 1, 1], [], []>} : vector<256x160xf32>, vector<160x32xf32>, vector<256x32xf32> -> vector<256x32xf32>
    %c0_78 = arith.constant 0 : index
    %c0_79 = arith.constant 0 : index
    %97 = vector.load %arg11[%c0_78, %c0_79] : memref<1x32xf32, #tpu.memory_space<vmem>>, vector<1x32xf32>
    %98 = vector.broadcast %97 : vector<1x32xf32> to vector<256x32xf32>
    %99 = arith.addf %96, %98 : vector<256x32xf32>
    %cst_80 = arith.constant dense<0.000000e+00> : vector<256xf32>
    %100 = vector.multi_reduction <add>, %99, %cst_80 [1] : vector<256x32xf32> to vector<256xf32>
    %101 = vector.shape_cast %100 : vector<256xf32> to vector<256x1xf32>
    %cst_81 = arith.constant 3.200000e+01 : f32
    %102 = vector.broadcast %cst_81 : f32 to vector<256x1xf32>
    %103 = arith.divf %101, %102 : vector<256x1xf32>
    %104 = vector.broadcast %103 : vector<256x1xf32> to vector<256x32xf32>
    %105 = arith.subf %99, %104 : vector<256x32xf32>
    %106 = arith.mulf %105, %105 : vector<256x32xf32>
    %cst_82 = arith.constant dense<0.000000e+00> : vector<256xf32>
    %107 = vector.multi_reduction <add>, %106, %cst_82 [1] : vector<256x32xf32> to vector<256xf32>
    %108 = vector.shape_cast %107 : vector<256xf32> to vector<256x1xf32>
    %cst_83 = arith.constant 3.200000e+01 : f32
    %109 = vector.broadcast %cst_83 : f32 to vector<256x1xf32>
    %110 = arith.divf %108, %109 : vector<256x1xf32>
    %111 = vector.broadcast %103 : vector<256x1xf32> to vector<256x32xf32>
    %112 = arith.subf %99, %111 : vector<256x32xf32>
    %cst_84 = arith.constant 9.99999974E-6 : f32
    %113 = vector.broadcast %cst_84 : f32 to vector<256x1xf32>
    %114 = arith.addf %110, %113 : vector<256x1xf32>
    %115 = math.rsqrt %114 : vector<256x1xf32>
    %116 = vector.broadcast %115 : vector<256x1xf32> to vector<256x32xf32>
    %117 = arith.mulf %112, %116 : vector<256x32xf32>
    %c0_85 = arith.constant 0 : index
    %c0_86 = arith.constant 0 : index
    %118 = vector.load %arg12[%c0_85, %c0_86] : memref<1x32xf32, #tpu.memory_space<vmem>>, vector<1x32xf32>
    %119 = vector.broadcast %118 : vector<1x32xf32> to vector<256x32xf32>
    %120 = arith.mulf %117, %119 : vector<256x32xf32>
    %c0_87 = arith.constant 0 : index
    %c0_88 = arith.constant 0 : index
    %121 = vector.load %arg13[%c0_87, %c0_88] : memref<1x32xf32, #tpu.memory_space<vmem>>, vector<1x32xf32>
    %122 = vector.broadcast %121 : vector<1x32xf32> to vector<256x32xf32>
    %123 = arith.addf %120, %122 : vector<256x32xf32>
    %cst_89 = arith.constant 0.000000e+00 : f32
    %124 = vector.broadcast %cst_89 : f32 to vector<256x32xf32>
    %125 = arith.maximumf %123, %124 : vector<256x32xf32>
    %126 = arith.addf %125, %33 : vector<256x32xf32>
    %c0_90 = arith.constant 0 : index
    %c0_91 = arith.constant 0 : index
    %127 = vector.load %arg14[%c0_90, %c0_91] : memref<256x32xf32, #tpu.memory_space<vmem>>, vector<256x32xf32>
    tpu.vector_store %arg14[%c0_90, %c0_91], %126 {strides = array<i32>} : memref<256x32xf32, #tpu.memory_space<vmem>>, vector<256x32xf32>,
    return
  }
  func.func @transform_0(%arg0: i32) -> (i32, i32) {
    %c0_i32 = arith.constant 0 : i32
    %c0_i32_0 = arith.constant 0 : i32
    return %arg0, %c0_i32 : i32, i32
  }
  func.func @transform_1(%arg0: i32) -> (i32, i32) {
    %c0_i32 = arith.constant 0 : i32
    %c0_i32_0 = arith.constant 0 : i32
    %c0_i32_1 = arith.constant 0 : i32
    return %c0_i32, %c0_i32_0 : i32, i32
  }
  func.func @transform_2(%arg0: i32) -> (i32, i32) {
    %c0_i32 = arith.constant 0 : i32
    %c0_i32_0 = arith.constant 0 : i32
    %c0_i32_1 = arith.constant 0 : i32
    return %c0_i32, %c0_i32_0 : i32, i32
  }
  func.func @transform_3(%arg0: i32) -> (i32, i32) {
    %c0_i32 = arith.constant 0 : i32
    %c0_i32_0 = arith.constant 0 : i32
    %c0_i32_1 = arith.constant 0 : i32
    return %c0_i32, %c0_i32_0 : i32, i32
  }
  func.func @transform_4(%arg0: i32) -> (i32, i32) {
    %c0_i32 = arith.constant 0 : i32
    %c0_i32_0 = arith.constant 0 : i32
    %c0_i32_1 = arith.constant 0 : i32
    return %c0_i32, %c0_i32_0 : i32, i32
  }
  func.func @transform_5(%arg0: i32) -> (i32, i32) {
    %c0_i32 = arith.constant 0 : i32
    %c0_i32_0 = arith.constant 0 : i32
    %c0_i32_1 = arith.constant 0 : i32
    return %c0_i32, %c0_i32_0 : i32, i32
  }
  func.func @transform_6(%arg0: i32) -> (i32, i32) {
    %c0_i32 = arith.constant 0 : i32
    %c0_i32_0 = arith.constant 0 : i32
    %c0_i32_1 = arith.constant 0 : i32
    return %c0_i32, %c0_i32_0 : i32, i32
  }
  func.func @transform_7(%arg0: i32) -> (i32, i32) {
    %c0_i32 = arith.constant 0 : i32
    %c0_i32_0 = arith.constant 0 : i32
    %c0_i32_1 = arith.constant 0 : i32
    return %c0_i32, %c0_i32_0 : i32, i32
  }
  func.func @transform_8(%arg0: i32) -> (i32, i32) {
    %c0_i32 = arith.constant 0 : i32
    %c0_i32_0 = arith.constant 0 : i32
    %c0_i32_1 = arith.constant 0 : i32
    return %c0_i32, %c0_i32_0 : i32, i32
  }
  func.func @transform_9(%arg0: i32) -> (i32, i32) {
    %c0_i32 = arith.constant 0 : i32
    %c0_i32_0 = arith.constant 0 : i32
    %c0_i32_1 = arith.constant 0 : i32
    return %c0_i32, %c0_i32_0 : i32, i32
  }
  func.func @transform_10(%arg0: i32) -> (i32, i32) {
    %c0_i32 = arith.constant 0 : i32
    %c0_i32_0 = arith.constant 0 : i32
    %c0_i32_1 = arith.constant 0 : i32
    return %c0_i32, %c0_i32_0 : i32, i32
  }
  func.func @transform_11(%arg0: i32) -> (i32, i32) {
    %c0_i32 = arith.constant 0 : i32
    %c0_i32_0 = arith.constant 0 : i32
    %c0_i32_1 = arith.constant 0 : i32
    return %c0_i32, %c0_i32_0 : i32, i32
  }
  func.func @transform_12(%arg0: i32) -> (i32, i32) {
    %c0_i32 = arith.constant 0 : i32
    %c0_i32_0 = arith.constant 0 : i32
    %c0_i32_1 = arith.constant 0 : i32
    return %c0_i32, %c0_i32_0 : i32, i32
  }
  func.func @transform_13(%arg0: i32) -> (i32, i32) {
    %c0_i32 = arith.constant 0 : i32
    %c0_i32_0 = arith.constant 0 : i32
    return %arg0, %c0_i32 : i32, i32
  }
}

</mosaic_0001>

<bundles_post_ra>
// kernel: tpu_custom_call.1
= control target key start
LH: loop header
LB: loop body
LE: loop exit
PB: predicated region body
PF: predicated region fallthrough
CT: control target
= control target key end

     0   :  { %s5602_s25 = smov 0   ;;  %s8708_s0 = inlined_call_operand.vmem [shape: f32[512,16], index: 0, kind: input, shape index: {}]   ;;  %s8709_s1 = inlined_call_operand.vmem [shape: f32[16,32], index: 1, kind: input, shape index: {}]   ;;  %s8710_s2 = inlined_call_operand.vmem [shape: f32[1,32], index: 2, kind: input, shape index: {}]   ;;  %s8711_s3 = inlined_call_operand.vmem [shape: f32[1,32], index: 3, kind: input, shape index: {}]   ;;  %s8712_s4 = inlined_call_operand.vmem [shape: f32[1,32], index: 4, kind: input, shape index: {}]   ;;  %s8713_s5 = inlined_call_operand.vmem [shape: f32[96,32], index: 5, kind: input, shape index: {}]   ;;  %s8714_s6 = inlined_call_operand.vmem [shape: f32[1,32], index: 6, kind: input, shape index: {}]   ;;  %s8715_s7 = inlined_call_operand.vmem [shape: f32[1,32], index: 7, kind: input, shape index: {}]   ;;  %s8716_s8 = inlined_call_operand.vmem [shape: f32[1,32], index: 8, kind: input, shape index: {}]   ;;  %s8717_s9 = inlined_call_operand.vmem [shape: f32[160,32], index: 9, kind: input, shape index: {}]   ;;  %s8718_s10 = inlined_call_operand.vmem [shape: f32[1,32], index: 10, kind: input, shape index: {}]   ;;  %s8719_s11 = inlined_call_operand.vmem [shape: f32[1,32], index: 11, kind: input, shape index: {}]   ;;  %s8720_s12 = inlined_call_operand.vmem [shape: f32[1,32], index: 12, kind: input, shape index: {}]   ;;  %s8721_s13 = inlined_call_operand.vmem [shape: f32[512,32], index: 13, kind: output, shape index: {}]  }
   0x1 LB: > { %s5172_s26 = sadd.s32 4294967295, %s5525_s25   ;;  %p5176_p0 = scmp.ge.s32.totalorder %s5525_s25, 1  ;;  %s5525_s25 = sphi %s5602_s25, %s23_s25  }
   0x2   : > { %p388_p1 = scmp.lt.s32.totalorder %s5525_s25, 3 }
   0x4   : > { %p389_p2 = pnand %p5176_p0, %p388_p1 }
   0x6   : > { %392 = sbr.rel (%p389_p2) target bundleno = 2446 (0x98e), region = 72 }
   0xb   : > { %v519_v0 = vld [vmem:[%s8709_s1 + $0x8] sm:$0xff]  ;;  %v518_v1 = vld [vmem:[%s8709_s1] sm:$0xff]  ;;  %s5177_s14 = sshll.u32 %s5172_s26, 5  ;;  %vm524_vm0 = vcmask 130048   ;;  %vm444_vm1 = vcmask 261120   ;;  %s5529_s26 = smov 32  }
   0xc   : > { %635 = vmatpush.msra.mxu0 %v519_v0  ;;  %p433_p3 = scmp.lt.s32.totalorder %s5177_s14, 63  ;;  %v5661_v18 = vld [vmem:[%s8710_s2] ss:$0 sm:$0xff]  ;;  %s5530_s27 = smov 64  }
   0xd   : > { %s5531_s19 = smov 96  }
   0xe   : > { %636 = vmatpush.msra.mxu0 %v518_v1  ;;  %s8886_s14 = smov (!%p433_p3, %s5177_s14), 63 }
   0xf   : > { %s5178_s15 = sshll.u32 %s8886_s14, 3 }
  0x10   : > { %s5624_s18 = scalar_lea.vmem %s8708_s0, %s5178_s15  ;;  %s8153_s21 = scalar_lea.vmem %s8721_s13, %s5178_s15 }
  0x11   : > { %v486_v2 = vld [vmem:[%s5624_s18] sm:$0xff]  ;;  %v487_v3 = vld [vmem:[%s5624_s18 + $0x8] sm:$0xff]  ;;  %v488_v4 = vld [vmem:[%s5624_s18 + $0x10] sm:$0xff] }
  0x12   : > { %5181 = vmatmul.msk.f32.vlgmr.msra.gmra.mxu0 %vm524_vm0, %v486_v2  ;;  %v489_v5 = vld [vmem:[%s5624_s18 + $0x18] sm:$0xff]  ;;  %v490_v6 = vld [vmem:[%s5624_s18 + $0x20] sm:$0xff]  ;;  %v491_v7 = vld [vmem:[%s5624_s18 + $0x28] sm:$0xff] }
  0x13   : > { %v492_v8 = vld [vmem:[%s5624_s18 + $0x30] sm:$0xff]  ;;  %v493_v9 = vld [vmem:[%s5624_s18 + $0x38] sm:$0xff]  ;;  %v494_v10 = vld [vmem:[%s5624_s18 + $0x40] sm:$0xff] }
  0x14   : > { %v495_v11 = vld [vmem:[%s5624_s18 + $0x48] sm:$0xff]  ;;  %v496_v12 = vld [vmem:[%s5624_s18 + $0x50] sm:$0xff]  ;;  %v497_v13 = vld [vmem:[%s5624_s18 + $0x58] sm:$0xff] }
  0x15   : > { %v498_v14 = vld [vmem:[%s5624_s18 + $0x60] sm:$0xff]  ;;  %v499_v15 = vld [vmem:[%s5624_s18 + $0x68] sm:$0xff]  ;;  %v500_v16 = vld [vmem:[%s5624_s18 + $0x70] sm:$0xff] }
  0x16   : > { %v501_v17 = vld [vmem:[%s5624_s18 + $0x78] sm:$0xff]  ;;  %v502_v20 = vld [vmem:[%s5624_s18 + $0x80] sm:$0xff]  ;;  %v503_v24 = vld [vmem:[%s5624_s18 + $0x88] sm:$0xff] }
  0x17   : > { %v504_v28 = vld [vmem:[%s5624_s18 + $0x90] sm:$0xff]  ;;  %v505_v32 = vld [vmem:[%s5624_s18 + $0x98] sm:$0xff]  ;;  %v506_v36 = vld [vmem:[%s5624_s18 + $0xa0] sm:$0xff] }
  0x18   : > { %v507_v40 = vld [vmem:[%s5624_s18 + $0xa8] sm:$0xff]  ;;  %v508_v44 = vld [vmem:[%s5624_s18 + $0xb0] sm:$0xff]  ;;  %v509_v48 = vld [vmem:[%s5624_s18 + $0xb8] sm:$0xff] }
  0x19   : > { %v510_v52 = vld [vmem:[%s5624_s18 + $0xc0] sm:$0xff]  ;;  %v511_v56 = vld [vmem:[%s5624_s18 + $0xc8] sm:$0xff]  ;;  %v512_v60 = vld [vmem:[%s5624_s18 + $0xd0] sm:$0xff] }
  0x1a   : > { %5182 = vmatmul.msk.f32.gmra.mxu0 %vm524_vm0, %v487_v3  ;;  %v513_v0 = vld [vmem:[%s5624_s18 + $0xd8] sm:$0xff]  ;;  %v5527_v3 = vmov 32.0  }
  0x1b   : > { %5317 = vrcp.f32 %v5527_v3 }
  0x22   : > { %5183 = vmatmul.msk.f32.gmra.mxu0 %vm524_vm0, %v488_v4 }
  0x2a   : > { %5184 = vmatmul.msk.f32.gmra.mxu0 %vm524_vm0, %v489_v5  ;;  %v514_v5 = vld [vmem:[%s5624_s18 + $0xe0] sm:$0xff] }
  0x32   : > { %5185 = vmatmul.msk.f32.gmra.mxu0 %vm524_vm0, %v490_v6 }
  0x3a   : > { %5186 = vmatmul.msk.f32.gmra.mxu0 %vm524_vm0, %v491_v7  ;;  %v5318_v7 = vpop.eup %5317 }
  0x3b   : > { %vm835_vm2 = vweird.f32 %v5318_v7 }
  0x42   : > { %5187 = vmatmul.msk.f32.gmra.mxu0 %vm524_vm0, %v492_v8 }
  0x4a   : > { %5188 = vmatmul.msk.f32.gmra.mxu0 %vm524_vm0, %v493_v9  ;;  %v831_v9 = vmul.f32 32.0, %v5318_v7 }
  0x52   : > { %5189 = vmatmul.msk.f32.gmra.mxu0 %vm524_vm0, %v494_v10 }
  0x5a   : > { %5190 = vmatmul.msk.f32.gmra.mxu0 %vm524_vm0, %v495_v11  ;;  %v515_v11 = vld [vmem:[%s5624_s18 + $0xe8] sm:$0xff] }
  0x62   : > { %5191 = vmatmul.msk.f32.gmra.mxu0 %vm524_vm0, %v496_v12 }
  0x6a   : > { %5192 = vmatmul.msk.f32.gmra.mxu0 %vm524_vm0, %v497_v13  ;;  %v832_v13 = vsub.f32 1.0, %v831_v9 }
  0x72   : > { %5193 = vmatmul.msk.f32.gmra.mxu0 %vm524_vm0, %v498_v14 }
  0x7a   : > { %5194 = vmatmul.msk.f32.gmra.mxu0 %vm524_vm0, %v499_v15  ;;  %v833_v15 = vmul.f32 %v5318_v7, %v832_v13 }
  0x82   : > { %5195 = vmatmul.msk.f32.gmra.mxu0 %vm524_vm0, %v500_v16 }
  0x8a   : > { %5196 = vmatmul.msk.f32.gmra.mxu0 %vm524_vm0, %v501_v17  ;;  %v516_v17 = vld [vmem:[%s5624_s18 + $0xf0] sm:$0xff] }
  0x8f   : > { %v638_v19 = vpop.f32.mrf.mxu0 }
  0x90   : > { %v5665_v21 = vadd.f32 %v5661_v18, %v638_v19 }
  0x92   : > { %5197 = vmatmul.msk.f32.gmra.mxu0 %vm524_vm0, %v502_v20  ;;  %v734_v22 = vsel %vm444_vm1, %v5665_v21, 0.0  ;;  %v834_v20 = vadd.f32 %v5318_v7, %v833_v15 }
  0x93   : > { %735 = vadd.xlane.f32.xlu0 %v734_v22 }
  0x97   : > { %v641_v23 = vpop.f32.mrf.mxu0 }
  0x98   : > { %v5672_v25 = vadd.f32 %v5661_v18, %v641_v23  ;;  %v5768_v23 = vsel %vm835_vm2, %v5318_v7, %v834_v20 }
  0x9a   : > { %5198 = vmatmul.msk.f32.gmra.mxu0 %vm524_vm0, %v503_v24  ;;  %v737_v26 = vsel %vm444_vm1, %v5672_v25, 0.0 }
  0x9b   : > { %738 = vadd.xlane.f32.xlu0 %v737_v26 }
  0x9f   : > { %v644_v27 = vpop.f32.mrf.mxu0 }
  0xa0   : > { %v5679_v29 = vadd.f32 %v5661_v18, %v644_v27 }
  0xa2   : > { %5199 = vmatmul.msk.f32.gmra.mxu0 %vm524_vm0, %v504_v28  ;;  %v740_v30 = vsel %vm444_vm1, %v5679_v29, 0.0  ;;  %v517_v28 = vld [vmem:[%s5624_s18 + $0xf8] sm:$0xff] }
  0xa3   : > { %741 = vadd.xlane.f32.xlu1 %v740_v30 }
  0xa7   : > { %v647_v31 = vpop.f32.mrf.mxu0 }
  0xa8   : > { %v5686_v33 = vadd.f32 %v5661_v18, %v647_v31 }
  0xaa   : > { %5200 = vmatmul.msk.f32.gmra.mxu0 %vm524_vm0, %v505_v32  ;;  %v743_v34 = vsel %vm444_vm1, %v5686_v33, 0.0 }
  0xab   : > { %744 = vadd.xlane.f32.xlu1 %v743_v34 }
  0xaf   : > { %v650_v35 = vpop.f32.mrf.mxu0 }
  0xb0   : > { %v5693_v37 = vadd.f32 %v5661_v18, %v650_v35 }
  0xb2   : > { %5201 = vmatmul.msk.f32.gmra.mxu0 %vm524_vm0, %v506_v36  ;;  %v746_v38 = vsel %vm444_vm1, %v5693_v37, 0.0 }
  0xb3   : > { %747 = vadd.xlane.f32.xlu2 %v746_v38 }
  0xb7   : > { %v653_v39 = vpop.f32.mrf.mxu0 }
  0xb8   : > { %v5700_v41 = vadd.f32 %v5661_v18, %v653_v39 }
  0xba   : > { %5202 = vmatmul.msk.f32.gmra.mxu0 %vm524_vm0, %v507_v40  ;;  %v749_v42 = vsel %vm444_vm1, %v5700_v41, 0.0 }
  0xbb   : > { %750 = vadd.xlane.f32.xlu2 %v749_v42 }
  0xbf   : > { %v656_v43 = vpop.f32.mrf.mxu0 }
  0xc0   : > { %v5707_v45 = vadd.f32 %v5661_v18, %v656_v43 }
  0xc2   : > { %5203 = vmatmul.msk.f32.gmra.mxu0 %vm524_vm0, %v508_v44  ;;  %v752_v46 = vsel %vm444_vm1, %v5707_v45, 0.0 }
  0xc3   : > { %753 = vadd.xlane.f32.xlu0 %v752_v46 }
  0xc7   : > { %v659_v47 = vpop.f32.mrf.mxu0 }
  0xc8   : > { %v5714_v49 = vadd.f32 %v5661_v18, %v659_v47 }
  0xca   : > { %5204 = vmatmul.msk.f32.gmra.mxu0 %vm524_vm0, %v509_v48  ;;  %v755_v50 = vsel %vm444_vm1, %v5714_v49, 0.0 }
  0xcb   : > { %756 = vadd.xlane.f32.xlu1 %v755_v50 }
  0xcf   : > { %v662_v51 = vpop.f32.mrf.mxu0 }
  0xd0   : > { %v5721_v53 = vadd.f32 %v5661_v18, %v662_v51 }
  0xd2   : > { %5205 = vmatmul.msk.f32.gmra.mxu0 %vm524_vm0, %v510_v52  ;;  %v758_v54 = vsel %vm444_vm1, %v5721_v53, 0.0 }
  0xd3   : > { %759 = vadd.xlane.f32.xlu2 %v758_v54 }
  0xd7   : > { %v665_v55 = vpop.f32.mrf.mxu0 }
  0xd8   : > { %v5728_v57 = vadd.f32 %v5661_v18, %v665_v55 }
  0xda   : > { %5206 = vmatmul.msk.f32.gmra.mxu0 %vm524_vm0, %v511_v56  ;;  %v761_v58 = vsel %vm444_vm1, %v5728_v57, 0.0 }
  0xdb   : > { %762 = vadd.xlane.f32.xlu0 %v761_v58 }
  0xdf   : > { %v668_v59 = vpop.f32.mrf.mxu0 }
  0xe0   : > { %v5735_v61 = vadd.f32 %v5661_v18, %v668_v59 }
  0xe2   : > { %5207 = vmatmul.msk.f32.gmra.mxu0 %vm524_vm0, %v512_v60  ;;  %v764_v62 = vsel %vm444_vm1, %v5735_v61, 0.0 }
  0xe3   : > { %765 = vadd.xlane.f32.xlu1 %v764_v62 }
  0xe7   : > { %v671_v63 = vpop.f32.mrf.mxu0 }
  0xe8   : > { %v5742_v1 = vadd.f32 %v5661_v18, %v671_v63 }
  0xea   : > { %5208 = vmatmul.msk.f32.gmra.mxu0 %vm524_vm0, %v513_v0  ;;  %v767_v2 = vsel %vm444_vm1, %v5742_v1, 0.0 }
  0xeb   : > { %768 = vadd.xlane.f32.xlu2 %v767_v2 }
  0xef   : > { %v674_v4 = vpop.f32.mrf.mxu0 }
  0xf0   : > { %v5749_v6 = vadd.f32 %v5661_v18, %v674_v4 }
  0xf2   : > { %5209 = vmatmul.msk.f32.gmra.mxu0 %vm524_vm0, %v514_v5  ;;  %v770_v8 = vsel %vm444_vm1, %v5749_v6, 0.0 }
  0xf3   : > { %771 = vadd.xlane.f32.xlu0 %v770_v8 }
  0xf7   : > { %v677_v10 = vpop.f32.mrf.mxu0 }
  0xf8   : > { %v5756_v12 = vadd.f32 %v5661_v18, %v677_v10 }
  0xfa   : > { %5210 = vmatmul.msk.f32.gmra.mxu0 %vm524_vm0, %v515_v11  ;;  %v773_v14 = vsel %vm444_vm1, %v5756_v12, 0.0 }
  0xfb   : > { %774 = vadd.xlane.f32.xlu1 %v773_v14 }
  0xff   : > { %v680_v16 = vpop.f32.mrf.mxu0 }
 0x100   : > { %v5763_v19 = vadd.f32 %v5661_v18, %v680_v16 }
 0x102   : > { %5211 = vmatmul.msk.f32.gmra.mxu0 %vm524_vm0, %v516_v17  ;;  %v776_v22 = vsel %vm444_vm1, %v5763_v19, 0.0 }
 0x103   : > { %777 = vadd.xlane.f32.xlu2 %v776_v22 }
 0x106   : > { %v736_v24 = vpop.xlane.xlu0 %735 }
 0x107   : > { %v837_v26 = vmul.f32 %v5768_v23, %v736_v24  ;;  %v683_v27 = vpop.f32.mrf.mxu0 }
 0x108   : > { %v5773_v30 = vadd.f32 %v5661_v18, %v683_v27 }
 0x109   : > { %v5776_v31 = vsub.f32 %v5665_v21, %v837_v26 }
 0x10a   : > { %5212 = vmatmul.msk.f32.gmra.mxu0 %vm524_vm0, %v517_v28  ;;  %v779_v32 = vsel %vm444_vm1, %v5773_v30, 0.0 }
 0x10b   : > { %780 = vadd.xlane.f32.xlu0 %v779_v32  ;;  %v901_v34 = vmul.f32 %v5776_v31, %v5776_v31 }
 0x10d   : > { %v933_v35 = vsel %vm444_vm1, %v901_v34, 0.0 }
 0x10e   : > { %934 = vadd.xlane.f32.xlu2 %v933_v35  ;;  %v739_v36 = vpop.xlane.xlu0 %738 }
 0x10f   : > { %v838_v38 = vmul.f32 %v5768_v23, %v739_v36  ;;  %v686_v39 = vpop.f32.mrf.mxu0 }
 0x110   : > { %v5786_v40 = vadd.f32 %v5661_v18, %v686_v39 }
 0x111   : > { %v5789_v21 = vsub.f32 %v5672_v25, %v838_v38 }
 0x112   : > { %v782_v42 = vsel %vm444_vm1, %v5786_v40, 0.0 }
 0x113   : > { %783 = vadd.xlane.f32.xlu1 %v782_v42  ;;  %v902_v43 = vmul.f32 %v5789_v21, %v5789_v21 }
 0x115   : > { %v936_v44 = vsel %vm444_vm1, %v902_v43, 0.0 }
 0x116   : > { %v742_v46 = vpop.xlane.xlu1 %741  ;;  %937 = vadd.xlane.f32.xlu0 %v936_v44 }
 0x117   : > { %v839_v47 = vmul.f32 %v5768_v23, %v742_v46  ;;  %v689_v48 = vpop.f32.mrf.mxu0 }
 0x118   : > { %v5798_v50 = vadd.f32 %v5661_v18, %v689_v48 }
 0x119   : > { %v5801_v25 = vsub.f32 %v5679_v29, %v839_v47 }
 0x11a   : > { %v785_v51 = vsel %vm444_vm1, %v5798_v50, 0.0 }
 0x11b   : > { %786 = vadd.xlane.f32.xlu2 %v785_v51  ;;  %v903_v52 = vmul.f32 %v5801_v25, %v5801_v25 }
 0x11d   : > { %v939_v54 = vsel %vm444_vm1, %v903_v52, 0.0 }
 0x11e   : > { %940 = vadd.xlane.f32.xlu1 %v939_v54  ;;  %v745_v55 = vpop.xlane.xlu1 %744 }
 0x11f   : > { %v840_v56 = vmul.f32 %v5768_v23, %v745_v55  ;;  %v692_v58 = vpop.f32.mrf.mxu0 }
 0x120   : > { %v5810_v59 = vadd.f32 %v5661_v18, %v692_v58 }
 0x121   : > { %v5813_v29 = vsub.f32 %v5686_v33, %v840_v56 }
 0x122   : > { %v788_v60 = vsel %vm444_vm1, %v5810_v59, 0.0 }
 0x123   : > { %789 = vadd.xlane.f32.xlu0 %v788_v60  ;;  %v904_v62 = vmul.f32 %v5813_v29, %v5813_v29 }
 0x125   : > { %v942_v63 = vsel %vm444_vm1, %v904_v62, 0.0 }
 0x126   : > { %v748_v0 = vpop.xlane.xlu2 %747  ;;  %943 = vadd.xlane.f32.xlu2 %v942_v63 }
 0x127   : > { %v841_v2 = vmul.f32 %v5768_v23, %v748_v0  ;;  %v695_v3 = vpop.f32.mrf.mxu0 }
 0x128   : > { %v5822_v4 = vadd.f32 %v5661_v18, %v695_v3 }
 0x129   : > { %v5825_v33 = vsub.f32 %v5693_v37, %v841_v2 }
 0x12a   : > { %v791_v5 = vsel %vm444_vm1, %v5822_v4, 0.0 }
 0x12b   : > { %792 = vadd.xlane.f32.xlu1 %v791_v5  ;;  %v905_v7 = vmul.f32 %v5825_v33, %v5825_v33 }
 0x12d   : > { %v945_v8 = vsel %vm444_vm1, %v905_v7, 0.0 }
 0x12e   : > { %v751_v9 = vpop.xlane.xlu2 %750  ;;  %946 = vadd.xlane.f32.xlu0 %v945_v8 }
 0x12f   : > { %v842_v10 = vmul.f32 %v5768_v23, %v751_v9  ;;  %v698_v11 = vpop.f32.mrf.mxu0 }
 0x130   : > { %v5834_v13 = vadd.f32 %v5661_v18, %v698_v11 }
 0x131   : > { %v5837_v37 = vsub.f32 %v5700_v41, %v842_v10 }
 0x132   : > { %v794_v14 = vsel %vm444_vm1, %v5834_v13, 0.0 }
 0x133   : > { %795 = vadd.xlane.f32.xlu2 %v794_v14  ;;  %v906_v15 = vmul.f32 %v5837_v37, %v5837_v37 }
 0x135   : > { %v948_v16 = vsel %vm444_vm1, %v906_v15, 0.0 }
 0x136   : > { %949 = vadd.xlane.f32.xlu1 %v948_v16  ;;  %v754_v17 = vpop.xlane.xlu0 %753 }
 0x137   : > { %v843_v20 = vmul.f32 %v5768_v23, %v754_v17  ;;  %v701_v22 = vpop.f32.mrf.mxu0  ;;  %v5528_v17 = vmov 0.0  }
 0x138   : > { %v5846_v24 = vadd.f32 %v5661_v18, %v701_v22  ;;  %446 = vst.msk [vmem:[#allocation2 + $0x8] sm:$0xff] %vm444_vm1, %v5528_v17 }
 0x139   : > { %v5849_v41 = vsub.f32 %v5707_v45, %v843_v20  ;;  %445 = vst.msk [vmem:[#allocation2] sm:$0xff] %vm444_vm1, %v5528_v17 }
 0x13a   : > { %v797_v26 = vsel %vm444_vm1, %v5846_v24, 0.0  ;;  %447 = vst.msk [vmem:[#allocation2 + $0x10] sm:$0xff] %vm444_vm1, %v5528_v17 }
 0x13b   : > { %798 = vadd.xlane.f32.xlu0 %v797_v26  ;;  %v907_v27 = vmul.f32 %v5849_v41, %v5849_v41  ;;  %448 = vst.msk [vmem:[#allocation2 + $0x18] sm:$0xff] %vm444_vm1, %v5528_v17 }
 0x13c   : > { %449 = vst.msk [vmem:[#allocation2 + $0x20] sm:$0xff] %vm444_vm1, %v5528_v17 }
 0x13d   : > { %v951_v28 = vsel %vm444_vm1, %v907_v27, 0.0  ;;  %450 = vst.msk [vmem:[#allocation2 + $0x28] sm:$0xff] %vm444_vm1, %v5528_v17 }
 0x13e   : > { %v757_v32 = vpop.xlane.xlu1 %756  ;;  %952 = vadd.xlane.f32.xlu2 %v951_v28  ;;  %451 = vst.msk [vmem:[#allocation2 + $0x30] sm:$0xff] %vm444_vm1, %v5528_v17 }
 0x13f   : > { %v844_v34 = vmul.f32 %v5768_v23, %v757_v32  ;;  %v704_v35 = vpop.f32.mrf.mxu0  ;;  %452 = vst.msk [vmem:[#allocation2 + $0x38] sm:$0xff] %vm444_vm1, %v5528_v17 }
 0x140   : > { %v5858_v36 = vadd.f32 %v5661_v18, %v704_v35  ;;  %453 = vst.msk [vmem:[#allocation2 + $0x40] sm:$0xff] %vm444_vm1, %v5528_v17 }
 0x141   : > { %v5861_v45 = vsub.f32 %v5714_v49, %v844_v34  ;;  %456 = vst.msk [vmem:[#allocation2 + $0x50] sm:$0xff] %vm444_vm1, %v5528_v17 }
 0x142   : > { %v800_v38 = vsel %vm444_vm1, %v5858_v36, 0.0  ;;  %457 = vst.msk [vmem:[#allocation2 + $0x58] sm:$0xff] %vm444_vm1, %v5528_v17 }
 0x143   : > { %801 = vadd.xlane.f32.xlu1 %v800_v38  ;;  %v908_v39 = vmul.f32 %v5861_v45, %v5861_v45  ;;  %458 = vst.msk [vmem:[#allocation2 + $0x60] sm:$0xff] %vm444_vm1, %v5528_v17 }
 0x144   : > { %459 = vst.msk [vmem:[#allocation2 + $0x68] sm:$0xff] %vm444_vm1, %v5528_v17 }
 0x145   : > { %v954_v42 = vsel %vm444_vm1, %v908_v39, 0.0  ;;  %460 = vst.msk [vmem:[#allocation2 + $0x70] sm:$0xff] %vm444_vm1, %v5528_v17 }
 0x146   : > { %v760_v43 = vpop.xlane.xlu2 %759  ;;  %955 = vadd.xlane.f32.xlu0 %v954_v42  ;;  %461 = vst.msk [vmem:[#allocation2 + $0x78] sm:$0xff] %vm444_vm1, %v5528_v17 }
 0x147   : > { %v845_v44 = vmul.f32 %v5768_v23, %v760_v43  ;;  %v707_v46 = vpop.f32.mrf.mxu0  ;;  %462 = vst.msk [vmem:[#allocation2 + $0x80] sm:$0xff] %vm444_vm1, %v5528_v17 }
 0x148   : > { %v5870_v47 = vadd.f32 %v5661_v18, %v707_v46  ;;  %463 = vst.msk [vmem:[#allocation2 + $0x88] sm:$0xff] %vm444_vm1, %v5528_v17 }
 0x149   : > { %v5873_v49 = vsub.f32 %v5721_v53, %v845_v44  ;;  %464 = vst.msk [vmem:[#allocation2 + $0x90] sm:$0xff] %vm444_vm1, %v5528_v17 }
 0x14a   : > { %v803_v48 = vsel %vm444_vm1, %v5870_v47, 0.0  ;;  %466 = vst.msk [vmem:[#allocation2 + $0xa0] sm:$0xff] %vm444_vm1, %v5528_v17 }
 0x14b   : > { %804 = vadd.xlane.f32.xlu2 %v803_v48  ;;  %v909_v51 = vmul.f32 %v5873_v49, %v5873_v49  ;;  %467 = vst.msk [vmem:[#allocation2 + $0xa8] sm:$0xff] %vm444_vm1, %v5528_v17 }
 0x14c   : > { %468 = vst.msk [vmem:[#allocation2 + $0xb0] sm:$0xff] %vm444_vm1, %v5528_v17 }
 0x14d   : > { %v957_v52 = vsel %vm444_vm1, %v909_v51, 0.0  ;;  %469 = vst.msk [vmem:[#allocation2 + $0xb8] sm:$0xff] %vm444_vm1, %v5528_v17 }
 0x14e   : > { %958 = vadd.xlane.f32.xlu1 %v957_v52  ;;  %v763_v54 = vpop.xlane.xlu0 %762  ;;  %470 = vst.msk [vmem:[#allocation2 + $0xc0] sm:$0xff] %vm444_vm1, %v5528_v17 }
 0x14f   : > { %v846_v55 = vmul.f32 %v5768_v23, %v763_v54  ;;  %v710_v56 = vpop.f32.mrf.mxu0  ;;  %471 = vst.msk [vmem:[#allocation2 + $0xc8] sm:$0xff] %vm444_vm1, %v5528_v17 }
 0x150   : > { %v5882_v58 = vadd.f32 %v5661_v18, %v710_v56  ;;  %472 = vst.msk [vmem:[#allocation2 + $0xd0] sm:$0xff] %vm444_vm1, %v5528_v17 }
 0x151   : > { %v5885_v53 = vsub.f32 %v5728_v57, %v846_v55  ;;  %473 = vst.msk [vmem:[#allocation2 + $0xd8] sm:$0xff] %vm444_vm1, %v5528_v17 }
 0x152   : > { %v806_v60 = vsel %vm444_vm1, %v5882_v58, 0.0  ;;  %474 = vst.msk [vmem:[#allocation2 + $0xe0] sm:$0xff] %vm444_vm1, %v5528_v17 }
 0x153   : > { %807 = vadd.xlane.f32.xlu0 %v806_v60  ;;  %v910_v62 = vmul.f32 %v5885_v53, %v5885_v53  ;;  %476 = vst.msk [vmem:[#allocation2 + $0xf0] sm:$0xff] %vm444_vm1, %v5528_v17 }
 0x154   : > { %477 = vst.msk [vmem:[#allocation2 + $0xf8] sm:$0xff] %vm444_vm1, %v5528_v17 }
 0x155   : > { %v960_v63 = vsel %vm444_vm1, %v910_v62, 0.0  ;;  %478 = vst.msk [vmem:[#allocation2 + $0x100] sm:$0xff] %vm444_vm1, %v5528_v17 }
 0x156   : > { %v766_v0 = vpop.xlane.xlu1 %765  ;;  %961 = vadd.xlane.f32.xlu2 %v960_v63  ;;  %479 = vst.msk [vmem:[#allocation2 + $0x108] sm:$0xff] %vm444_vm1, %v5528_v17 }
 0x157   : > { %v847_v2 = vmul.f32 %v5768_v23, %v766_v0  ;;  %v713_v3 = vpop.f32.mrf.mxu0  ;;  %480 = vst.msk [vmem:[#allocation2 + $0x110] sm:$0xff] %vm444_vm1, %v5528_v17 }
 0x158   : > { %v5894_v5 = vadd.f32 %v5661_v18, %v713_v3  ;;  %481 = vst.msk [vmem:[#allocation2 + $0x118] sm:$0xff] %vm444_vm1, %v5528_v17 }
 0x159   : > { %v5897_v57 = vsub.f32 %v5735_v61, %v847_v2  ;;  %482 = vst.msk [vmem:[#allocation2 + $0x120] sm:$0xff] %vm444_vm1, %v5528_v17 }
 0x15a   : > { %v809_v7 = vsel %vm444_vm1, %v5894_v5, 0.0  ;;  %483 = vst.msk [vmem:[#allocation2 + $0x128] sm:$0xff] %vm444_vm1, %v5528_v17 }
 0x15b   : > { %810 = vadd.xlane.f32.xlu1 %v809_v7  ;;  %v911_v8 = vmul.f32 %v5897_v57, %v5897_v57  ;;  %484 = vst.msk [vmem:[#allocation2 + $0x130] sm:$0xff] %vm444_vm1, %v5528_v17 }
 0x15d   : > { %v963_v9 = vsel %vm444_vm1, %v911_v8, 0.0 }
 0x15e   : > { %v769_v10 = vpop.xlane.xlu2 %768  ;;  %964 = vadd.xlane.f32.xlu0 %v963_v9 }
 0x15f   : > { %v848_v11 = vmul.f32 %v5768_v23, %v769_v10  ;;  %v716_v14 = vpop.f32.mrf.mxu0 }
 0x160   : > { %v5906_v15 = vadd.f32 %v5661_v18, %v716_v14 }
 0x161   : > { %v5909_v61 = vsub.f32 %v5742_v1, %v848_v11 }
 0x162   : > { %v812_v16 = vsel %vm444_vm1, %v5906_v15, 0.0 }
 0x163   : > { %813 = vadd.xlane.f32.xlu2 %v812_v16  ;;  %v912_v20 = vmul.f32 %v5909_v61, %v5909_v61 }
 0x165   : > { %v966_v1 = vsel %vm444_vm1, %v912_v20, 0.0 }
 0x166   : > { %967 = vadd.xlane.f32.xlu1 %v966_v1  ;;  %v772_v22 = vpop.xlane.xlu0 %771 }
 0x167   : > { %v849_v26 = vmul.f32 %v5768_v23, %v772_v22  ;;  %v719_v27 = vpop.f32.mrf.mxu0 }
 0x168   : > { %v5930_v28 = vadd.f32 %v5661_v18, %v719_v27 }
 0x169   : > { %v5935_v32 = vsub.f32 %v5749_v6, %v849_v26 }
 0x16a   : > { %v815_v34 = vsel %vm444_vm1, %v5930_v28, 0.0 }
 0x16b   : > { %816 = vadd.xlane.f32.xlu0 %v815_v34  ;;  %v913_v35 = vmul.f32 %v5935_v32, %v5935_v32 }
 0x16d   : > { %v969_v6 = vsel %vm444_vm1, %v913_v35, 0.0 }
 0x16e   : > { %v775_v38 = vpop.xlane.xlu1 %774  ;;  %970 = vadd.xlane.f32.xlu2 %v969_v6 }
 0x16f   : > { %v850_v39 = vmul.f32 %v5768_v23, %v775_v38  ;;  %v722_v42 = vpop.f32.mrf.mxu0 }
 0x170   : > { %v5958_v43 = vadd.f32 %v5661_v18, %v722_v42 }
 0x171   : > { %v5963_v44 = vsub.f32 %v5756_v12, %v850_v39 }
 0x172   : > { %v818_v46 = vsel %vm444_vm1, %v5958_v43, 0.0 }
 0x173   : > { %819 = vadd.xlane.f32.xlu1 %v818_v46  ;;  %v914_v48 = vmul.f32 %v5963_v44, %v5963_v44 }
 0x175   : > { %v972_v12 = vsel %vm444_vm1, %v914_v48, 0.0 }
 0x176   : > { %v778_v51 = vpop.xlane.xlu2 %777  ;;  %973 = vadd.xlane.f32.xlu0 %v972_v12 }
 0x177   : > { %v851_v52 = vmul.f32 %v5768_v23, %v778_v51  ;;  %v725_v54 = vpop.f32.mrf.mxu0 }
 0x178   : > { %v5986_v55 = vadd.f32 %v5661_v18, %v725_v54 }
 0x179   : > { %v5991_v56 = vsub.f32 %v5763_v19, %v851_v52 }
 0x17a   : > { %v821_v60 = vsel %vm444_vm1, %v5986_v55, 0.0 }
 0x17b   : > { %822 = vadd.xlane.f32.xlu2 %v821_v60  ;;  %v915_v62 = vmul.f32 %v5991_v56, %v5991_v56 }
 0x17d   : > { %v975_v19 = vsel %vm444_vm1, %v915_v62, 0.0 }
 0x17e   : > { %976 = vadd.xlane.f32.xlu1 %v975_v19  ;;  %v781_v63 = vpop.xlane.xlu0 %780 }
 0x17f   : > { %v852_v0 = vmul.f32 %v5768_v23, %v781_v63  ;;  %v728_v2 = vpop.f32.mrf.mxu0 }
 0x180   : > { %v6014_v3 = vadd.f32 %v5661_v18, %v728_v2 }
 0x181   : > { %v6019_v7 = vsub.f32 %v5773_v30, %v852_v0  ;;  %v935_v8 = vpop.xlane.xlu2 %934 }
 0x182   : > { %v1029_v9 = vmul.f32 %v935_v8, %v5768_v23  ;;  %v824_v10 = vsel %vm444_vm1, %v6014_v3, 0.0 }
 0x183   : > { %825 = vadd.xlane.f32.xlu0 %v824_v10  ;;  %v916_v30 = vmul.f32 %v6019_v7, %v6019_v7 }
 0x184   : > { %v1061_v11 = vadd.f32 1e-05, %v1029_v9 }
 0x185   : > { %v978_v14 = vsel %vm444_vm1, %v916_v30, 0.0 }
 0x186   : > { %5319 = vrsqrt.f32 %v1061_v11  ;;  %v784_v16 = vpop.xlane.xlu1 %783  ;;  %979 = vadd.xlane.f32.xlu2 %v978_v14  ;;  %vm1099_vm4 = vweird.f32 %v1061_v11 }
 0x187   : > { %v853_v20 = vmul.f32 %v5768_v23, %v784_v16  ;;  %v731_v1 = vpop.f32.mrf.mxu0 }
 0x188   : > { %v6039_v22 = vadd.f32 %v5661_v18, %v731_v1 }
 0x189   : > { %v6042_v26 = vsub.f32 %v5786_v40, %v853_v20  ;;  %v938_v27 = vpop.xlane.xlu0 %937 }
 0x18a   : > { %v1030_v34 = vmul.f32 %v938_v27, %v5768_v23  ;;  %v827_v35 = vsel %vm444_vm1, %v6039_v22, 0.0 }
 0x18b   : > { %828 = vadd.xlane.f32.xlu1 %v827_v35  ;;  %v917_v6 = vmul.f32 %v6042_v26, %v6042_v26 }
 0x18c   : > { %v5320_v38 = vpop.eup %5319  ;;  %v1062_v39 = vadd.f32 1e-05, %v1030_v34 }
 0x18d   : > { %v1094_v42 = vmul.f32 %v5320_v38, %v1061_v11  ;;  %v981_v46 = vsel %vm444_vm1, %v917_v6, 0.0  ;;  %vm1100_vm3 = vweird.f32 %v5320_v38  ;;  %v6067_v11 = vld [vmem:[%s8712_s4] ss:$0 sm:$0xff] }
 0x18e   : > { %5321 = vrsqrt.f32 %v1062_v39  ;;  %v787_v18 = vpop.xlane.xlu2 %786  ;;  %982 = vadd.xlane.f32.xlu0 %v981_v46  ;;  %vm1101_vm5 = vmor %vm1099_vm4, %vm1100_vm3  ;;  %vm1109_vm7 = vweird.f32 %v1062_v39  ;;  %vm454_vm3 = vcmask 254976  }
 0x18f   : > { %v1095_v40 = vmul.f32 %v5320_v38, %v1094_v42  ;;  %v854_v48 = vmul.f32 %v5768_v23, %v787_v18  ;;  %455 = vst.msk [vmem:[#allocation2 + $0x48] sm:$0x3] %vm454_vm3, %v5528_v17 }
 0x190   : > { %465 = vst.msk [vmem:[#allocation2 + $0x98] sm:$0x3] %vm454_vm3, %v5528_v17 }
 0x191   : > { %v1096_v12 = vmul.f32 0.5, %v1095_v40  ;;  %v6052_v51 = vsub.f32 %v5798_v50, %v854_v48  ;;  %v941_v52 = vpop.xlane.xlu1 %940  ;;  %v6061_v50 = vld [vmem:[%s8711_s3] ss:$0 sm:$0xff]  ;;  %475 = vst.msk [vmem:[#allocation2 + $0xe8] sm:$0x3] %vm454_vm3, %v5528_v17 }
 0x192   : > { %v1031_v54 = vmul.f32 %v941_v52, %v5768_v23  ;;  %485 = vst.msk [vmem:[#allocation2 + $0x138] sm:$0x3] %vm454_vm3, %v5528_v17 }
 0x193   : > { %v1097_v60 = vsub.f32 1.5, %v1096_v12  ;;  %v918_v62 = vmul.f32 %v6052_v51, %v6052_v51 }
 0x194   : > { %v5322_v19 = vpop.eup %5321  ;;  %v1063_v63 = vadd.f32 1e-05, %v1031_v54 }
 0x195   : > { %v1098_v0 = vmul.f32 %v5320_v38, %v1097_v60  ;;  %v1104_v2 = vmul.f32 %v5322_v19, %v1062_v39  ;;  %v984_v8 = vsel %vm444_vm1, %v918_v62, 0.0  ;;  %vm1110_vm6 = vweird.f32 %v5322_v19 }
 0x196   : > { %5323 = vrsqrt.f32 %v1063_v63  ;;  %985 = vadd.xlane.f32.xlu1 %v984_v8  ;;  %v790_v9 = vpop.xlane.xlu0 %789  ;;  %vm1111_vm8 = vmor %vm1109_vm7, %vm1110_vm6  ;;  %vm1119_vm10 = vweird.f32 %v1063_v63 }
 0x197   : > { %v1102_v10 = vsel %vm1101_vm5, %v5320_v38, %v1098_v0  ;;  %v1105_v30 = vmul.f32 %v5322_v19, %v1104_v2  ;;  %v855_v14 = vmul.f32 %v5768_v23, %v790_v9 }
 0x198   : > { %v1413_v16 = vmul.f32 %v1102_v10, %v5776_v31 }
 0x199   : > { %v1106_v20 = vmul.f32 0.5, %v1105_v30  ;;  %v6071_v1 = vsub.f32 %v5810_v59, %v855_v14  ;;  %v944_v27 = vpop.xlane.xlu2 %943 }
 0x19a   : > { %v1449_v34 = vmul.f32 %v6061_v50, %v1413_v16  ;;  %v1032_v35 = vmul.f32 %v944_v27, %v5768_v23 }
 0x19b   : > { %v1107_v6 = vsub.f32 1.5, %v1106_v20  ;;  %v919_v38 = vmul.f32 %v6071_v1, %v6071_v1 }
 0x19c   : > { %v5324_v42 = vpop.eup %5323  ;;  %v6078_v46 = vadd.f32 %v6067_v11, %v1449_v34  ;;  %v1064_v18 = vadd.f32 1e-05, %v1032_v35 }
 0x19d   : > { %v1108_v31 = vmul.f32 %v5322_v19, %v1107_v6  ;;  %v1114_v40 = vmul.f32 %v5324_v42, %v1063_v63  ;;  %v987_v59 = vsel %vm444_vm1, %v919_v38, 0.0  ;;  %vm1120_vm9 = vweird.f32 %v5324_v42 }
 0x19e   : > { %8785 = vst [vmem:[#allocation4_spill] sm:$0xff] %v6078_v46  ;;  %v8725_v48 = vmax.f32 %v6078_v46, 0.0  ;;  %5325 = vrsqrt.f32 %v1064_v18  ;;  %v793_v12 = vpop.xlane.xlu1 %792  ;;  %988 = vadd.xlane.f32.xlu2 %v987_v59  ;;  %vm1121_vm11 = vmor %vm1119_vm10, %vm1120_vm9  ;;  %vm1129_vm13 = vweird.f32 %v1064_v18 }
 0x19f   : > { %v1112_v52 = vsel %vm1111_vm8, %v5322_v19, %v1108_v31  ;;  %v1115_v54 = vmul.f32 %v5324_v42, %v1114_v40  ;;  %v856_v60 = vmul.f32 %v5768_v23, %v793_v12 }
 0x1a0   : > { %1549 = vst.msk [vmem:[#allocation2 + $0x8] sm:$0xff] %vm444_vm1, %v8725_v48  ;;  %v1414_v62 = vmul.f32 %v1112_v52, %v5789_v21 }
 0x1a1   : > { %v1116_v39 = vmul.f32 0.5, %v1115_v54  ;;  %v6088_v0 = vsub.f32 %v5822_v4, %v856_v60  ;;  %v947_v2 = vpop.xlane.xlu0 %946 }
 0x1a2   : > { %v1450_v8 = vmul.f32 %v6061_v50, %v1414_v62  ;;  %v1033_v9 = vmul.f32 %v947_v2, %v5768_v23 }
 0x1a3   : > { %v1117_v10 = vsub.f32 1.5, %v1116_v39  ;;  %v920_v19 = vmul.f32 %v6088_v0, %v6088_v0 }
 0x1a4   : > { %v5326_v30 = vpop.eup %5325  ;;  %v6095_v14 = vadd.f32 %v6067_v11, %v1450_v8  ;;  %v1065_v16 = vadd.f32 1e-05, %v1033_v9 }
 0x1a5   : > { %v1118_v21 = vmul.f32 %v5324_v42, %v1117_v10  ;;  %v1124_v20 = vmul.f32 %v5326_v30, %v1064_v18  ;;  %v990_v4 = vsel %vm444_vm1, %v920_v19, 0.0  ;;  %vm1130_vm12 = vweird.f32 %v5326_v30 }
 0x1a6   : > { %8786 = vst [vmem:[#allocation5_spill] sm:$0xff] %v6095_v14  ;;  %v8729_v27 = vmax.f32 %v6095_v14, 0.0  ;;  %5327 = vrsqrt.f32 %v1065_v16  ;;  %991 = vadd.xlane.f32.xlu0 %v990_v4  ;;  %v6103_v40 = vpop.xlane.xlu2 %795  ;;  %vm1131_vm14 = vmor %vm1129_vm13, %vm1130_vm12  ;;  %vm1139_vm0 = vweird.f32 %v1065_v16 }
 0x1a7   : > { %v1122_v34 = vsel %vm1121_vm11, %v5324_v42, %v1118_v21  ;;  %v1125_v35 = vmul.f32 %v5326_v30, %v1124_v20  ;;  %v1581_v6 = vld [vmem:[#allocation2 + $0x7] sm:$0xff] }
 0x1a8   : > { %1550 = vst.msk [vmem:[#allocation2 + $0x10] sm:$0xff] %vm444_vm1, %v8729_v27  ;;  %v1415_v38 = vmul.f32 %v1122_v34, %v5801_v25  ;;  %v1645_v2 = vld [vmem:[#allocation2 + $0x8] sm:$0xff] }
 0x1a9   : > { %v1126_v31 = vmul.f32 0.5, %v1125_v35  ;;  %v950_v63 = vpop.xlane.xlu1 %949  ;;  %1613 = vst.msk [vmem:[#allocation3] sm:$0xff] %vm444_vm1, %v1581_v6 }
 0x1aa   : > { %v1451_v59 = vmul.f32 %v6061_v50, %v1415_v38  ;;  %v1034_v12 = vmul.f32 %v950_v63, %v5768_v23 }
 0x1ab   : > { %v1127_v52 = vsub.f32 1.5, %v1126_v31 }
 0x1ac   : > { %v5328_v42 = vpop.eup %5327  ;;  %v6109_v54 = vadd.f32 %v6067_v11, %v1451_v59  ;;  %v1066_v60 = vadd.f32 1e-05, %v1034_v12 }
 0x1ad   : > { %v1128_v62 = vmul.f32 %v5326_v30, %v1127_v52  ;;  %v1134_v25 = vmul.f32 %v5328_v42, %v1065_v16  ;;  %vm1140_vm15 = vweird.f32 %v5328_v42 }
 0x1ae   : > { %v8753_v39 = vmax.f32 %v6109_v54, 0.0  ;;  %5329 = vrsqrt.f32 %v1066_v60  ;;  %v6117_v18 = vpop.xlane.xlu0 %798  ;;  %vm1141_vm2 = vmor %vm1139_vm0, %vm1140_vm15  ;;  %vm1149_vm5 = vweird.f32 %v1066_v60 }
 0x1af   : > { %v1132_v8 = vsel %vm1131_vm14, %v5326_v30, %v1128_v62  ;;  %v1135_v9 = vmul.f32 %v5328_v42, %v1134_v25  ;;  %1709 = vrot.lane.b32.xlu1 %v1645_v2, %s5529_s26  ;;  %v1582_v10 = vld [vmem:[#allocation2 + $0xf] sm:$0xff] }
 0x1b0   : > { %1551 = vst.msk [vmem:[#allocation2 + $0x18] sm:$0xff] %vm444_vm1, %v8753_v39  ;;  %v1416_v19 = vmul.f32 %v1132_v8, %v5813_v29  ;;  %v1646_v63 = vld [vmem:[#allocation2 + $0x10] sm:$0xff] }
 0x1b1   : > { %v1136_v21 = vmul.f32 0.5, %v1135_v9  ;;  %v953_v20 = vpop.xlane.xlu2 %952  ;;  %1614 = vst.msk [vmem:[#allocation3 + $0x10] sm:$0xff] %vm444_vm1, %v1582_v10 }
 0x1b2   : > { %v1452_v4 = vmul.f32 %v6061_v50, %v1416_v19  ;;  %v1035_v30 = vmul.f32 %v953_v20, %v5768_v23 }
 0x1b3   : > { %v1137_v34 = vsub.f32 1.5, %v1136_v21 }
 0x1b4   : > { %v5330_v35 = vpop.eup %5329  ;;  %v6123_v6 = vadd.f32 %v6067_v11, %v1452_v4  ;;  %v1067_v38 = vadd.f32 1e-05, %v1035_v30 }
 0x1b5   : > { %v1138_v31 = vmul.f32 %v5328_v42, %v1137_v34  ;;  %v1144_v29 = vmul.f32 %v5330_v35, %v1066_v60  ;;  %vm1150_vm4 = vweird.f32 %v5330_v35 }
 0x1b6   : > { %8787 = vst [vmem:[#allocation6_spill] sm:$0xff] %v6123_v6  ;;  %v8723_v59 = vmax.f32 %v6123_v6, 0.0  ;;  %5331 = vrsqrt.f32 %v1067_v38  ;;  %1711 = vrot.lane.b32.xlu2 %v1646_v63, %s5529_s26  ;;  %v6131_v16 = vpop.xlane.xlu1 %801  ;;  %vm1151_vm6 = vmor %vm1149_vm5, %vm1150_vm4  ;;  %vm1159_vm8 = vweird.f32 %v1067_v38 }
 0x1b7   : > { %v1142_v12 = vsel %vm1141_vm2, %v5328_v42, %v1138_v31  ;;  %v1145_v52 = vmul.f32 %v5330_v35, %v1144_v29  ;;  %v1583_v62 = vld [vmem:[#allocation2 + $0x17] sm:$0xff] }
 0x1b8   : > { %1552 = vst.msk [vmem:[#allocation2 + $0x20] sm:$0xff] %vm444_vm1, %v8723_v59  ;;  %v1417_v25 = vmul.f32 %v1142_v12, %v5825_v33  ;;  %v1647_v9 = vld [vmem:[#allocation2 + $0x18] sm:$0xff] }
 0x1b9   : > { %v1146_v2 = vmul.f32 0.5, %v1145_v52  ;;  %v956_v8 = vpop.xlane.xlu0 %955  ;;  %1615 = vst.msk [vmem:[#allocation3 + $0x20] sm:$0xff] %vm444_vm1, %v1583_v62 }
 0x1ba   : > { %v1453_v10 = vmul.f32 %v6061_v50, %v1417_v25  ;;  %v1036_v42 = vmul.f32 %v956_v8, %v5768_v23  ;;  %1713 = vrot.lane.b32.xlu0 %v1647_v9, %s5529_s26 }
 0x1bb   : > { %v1147_v19 = vsub.f32 1.5, %v1146_v2 }
 0x1bc   : > { %v5332_v33 = vpop.eup %5331  ;;  %v6142_v21 = vadd.f32 %v6067_v11, %v1453_v10  ;;  %v1068_v20 = vadd.f32 1e-05, %v1036_v42 }
 0x1bd   : > { %v1148_v4 = vmul.f32 %v5330_v35, %v1147_v19  ;;  %v1154_v30 = vmul.f32 %v5332_v33, %v1067_v38  ;;  %vm1160_vm7 = vweird.f32 %v5332_v33 }
 0x1be   : > { %8788 = vst [vmem:[#allocation7_spill] sm:$0xff] %v6142_v21  ;;  %v8728_v34 = vmax.f32 %v6142_v21, 0.0  ;;  %5333 = vrsqrt.f32 %v1068_v20  ;;  %v6153_v62 = vpop.xlane.xlu2 %804  ;;  %vm1161_vm9 = vmor %vm1159_vm8, %vm1160_vm7  ;;  %vm1169_vm11 = vweird.f32 %v1068_v20 }
 0x1bf   : > { %v1152_v31 = vsel %vm1151_vm6, %v5330_v35, %v1148_v4  ;;  %v1155_v29 = vmul.f32 %v5332_v33, %v1154_v30  ;;  %v1584_v63 = vld [vmem:[#allocation2 + $0x1f] sm:$0xff] }
 0x1c0   : > { %1553 = vst.msk [vmem:[#allocation2 + $0x28] sm:$0xff] %vm444_vm1, %v8728_v34  ;;  %v1418_v12 = vmul.f32 %v1152_v31, %v5837_v37 }
 0x1c1   : > { %v1156_v52 = vmul.f32 0.5, %v1155_v29  ;;  %v959_v60 = vpop.xlane.xlu1 %958  ;;  %1616 = vst.msk [vmem:[#allocation3 + $0x30] sm:$0xff] %vm444_vm1, %v1584_v63 }
 0x1c2   : > { %v1454_v17 = vmul.f32 %v6061_v50, %v1418_v12  ;;  %v1037_v25 = vmul.f32 %v959_v60, %v5768_v23 }
 0x1c3   : > { %v1157_v2 = vsub.f32 1.5, %v1156_v52 }
 0x1c4   : > { %v5334_v35 = vpop.eup %5333  ;;  %v6159_v8 = vadd.f32 %v6067_v11, %v1454_v17  ;;  %v1069_v9 = vadd.f32 1e-05, %v1037_v25  ;;  %v857_v17 = vmul.f32 %v5768_v23, %v6103_v40 }
 0x1c5   : > { %v1158_v10 = vmul.f32 %v5332_v33, %v1157_v2  ;;  %v1164_v37 = vmul.f32 %v5334_v35, %v1068_v20  ;;  %vm1170_vm10 = vweird.f32 %v5334_v35 }
 0x1c6   : > { %v8752_v42 = vmax.f32 %v6159_v8, 0.0  ;;  %5335 = vrsqrt.f32 %v1069_v9  ;;  %v6166_v63 = vpop.xlane.xlu0 %807  ;;  %vm1171_vm12 = vmor %vm1169_vm11, %vm1170_vm10  ;;  %vm1179_vm14 = vweird.f32 %v1069_v9 }
 0x1c7   : > { %v1162_v19 = vsel %vm1161_vm9, %v5332_v33, %v1158_v10  ;;  %v1165_v4 = vmul.f32 %v5334_v35, %v1164_v37  ;;  %v1585_v30 = vld [vmem:[#allocation2 + $0x27] sm:$0xff] }
 0x1c8   : > { %1554 = vst.msk [vmem:[#allocation2 + $0x30] sm:$0xff] %vm444_vm1, %v8752_v42  ;;  %v1419_v31 = vmul.f32 %v1162_v19, %v5849_v41 }
 0x1c9   : > { %v1166_v29 = vmul.f32 0.5, %v1165_v4  ;;  %v962_v12 = vpop.xlane.xlu2 %961  ;;  %1617 = vst.msk [vmem:[#allocation3 + $0x40] sm:$0xff] %vm444_vm1, %v1585_v30 }
 0x1ca   : > { %v1455_v38 = vmul.f32 %v6061_v50, %v1419_v31  ;;  %v1038_v52 = vmul.f32 %v962_v12, %v5768_v23  ;;  %v6178_v31 = vsub.f32 %v5834_v13, %v857_v17 }
 0x1cb   : > { %v1167_v60 = vsub.f32 1.5, %v1166_v29 }
 0x1cc   : > { %v5336_v33 = vpop.eup %5335  ;;  %v6174_v25 = vadd.f32 %v6067_v11, %v1455_v38  ;;  %v1070_v41 = vadd.f32 1e-05, %v1038_v52 }
 0x1cd   : > { %v1168_v2 = vmul.f32 %v5334_v35, %v1167_v60  ;;  %v1174_v10 = vmul.f32 %v5336_v33, %v1069_v9  ;;  %vm1180_vm13 = vweird.f32 %v5336_v33 }
 0x1ce   : > { %8789 = vst [vmem:[#allocation8_spill] sm:$0xff] %v6174_v25  ;;  %v8722_v37 = vmax.f32 %v6174_v25, 0.0  ;;  %5337 = vrsqrt.f32 %v1070_v41  ;;  %v6184_v12 = vpop.xlane.xlu1 %810  ;;  %vm1181_vm15 = vmor %vm1179_vm14, %vm1180_vm13  ;;  %vm1189_vm2 = vweird.f32 %v1070_v41 }
 0x1cf   : > { %v1172_v19 = vsel %vm1171_vm12, %v5334_v35, %v1168_v2  ;;  %v1175_v4 = vmul.f32 %v5336_v33, %v1174_v10  ;;  %v1586_v30 = vld [vmem:[#allocation2 + $0x2f] sm:$0xff]  ;;  %v858_v35 = vmul.f32 %v5768_v23, %v6117_v18  ;;  %v921_v2 = vmul.f32 %v6178_v31, %v6178_v31 }
 0x1d0   : > { %1555 = vst.msk [vmem:[#allocation2 + $0x38] sm:$0xff] %vm444_vm1, %v8722_v37  ;;  %v1420_v40 = vmul.f32 %v1172_v19, %v5861_v45 }
 0x1d1   : > { %v1176_v29 = vmul.f32 0.5, %v1175_v4  ;;  %v965_v20 = vpop.xlane.xlu0 %964  ;;  %1618 = vst.msk [vmem:[#allocation3 + $0x50] sm:$0xff] %vm444_vm1, %v1586_v30  ;;  %v6197_v4 = vsub.f32 %v5846_v24, %v858_v35  ;;  %v859_v30 = vmul.f32 %v5768_v23, %v6131_v16 }
 0x1d2   : > { %v1456_v38 = vmul.f32 %v6061_v50, %v1420_v40  ;;  %v1039_v13 = vmul.f32 %v965_v20, %v5768_v23 }
 0x1d3   : > { %v1177_v52 = vsub.f32 1.5, %v1176_v29 }
 0x1d4   : > { %v5338_v60 = vpop.eup %5337  ;;  %v6192_v17 = vadd.f32 %v6067_v11, %v1456_v38  ;;  %v1071_v45 = vadd.f32 1e-05, %v1039_v13  ;;  %v993_v38 = vsel %vm444_vm1, %v921_v2, 0.0 }
 0x1d5   : > { %v1178_v10 = vmul.f32 %v5336_v33, %v1177_v52  ;;  %v1184_v19 = vmul.f32 %v5338_v60, %v1070_v41  ;;  %v922_v52 = vmul.f32 %v6197_v4, %v6197_v4  ;;  %vm1190_vm0 = vweird.f32 %v5338_v60 }
 0x1d6   : > { %8790 = vst [vmem:[#allocation9_spill] sm:$0xff] %v6192_v17  ;;  %v8727_v18 = vmax.f32 %v6192_v17, 0.0  ;;  %5339 = vrsqrt.f32 %v1071_v45  ;;  %v6207_v35 = vpop.xlane.xlu2 %813  ;;  %vm1191_vm3 = vmor %vm1189_vm2, %vm1190_vm0  ;;  %vm1199_vm5 = vweird.f32 %v1071_v45 }
 0x1d7   : > { %v1182_v40 = vsel %vm1181_vm15, %v5336_v33, %v1178_v10  ;;  %v1185_v29 = vmul.f32 %v5338_v60, %v1184_v19  ;;  %v1587_v20 = vld [vmem:[#allocation2 + $0x37] sm:$0xff]  ;;  %v6215_v10 = vsub.f32 %v5858_v36, %v859_v30 }
 0x1d8   : > { %1556 = vst.msk [vmem:[#allocation2 + $0x40] sm:$0xff] %vm444_vm1, %v8727_v18  ;;  %v1421_v9 = vmul.f32 %v1182_v40, %v5873_v49  ;;  %v1839_v18 = vld [vmem:[#allocation2 + $0x11] sm:$0xff] }
 0x1d9   : > { %v1186_v24 = vmul.f32 0.5, %v1185_v29  ;;  %v968_v13 = vpop.xlane.xlu1 %967  ;;  %994 = vadd.xlane.f32.xlu1 %v993_v38  ;;  %1619 = vst.msk [vmem:[#allocation3 + $0x60] sm:$0xff] %vm444_vm1, %v1587_v20  ;;  %v996_v38 = vsel %vm444_vm1, %v922_v52, 0.0  ;;  %v923_v36 = vmul.f32 %v6215_v10, %v6215_v10 }
 0x1da   : > { %v1457_v16 = vmul.f32 %v6061_v50, %v1421_v9  ;;  %v1040_v33 = vmul.f32 %v968_v13, %v5768_v23 }
 0x1db   : > { %v1187_v49 = vsub.f32 1.5, %v1186_v24 }
 0x1dc   : > { %v5340_v2 = vpop.eup %5339  ;;  %v6218_v19 = vadd.f32 %v6067_v11, %v1457_v16  ;;  %v1072_v40 = vadd.f32 1e-05, %v1040_v33 }
 0x1dd   : > { %v1188_v29 = vmul.f32 %v5338_v60, %v1187_v49  ;;  %v1194_v20 = vmul.f32 %v5340_v2, %v1071_v45  ;;  %vm1200_vm4 = vweird.f32 %v5340_v2 }
 0x1de   : > { %v8751_v9 = vmax.f32 %v6218_v19, 0.0  ;;  %5341 = vrsqrt.f32 %v1072_v40  ;;  %v6228_v16 = vpop.xlane.xlu0 %816  ;;  %vm1201_vm6 = vmor %vm1199_vm5, %vm1200_vm4  ;;  %vm1209_vm8 = vweird.f32 %v1072_v40 }
 0x1df   : > { %v1192_v13 = vsel %vm1191_vm3, %v5338_v60, %v1188_v29  ;;  %v1195_v37 = vmul.f32 %v5340_v2, %v1194_v20  ;;  %997 = vadd.xlane.f32.xlu2 %v996_v38  ;;  %v1588_v41 = vld [vmem:[#allocation2 + $0x3f] sm:$0xff]  ;;  %v999_v29 = vsel %vm444_vm1, %v923_v36, 0.0 }
 0x1e0   : > { %1557 = vst.msk [vmem:[#allocation2 + $0x58] sm:$0xff] %vm444_vm1, %v8751_v9  ;;  %v1422_v30 = vmul.f32 %v1192_v13, %v5885_v53 }
 0x1e1   : > { %v1196_v24 = vmul.f32 0.5, %v1195_v37  ;;  %v971_v33 = vpop.xlane.xlu2 %970  ;;  %1620 = vst.msk [vmem:[#allocation3 + $0x70] sm:$0xff] %vm444_vm1, %v1588_v41 }
 0x1e2   : > { %v1458_v60 = vmul.f32 %v6061_v50, %v1422_v30  ;;  %v1041_v52 = vmul.f32 %v971_v33, %v5768_v23 }
 0x1e3   : > { %v1197_v49 = vsub.f32 1.5, %v1196_v24 }
 0x1e4   : > { %v5342_v20 = vpop.eup %5341  ;;  %v6235_v38 = vadd.f32 %v6067_v11, %v1458_v60  ;;  %v1073_v53 = vadd.f32 1e-05, %v1041_v52  ;;  %1000 = vadd.xlane.f32.xlu0 %v999_v29 }
 0x1e5   : > { %v1198_v37 = vmul.f32 %v5340_v2, %v1197_v49  ;;  %v1204_v13 = vmul.f32 %v5342_v20, %v1072_v40  ;;  %vm1210_vm7 = vweird.f32 %v5342_v20 }
 0x1e6   : > { %8791 = vst [vmem:[#allocation10_spill] sm:$0xff] %v6235_v38  ;;  %v8724_v59 = vmax.f32 %v6235_v38, 0.0  ;;  %5343 = vrsqrt.f32 %v1073_v53  ;;  %v6242_v60 = vpop.xlane.xlu1 %819  ;;  %vm1211_vm9 = vmor %vm1209_vm8, %vm1210_vm7  ;;  %vm1219_vm11 = vweird.f32 %v1073_v53 }
 0x1e7   : > { %v1202_v30 = vsel %vm1201_vm6, %v5340_v2, %v1198_v37  ;;  %v1205_v41 = vmul.f32 %v5342_v20, %v1204_v13  ;;  %v1589_v33 = vld [vmem:[#allocation2 + $0x57] sm:$0xff] }
 0x1e8   : > { %1558 = vst.msk [vmem:[#allocation2 + $0x60] sm:$0xff] %vm444_vm1, %v8724_v59  ;;  %v1423_v36 = vmul.f32 %v1202_v30, %v5897_v57 }
 0x1e9   : > { %v1206_v24 = vmul.f32 0.5, %v1205_v41  ;;  %v974_v52 = vpop.xlane.xlu0 %973  ;;  %1621 = vst.msk [vmem:[#allocation3 + $0x80] sm:$0xff] %vm444_vm1, %v1589_v33 }
 0x1ea   : > { %v1459_v45 = vmul.f32 %v6061_v50, %v1423_v36  ;;  %v1042_v49 = vmul.f32 %v974_v52, %v5768_v23 }
 0x1eb   : > { %v1207_v29 = vsub.f32 1.5, %v1206_v24 }
 0x1ec   : > { %v5344_v2 = vpop.eup %5343  ;;  %v6248_v37 = vadd.f32 %v6067_v11, %v1459_v45  ;;  %v1074_v13 = vadd.f32 1e-05, %v1042_v49  ;;  %v1838_v49 = vld [vmem:[#allocation2 + $0x9] sm:$0xff] }
 0x1ed   : > { %v1208_v59 = vmul.f32 %v5342_v20, %v1207_v29  ;;  %v1214_v57 = vmul.f32 %v5344_v2, %v1073_v53  ;;  %vm1220_vm10 = vweird.f32 %v5344_v2 }
 0x1ee   : > { %8792 = vst [vmem:[#allocation11_spill] sm:$0xff] %v6248_v37  ;;  %v8726_v30 = vmax.f32 %v6248_v37, 0.0  ;;  %5345 = vrsqrt.f32 %v1074_v13  ;;  %v6255_v52 = vpop.xlane.xlu2 %822  ;;  %vm1221_vm12 = vmor %vm1219_vm11, %vm1220_vm10  ;;  %vm1229_vm14 = vweird.f32 %v1074_v13  ;;  %vm1805_vm10 = vcmask 523520  }
 0x1ef   : > { %v1212_v41 = vsel %vm1211_vm9, %v5342_v20, %v1208_v59  ;;  %v1215_v33 = vmul.f32 %v5344_v2, %v1214_v57  ;;  %v1590_v48 = vld [vmem:[#allocation2 + $0x5f] sm:$0xff] }
 0x1f0   : > { %1559 = vst.msk [vmem:[#allocation2 + $0x68] sm:$0xff] %vm444_vm1, %v8726_v30  ;;  %v1424_v36 = vmul.f32 %v1212_v41, %v5909_v61 }
 0x1f1   : > { %v1216_v24 = vmul.f32 0.5, %v1215_v33  ;;  %v977_v45 = vpop.xlane.xlu1 %976  ;;  %1622 = vst.msk [vmem:[#allocation3 + $0x90] sm:$0xff] %vm444_vm1, %v1590_v48  ;;  %v1648_v48 = vld [vmem:[#allocation2 + $0x20] sm:$0xff] }
 0x1f2   : > { %v1460_v40 = vmul.f32 %v6061_v50, %v1424_v36  ;;  %v1043_v29 = vmul.f32 %v977_v45, %v5768_v23  ;;  %1902 = vrot.lane.b32.xlu1 %v1838_v49, %s5530_s27  ;;  %v1650_v49 = vld [vmem:[#allocation2 + $0x30] sm:$0xff] }
 0x1f3   : > { %v1217_v59 = vsub.f32 1.5, %v1216_v24 }
 0x1f4   : > { %v5346_v20 = vpop.eup %5345  ;;  %v6262_v57 = vadd.f32 %v6067_v11, %v1460_v40  ;;  %v1075_v61 = vadd.f32 1e-05, %v1043_v29 }
 0x1f5   : > { %v1218_v41 = vmul.f32 %v5344_v2, %v1217_v59  ;;  %v1224_v33 = vmul.f32 %v5346_v20, %v1074_v13  ;;  %vm1230_vm13 = vweird.f32 %v5346_v20 }
 0x1f6   : > { %v8731_v30 = vmax.f32 %v6262_v57, 0.0  ;;  %5347 = vrsqrt.f32 %v1075_v61  ;;  %v6271_v29 = vpop.xlane.xlu0 %825  ;;  %vm1231_vm15 = vmor %vm1229_vm14, %vm1230_vm13  ;;  %vm1239_vm2 = vweird.f32 %v1075_v61 }
 0x1f7   : > { %v1222_v36 = vsel %vm1221_vm12, %v5344_v2, %v1218_v41  ;;  %v1225_v45 = vmul.f32 %v5346_v20, %v1224_v33  ;;  %1715 = vrot.lane.b32.xlu2 %v1648_v48, %s5529_s26  ;;  %v1591_v24 = vld [vmem:[#allocation2 + $0x67] sm:$0xff] }
 0x1f8   : > { %1560 = vst.msk [vmem:[#allocation2 + $0x70] sm:$0xff] %vm444_vm1, %v8731_v30  ;;  %v1425_v40 = vmul.f32 %v1222_v36, %v5935_v32  ;;  %1719 = vrot.lane.b32.xlu0 %v1650_v49, %s5529_s26 }
 0x1f9   : > { %v1226_v53 = vmul.f32 0.5, %v1225_v45  ;;  %v980_v59 = vpop.xlane.xlu2 %979  ;;  %1623 = vst.msk [vmem:[#allocation3 + $0xa0] sm:$0xff] %vm444_vm1, %v1591_v24  ;;  %v1841_v24 = vld [vmem:[#allocation2 + $0x21] sm:$0xff] }
 0x1fa   : > { %v1461_v2 = vmul.f32 %v6061_v50, %v1425_v40  ;;  %v1044_v41 = vmul.f32 %v980_v59, %v5768_v23  ;;  %1904 = vrot.lane.b32.xlu1 %v1839_v18, %s5530_s27 }
 0x1fb   : > { %v1227_v33 = vsub.f32 1.5, %v1226_v53 }
 0x1fc   : > { %v5348_v48 = vpop.eup %5347  ;;  %v6278_v32 = vadd.f32 %v6067_v11, %v1461_v2  ;;  %v1076_v36 = vadd.f32 1e-05, %v1044_v41  ;;  %v1840_v41 = vld [vmem:[#allocation2 + $0x19] sm:$0xff] }
 0x1fd   : > { %v1228_v45 = vmul.f32 %v5346_v20, %v1227_v33  ;;  %v1234_v49 = vmul.f32 %v5348_v48, %v1075_v61  ;;  %vm1240_vm0 = vweird.f32 %v5348_v48 }
 0x1fe   : > { %8793 = vst [vmem:[#allocation12_spill] sm:$0xff] %v6278_v32  ;;  %v8730_v34 = vmax.f32 %v6278_v32, 0.0  ;;  %5349 = vrsqrt.f32 %v1076_v36  ;;  %v6286_v2 = vpop.xlane.xlu1 %828  ;;  %vm1241_vm3 = vmor %vm1239_vm2, %vm1240_vm0  ;;  %vm1249_vm5 = vweird.f32 %v1076_v36 }
 0x1ff   : > { %v1232_v40 = vsel %vm1231_vm15, %v5346_v20, %v1228_v45  ;;  %v1235_v27 = vmul.f32 %v5348_v48, %v1234_v49  ;;  %1908 = vrot.lane.b32.xlu2 %v1841_v24, %s5530_s27  ;;  %v1592_v18 = vld [vmem:[#allocation2 + $0x6f] sm:$0xff] }
 0x200   : > { %1561 = vst.msk [vmem:[#allocation2 + $0x78] sm:$0xff] %vm444_vm1, %v8730_v34  ;;  %v1426_v53 = vmul.f32 %v1232_v40, %v5963_v44 }
 0x201   : > { %v1236_v59 = vmul.f32 0.5, %v1235_v27  ;;  %v983_v13 = vpop.xlane.xlu0 %982  ;;  %1624 = vst.msk [vmem:[#allocation3 + $0xb0] sm:$0xff] %vm444_vm1, %v1592_v18 }
 0x202   : > { %v1462_v33 = vmul.f32 %v6061_v50, %v1426_v53  ;;  %v1045_v20 = vmul.f32 %v983_v13, %v5768_v23  ;;  %1906 = vrot.lane.b32.xlu1 %v1840_v41, %s5530_s27 }
 0x203   : > { %v1237_v45 = vsub.f32 1.5, %v1236_v59 }
 0x204   : > { %v5350_v49 = vpop.eup %5349  ;;  %v6293_v24 = vadd.f32 %v6067_v11, %v1462_v33  ;;  %v1077_v44 = vadd.f32 1e-05, %v1045_v20 }
 0x205   : > { %v1238_v27 = vmul.f32 %v5348_v48, %v1237_v45  ;;  %v1244_v40 = vmul.f32 %v5350_v49, %v1076_v36  ;;  %vm1250_vm4 = vweird.f32 %v5350_v49 }
 0x206   : > { %8794 = vst [vmem:[#allocation13_spill] sm:$0xff] %v6293_v24  ;;  %v8732_v34 = vmax.f32 %v6293_v24, 0.0  ;;  %5351 = vrsqrt.f32 %v1077_v44  ;;  %vm1251_vm6 = vmor %vm1249_vm5, %vm1250_vm4  ;;  %vm1259_vm8 = vweird.f32 %v1077_v44 }
 0x207   : > { %v1242_v18 = vsel %vm1241_vm3, %v5348_v48, %v1238_v27  ;;  %v1245_v53 = vmul.f32 %v5350_v49, %v1244_v40  ;;  %v1593_v30 = vld [vmem:[#allocation2 + $0x77] sm:$0xff] }
 0x208   : > { %1562 = vst.msk [vmem:[#allocation2 + $0x80] sm:$0xff] %vm444_vm1, %v8732_v34  ;;  %v1427_v59 = vmul.f32 %v1242_v18, %v5991_v56 }
 0x209   : > { %v1246_v13 = vmul.f32 0.5, %v1245_v53  ;;  %v986_v41 = vpop.xlane.xlu1 %985  ;;  %1625 = vst.msk [vmem:[#allocation3 + $0xc0] sm:$0xff] %vm444_vm1, %v1593_v30 }
 0x20a   : > { %v1463_v61 = vmul.f32 %v6061_v50, %v1427_v59  ;;  %v1046_v33 = vmul.f32 %v986_v41, %v5768_v23 }
 0x20b   : > { %v1247_v20 = vsub.f32 1.5, %v1246_v13 }
 0x20c   : > { %v5352_v45 = vpop.eup %5351  ;;  %v6304_v48 = vadd.f32 %v6067_v11, %v1463_v61  ;;  %v1078_v27 = vadd.f32 1e-05, %v1046_v33 }
 0x20d   : > { %v1248_v40 = vmul.f32 %v5350_v49, %v1247_v20  ;;  %v1254_v34 = vmul.f32 %v5352_v45, %v1077_v44  ;;  %vm1260_vm7 = vweird.f32 %v5352_v45 }
 0x20e   : > { %v8733_v56 = vmax.f32 %v6304_v48, 0.0  ;;  %5353 = vrsqrt.f32 %v1078_v27  ;;  %vm1261_vm9 = vmor %vm1259_vm8, %vm1260_vm7  ;;  %vm1269_vm12 = vweird.f32 %v1078_v27  ;;  %vm1998_vm7 = vcmask 785920  }
 0x20f   : > { %v1252_v18 = vsel %vm1251_vm6, %v5350_v49, %v1248_v40  ;;  %v1255_v30 = vmul.f32 %v5352_v45, %v1254_v34  ;;  %v1594_v53 = vld [vmem:[#allocation2 + $0x7f] sm:$0xff]  ;;  %v862_v40 = vmul.f32 %v5768_v23, %v6184_v12 }
 0x210   : > { %1563 = vst.msk [vmem:[#allocation2 + $0x88] sm:$0xff] %vm444_vm1, %v8733_v56  ;;  %v1428_v59 = vmul.f32 %v1252_v18, %v6019_v7 }
 0x211   : > { %v1256_v13 = vmul.f32 0.5, %v1255_v30  ;;  %v989_v41 = vpop.xlane.xlu2 %988  ;;  %1626 = vst.msk [vmem:[#allocation3 + $0xd0] sm:$0xff] %vm444_vm1, %v1594_v53 }
 0x212   : > { %v1464_v36 = vmul.f32 %v6061_v50, %v1428_v59  ;;  %v1047_v61 = vmul.f32 %v989_v41, %v5768_v23  ;;  %v6325_v41 = vsub.f32 %v5894_v5, %v862_v40 }
 0x213   : > { %v1257_v33 = vsub.f32 1.5, %v1256_v13 }
 0x214   : > { %v5354_v20 = vpop.eup %5353  ;;  %v6315_v34 = vadd.f32 %v6067_v11, %v1464_v36  ;;  %v1079_v49 = vadd.f32 1e-05, %v1047_v61 }
 0x215   : > { %v1258_v56 = vmul.f32 %v5352_v45, %v1257_v33  ;;  %v1264_v7 = vmul.f32 %v5354_v20, %v1078_v27  ;;  %vm1270_vm11 = vweird.f32 %v5354_v20 }
 0x216   : > { %8795 = vst [vmem:[#allocation14_spill] sm:$0xff] %v6315_v34  ;;  %v8738_v18 = vmax.f32 %v6315_v34, 0.0  ;;  %5355 = vrsqrt.f32 %v1079_v49  ;;  %vm1271_vm13 = vmor %vm1269_vm12, %vm1270_vm11  ;;  %vm1279_vm15 = vweird.f32 %v1079_v49 }
 0x217   : > { %v1262_v30 = vsel %vm1261_vm9, %v5352_v45, %v1258_v56  ;;  %v1265_v53 = vmul.f32 %v5354_v20, %v1264_v7  ;;  %v1595_v59 = vld [vmem:[#allocation2 + $0x87] sm:$0xff]  ;;  %v861_v56 = vmul.f32 %v5768_v23, %v6166_v63  ;;  %v860_v63 = vmul.f32 %v5768_v23, %v6153_v62 }
 0x218   : > { %1564 = vst.msk [vmem:[#allocation2 + $0x90] sm:$0xff] %vm444_vm1, %v8738_v18  ;;  %v1429_v13 = vmul.f32 %v1262_v30, %v6042_v26 }
 0x219   : > { %v1266_v12 = vmul.f32 0.5, %v1265_v53  ;;  %v1712_v44 = vpop.permute.xlu2 %1711  ;;  %v992_v36 = vpop.xlane.xlu0 %991  ;;  %1627 = vst.msk [vmem:[#allocation3 + $0xe0] sm:$0xff] %vm444_vm1, %v1595_v59  ;;  %v926_v53 = vmul.f32 %v6325_v41, %v6325_v41 }
 0x21a   : > { %v1465_v61 = vmul.f32 %v6061_v50, %v1429_v13  ;;  %1807 = vst.msk [vmem:[#allocation3 + $0x10] sm:$0xff] %vm1805_vm10, %v1712_v44  ;;  %v1048_v45 = vmul.f32 %v992_v36, %v5768_v23  ;;  %v6342_v13 = vsub.f32 %v5882_v58, %v861_v56  ;;  %v6353_v58 = vsub.f32 %v5870_v47, %v860_v63 }
 0x21b   : > { %v1267_v33 = vsub.f32 1.5, %v1266_v12 }
 0x21c   : > { %v5356_v26 = vpop.eup %5355  ;;  %v6334_v5 = vadd.f32 %v6067_v11, %v1465_v61  ;;  %v1080_v40 = vadd.f32 1e-05, %v1048_v45  ;;  %v924_v63 = vmul.f32 %v6353_v58, %v6353_v58 }
 0x21d   : > { %v1268_v7 = vmul.f32 %v5354_v20, %v1267_v33  ;;  %v1274_v30 = vmul.f32 %v5356_v26, %v1079_v49  ;;  %v1008_v33 = vsel %vm444_vm1, %v926_v53, 0.0  ;;  %vm1280_vm14 = vweird.f32 %v5356_v26 }
 0x21e   : > { %8796 = vst [vmem:[#allocation15_spill] sm:$0xff] %v6334_v5  ;;  %v8750_v59 = vmax.f32 %v6334_v5, 0.0  ;;  %5357 = vrsqrt.f32 %v1080_v40  ;;  %vm1281_vm0 = vmor %vm1279_vm15, %vm1280_vm14  ;;  %vm1289_vm3 = vweird.f32 %v1080_v40  ;;  %vm2079_vm14 = vcmask 785408  }
 0x21f   : > { %v1272_v12 = vsel %vm1271_vm13, %v5354_v20, %v1268_v7  ;;  %v1275_v44 = vmul.f32 %v5356_v26, %v1274_v30  ;;  %v1596_v36 = vld [vmem:[#allocation2 + $0x8f] sm:$0xff] }
 0x220   : > { %1565 = vst.msk [vmem:[#allocation2 + $0xa8] sm:$0xff] %vm444_vm1, %v8750_v59  ;;  %v1430_v27 = vmul.f32 %v1272_v12, %v6052_v51  ;;  %v925_v51 = vmul.f32 %v6342_v13, %v6342_v13 }
 0x221   : > { %v1276_v61 = vmul.f32 0.5, %v1275_v44  ;;  %v1710_v45 = vpop.permute.xlu1 %1709  ;;  %1628 = vst.msk [vmem:[#allocation3 + $0xf0] sm:$0xff] %vm444_vm1, %v1596_v36 }
 0x222   : > { %v1466_v62 = vmul.f32 %v6061_v50, %v1430_v27  ;;  %1806 = vst.msk [vmem:[#allocation3] sm:$0xff] %vm1805_vm10, %v1710_v45  ;;  %1009 = vadd.xlane.f32.xlu0 %v1008_v33  ;;  %v1005_v47 = vsel %vm444_vm1, %v925_v51, 0.0  ;;  %v1002_v33 = vsel %vm444_vm1, %v924_v63, 0.0 }
 0x223   : > { %v1277_v20 = vsub.f32 1.5, %v1276_v61 }
 0x224   : > { %v5358_v56 = vpop.eup %5357  ;;  %v6358_v7 = vadd.f32 %v6067_v11, %v1466_v62 }
 0x225   : > { %v1278_v30 = vmul.f32 %v5356_v26, %v1277_v20  ;;  %v1284_v53 = vmul.f32 %v5358_v56, %v1080_v40  ;;  %vm1290_vm2 = vweird.f32 %v5358_v56  ;;  %v1844_v40 = vld [vmem:[#allocation2 + $0x39] sm:$0xff] }
 0x226   : > { %8797 = vst [vmem:[#allocation16_spill] sm:$0xff] %v6358_v7  ;;  %v8735_v12 = vmax.f32 %v6358_v7, 0.0  ;;  %vm1291_vm4 = vmor %vm1289_vm3, %vm1290_vm2 }
 0x227   : > { %v1282_v44 = vsel %vm1281_vm0, %v5356_v26, %v1278_v30  ;;  %v1285_v27 = vmul.f32 %v5358_v56, %v1284_v53  ;;  %v1597_v36 = vld [vmem:[#allocation2 + $0xa7] sm:$0xff] }
 0x228   : > { %1566 = vst.msk [vmem:[#allocation2 + $0xb0] sm:$0xff] %vm444_vm1, %v8735_v12  ;;  %v1431_v61 = vmul.f32 %v1282_v44, %v6071_v1  ;;  %1006 = vadd.xlane.f32.xlu2 %v1005_v47 }
 0x229   : > { %v1286_v49 = vmul.f32 0.5, %v1285_v27  ;;  %1629 = vst.msk [vmem:[#allocation3 + $0x100] sm:$0xff] %vm444_vm1, %v1597_v36 }
 0x22a   : > { %v1467_v45 = vmul.f32 %v6061_v50, %v1431_v61  ;;  %v1845_v61 = vld [vmem:[#allocation2 + $0x41] sm:$0xff] }
 0x22b   : > { %v1287_v26 = vsub.f32 1.5, %v1286_v49  ;;  %v2070_v49 = vld [vmem:[%s8713_s5 + $0x38] sm:$0xff] }
 0x22c   : > { %v6372_v62 = vadd.f32 %v6067_v11, %v1467_v45  ;;  %1003 = vadd.xlane.f32.xlu1 %v1002_v33  ;;  %v1714_v20 = vpop.permute.xlu0 %1713  ;;  %v1842_v45 = vld [vmem:[#allocation2 + $0x29] sm:$0xff] }
 0x22d   : > { %v1288_v51 = vmul.f32 %v5358_v56, %v1287_v26  ;;  %1808 = vst.msk [vmem:[#allocation3 + $0x20] sm:$0xff] %vm1805_vm10, %v1714_v20  ;;  %v2069_v33 = vld [vmem:[%s8713_s5 + $0x30] sm:$0xff]  ;;  %v2068_v20 = vld [vmem:[%s8713_s5 + $0x28] sm:$0xff] }
 0x22e   : > { %8798 = vst [vmem:[#allocation17_spill] sm:$0xff] %v6372_v62  ;;  %v8737_v1 = vmax.f32 %v6372_v62, 0.0 }
 0x22f   : > { %v1292_v30 = vsel %vm1291_vm4, %v5358_v56, %v1288_v51  ;;  %v1598_v53 = vld [vmem:[#allocation2 + $0xaf] sm:$0xff]  ;;  %v2074_v56 = vld [vmem:[%s8713_s5 + $0x58] sm:$0xff] }
 0x230   : > { %1567 = vst.msk [vmem:[#allocation2 + $0xb8] sm:$0xff] %vm444_vm1, %v8737_v1  ;;  %v1432_v44 = vmul.f32 %v1292_v30, %v6088_v0  ;;  %2180 = vmatpush.msra.mxu1 %v2074_v56  ;;  %v2071_v0 = vld [vmem:[%s8713_s5 + $0x40] sm:$0xff]  ;;  %v1649_v51 = vld [vmem:[#allocation2 + $0x28] sm:$0xff] }
 0x231   : > { %1630 = vst.msk [vmem:[#allocation3 + $0x110] sm:$0xff] %vm444_vm1, %v1598_v53  ;;  %v2067_v30 = vld [vmem:[%s8713_s5 + $0x20] sm:$0xff]  ;;  %v1653_v53 = vld [vmem:[#allocation2 + $0x58] sm:$0xff]  ;;  %v2064_v56 = vld [vmem:[%s8713_s5 + $0x8] sm:$0xff] }
 0x232   : > { %v1468_v27 = vmul.f32 %v6061_v50, %v1432_v44  ;;  %v2073_v50 = vld [vmem:[%s8713_s5 + $0x50] sm:$0xff]  ;;  %v2066_v44 = vld [vmem:[%s8713_s5 + $0x18] sm:$0xff] }
 0x233   : > { %2181 = vmatpush.msra.mxu1 %v2073_v50  ;;  %v2063_v50 = vld [vmem:[%s8713_s5] sm:$0xff] }
 0x234   : > { %v6383_v47 = vadd.f32 %v6067_v11, %v1468_v27  ;;  %v2072_v11 = vld [vmem:[%s8713_s5 + $0x48] sm:$0xff]  ;;  %v1651_v27 = vld [vmem:[#allocation2 + $0x38] sm:$0xff] }
 0x235   : > { %2182 = vmatpush.msra.mxu1 %v2072_v11 }
 0x236   : > { %8799 = vst [vmem:[#allocation18_spill] sm:$0xff] %v6383_v47  ;;  %v8749_v63 = vmax.f32 %v6383_v47, 0.0  ;;  %1914 = vrot.lane.b32.xlu0 %v1844_v40, %s5530_s27  ;;  %v2065_v40 = vld [vmem:[%s8713_s5 + $0x10] sm:$0xff] }
 0x237   : > { %v1599_v36 = vld [vmem:[#allocation2 + $0xb7] sm:$0xff]  ;;  %2183 = vmatpush.msra.mxu1 %v2071_v0 }
 0x238   : > { %1568 = vst.msk [vmem:[#allocation2 + $0xc0] sm:$0xff] %vm444_vm1, %v8749_v63 }
 0x239   : > { %1631 = vst.msk [vmem:[#allocation3 + $0x120] sm:$0xff] %vm444_vm1, %v1599_v36  ;;  %2184 = vmatpush.msra.mxu1 %v2070_v49 }
 0x23b   : > { %2185 = vmatpush.msra.mxu1 %v2069_v33 }
 0x23d   : > { %2186 = vmatpush.msra.mxu1 %v2068_v20 }
 0x23e   : > { %1916 = vrot.lane.b32.xlu0 %v1845_v61, %s5530_s27  ;;  %v1843_v61 = vld [vmem:[#allocation2 + $0x31] sm:$0xff] }
 0x23f   : > { %v1600_v26 = vld [vmem:[#allocation2 + $0xbf] sm:$0xff]  ;;  %2187 = vmatpush.msra.mxu1 %v2067_v30 }
 0x240   : > { %1910 = vrot.lane.b32.xlu2 %v1842_v45, %s5530_s27  ;;  %1632 = vst.msk [vmem:[#allocation3 + $0x130] sm:$0xff] %vm444_vm1, %v1600_v26 }
 0x241   : > { %2188 = vmatpush.msra.mxu1 %v2066_v44 }
 0x243   : > { %2189 = vmatpush.msra.mxu1 %v2065_v40 }
 0x245   : > { %1717 = vrot.lane.b32.xlu1 %v1649_v51, %s5529_s26  ;;  %2190 = vmatpush.msra.mxu1 %v2064_v56 }
 0x246   : > { %1725 = vrot.lane.b32.xlu0 %v1653_v53, %s5529_s26 }
 0x247   : > { %2191 = vmatpush.msra.mxu1 %v2063_v50 }
 0x248   : > { %1721 = vrot.lane.b32.xlu2 %v1651_v27, %s5529_s26 }
 0x24c   : > { %v995_v36 = vpop.xlane.xlu1 %994 }
 0x24d   : > { %v1049_v11 = vmul.f32 %v995_v36, %v5768_v23 }
 0x24f   : > { %v1081_v0 = vadd.f32 1e-05, %v1049_v11 }
 0x250   : > { %1912 = vrot.lane.b32.xlu2 %v1843_v61, %s5530_s27 }
 0x251   : > { %5359 = vrsqrt.f32 %v1081_v0  ;;  %vm1299_vm6 = vweird.f32 %v1081_v0 }
 0x252   : > { %v998_v49 = vpop.xlane.xlu2 %997 }
 0x253   : > { %v1050_v45 = vmul.f32 %v998_v49, %v5768_v23 }
 0x255   : > { %v1082_v26 = vadd.f32 1e-05, %v1050_v45  ;;  %v863_v45 = vmul.f32 %v5768_v23, %v6207_v35 }
 0x257   : > { %v5360_v33 = vpop.eup %5359  ;;  %5361 = vrsqrt.f32 %v1082_v26  ;;  %v1001_v20 = vpop.xlane.xlu0 %1000  ;;  %vm1309_vm11 = vweird.f32 %v1082_v26 }
 0x258   : > { %v1294_v51 = vmul.f32 %v5360_v33, %v1081_v0  ;;  %v1051_v30 = vmul.f32 %v1001_v20, %v5768_v23  ;;  %vm1300_vm5 = vweird.f32 %v5360_v33 }
 0x259   : > { %vm1301_vm8 = vmor %vm1299_vm6, %vm1300_vm5 }
 0x25a   : > { %v1295_v53 = vmul.f32 %v5360_v33, %v1294_v51  ;;  %v1083_v44 = vadd.f32 1e-05, %v1051_v30  ;;  %v1716_v27 = vpop.permute.xlu2 %1715 }
 0x25b   : > { %1809 = vst.msk [vmem:[#allocation3 + $0x30] sm:$0xff] %vm1805_vm10, %v1716_v27 }
 0x25c   : > { %v1296_v40 = vmul.f32 0.5, %v1295_v53  ;;  %5363 = vrsqrt.f32 %v1083_v44  ;;  %v865_v53 = vmul.f32 %v5768_v23, %v6242_v60  ;;  %v6452_v60 = vsub.f32 %v5906_v15, %v863_v45 }
 0x25d   : > { %v5362_v56 = vpop.eup %5361  ;;  %vm1319_vm15 = vweird.f32 %v1083_v44 }
 0x25e   : > { %v1297_v36 = vsub.f32 1.5, %v1296_v40  ;;  %v1304_v50 = vmul.f32 %v5362_v56, %v1082_v26  ;;  %vm1310_vm9 = vweird.f32 %v5362_v56 }
 0x25f   : > { %vm1311_vm12 = vmor %vm1309_vm11, %vm1310_vm9 }
 0x260   : > { %v1298_v11 = vmul.f32 %v5360_v33, %v1297_v36  ;;  %v1305_v61 = vmul.f32 %v5362_v56, %v1304_v50  ;;  %v6447_v50 = vld [vmem:[%s8711_s3] ss:$0 sm:$0xff] }
 0x262   : > { %v5364_v49 = vpop.eup %5363  ;;  %v1302_v20 = vsel %vm1301_vm8, %v5360_v33, %v1298_v11  ;;  %v1306_v51 = vmul.f32 0.5, %v1305_v61  ;;  %v1909_v30 = vpop.permute.xlu2 %1908  ;;  %v6455_v11 = vsub.f32 %v5958_v43, %v865_v53  ;;  %v6460_v61 = vld [vmem:[%s8712_s4] ss:$0 sm:$0xff]  ;;  %v927_v43 = vmul.f32 %v6452_v60, %v6452_v60 }
 0x263   : > { %v1433_v27 = vmul.f32 %v1302_v20, %v6178_v31  ;;  %v1314_v40 = vmul.f32 %v5364_v49, %v1083_v44  ;;  %2002 = vst.msk [vmem:[#allocation3 + $0x30] sm:$0xff] %vm1998_vm7, %v1909_v30  ;;  %vm1320_vm13 = vweird.f32 %v5364_v49 }
 0x264   : > { %v1307_v36 = vsub.f32 1.5, %v1306_v51  ;;  %v1903_v0 = vpop.permute.xlu1 %1902  ;;  %vm1321_vm0 = vmor %vm1319_vm15, %vm1320_vm13 }
 0x265   : > { %v1469_v35 = vmul.f32 %v6447_v50, %v1433_v27  ;;  %v1315_v33 = vmul.f32 %v5364_v49, %v1314_v40  ;;  %1999 = vst.msk [vmem:[#allocation3] sm:$0xff] %vm1998_vm7, %v1903_v0 }
 0x266   : > { %v1308_v31 = vmul.f32 %v5362_v56, %v1307_v36 }
 0x267   : > { %v6463_v20 = vadd.f32 %v6460_v61, %v1469_v35  ;;  %v1316_v51 = vmul.f32 0.5, %v1315_v33 }
 0x268   : > { %v1312_v30 = vsel %vm1311_vm12, %v5362_v56, %v1308_v31  ;;  %v929_v56 = vmul.f32 %v6455_v11, %v6455_v11  ;;  %v1011_v31 = vsel %vm444_vm1, %v927_v43, 0.0 }
 0x269   : > { %8800 = vst [vmem:[#allocation19_spill] sm:$0xff] %v6463_v20  ;;  %v8734_v27 = vmax.f32 %v6463_v20, 0.0  ;;  %v1434_v15 = vmul.f32 %v1312_v30, %v6197_v4  ;;  %v1317_v45 = vsub.f32 1.5, %v1316_v51  ;;  %v864_v4 = vmul.f32 %v5768_v23, %v6228_v16 }
 0x26a   : > { %v1720_v26 = vpop.permute.xlu0 %1719  ;;  %v1017_v16 = vsel %vm444_vm1, %v929_v56, 0.0 }
 0x26b   : > { %1569 = vst.msk [vmem:[#allocation2 + $0xc8] sm:$0xff] %vm444_vm1, %v8734_v27  ;;  %v1470_v53 = vmul.f32 %v6447_v50, %v1434_v15  ;;  %v1318_v40 = vmul.f32 %v5364_v49, %v1317_v45  ;;  %v6488_v30 = vsub.f32 %v5930_v28, %v864_v4 }
 0x26c   : > { %1811 = vst.msk [vmem:[#allocation3 + $0x50] sm:$0xff] %vm1805_vm10, %v1720_v26  ;;  %v1905_v36 = vpop.permute.xlu1 %1904  ;;  %v2031_v0 = vld [vmem:[#allocation3] sm:$0xff] }
 0x26d   : > { %v6479_v35 = vadd.f32 %v6460_v61, %v1470_v53  ;;  %v1322_v33 = vsel %vm1321_vm0, %v5364_v49, %v1318_v40  ;;  %2000 = vst.msk [vmem:[#allocation3 + $0x10] sm:$0xff] %vm1998_vm7, %v1905_v36  ;;  %5213 = vmatmul.msk.f32.vlgmr.msra.gmra.mxu1 %vm2079_vm14, %v2031_v0  ;;  %v928_v28 = vmul.f32 %v6488_v30, %v6488_v30  ;;  %v1846_v36 = vld [vmem:[#allocation2 + $0x59] sm:$0xff]  ;;  %v2034_v0 = vld [vmem:[#allocation3 + $0x30] sm:$0xff] }
 0x26e   : > { %v1435_v44 = vmul.f32 %v1322_v33, %v6215_v10  ;;  %v1652_v33 = vld [vmem:[#allocation2 + $0x40] sm:$0xff] }
 0x26f   : > { %8801 = vst [vmem:[#allocation20_spill] sm:$0xff] %v6479_v35  ;;  %v8736_v51 = vmax.f32 %v6479_v35, 0.0  ;;  %1012 = vadd.xlane.f32.xlu1 %v1011_v31  ;;  %v1014_v53 = vsel %vm444_vm1, %v928_v28, 0.0  ;;  %v1654_v31 = vld [vmem:[#allocation2 + $0x60] sm:$0xff] }
 0x270   : > { %v1471_v15 = vmul.f32 %v6447_v50, %v1435_v44  ;;  %1018 = vadd.xlane.f32.xlu0 %v1017_v16  ;;  %v1655_v44 = vld [vmem:[#allocation2 + $0x68] sm:$0xff] }
 0x271   : > { %1570 = vst.msk [vmem:[#allocation2 + $0xd0] sm:$0xff] %vm444_vm1, %v8736_v51 }
 0x272   : > { %v6495_v49 = vadd.f32 %v6460_v61, %v1471_v15  ;;  %v1601_v10 = vld [vmem:[#allocation2 + $0xc7] sm:$0xff] }
 0x273   : > { %1633 = vst.msk [vmem:[#allocation3 + $0x140] sm:$0xff] %vm444_vm1, %v1601_v10 }
 0x274   : > { %8802 = vst [vmem:[#allocation21_spill] sm:$0xff] %v6495_v49  ;;  %v8748_v45 = vmax.f32 %v6495_v49, 0.0  ;;  %v1907_v26 = vpop.permute.xlu1 %1906  ;;  %v2032_v43 = vld [vmem:[#allocation3 + $0x10] sm:$0xff] }
 0x275   : > { %2001 = vst.msk [vmem:[#allocation3 + $0x20] sm:$0xff] %vm1998_vm7, %v1907_v26  ;;  %5214 = vmatmul.msk.f32.gmra.mxu1 %vm2079_vm14, %v2032_v43 }
 0x276   : > { %1571 = vst.msk [vmem:[#allocation2 + $0xd8] sm:$0xff] %vm444_vm1, %v8748_v45 }
 0x278   : > { %v1602_v40 = vld [vmem:[#allocation2 + $0xcf] sm:$0xff] }
 0x279   : > { %1015 = vadd.xlane.f32.xlu2 %v1014_v53  ;;  %1634 = vst.msk [vmem:[#allocation3 + $0x150] sm:$0xff] %vm444_vm1, %v1602_v40 }
 0x27c   : > { %v2033_v56 = vld [vmem:[#allocation3 + $0x20] sm:$0xff] }
 0x27d   : > { %5215 = vmatmul.msk.f32.gmra.mxu1 %vm2079_vm14, %v2033_v56  ;;  %v1603_v4 = vld [vmem:[#allocation2 + $0xd7] sm:$0xff] }
 0x27e   : > { %1635 = vst.msk [vmem:[#allocation3 + $0x160] sm:$0xff] %vm444_vm1, %v1603_v4 }
 0x284   : > { %1918 = vrot.lane.b32.xlu0 %v1846_v36, %s5530_s27 }
 0x285   : > { %5216 = vmatmul.msk.f32.gmra.mxu1 %vm2079_vm14, %v2034_v0 }
 0x288   : > { %1723 = vrot.lane.b32.xlu1 %v1652_v33, %s5529_s26 }
 0x28c   : > { %1729 = vrot.lane.b32.xlu0 %v1655_v44, %s5529_s26  ;;  %v866_v44 = vmul.f32 %v5768_v23, %v6255_v52 }
 0x291   : > { %1727 = vrot.lane.b32.xlu2 %v1654_v31, %s5529_s26 }
 0x295   : > { %v1010_v16 = vpop.xlane.xlu0 %1009 }
 0x296   : > { %v1054_v15 = vmul.f32 %v1010_v16, %v5768_v23 }
 0x298   : > { %v1086_v10 = vadd.f32 1e-05, %v1054_v15 }
 0x29a   : > { %5365 = vrsqrt.f32 %v1086_v10  ;;  %vm1349_vm3 = vweird.f32 %v1086_v10 }
 0x29b   : > { %v1007_v26 = vpop.xlane.xlu2 %1006 }
 0x29c   : > { %v1053_v43 = vmul.f32 %v1007_v26, %v5768_v23 }
 0x29e   : > { %v1085_v28 = vadd.f32 1e-05, %v1053_v43  ;;  %v6523_v43 = vsub.f32 %v5986_v55, %v866_v44 }
 0x29f   : > { %v1004_v53 = vpop.xlane.xlu1 %1003 }
 0x2a0   : > { %v5366_v40 = vpop.eup %5365  ;;  %5367 = vrsqrt.f32 %v1085_v28  ;;  %v1052_v56 = vmul.f32 %v1004_v53, %v5768_v23  ;;  %v868_v53 = vmul.f32 %v5768_v23, %v6286_v2  ;;  %v930_v55 = vmul.f32 %v6523_v43, %v6523_v43 }
 0x2a1   : > { %v1344_v4 = vmul.f32 %v5366_v40, %v1086_v10  ;;  %vm1350_vm2 = vweird.f32 %v5366_v40  ;;  %vm1339_vm6 = vweird.f32 %v1085_v28 }
 0x2a2   : > { %v1084_v36 = vadd.f32 1e-05, %v1052_v56  ;;  %vm1351_vm4 = vmor %vm1349_vm3, %vm1350_vm2  ;;  %v6534_v2 = vsub.f32 %v6039_v22, %v868_v53  ;;  %v1020_v22 = vsel %vm444_vm1, %v930_v55, 0.0 }
 0x2a3   : > { %v1345_v0 = vmul.f32 %v5366_v40, %v1344_v4  ;;  %v6518_v33 = vpop.permute.xlu2 %1910 }
 0x2a4   : > { %5369 = vrsqrt.f32 %v1084_v36  ;;  %vm1329_vm11 = vweird.f32 %v1084_v36 }
 0x2a5   : > { %v1346_v31 = vmul.f32 0.5, %v1345_v0 }
 0x2a6   : > { %v5368_v16 = vpop.eup %5367 }
 0x2a7   : > { %v1347_v15 = vsub.f32 1.5, %v1346_v31  ;;  %v1334_v26 = vmul.f32 %v5368_v16, %v1085_v28  ;;  %v867_v31 = vmul.f32 %v5768_v23, %v6271_v29  ;;  %vm1340_vm5 = vweird.f32 %v5368_v16 }
 0x2a8   : > { %v1915_v27 = vpop.permute.xlu0 %1914  ;;  %vm1341_vm8 = vmor %vm1339_vm6, %vm1340_vm5 }
 0x2a9   : > { %v1348_v56 = vmul.f32 %v5366_v40, %v1347_v15  ;;  %v1335_v4 = vmul.f32 %v5368_v16, %v1334_v26 }
 0x2aa   : > { %v5370_v12 = vpop.eup %5369 }
 0x2ab   : > { %v1352_v51 = vsel %vm1351_vm4, %v5366_v40, %v1348_v56  ;;  %v1336_v52 = vmul.f32 0.5, %v1335_v4  ;;  %v1324_v1 = vmul.f32 %v5370_v12, %v1084_v36  ;;  %v1722_v0 = vpop.permute.xlu2 %1721  ;;  %vm1330_vm9 = vweird.f32 %v5370_v12 }
 0x2ac   : > { %v1438_v18 = vmul.f32 %v1352_v51, %v6325_v41  ;;  %1812 = vst.msk [vmem:[#allocation3 + $0x60] sm:$0xff] %vm1805_vm10, %v1722_v0  ;;  %v6539_v41 = vsub.f32 %v6014_v3, %v867_v31  ;;  %vm1331_vm12 = vmor %vm1329_vm11, %vm1330_vm9 }
 0x2ad   : > { %v1337_v10 = vsub.f32 1.5, %v1336_v52  ;;  %v1325_v44 = vmul.f32 %v5370_v12, %v1324_v1  ;;  %2005 = vst.msk [vmem:[#allocation3 + $0x60] sm:$0xff] %vm1998_vm7, %v1915_v27 }
 0x2ae   : > { %v1474_v40 = vmul.f32 %v6447_v50, %v1438_v18  ;;  %v932_v18 = vmul.f32 %v6534_v2, %v6534_v2  ;;  %v931_v0 = vmul.f32 %v6539_v41, %v6539_v41 }
 0x2af   : > { %v1338_v15 = vmul.f32 %v5368_v16, %v1337_v10  ;;  %v1326_v29 = vmul.f32 0.5, %v1325_v44 }
 0x2b0   : > { %v6542_v51 = vadd.f32 %v6460_v61, %v1474_v40  ;;  %v6544_v26 = vpop.permute.xlu0 %1916  ;;  %v1026_v52 = vsel %vm444_vm1, %v932_v18, 0.0  ;;  %v1023_v44 = vsel %vm444_vm1, %v931_v0, 0.0  ;;  %v1847_v18 = vld [vmem:[#allocation2 + $0x61] sm:$0xff]  ;;  %v1849_v0 = vld [vmem:[#allocation2 + $0x71] sm:$0xff] }
 0x2b1   : > { %v1342_v53 = vsel %vm1341_vm8, %v5368_v16, %v1338_v15  ;;  %v1327_v1 = vsub.f32 1.5, %v1326_v29 }
 0x2b2   : > { %8803 = vst [vmem:[#allocation22_spill] sm:$0xff] %v6542_v51  ;;  %v8747_v27 = vmax.f32 %v6542_v51, 0.0  ;;  %v1437_v28 = vmul.f32 %v1342_v53, %v6342_v13  ;;  %1021 = vadd.xlane.f32.xlu1 %v1020_v22 }
 0x2b3   : > { %v1328_v3 = vmul.f32 %v5370_v12, %v1327_v1  ;;  %v1913_v56 = vpop.permute.xlu2 %1912  ;;  %v1657_v1 = vld [vmem:[#allocation2 + $0x78] sm:$0xff] }
 0x2b4   : > { %1574 = vst.msk [vmem:[#allocation2 + $0x100] sm:$0xff] %vm444_vm1, %v8747_v27  ;;  %v1473_v4 = vmul.f32 %v6447_v50, %v1437_v28  ;;  %v2037_v28 = vld [vmem:[#allocation3 + $0x60] sm:$0xff] }
 0x2b5   : > { %v1332_v16 = vsel %vm1331_vm12, %v5370_v12, %v1328_v3  ;;  %2004 = vst.msk [vmem:[#allocation3 + $0x50] sm:$0xff] %vm1998_vm7, %v1913_v56  ;;  %v1659_v3 = vld [vmem:[#allocation2 + $0x88] sm:$0xff]  ;;  %v1656_v56 = vld [vmem:[#allocation2 + $0x70] sm:$0xff] }
 0x2b6   : > { %v6560_v13 = vadd.f32 %v6460_v61, %v1473_v4  ;;  %v1436_v36 = vmul.f32 %v1332_v16, %v6353_v58  ;;  %1027 = vadd.xlane.f32.xlu0 %v1026_v52  ;;  %v1848_v4 = vld [vmem:[#allocation2 + $0x69] sm:$0xff]  ;;  %v1853_v16 = vld [vmem:[#allocation2 + $0x91] sm:$0xff]  ;;  %v1658_v52 = vld [vmem:[#allocation2 + $0x80] sm:$0xff] }
 0x2b7   : > { %v1718_v31 = vpop.permute.xlu1 %1717 }
 0x2b8   : > { %8804 = vst [vmem:[#allocation23_spill] sm:$0xff] %v6560_v13  ;;  %v8742_v55 = vmax.f32 %v6560_v13, 0.0  ;;  %v1472_v10 = vmul.f32 %v6447_v50, %v1436_v36  ;;  %v1726_v12 = vpop.permute.xlu0 %1725  ;;  %v1850_v36 = vld [vmem:[#allocation2 + $0x79] sm:$0xff] }
 0x2b9   : > { %1810 = vst.msk [vmem:[#allocation3 + $0x40] sm:$0xff] %vm1805_vm10, %v1718_v31  ;;  %v1661_v31 = vld [vmem:[#allocation2 + $0xa8] sm:$0xff] }
 0x2ba   : > { %2003 = vst.msk [vmem:[#allocation3 + $0x40] sm:$0xff] %vm1998_vm7, %v6518_v33  ;;  %v6573_v58 = vadd.f32 %v6460_v61, %v1472_v10  ;;  %1024 = vadd.xlane.f32.xlu2 %v1023_v44 }
 0x2bb   : > { %1573 = vst.msk [vmem:[#allocation2 + $0xf8] sm:$0xff] %vm444_vm1, %v8742_v55 }
 0x2bc   : > { %8805 = vst [vmem:[#allocation24_spill] sm:$0xff] %v6573_v58  ;;  %v8740_v40 = vmax.f32 %v6573_v58, 0.0  ;;  %v2036_v53 = vld [vmem:[#allocation3 + $0x50] sm:$0xff] }
 0x2bd   : > { %1814 = vst.msk [vmem:[#allocation3 + $0x80] sm:$0xff] %vm1805_vm10, %v1726_v12  ;;  %v1660_v12 = vld [vmem:[#allocation2 + $0x90] sm:$0xff] }
 0x2be   : > { %1572 = vst.msk [vmem:[#allocation2 + $0xe0] sm:$0xff] %vm444_vm1, %v8740_v40 }
 0x2c1   : > { %v2035_v15 = vld [vmem:[#allocation3 + $0x40] sm:$0xff] }
 0x2c2   : > { %5217 = vmatmul.msk.f32.gmra.mxu1 %vm2079_vm14, %v2035_v15  ;;  %v1606_v33 = vld [vmem:[#allocation2 + $0xff] sm:$0xff]  ;;  %v1605_v29 = vld [vmem:[#allocation2 + $0xf7] sm:$0xff] }
 0x2c3   : > { %1638 = vst.msk [vmem:[#allocation3 + $0x190] sm:$0xff] %vm444_vm1, %v1606_v33 }
 0x2c4   : > { %1637 = vst.msk [vmem:[#allocation3 + $0x180] sm:$0xff] %vm444_vm1, %v1605_v29 }
 0x2c5   : > { %v1604_v22 = vld [vmem:[#allocation2 + $0xdf] sm:$0xff] }
 0x2c6   : > { %1636 = vst.msk [vmem:[#allocation3 + $0x170] sm:$0xff] %vm444_vm1, %v1604_v22 }
 0x2ca   : > { %5218 = vmatmul.msk.f32.gmra.mxu1 %vm2079_vm14, %v2036_v53  ;;  %1733 = vrot.lane.b32.xlu0 %v1657_v1, %s5529_s26  ;;  %v1851_v53 = vld [vmem:[#allocation2 + $0x81] sm:$0xff]  ;;  %v1663_v1 = vld [vmem:[#allocation2 + $0xb8] sm:$0xff] }
 0x2cb   : > { %1920 = vrot.lane.b32.xlu1 %v1847_v18, %s5530_s27  ;;  %v1852_v18 = vld [vmem:[#allocation2 + $0x89] sm:$0xff] }
 0x2d2   : > { %5219 = vmatmul.msk.f32.gmra.mxu1 %vm2079_vm14, %v2037_v28  ;;  %1737 = vrot.lane.b32.xlu0 %v1659_v3, %s5529_s26 }
 0x2d3   : > { %1731 = vrot.lane.b32.xlu2 %v1656_v56, %s5529_s26  ;;  %1922 = vrot.lane.b32.xlu1 %v1848_v4, %s5530_s27 }
 0x2da   : > { %1932 = vrot.lane.b32.xlu0 %v1853_v16, %s5530_s27 }
 0x2db   : > { %1735 = vrot.lane.b32.xlu2 %v1658_v52, %s5529_s26  ;;  %1924 = vrot.lane.b32.xlu1 %v1849_v0, %s5530_s27 }
 0x2e2   : > { %v1013_v10 = vpop.xlane.xlu1 %1012  ;;  %1741 = vrot.lane.b32.xlu0 %v1661_v31, %s5529_s26 }
 0x2e3   : > { %1926 = vrot.lane.b32.xlu2 %v1850_v36, %s5530_s27  ;;  %v1055_v44 = vmul.f32 %v1013_v10, %v5768_v23  ;;  %1739 = vrot.lane.b32.xlu1 %v1660_v12, %s5529_s26  ;;  %v1019_v15 = vpop.xlane.xlu0 %1018  ;;  %v1854_v10 = vld [vmem:[#allocation2 + $0xa9] sm:$0xff]  ;;  %v1856_v12 = vld [vmem:[#allocation2 + $0xb9] sm:$0xff] }
 0x2e4   : > { %v1057_v33 = vmul.f32 %v1019_v15, %v5768_v23  ;;  %v1662_v15 = vld [vmem:[#allocation2 + $0xb0] sm:$0xff] }
 0x2e5   : > { %v1087_v29 = vadd.f32 1e-05, %v1055_v44 }
 0x2e6   : > { %v1089_v22 = vadd.f32 1e-05, %v1057_v33 }
 0x2e7   : > { %5371 = vrsqrt.f32 %v1087_v29  ;;  %vm1359_vm0 = vweird.f32 %v1087_v29 }
 0x2e8   : > { %5373 = vrsqrt.f32 %v1089_v22  ;;  %vm1379_vm3 = vweird.f32 %v1089_v22 }
 0x2ea   : > { %1745 = vrot.lane.b32.xlu0 %v1663_v1, %s5529_s26 }
 0x2eb   : > { %1928 = vrot.lane.b32.xlu2 %v1851_v53, %s5530_s27  ;;  %1930 = vrot.lane.b32.xlu1 %v1852_v18, %s5530_s27 }
 0x2ec   : > { %v1016_v28 = vpop.xlane.xlu2 %1015 }
 0x2ed   : > { %v5372_v3 = vpop.eup %5371  ;;  %v1056_v56 = vmul.f32 %v1016_v28, %v5768_v23 }
 0x2ee   : > { %v5374_v4 = vpop.eup %5373  ;;  %v1354_v16 = vmul.f32 %v5372_v3, %v1087_v29  ;;  %vm1360_vm13 = vweird.f32 %v5372_v3  ;;  %v1855_v29 = vld [vmem:[#allocation2 + $0xb1] sm:$0xff] }
 0x2ef   : > { %v1374_v52 = vmul.f32 %v5374_v4, %v1089_v22  ;;  %v1088_v0 = vadd.f32 1e-05, %v1056_v56  ;;  %vm1380_vm15 = vweird.f32 %v5374_v4  ;;  %vm1361_vm2 = vmor %vm1359_vm0, %vm1360_vm13 }
 0x2f0   : > { %v1355_v36 = vmul.f32 %v5372_v3, %v1354_v16  ;;  %vm1381_vm4 = vmor %vm1379_vm3, %vm1380_vm15 }
 0x2f1   : > { %v1375_v31 = vmul.f32 %v5374_v4, %v1374_v52  ;;  %5375 = vrsqrt.f32 %v1088_v0  ;;  %vm1369_vm6 = vweird.f32 %v1088_v0 }
 0x2f2   : > { %v1356_v44 = vmul.f32 0.5, %v1355_v36  ;;  %1938 = vrot.lane.b32.xlu0 %v1856_v12, %s5530_s27 }
 0x2f3   : > { %1934 = vrot.lane.b32.xlu2 %v1854_v10, %s5530_s27  ;;  %v1376_v33 = vmul.f32 0.5, %v1375_v31  ;;  %1743 = vrot.lane.b32.xlu1 %v1662_v15, %s5529_s26  ;;  %v1859_v15 = vld [vmem:[#allocation2 + $0xd1] sm:$0xff] }
 0x2f4   : > { %v1357_v53 = vsub.f32 1.5, %v1356_v44  ;;  %v1728_v1 = vpop.permute.xlu2 %1727  ;;  %v1665_v44 = vld [vmem:[#allocation2 + $0xc8] sm:$0xff] }
 0x2f5   : > { %v1377_v18 = vsub.f32 1.5, %v1376_v33  ;;  %1815 = vst.msk [vmem:[#allocation3 + $0x90] sm:$0xff] %vm1805_vm10, %v1728_v1 }
 0x2f6   : > { %v1358_v28 = vmul.f32 %v5372_v3, %v1357_v53  ;;  %v1919_v56 = vpop.permute.xlu0 %1918 }
 0x2f7   : > { %v5376_v16 = vpop.eup %5375  ;;  %v1378_v52 = vmul.f32 %v5374_v4, %v1377_v18  ;;  %2007 = vst.msk [vmem:[#allocation3 + $0x80] sm:$0xff] %vm1998_vm7, %v1919_v56 }
 0x2f8   : > { %v1362_v36 = vsel %vm1361_vm2, %v5372_v3, %v1358_v28  ;;  %v1364_v31 = vmul.f32 %v5376_v16, %v1088_v0  ;;  %vm1370_vm5 = vweird.f32 %v5376_v16 }
 0x2f9   : > { %v1439_v10 = vmul.f32 %v1362_v36, %v6452_v60  ;;  %v1382_v12 = vsel %vm1381_vm4, %v5374_v4, %v1378_v52  ;;  %vm1371_vm8 = vmor %vm1369_vm6, %vm1370_vm5 }
 0x2fa   : > { %v1441_v33 = vmul.f32 %v1382_v12, %v6455_v11  ;;  %v1365_v1 = vmul.f32 %v5376_v16, %v1364_v31  ;;  %v1724_v53 = vpop.permute.xlu1 %1723  ;;  %1944 = vrot.lane.b32.xlu0 %v1859_v15, %s5530_s27  ;;  %v1670_v31 = vld [vmem:[#allocation2 + $0x100] sm:$0xff] }
 0x2fb   : > { %1749 = vrot.lane.b32.xlu2 %v1665_v44, %s5529_s26  ;;  %v1475_v22 = vmul.f32 %v6447_v50, %v1439_v10  ;;  %1813 = vst.msk [vmem:[#allocation3 + $0x70] sm:$0xff] %vm1805_vm10, %v1724_v53  ;;  %1936 = vrot.lane.b32.xlu1 %v1855_v29, %s5530_s27  ;;  %v1664_v12 = vld [vmem:[#allocation2 + $0xc0] sm:$0xff]  ;;  %v1667_v53 = vld [vmem:[#allocation2 + $0xd8] sm:$0xff] }
 0x2fc   : > { %v1477_v60 = vmul.f32 %v6447_v50, %v1441_v33  ;;  %v1366_v3 = vmul.f32 0.5, %v1365_v1  ;;  %2006 = vst.msk [vmem:[#allocation3 + $0x70] sm:$0xff] %vm1998_vm7, %v6544_v26  ;;  %v1857_v26 = vld [vmem:[#allocation2 + $0xc1] sm:$0xff]  ;;  %v1862_v29 = vld [vmem:[#allocation2 + $0xf9] sm:$0xff] }
 0x2fd   : > { %v6619_v11 = vadd.f32 %v6460_v61, %v1475_v22 }
 0x2fe   : > { %v6622_v4 = vadd.f32 %v6460_v61, %v1477_v60  ;;  %v1367_v18 = vsub.f32 1.5, %v1366_v3  ;;  %v1730_v28 = vpop.permute.xlu0 %1729  ;;  %v2039_v22 = vld [vmem:[#allocation3 + $0x80] sm:$0xff]  ;;  %v1858_v3 = vld [vmem:[#allocation2 + $0xc9] sm:$0xff] }
 0x2ff   : > { %8806 = vst [vmem:[#allocation25_spill] sm:$0xff] %v6619_v11  ;;  %v8739_v56 = vmax.f32 %v6619_v11, 0.0  ;;  %v1860_v60 = vld [vmem:[#allocation2 + $0xd9] sm:$0xff] }
 0x300   : > { %8807 = vst [vmem:[#allocation26_spill] sm:$0xff] %v6622_v4  ;;  %v8746_v52 = vmax.f32 %v6622_v4, 0.0  ;;  %v1368_v36 = vmul.f32 %v5376_v16, %v1367_v18 }
 0x301   : > { %1816 = vst.msk [vmem:[#allocation3 + $0xa0] sm:$0xff] %vm1805_vm10, %v1730_v28 }
 0x302   : > { %1575 = vst.msk [vmem:[#allocation2 + $0x108] sm:$0xff] %vm444_vm1, %v8739_v56  ;;  %v1372_v10 = vsel %vm1371_vm8, %v5376_v16, %v1368_v36  ;;  %1759 = vrot.lane.b32.xlu0 %v1670_v31, %s5529_s26  ;;  %v1668_v31 = vld [vmem:[#allocation2 + $0xe0] sm:$0xff] }
 0x303   : > { %1577 = vst.msk [vmem:[#allocation2 + $0x118] sm:$0xff] %vm444_vm1, %v8746_v52  ;;  %1940 = vrot.lane.b32.xlu2 %v1857_v26, %s5530_s27  ;;  %v1440_v44 = vmul.f32 %v1372_v10, %v6488_v30  ;;  %1747 = vrot.lane.b32.xlu1 %v1664_v12, %s5529_s26  ;;  %v2038_v0 = vld [vmem:[#allocation3 + $0x70] sm:$0xff]  ;;  %v1669_v26 = vld [vmem:[#allocation2 + $0xf8] sm:$0xff] }
 0x304   : > { %5220 = vmatmul.msk.f32.gmra.mxu1 %vm2079_vm14, %v2038_v0  ;;  %v1666_v30 = vld [vmem:[#allocation2 + $0xd0] sm:$0xff] }
 0x305   : > { %v1476_v15 = vmul.f32 %v6447_v50, %v1440_v44  ;;  %v1861_v44 = vld [vmem:[#allocation2 + $0xe1] sm:$0xff] }
 0x307   : > { %v6640_v33 = vadd.f32 %v6460_v61, %v1476_v15 }
 0x309   : > { %8808 = vst [vmem:[#allocation27_spill] sm:$0xff] %v6640_v33  ;;  %v1607_v1 = vld [vmem:[#allocation2 + $0x107] sm:$0xff]  ;;  %v8741_v16 = vmax.f32 %v6640_v33, 0.0 }
 0x30a   : > { %1639 = vst.msk [vmem:[#allocation3 + $0x1a0] sm:$0xff] %vm444_vm1, %v1607_v1  ;;  %1950 = vrot.lane.b32.xlu0 %v1862_v29, %s5530_s27  ;;  %v1671_v12 = vld [vmem:[#allocation2 + $0x108] sm:$0xff] }
 0x30b   : > { %1753 = vrot.lane.b32.xlu2 %v1667_v53, %s5529_s26  ;;  %1576 = vst.msk [vmem:[#allocation2 + $0x110] sm:$0xff] %vm444_vm1, %v8741_v16  ;;  %1751 = vrot.lane.b32.xlu1 %v1666_v30, %s5529_s26  ;;  %v1863_v29 = vld [vmem:[#allocation2 + $0x101] sm:$0xff] }
 0x30c   : > { %5221 = vmatmul.msk.f32.gmra.mxu1 %vm2079_vm14, %v2039_v22 }
 0x312   : > { %v1672_v18 = vld [vmem:[#allocation2 + $0x110] sm:$0xff] }
 0x313   : > { %1946 = vrot.lane.b32.xlu2 %v1860_v60, %s5530_s27  ;;  %1942 = vrot.lane.b32.xlu1 %v1858_v3, %s5530_s27  ;;  %v1608_v28 = vld [vmem:[#allocation2 + $0x10f] sm:$0xff]  ;;  %v1609_v36 = vld [vmem:[#allocation2 + $0x117] sm:$0xff] }
 0x314   : > { %1763 = vrot.lane.b32.xlu0 %v1672_v18, %s5529_s26  ;;  %1640 = vst.msk [vmem:[#allocation3 + $0x1b0] sm:$0xff] %vm444_vm1, %v1608_v28  ;;  %v1865_v10 = vld [vmem:[#allocation2 + $0x111] sm:$0xff]  ;;  %v1864_v22 = vld [vmem:[#allocation2 + $0x109] sm:$0xff] }
 0x315   : > { %1641 = vst.msk [vmem:[#allocation3 + $0x1c0] sm:$0xff] %vm444_vm1, %v1609_v36 }
 0x31b   : > { %1757 = vrot.lane.b32.xlu2 %v1669_v26, %s5529_s26  ;;  %1755 = vrot.lane.b32.xlu1 %v1668_v31, %s5529_s26  ;;  %v1673_v31 = vld [vmem:[#allocation2 + $0x118] sm:$0xff] }
 0x31c   : > { %1956 = vrot.lane.b32.xlu0 %v1865_v10, %s5530_s27 }
 0x323   : > { %1761 = vrot.lane.b32.xlu2 %v1671_v12, %s5529_s26  ;;  %1948 = vrot.lane.b32.xlu1 %v1861_v44, %s5530_s27 }
 0x325   : > { %v1022_v0 = vpop.xlane.xlu1 %1021 }
 0x326   : > { %v1058_v15 = vmul.f32 %v1022_v0, %v5768_v23 }
 0x328   : > { %v1090_v1 = vadd.f32 1e-05, %v1058_v15 }
 0x329   : > { %v1028_v53 = vpop.xlane.xlu0 %1027 }
 0x32a   : > { %5377 = vrsqrt.f32 %v1090_v1  ;;  %v1060_v30 = vmul.f32 %v1028_v53, %v5768_v23  ;;  %vm1389_vm11 = vweird.f32 %v1090_v1 }
 0x32b   : > { %1952 = vrot.lane.b32.xlu2 %v1863_v29, %s5530_s27  ;;  %1954 = vrot.lane.b32.xlu1 %v1864_v22, %s5530_s27 }
 0x32c   : > { %v1092_v60 = vadd.f32 1e-05, %v1060_v30 }
 0x32d   : > { %v1025_v3 = vpop.xlane.xlu2 %1024 }
 0x32e   : > { %5379 = vrsqrt.f32 %v1092_v60  ;;  %v1059_v18 = vmul.f32 %v1025_v3, %v5768_v23  ;;  %vm1409_vm15 = vweird.f32 %v1092_v60 }
 0x330   : > { %v5378_v28 = vpop.eup %5377  ;;  %v1091_v36 = vadd.f32 1e-05, %v1059_v18 }
 0x331   : > { %v1384_v26 = vmul.f32 %v5378_v28, %v1090_v1  ;;  %vm1390_vm9 = vweird.f32 %v5378_v28 }
 0x332   : > { %5381 = vrsqrt.f32 %v1091_v36  ;;  %vm1391_vm12 = vmor %vm1389_vm11, %vm1390_vm9  ;;  %vm1399_vm3 = vweird.f32 %v1091_v36 }
 0x333   : > { %1765 = vrot.lane.b32.xlu2 %v1673_v31, %s5529_s26  ;;  %v1385_v10 = vmul.f32 %v5378_v28, %v1384_v26 }
 0x334   : > { %v5380_v12 = vpop.eup %5379 }
 0x335   : > { %v1386_v44 = vmul.f32 0.5, %v1385_v10  ;;  %v1404_v0 = vmul.f32 %v5380_v12, %v1092_v60  ;;  %v1732_v15 = vpop.permute.xlu2 %1731  ;;  %vm1410_vm13 = vweird.f32 %v5380_v12 }
 0x336   : > { %1817 = vst.msk [vmem:[#allocation3 + $0xb0] sm:$0xff] %vm1805_vm10, %v1732_v15  ;;  %v6670_v15 = vpop.f32.mrf.mxu1  ;;  %vm1411_vm0 = vmor %vm1409_vm15, %vm1410_vm13 }
 0x337   : > { %v1387_v53 = vsub.f32 1.5, %v1386_v44  ;;  %v1405_v29 = vmul.f32 %v5380_v12, %v1404_v0 }
 0x338   : > { %v5382_v30 = vpop.eup %5381 }
 0x339   : > { %v1388_v22 = vmul.f32 %v5378_v28, %v1387_v53  ;;  %v1406_v3 = vmul.f32 0.5, %v1405_v29  ;;  %v1394_v18 = vmul.f32 %v5382_v30, %v1091_v36  ;;  %vm1400_vm2 = vweird.f32 %v5382_v30 }
 0x33a   : > { %vm1401_vm4 = vmor %vm1399_vm3, %vm1400_vm2 }
 0x33b   : > { %v1392_v56 = vsel %vm1391_vm12, %v5378_v28, %v1388_v22  ;;  %v1407_v40 = vsub.f32 1.5, %v1406_v3  ;;  %v1395_v31 = vmul.f32 %v5382_v30, %v1394_v18 }
 0x33c   : > { %v1442_v26 = vmul.f32 %v1392_v56, %v6523_v43  ;;  %v1734_v10 = vpop.permute.xlu0 %1733 }
 0x33d   : > { %v1408_v16 = vmul.f32 %v5380_v12, %v1407_v40  ;;  %v1396_v55 = vmul.f32 0.5, %v1395_v31  ;;  %1818 = vst.msk [vmem:[#allocation3 + $0xc0] sm:$0xff] %vm1805_vm10, %v1734_v10  ;;  %v1921_v44 = vpop.permute.xlu1 %1920  ;;  %v1736_v0 = vpop.permute.xlu2 %1735 }
 0x33e   : > { %v1478_v1 = vmul.f32 %v6447_v50, %v1442_v26  ;;  %2008 = vst.msk [vmem:[#allocation3 + $0x90] sm:$0xff] %vm1998_vm7, %v1921_v44 }
 0x33f   : > { %v1412_v28 = vsel %vm1411_vm0, %v5380_v12, %v1408_v16  ;;  %v1397_v53 = vsub.f32 1.5, %v1396_v55  ;;  %1819 = vst.msk [vmem:[#allocation3 + $0xd0] sm:$0xff] %vm1805_vm10, %v1736_v0 }
 0x340   : > { %v6676_v43 = vadd.f32 %v6460_v61, %v1478_v1  ;;  %v1444_v40 = vmul.f32 %v1412_v28, %v6534_v2 }
 0x341   : > { %v1398_v56 = vmul.f32 %v5382_v30, %v1397_v53 }
 0x342   : > { %8809 = vst [vmem:[#allocation28_spill] sm:$0xff] %v6676_v43  ;;  %v8743_v60 = vmax.f32 %v6676_v43, 0.0  ;;  %v1480_v29 = vmul.f32 %v6447_v50, %v1444_v40 }
 0x343   : > { %v1402_v22 = vsel %vm1401_vm4, %v5382_v30, %v1398_v56  ;;  %v6694_v30 = vpop.f32.mrf.mxu1 }
 0x344   : > { %1578 = vst.msk [vmem:[#allocation2 + $0x120] sm:$0xff] %vm444_vm1, %v8743_v60  ;;  %v6685_v55 = vadd.f32 %v6460_v61, %v1480_v29  ;;  %v1443_v16 = vmul.f32 %v1402_v22, %v6539_v41  ;;  %v1738_v12 = vpop.permute.xlu0 %1737 }
 0x345   : > { %1820 = vst.msk [vmem:[#allocation3 + $0xe0] sm:$0xff] %vm1805_vm10, %v1738_v12  ;;  %v1923_v2 = vpop.permute.xlu1 %1922  ;;  %v1927_v36 = vpop.permute.xlu2 %1926  ;;  %v2040_v3 = vld [vmem:[#allocation3 + $0x90] sm:$0xff] }
 0x346   : > { %8810 = vst [vmem:[#allocation29_spill] sm:$0xff] %v6685_v55  ;;  %v8745_v18 = vmax.f32 %v6685_v55, 0.0  ;;  %v1479_v31 = vmul.f32 %v6447_v50, %v1443_v16  ;;  %5222 = vmatmul.msk.f32.gmra.mxu1 %vm2079_vm14, %v2040_v3 }
 0x347   : > { %2009 = vst.msk [vmem:[#allocation3 + $0xa0] sm:$0xff] %vm1998_vm7, %v1923_v2 }
 0x348   : > { %2011 = vst.msk [vmem:[#allocation3 + $0xc0] sm:$0xff] %vm1998_vm7, %v1927_v36  ;;  %v6700_v41 = vadd.f32 %v6460_v61, %v1479_v31 }
 0x349   : > { %1580 = vst.msk [vmem:[#allocation2 + $0x130] sm:$0xff] %vm444_vm1, %v8745_v18 }
 0x34a   : > { %8811 = vst [vmem:[#allocation30_spill] sm:$0xff] %v6700_v41  ;;  %v8744_v26 = vmax.f32 %v6700_v41, 0.0 }
 0x34b   : > { %v1674_v10 = vld [vmem:[#allocation2 + $0x120] sm:$0xff]  ;;  %v2199_v61 = vpop.f32.mrf.mxu1 }
 0x34c   : > { %v1866_v44 = vld [vmem:[#allocation2 + $0x119] sm:$0xff]  ;;  %1579 = vst.msk [vmem:[#allocation2 + $0x128] sm:$0xff] %vm444_vm1, %v8744_v26  ;;  %1767 = vrot.lane.b32.xlu0 %v1674_v10, %s5529_s26  ;;  %v1933_v0 = vpop.permute.xlu0 %1932 }
 0x34d   : > { %v1610_v50 = vld [vmem:[#allocation2 + $0x11f] sm:$0xff]  ;;  %1958 = vrot.lane.b32.xlu2 %v1866_v44, %s5530_s27  ;;  %v1925_v1 = vpop.permute.xlu1 %1924  ;;  %v1929_v28 = vpop.permute.xlu2 %1928 }
 0x34e   : > { %v2041_v53 = vld [vmem:[#allocation3 + $0xa0] sm:$0xff]  ;;  %1642 = vst.msk [vmem:[#allocation3 + $0x1d0] sm:$0xff] %vm444_vm1, %v1610_v50 }
 0x34f   : > { %2010 = vst.msk [vmem:[#allocation3 + $0xb0] sm:$0xff] %vm1998_vm7, %v1925_v1  ;;  %5223 = vmatmul.msk.f32.gmra.mxu1 %vm2079_vm14, %v2041_v53 }
 0x350   : > { %2012 = vst.msk [vmem:[#allocation3 + $0xd0] sm:$0xff] %vm1998_vm7, %v1929_v28  ;;  %v1869_v56 = vld [vmem:[#allocation2 + $0x131] sm:$0xff]  ;;  %v2043_v28 = vld [vmem:[#allocation3 + $0xc0] sm:$0xff] }
 0x351   : > { %v1676_v29 = vld [vmem:[#allocation2 + $0x130] sm:$0xff] }
 0x353   : > { %v1675_v40 = vld [vmem:[#allocation2 + $0x128] sm:$0xff]  ;;  %v6722_v10 = vpop.f32.mrf.mxu1 }
 0x354   : > { %1769 = vrot.lane.b32.xlu1 %v1675_v40, %s5529_s26  ;;  %v1742_v22 = vpop.permute.xlu0 %1741  ;;  %1771 = vrot.lane.b32.xlu0 %v1676_v29, %s5529_s26  ;;  %v1611_v36 = vld [vmem:[#allocation2 + $0x127] sm:$0xff]  ;;  %v1612_v3 = vld [vmem:[#allocation2 + $0x12f] sm:$0xff] }
 0x355   : > { %1964 = vrot.lane.b32.xlu2 %v1869_v56, %s5530_s27  ;;  %1822 = vst.msk [vmem:[#allocation3 + $0x100] sm:$0xff] %vm1805_vm10, %v1742_v22  ;;  %v1740_v16 = vpop.permute.xlu1 %1739  ;;  %v1935_v12 = vpop.permute.xlu2 %1934  ;;  %v1867_v31 = vld [vmem:[#allocation2 + $0x121] sm:$0xff]  ;;  %v1868_v44 = vld [vmem:[#allocation2 + $0x129] sm:$0xff] }
 0x356   : > { %v2042_v2 = vld [vmem:[#allocation3 + $0xb0] sm:$0xff]  ;;  %1821 = vst.msk [vmem:[#allocation3 + $0xf0] sm:$0xff] %vm1805_vm10, %v1740_v16 }
 0x357   : > { %5224 = vmatmul.msk.f32.gmra.mxu1 %vm2079_vm14, %v2042_v2  ;;  %2014 = vst.msk [vmem:[#allocation3 + $0xf0] sm:$0xff] %vm1998_vm7, %v1933_v0  ;;  %v2044_v22 = vld [vmem:[#allocation3 + $0xd0] sm:$0xff] }
 0x358   : > { %2015 = vst.msk [vmem:[#allocation3 + $0x100] sm:$0xff] %vm1998_vm7, %v1935_v12 }
 0x359   : > { %1643 = vst.msk [vmem:[#allocation3 + $0x1e0] sm:$0xff] %vm444_vm1, %v1611_v36 }
 0x35a   : > { %1644 = vst.msk [vmem:[#allocation3 + $0x1f0] sm:$0xff] %vm444_vm1, %v1612_v3 }
 0x35b   : > { %v2205_v53 = vpop.f32.mrf.mxu1 }
 0x35c   : > { %1960 = vrot.lane.b32.xlu1 %v1867_v31, %s5530_s27  ;;  %v1746_v50 = vpop.permute.xlu0 %1745  ;;  %1962 = vrot.lane.b32.xlu0 %v1868_v44, %s5530_s27 }
 0x35d   : > { %1824 = vst.msk [vmem:[#allocation3 + $0x120] sm:$0xff] %vm1805_vm10, %v1746_v50  ;;  %v1931_v1 = vpop.permute.xlu1 %1930  ;;  %v1750_v0 = vpop.permute.xlu2 %1749 }
 0x35e   : > { %2013 = vst.msk [vmem:[#allocation3 + $0xe0] sm:$0xff] %vm1998_vm7, %v1931_v1  ;;  %v2046_v1 = vld [vmem:[#allocation3 + $0xf0] sm:$0xff] }
 0x35f   : > { %5225 = vmatmul.msk.f32.gmra.mxu1 %vm2079_vm14, %v2043_v28  ;;  %1826 = vst.msk [vmem:[#allocation3 + $0x140] sm:$0xff] %vm1805_vm10, %v1750_v0  ;;  %v6740_v0 = vld [vmem:[%s8714_s6] ss:$0 sm:$0xff] }
 0x360   : > { %v6746_v28 = vadd.f32 %v6740_v0, %v2199_v61 }
 0x363   : > { %v2208_v3 = vpop.f32.mrf.mxu1 }
 0x364   : > { %v1939_v40 = vpop.permute.xlu0 %1938  ;;  %v6755_v61 = vadd.f32 %v6740_v0, %v2208_v3 }
 0x365   : > { %2017 = vst.msk [vmem:[#allocation3 + $0x120] sm:$0xff] %vm1998_vm7, %v1939_v40  ;;  %v1744_v56 = vpop.permute.xlu1 %1743  ;;  %v1941_v29 = vpop.permute.xlu2 %1940  ;;  %v2045_v36 = vld [vmem:[#allocation3 + $0xe0] sm:$0xff] }
 0x366   : > { %1823 = vst.msk [vmem:[#allocation3 + $0x110] sm:$0xff] %vm1805_vm10, %v1744_v56 }
 0x367   : > { %5226 = vmatmul.msk.f32.gmra.mxu1 %vm2079_vm14, %v2044_v22  ;;  %v2295_v22 = vsel %vm444_vm1, %v6746_v28, 0.0 }
 0x36b   : > { %v2211_v40 = vpop.f32.mrf.mxu1 }
 0x36c   : > { %v1945_v16 = vpop.permute.xlu0 %1944 }
 0x36d   : > { %v1937_v12 = vpop.permute.xlu1 %1936  ;;  %v1754_v2 = vpop.permute.xlu2 %1753 }
 0x36e   : > { %2016 = vst.msk [vmem:[#allocation3 + $0x110] sm:$0xff] %vm1998_vm7, %v1937_v12 }
 0x36f   : > { %5227 = vmatmul.msk.f32.gmra.mxu1 %vm2079_vm14, %v2045_v36  ;;  %1828 = vst.msk [vmem:[#allocation3 + $0x160] sm:$0xff] %vm1805_vm10, %v1754_v2  ;;  %v2047_v36 = vld [vmem:[#allocation3 + $0x100] sm:$0xff] }
 0x374   : > { %v1760_v31 = vpop.permute.xlu0 %1759 }
 0x375   : > { %1831 = vst.msk [vmem:[#allocation3 + $0x190] sm:$0xff] %vm1805_vm10, %v1760_v31  ;;  %v1748_v44 = vpop.permute.xlu1 %1747  ;;  %v1947_v50 = vpop.permute.xlu2 %1946 }
 0x376   : > { %1825 = vst.msk [vmem:[#allocation3 + $0x130] sm:$0xff] %vm1805_vm10, %v1748_v44  ;;  %v6765_v44 = vadd.f32 %v6740_v0, %v6694_v30  ;;  %v6779_v30 = vadd.f32 %v6740_v0, %v6722_v10 }
 0x377   : > { %5228 = vmatmul.msk.f32.gmra.mxu1 %vm2079_vm14, %v2046_v1  ;;  %2018 = vst.msk [vmem:[#allocation3 + $0x130] sm:$0xff] %vm1998_vm7, %v1941_v29  ;;  %v6760_v29 = vadd.f32 %v6740_v0, %v6670_v15 }
 0x378   : > { %2021 = vst.msk [vmem:[#allocation3 + $0x160] sm:$0xff] %vm1998_vm7, %v1947_v50  ;;  %v2304_v50 = vsel %vm444_vm1, %v6755_v61, 0.0 }
 0x379   : > { %v2289_v3 = vsel %vm444_vm1, %v6760_v29, 0.0 }
 0x37c   : > { %v1951_v56 = vpop.permute.xlu0 %1950 }
 0x37d   : > { %v1752_v12 = vpop.permute.xlu1 %1751  ;;  %v1758_v2 = vpop.permute.xlu2 %1757 }
 0x37e   : > { %2296 = vadd.xlane.f32.xlu2 %v2295_v22  ;;  %1827 = vst.msk [vmem:[#allocation3 + $0x150] sm:$0xff] %vm1805_vm10, %v1752_v12  ;;  %v2048_v22 = vld [vmem:[#allocation3 + $0x110] sm:$0xff] }
 0x37f   : > { %5229 = vmatmul.msk.f32.gmra.mxu1 %vm2079_vm14, %v2047_v36  ;;  %2020 = vst.msk [vmem:[#allocation3 + $0x150] sm:$0xff] %vm1998_vm7, %v1945_v16 }
 0x380   : > { %1830 = vst.msk [vmem:[#allocation3 + $0x180] sm:$0xff] %vm1805_vm10, %v1758_v2  ;;  %v6782_v2 = vadd.f32 %v6740_v0, %v2205_v53 }
 0x381   : > { %2023 = vst.msk [vmem:[#allocation3 + $0x180] sm:$0xff] %vm1998_vm7, %v1951_v56  ;;  %v2214_v31 = vpop.f32.mrf.mxu1  ;;  %v2292_v56 = vsel %vm444_vm1, %v6765_v44, 0.0 }
 0x382   : > { %v2301_v53 = vsel %vm444_vm1, %v6782_v2, 0.0 }
 0x385   : > { %v1943_v16 = vpop.permute.xlu1 %1942  ;;  %v1762_v1 = vpop.permute.xlu2 %1761 }
 0x386   : > { %2305 = vadd.xlane.f32.xlu2 %v2304_v50  ;;  %2019 = vst.msk [vmem:[#allocation3 + $0x140] sm:$0xff] %vm1998_vm7, %v1943_v16  ;;  %v1764_v15 = vpop.permute.xlu0 %1763  ;;  %2290 = vadd.xlane.f32.xlu1 %v2289_v3 }
 0x387   : > { %5230 = vmatmul.msk.f32.gmra.mxu1 %vm2079_vm14, %v2048_v22  ;;  %1832 = vst.msk [vmem:[#allocation3 + $0x1a0] sm:$0xff] %vm1805_vm10, %v1762_v1  ;;  %2293 = vadd.xlane.f32.xlu0 %v2292_v56  ;;  %v2298_v1 = vsel %vm444_vm1, %v6779_v30, 0.0  ;;  %v2049_v22 = vld [vmem:[#allocation3 + $0x120] sm:$0xff]  ;;  %v6801_v56 = vadd.f32 %v6740_v0, %v2214_v31 }
 0x388   : > { %1833 = vst.msk [vmem:[#allocation3 + $0x1b0] sm:$0xff] %vm1805_vm10, %v1764_v15  ;;  %v6798_v15 = vadd.f32 %v6740_v0, %v2211_v40 }
 0x389   : > { %v2217_v12 = vpop.f32.mrf.mxu1 }
 0x38a   : > { %v6785_v36 = vadd.f32 %v6740_v0, %v2217_v12 }
 0x38c   : > { %v2313_v50 = vsel %vm444_vm1, %v6785_v36, 0.0 }
 0x38d   : > { %v1756_v16 = vpop.permute.xlu1 %1755  ;;  %v1953_v3 = vpop.permute.xlu2 %1952  ;;  %v2051_v31 = vld [vmem:[#allocation3 + $0x140] sm:$0xff] }
 0x38e   : > { %2314 = vadd.xlane.f32.xlu2 %v2313_v50  ;;  %1829 = vst.msk [vmem:[#allocation3 + $0x170] sm:$0xff] %vm1805_vm10, %v1756_v16  ;;  %v1957_v10 = vpop.permute.xlu0 %1956  ;;  %2299 = vadd.xlane.f32.xlu1 %v2298_v1  ;;  %v2307_v16 = vsel %vm444_vm1, %v6798_v15, 0.0  ;;  %v2050_v1 = vld [vmem:[#allocation3 + $0x130] sm:$0xff] }
 0x38f   : > { %5231 = vmatmul.msk.f32.gmra.mxu1 %vm2079_vm14, %v2049_v22  ;;  %2024 = vst.msk [vmem:[#allocation3 + $0x190] sm:$0xff] %vm1998_vm7, %v1953_v3  ;;  %2302 = vadd.xlane.f32.xlu0 %v2301_v53  ;;  %v2310_v3 = vsel %vm444_vm1, %v6801_v56, 0.0  ;;  %v2052_v22 = vld [vmem:[#allocation3 + $0x150] sm:$0xff]  ;;  %v2053_v53 = vld [vmem:[#allocation3 + $0x160] sm:$0xff] }
 0x390   : > { %2026 = vst.msk [vmem:[#allocation3 + $0x1b0] sm:$0xff] %vm1998_vm7, %v1957_v10 }
 0x395   : > { %v1949_v12 = vpop.permute.xlu1 %1948  ;;  %v1766_v50 = vpop.permute.xlu2 %1765 }
 0x396   : > { %2022 = vst.msk [vmem:[#allocation3 + $0x170] sm:$0xff] %vm1998_vm7, %v1949_v12  ;;  %2308 = vadd.xlane.f32.xlu1 %v2307_v16 }
 0x397   : > { %5232 = vmatmul.msk.f32.gmra.mxu1 %vm2079_vm14, %v2050_v1  ;;  %1834 = vst.msk [vmem:[#allocation3 + $0x1c0] sm:$0xff] %vm1805_vm10, %v1766_v50  ;;  %2311 = vadd.xlane.f32.xlu0 %v2310_v3  ;;  %v2055_v50 = vld [vmem:[#allocation3 + $0x180] sm:$0xff] }
 0x39d   : > { %v1955_v40 = vpop.permute.xlu1 %1954  ;;  %v2054_v12 = vld [vmem:[#allocation3 + $0x170] sm:$0xff] }
 0x39e   : > { %2025 = vst.msk [vmem:[#allocation3 + $0x1a0] sm:$0xff] %vm1998_vm7, %v1955_v40  ;;  %v2056_v40 = vld [vmem:[#allocation3 + $0x190] sm:$0xff] }
 0x39f   : > { %5233 = vmatmul.msk.f32.gmra.mxu1 %vm2079_vm14, %v2051_v31 }
 0x3a7   : > { %v1959_v10 = vpop.permute.xlu2 %1958  ;;  %5234 = vmatmul.msk.f32.gmra.mxu1 %vm2079_vm14, %v2052_v22 }
 0x3a8   : > { %2027 = vst.msk [vmem:[#allocation3 + $0x1c0] sm:$0xff] %vm1998_vm7, %v1959_v10 }
 0x3af   : > { %5235 = vmatmul.msk.f32.gmra.mxu1 %vm2079_vm14, %v2053_v53  ;;  %v1965_v53 = vpop.permute.xlu2 %1964 }
 0x3b7   : > { %5236 = vmatmul.msk.f32.gmra.mxu1 %vm2079_vm14, %v2054_v12 }
 0x3be   : > { %v1768_v16 = vpop.permute.xlu0 %1767 }
 0x3bf   : > { %5237 = vmatmul.msk.f32.gmra.mxu1 %vm2079_vm14, %v2055_v50  ;;  %1835 = vst.msk [vmem:[#allocation3 + $0x1d0] sm:$0xff] %vm1805_vm10, %v1768_v16  ;;  %v2057_v16 = vld [vmem:[#allocation3 + $0x1a0] sm:$0xff] }
 0x3c3   : > { %v2220_v1 = vpop.f32.mrf.mxu1 }
 0x3c4   : > { %v6819_v3 = vadd.f32 %v6740_v0, %v2220_v1 }
 0x3c6   : > { %v1770_v31 = vpop.permute.xlu1 %1769  ;;  %v2316_v22 = vsel %vm444_vm1, %v6819_v3, 0.0  ;;  %v1772_v10 = vpop.permute.xlu0 %1771 }
 0x3c7   : > { %5238 = vmatmul.msk.f32.gmra.mxu1 %vm2079_vm14, %v2056_v40  ;;  %1836 = vst.msk [vmem:[#allocation3 + $0x1e0] sm:$0xff] %vm1805_vm10, %v1770_v31  ;;  %2317 = vadd.xlane.f32.xlu1 %v2316_v22 }
 0x3c8   : > { %1837 = vst.msk [vmem:[#allocation3 + $0x1f0] sm:$0xff] %vm1805_vm10, %v1772_v10 }
 0x3c9   : > { %2030 = vst.msk [vmem:[#allocation3 + $0x1f0] sm:$0xff] %vm1998_vm7, %v1965_v53  ;;  %v2058_v53 = vld [vmem:[#allocation3 + $0x1b0] sm:$0xff] }
 0x3cc   : > { %v2223_v12 = vpop.f32.mrf.mxu1 }
 0x3cd   : > { %v6828_v50 = vadd.f32 %v6740_v0, %v2223_v12 }
 0x3ce   : > { %v1961_v1 = vpop.permute.xlu1 %1960  ;;  %v1963_v31 = vpop.permute.xlu0 %1962 }
 0x3cf   : > { %5239 = vmatmul.msk.f32.gmra.mxu1 %vm2079_vm14, %v2057_v16  ;;  %v2319_v40 = vsel %vm444_vm1, %v6828_v50, 0.0  ;;  %2028 = vst.msk [vmem:[#allocation3 + $0x1d0] sm:$0xff] %vm1998_vm7, %v1961_v1  ;;  %v2059_v1 = vld [vmem:[#allocation3 + $0x1c0] sm:$0xff] }
 0x3d0   : > { %2320 = vadd.xlane.f32.xlu0 %v2319_v40  ;;  %2029 = vst.msk [vmem:[#allocation3 + $0x1e0] sm:$0xff] %vm1998_vm7, %v1963_v31  ;;  %v2062_v27 = vld [vmem:[#allocation3 + $0x1f0] sm:$0xff] }
 0x3d4   : > { %v2226_v22 = vpop.f32.mrf.mxu1 }
 0x3d5   : > { %v6836_v10 = vadd.f32 %v6740_v0, %v2226_v22 }
 0x3d7   : > { %5240 = vmatmul.msk.f32.gmra.mxu1 %vm2079_vm14, %v2058_v53  ;;  %v2322_v12 = vsel %vm444_vm1, %v6836_v10, 0.0  ;;  %v2060_v53 = vld [vmem:[#allocation3 + $0x1d0] sm:$0xff] }
 0x3d8   : > { %2323 = vadd.xlane.f32.xlu2 %v2322_v12 }
 0x3dc   : > { %v2229_v16 = vpop.f32.mrf.mxu1 }
 0x3dd   : > { %v6842_v60 = vadd.f32 %v6740_v0, %v2229_v16 }
 0x3df   : > { %5241 = vmatmul.msk.f32.gmra.mxu1 %vm2079_vm14, %v2059_v1  ;;  %v2325_v40 = vsel %vm444_vm1, %v6842_v60, 0.0  ;;  %v2061_v1 = vld [vmem:[#allocation3 + $0x1e0] sm:$0xff] }
 0x3e0   : > { %2326 = vadd.xlane.f32.xlu1 %v2325_v40 }
 0x3e4   : > { %v2232_v31 = vpop.f32.mrf.mxu1 }
 0x3e5   : > { %v6848_v22 = vadd.f32 %v6740_v0, %v2232_v31 }
 0x3e7   : > { %5242 = vmatmul.msk.f32.gmra.mxu1 %vm2079_vm14, %v2060_v53  ;;  %v2328_v12 = vsel %vm444_vm1, %v6848_v22, 0.0 }
 0x3e8   : > { %2329 = vadd.xlane.f32.xlu0 %v2328_v12 }
 0x3ec   : > { %v2235_v16 = vpop.f32.mrf.mxu1 }
 0x3ed   : > { %v6854_v26 = vadd.f32 %v6740_v0, %v2235_v16 }
 0x3ef   : > { %5243 = vmatmul.msk.f32.gmra.mxu1 %vm2079_vm14, %v2061_v1  ;;  %v2331_v40 = vsel %vm444_vm1, %v6854_v26, 0.0 }
 0x3f0   : > { %2332 = vadd.xlane.f32.xlu2 %v2331_v40 }
 0x3f1   : > { %v2297_v31 = vpop.xlane.xlu2 %2296 }
 0x3f2   : > { %v2387_v18 = vmul.f32 %v2297_v31, %v5768_v23 }
 0x3f4   : > { %v2238_v52 = vpop.f32.mrf.mxu1  ;;  %v6864_v12 = vsub.f32 %v6746_v28, %v2387_v18 }
 0x3f5   : > { %v6861_v53 = vadd.f32 %v6740_v0, %v2238_v52 }
 0x3f6   : > { %v2451_v31 = vmul.f32 %v6864_v12, %v6864_v12 }
 0x3f7   : > { %5244 = vmatmul.msk.f32.gmra.mxu1 %vm2079_vm14, %v2062_v27  ;;  %v2334_v16 = vsel %vm444_vm1, %v6861_v53, 0.0 }
 0x3f8   : > { %2335 = vadd.xlane.f32.xlu1 %v2334_v16  ;;  %v2487_v27 = vsel %vm444_vm1, %v2451_v31, 0.0 }
 0x3f9   : > { %v2291_v1 = vpop.xlane.xlu1 %2290 }
 0x3fa   : > { %v2385_v40 = vmul.f32 %v2291_v1, %v5768_v23  ;;  %v2294_v45 = vpop.xlane.xlu0 %2293 }
 0x3fb   : > { %v2386_v52 = vmul.f32 %v2294_v45, %v5768_v23 }
 0x3fc   : > { %v2241_v63 = vpop.f32.mrf.mxu1  ;;  %v6874_v59 = vsub.f32 %v6760_v29, %v2385_v40 }
 0x3fd   : > { %v6877_v18 = vsub.f32 %v6765_v44, %v2386_v52  ;;  %v6887_v44 = vadd.f32 %v6740_v0, %v2241_v63  ;;  %v2306_v52 = vpop.xlane.xlu2 %2305 }
 0x3fe   : > { %v2449_v28 = vmul.f32 %v6874_v59, %v6874_v59 }
 0x3ff   : > { %v2450_v16 = vmul.f32 %v6877_v18, %v6877_v18 }
 0x400   : > { %2488 = vadd.xlane.f32.xlu1 %v2487_v27  ;;  %v2481_v1 = vsel %vm444_vm1, %v2449_v28, 0.0  ;;  %v2337_v28 = vsel %vm444_vm1, %v6887_v44, 0.0 }
 0x401   : > { %v2300_v9 = vpop.xlane.xlu1 %2299  ;;  %2482 = vadd.xlane.f32.xlu0 %v2481_v1  ;;  %v2484_v45 = vsel %vm444_vm1, %v2450_v16, 0.0  ;;  %v2390_v1 = vmul.f32 %v2306_v52, %v5768_v23 }
 0x402   : > { %2485 = vadd.xlane.f32.xlu2 %v2484_v45  ;;  %v2388_v40 = vmul.f32 %v2300_v9, %v5768_v23 }
 0x404   : > { %v2244_v29 = vpop.f32.mrf.mxu1  ;;  %v6894_v27 = vsub.f32 %v6779_v30, %v2388_v40  ;;  %v6907_v30 = vsub.f32 %v6755_v61, %v2390_v1 }
 0x405   : > { %v6891_v31 = vadd.f32 %v6740_v0, %v2244_v29 }
 0x406   : > { %v2452_v45 = vmul.f32 %v6894_v27, %v6894_v27  ;;  %v2454_v52 = vmul.f32 %v6907_v30, %v6907_v30 }
 0x407   : > { %v2340_v16 = vsel %vm444_vm1, %v6891_v31, 0.0 }
 0x408   : > { %v2490_v40 = vsel %vm444_vm1, %v2452_v45, 0.0  ;;  %v2496_v61 = vsel %vm444_vm1, %v2454_v52, 0.0 }
 0x409   : > { %2338 = vadd.xlane.f32.xlu0 %v2337_v28  ;;  %v2303_v28 = vpop.xlane.xlu0 %2302 }
 0x40a   : > { %2341 = vadd.xlane.f32.xlu2 %v2340_v16 }
 0x40c   : > { %v2247_v63 = vpop.f32.mrf.mxu1 }
 0x40d   : > { %v6902_v9 = vadd.f32 %v6740_v0, %v2247_v63  ;;  %v2389_v63 = vmul.f32 %v2303_v28, %v5768_v23 }
 0x40f   : > { %v2343_v29 = vsel %vm444_vm1, %v6902_v9, 0.0  ;;  %v6920_v1 = vsub.f32 %v6782_v2, %v2389_v63 }
 0x410   : > { %2344 = vadd.xlane.f32.xlu1 %v2343_v29  ;;  %v2315_v29 = vpop.xlane.xlu2 %2314 }
 0x411   : > { %2491 = vadd.xlane.f32.xlu0 %v2490_v40  ;;  %v2393_v39 = vmul.f32 %v2315_v29, %v5768_v23  ;;  %v2453_v28 = vmul.f32 %v6920_v1, %v6920_v1 }
 0x413   : > { %v6933_v2 = vsub.f32 %v6785_v36, %v2393_v39  ;;  %v2493_v63 = vsel %vm444_vm1, %v2453_v28, 0.0  ;;  %v2312_v39 = vpop.xlane.xlu0 %2311 }
 0x414   : > { %v2250_v16 = vpop.f32.mrf.mxu1  ;;  %v2392_v28 = vmul.f32 %v2312_v39, %v5768_v23 }
 0x415   : > { %v6916_v42 = vadd.f32 %v6740_v0, %v2250_v16  ;;  %v2309_v16 = vpop.xlane.xlu1 %2308 }
 0x417   : > { %v2346_v45 = vsel %vm444_vm1, %v6916_v42, 0.0 }
 0x418   : > { %2497 = vadd.xlane.f32.xlu1 %v2496_v61  ;;  %v2391_v61 = vmul.f32 %v2309_v16, %v5768_v23 }
 0x419   : > { %2347 = vadd.xlane.f32.xlu0 %v2346_v45 }
 0x41a   : > { %v6943_v11 = vsub.f32 %v6798_v15, %v2391_v61  ;;  %v6955_v15 = vsub.f32 %v6801_v56, %v2392_v28 }
 0x41c   : > { %v2253_v40 = vpop.f32.mrf.mxu1  ;;  %v2455_v16 = vmul.f32 %v6943_v11, %v6943_v11 }
 0x41d   : > { %v6926_v43 = vadd.f32 %v6740_v0, %v2253_v40  ;;  %v2457_v40 = vmul.f32 %v6933_v2, %v6933_v2 }
 0x41e   : > { %v2499_v61 = vsel %vm444_vm1, %v2455_v16, 0.0 }
 0x41f   : > { %v2349_v52 = vsel %vm444_vm1, %v6926_v43, 0.0  ;;  %v2505_v36 = vsel %vm444_vm1, %v2457_v40, 0.0  ;;  %v2456_v40 = vmul.f32 %v6955_v15, %v6955_v15 }
 0x420   : > { %2350 = vadd.xlane.f32.xlu2 %v2349_v52 }
 0x421   : > { %2494 = vadd.xlane.f32.xlu0 %v2493_v63 }
 0x424   : > { %v2256_v45 = vpop.f32.mrf.mxu1 }
 0x425   : > { %v6938_v29 = vadd.f32 %v6740_v0, %v2256_v45 }
 0x427   : > { %v2352_v52 = vsel %vm444_vm1, %v6938_v29, 0.0 }
 0x428   : > { %2353 = vadd.xlane.f32.xlu1 %v2352_v52 }
 0x429   : > { %2506 = vadd.xlane.f32.xlu0 %v2505_v36  ;;  %v2502_v36 = vsel %vm444_vm1, %v2456_v40, 0.0 }
 0x42c   : > { %v2259_v63 = vpop.f32.mrf.mxu1 }
 0x42d   : > { %v6952_v45 = vadd.f32 %v6740_v0, %v2259_v63 }
 0x42f   : > { %v2355_v52 = vsel %vm444_vm1, %v6952_v45, 0.0 }
 0x430   : > { %2500 = vadd.xlane.f32.xlu1 %v2499_v61  ;;  %2356 = vadd.xlane.f32.xlu2 %v2355_v52 }
 0x434   : > { %v2262_v39 = vpop.f32.mrf.mxu1 }
 0x435   : > { %v6964_v63 = vadd.f32 %v6740_v0, %v2262_v39 }
 0x437   : > { %v2358_v40 = vsel %vm444_vm1, %v6964_v63, 0.0 }
 0x438   : > { %2503 = vadd.xlane.f32.xlu1 %v2502_v36 }
 0x43a   : > { %v2318_v58 = vpop.xlane.xlu1 %2317 }
 0x43b   : > { %v2394_v56 = vmul.f32 %v2318_v58, %v5768_v23 }
 0x43c   : > { %v2265_v28 = vpop.f32.mrf.mxu1 }
 0x43d   : > { %v6968_v16 = vadd.f32 %v6740_v0, %v2265_v28  ;;  %v6971_v61 = vsub.f32 %v6819_v3, %v2394_v56 }
 0x43f   : > { %v2361_v52 = vsel %vm444_vm1, %v6968_v16, 0.0  ;;  %v2458_v36 = vmul.f32 %v6971_v61, %v6971_v61 }
 0x440   : > { %2362 = vadd.xlane.f32.xlu2 %v2361_v52  ;;  %2359 = vadd.xlane.f32.xlu1 %v2358_v40 }
 0x441   : > { %v2508_v56 = vsel %vm444_vm1, %v2458_v36, 0.0 }
 0x443   : > { %v2321_v39 = vpop.xlane.xlu0 %2320 }
 0x444   : > { %v2395_v58 = vmul.f32 %v2321_v39, %v5768_v23  ;;  %v2268_v20 = vpop.f32.mrf.mxu1 }
 0x445   : > { %v6981_v28 = vadd.f32 %v6740_v0, %v2268_v20 }
 0x446   : > { %v6984_v3 = vsub.f32 %v6828_v50, %v2395_v58 }
 0x447   : > { %v2364_v7 = vsel %vm444_vm1, %v6981_v28, 0.0 }
 0x448   : > { %2509 = vadd.xlane.f32.xlu2 %v2508_v56  ;;  %2365 = vadd.xlane.f32.xlu0 %v2364_v7  ;;  %v2459_v52 = vmul.f32 %v6984_v3, %v6984_v3 }
 0x44a   : > { %v2511_v40 = vsel %vm444_vm1, %v2459_v52, 0.0 }
 0x44b   : > { %v2324_v39 = vpop.xlane.xlu2 %2323  ;;  %2512 = vadd.xlane.f32.xlu1 %v2511_v40 }
 0x44c   : > { %v2396_v20 = vmul.f32 %v2324_v39, %v5768_v23  ;;  %v2271_v41 = vpop.f32.mrf.mxu1 }
 0x44d   : > { %v6994_v50 = vadd.f32 %v6740_v0, %v2271_v41 }
 0x44e   : > { %v6997_v36 = vsub.f32 %v6836_v10, %v2396_v20 }
 0x44f   : > { %v2367_v58 = vsel %vm444_vm1, %v6994_v50, 0.0 }
 0x450   : > { %2368 = vadd.xlane.f32.xlu2 %v2367_v58  ;;  %v2460_v7 = vmul.f32 %v6997_v36, %v6997_v36 }
 0x452   : > { %v2514_v56 = vsel %vm444_vm1, %v2460_v7, 0.0 }
 0x453   : > { %v2327_v52 = vpop.xlane.xlu1 %2326  ;;  %2515 = vadd.xlane.f32.xlu0 %v2514_v56 }
 0x454   : > { %v2397_v40 = vmul.f32 %v2327_v52, %v5768_v23  ;;  %v2274_v39 = vpop.f32.mrf.mxu1 }
 0x455   : > { %v7009_v10 = vadd.f32 %v6740_v0, %v2274_v39 }
 0x456   : > { %v7006_v41 = vsub.f32 %v6842_v60, %v2397_v40 }
 0x457   : > { %v2370_v33 = vsel %vm444_vm1, %v7009_v10, 0.0 }
 0x458   : > { %v2461_v20 = vmul.f32 %v7006_v41, %v7006_v41 }
 0x45a   : > { %v2517_v58 = vsel %vm444_vm1, %v2461_v20, 0.0 }
 0x45b   : > { %2518 = vadd.xlane.f32.xlu2 %v2517_v58  ;;  %2371 = vadd.xlane.f32.xlu0 %v2370_v33  ;;  %v2330_v7 = vpop.xlane.xlu0 %2329 }
 0x45c   : > { %v2398_v56 = vmul.f32 %v2330_v7, %v5768_v23  ;;  %v2277_v52 = vpop.f32.mrf.mxu1 }
 0x45d   : > { %v7021_v40 = vadd.f32 %v6740_v0, %v2277_v52 }
 0x45e   : > { %v7018_v60 = vsub.f32 %v6848_v22, %v2398_v56 }
 0x45f   : > { %v2373_v20 = vsel %vm444_vm1, %v7021_v40, 0.0 }
 0x460   : > { %v2462_v39 = vmul.f32 %v7018_v60, %v7018_v60 }
 0x462   : > { %v2520_v13 = vsel %vm444_vm1, %v2462_v39, 0.0 }
 0x463   : > { %v2333_v58 = vpop.xlane.xlu2 %2332  ;;  %2374 = vadd.xlane.f32.xlu2 %v2373_v20  ;;  %2521 = vadd.xlane.f32.xlu1 %v2520_v13 }
 0x464   : > { %v2399_v33 = vmul.f32 %v2333_v58, %v5768_v23  ;;  %v2280_v7 = vpop.f32.mrf.mxu1 }
 0x465   : > { %v7030_v22 = vadd.f32 %v6740_v0, %v2280_v7 }
 0x466   : > { %v7033_v56 = vsub.f32 %v6854_v26, %v2399_v33 }
 0x467   : > { %v2376_v52 = vsel %vm444_vm1, %v7030_v22, 0.0 }
 0x468   : > { %2377 = vadd.xlane.f32.xlu0 %v2376_v52  ;;  %v2463_v39 = vmul.f32 %v7033_v56, %v7033_v56 }
 0x46a   : > { %v2523_v33 = vsel %vm444_vm1, %v2463_v39, 0.0 }
 0x46b   : > { %v2336_v35 = vpop.xlane.xlu1 %2335 }
 0x46c   : > { %v2400_v20 = vmul.f32 %v2336_v35, %v5768_v23  ;;  %v2283_v13 = vpop.f32.mrf.mxu1 }
 0x46d   : > { %v7041_v58 = vadd.f32 %v6740_v0, %v2283_v13 }
 0x46e   : > { %v7044_v7 = vsub.f32 %v6861_v53, %v2400_v20 }
 0x46f   : > { %v2379_v26 = vsel %vm444_vm1, %v7041_v58, 0.0 }
 0x470   : > { %2380 = vadd.xlane.f32.xlu2 %v2379_v26  ;;  %2524 = vadd.xlane.f32.xlu0 %v2523_v33  ;;  %v2464_v62 = vmul.f32 %v7044_v7, %v7044_v7 }
 0x472   : > { %v2526_v39 = vsel %vm444_vm1, %v2464_v62, 0.0 }
 0x473   : > { %v2489_v52 = vpop.xlane.xlu1 %2488 }
 0x474   : > { %v2579_v35 = vmul.f32 %v2489_v52, %v5768_v23  ;;  %v2286_v34 = vpop.f32.mrf.mxu1  ;;  %v2483_v32 = vpop.xlane.xlu0 %2482 }
 0x475   : > { %v7053_v13 = vadd.f32 %v6740_v0, %v2286_v34  ;;  %v2486_v20 = vpop.xlane.xlu2 %2485  ;;  %v2577_v38 = vmul.f32 %v2483_v32, %v5768_v23 }
 0x476   : > { %v2611_v53 = vadd.f32 1e-05, %v2579_v35  ;;  %v2578_v55 = vmul.f32 %v2486_v20, %v5768_v23 }
 0x477   : > { %v2382_v26 = vsel %vm444_vm1, %v7053_v13, 0.0  ;;  %v2609_v33 = vadd.f32 1e-05, %v2577_v38 }
 0x478   : > { %5383 = vrsqrt.f32 %v2611_v53  ;;  %2527 = vadd.xlane.f32.xlu2 %v2526_v39  ;;  %2383 = vadd.xlane.f32.xlu1 %v2382_v26  ;;  %v2610_v52 = vadd.f32 1e-05, %v2578_v55  ;;  %vm2667_vm5 = vweird.f32 %v2611_v53 }
 0x479   : > { %5385 = vrsqrt.f32 %v2609_v33  ;;  %vm2647_vm11 = vweird.f32 %v2609_v33 }
 0x47a   : > { %5387 = vrsqrt.f32 %v2610_v52  ;;  %vm2657_vm12 = vweird.f32 %v2610_v52 }
 0x47c   : > { %v2339_v34 = vpop.xlane.xlu0 %2338 }
 0x47d   : > { %v2342_v35 = vpop.xlane.xlu2 %2341  ;;  %v2401_v4 = vmul.f32 %v2339_v34, %v5768_v23  ;;  %v3917_v34 = vld [vmem:[%s8717_s9 + $0x98] sm:$0xff] }
 0x47e   : > { %v5384_v0 = vpop.eup %5383  ;;  %v2402_v20 = vmul.f32 %v2342_v35, %v5768_v23  ;;  %4143 = vmatpush.msra.mxu3 %v3917_v34 }
 0x47f   : > { %v2662_v32 = vmul.f32 %v5384_v0, %v2611_v53  ;;  %v5386_v25 = vpop.eup %5385  ;;  %v7063_v62 = vsub.f32 %v6887_v44, %v2401_v4  ;;  %vm2668_vm14 = vweird.f32 %v5384_v0 }
 0x480   : > { %v5388_v51 = vpop.eup %5387  ;;  %v2642_v38 = vmul.f32 %v5386_v25, %v2609_v33  ;;  %v7066_v39 = vsub.f32 %v6891_v31, %v2402_v20  ;;  %v3916_v20 = vld [vmem:[%s8717_s9 + $0x90] sm:$0xff]  ;;  %vm2648_vm6 = vweird.f32 %v5386_v25  ;;  %vm2669_vm8 = vmor %vm2667_vm5, %vm2668_vm14 }
 0x481   : > { %v2663_v49 = vmul.f32 %v5384_v0, %v2662_v32  ;;  %v2652_v55 = vmul.f32 %v5388_v51, %v2610_v52  ;;  %v2465_v26 = vmul.f32 %v7063_v62, %v7063_v62  ;;  %4144 = vmatpush.msra.mxu3 %v3916_v20  ;;  %vm2658_vm9 = vweird.f32 %v5388_v51  ;;  %vm2649_vm13 = vmor %vm2647_vm11, %vm2648_vm6 }
 0x482   : > { %v2643_v35 = vmul.f32 %v5386_v25, %v2642_v38  ;;  %v2466_v4 = vmul.f32 %v7066_v39, %v7066_v39  ;;  %vm2659_vm15 = vmor %vm2657_vm12, %vm2658_vm9 }
 0x483   : > { %v2664_v6 = vmul.f32 0.5, %v2663_v49  ;;  %v2345_v47 = vpop.xlane.xlu1 %2344  ;;  %v2653_v44 = vmul.f32 %v5388_v51, %v2652_v55  ;;  %v2529_v31 = vsel %vm444_vm1, %v2465_v26, 0.0  ;;  %v3915_v55 = vld [vmem:[%s8717_s9 + $0x88] sm:$0xff] }
 0x484   : > { %v2403_v32 = vmul.f32 %v2345_v47, %v5768_v23  ;;  %v2644_v46 = vmul.f32 0.5, %v2643_v35  ;;  %v2532_v49 = vsel %vm444_vm1, %v2466_v4, 0.0  ;;  %2530 = vadd.xlane.f32.xlu2 %v2529_v31  ;;  %v2492_v38 = vpop.xlane.xlu0 %2491  ;;  %4145 = vmatpush.msra.mxu3 %v3915_v55  ;;  %v7091_v35 = vld [vmem:[%s8715_s7] ss:$0 sm:$0xff] }
 0x485   : > { %v2665_v5 = vsub.f32 1.5, %v2664_v6  ;;  %v2654_v24 = vmul.f32 0.5, %v2653_v44  ;;  %2533 = vadd.xlane.f32.xlu1 %v2532_v49  ;;  %v2580_v47 = vmul.f32 %v2492_v38, %v5768_v23 }
 0x486   : > { %v7082_v34 = vsub.f32 %v6902_v9, %v2403_v32  ;;  %v2645_v6 = vsub.f32 1.5, %v2644_v46  ;;  %v7102_v32 = vld [vmem:[%s8716_s8] ss:$0 sm:$0xff] }
 0x487   : > { %v2666_v26 = vmul.f32 %v5384_v0, %v2665_v5  ;;  %v2655_v9 = vsub.f32 1.5, %v2654_v24  ;;  %v2612_v4 = vadd.f32 1e-05, %v2580_v47  ;;  %v3914_v5 = vld [vmem:[%s8717_s9 + $0x80] sm:$0xff] }
 0x488   : > { %v2467_v44 = vmul.f32 %v7082_v34, %v7082_v34  ;;  %v2646_v53 = vmul.f32 %v5386_v25, %v2645_v6  ;;  %4146 = vmatpush.msra.mxu3 %v3914_v5 }
 0x489   : > { %v2670_v46 = vsel %vm2669_vm8, %v5384_v0, %v2666_v26  ;;  %v2656_v31 = vmul.f32 %v5388_v51, %v2655_v9  ;;  %5389 = vrsqrt.f32 %v2612_v4  ;;  %vm2677_vm2 = vweird.f32 %v2612_v4 }
 0x48a   : > { %v2963_v24 = vmul.f32 %v2670_v46, %v6864_v12  ;;  %v2650_v20 = vsel %vm2649_vm13, %v5386_v25, %v2646_v53  ;;  %v2535_v0 = vsel %vm444_vm1, %v2467_v44, 0.0 }
 0x48b   : > { %v2498_v49 = vpop.xlane.xlu1 %2497  ;;  %v2660_v38 = vsel %vm2659_vm15, %v5388_v51, %v2656_v31  ;;  %v2961_v47 = vmul.f32 %v2650_v20, %v6874_v59  ;;  %2536 = vadd.xlane.f32.xlu0 %v2535_v0 }
 0x48c   : > { %v2999_v33 = vmul.f32 %v7091_v35, %v2963_v24  ;;  %v2582_v55 = vmul.f32 %v2498_v49, %v5768_v23  ;;  %v2962_v12 = vmul.f32 %v2660_v38, %v6877_v18  ;;  %v2348_v26 = vpop.xlane.xlu0 %2347 }
 0x48d   : > { %v2997_v6 = vmul.f32 %v7091_v35, %v2961_v47  ;;  %v2404_v25 = vmul.f32 %v2348_v26, %v5768_v23 }
 0x48e   : > { %v3035_v52 = vadd.f32 %v7102_v32, %v2999_v33  ;;  %v2614_v9 = vadd.f32 1e-05, %v2582_v55  ;;  %v2998_v44 = vmul.f32 %v7091_v35, %v2962_v12 }
 0x48f   : > { %v5390_v5 = vpop.eup %5389  ;;  %v3033_v51 = vadd.f32 %v7102_v32, %v2997_v6  ;;  %v7118_v18 = vsub.f32 %v6916_v42, %v2404_v25 }
 0x490   : > { %v3067_v46 = vmax.f32 %v3035_v52, 0.0  ;;  %5391 = vrsqrt.f32 %v2614_v9  ;;  %v3034_v59 = vadd.f32 %v7102_v32, %v2998_v44  ;;  %v2672_v53 = vmul.f32 %v5390_v5, %v2612_v4 }
 0x491   : > { %v3065_v24 = vmax.f32 %v3033_v51, 0.0  ;;  %v2468_v0 = vmul.f32 %v7118_v18, %v7118_v18  ;;  %vm2678_vm0 = vweird.f32 %v5390_v5  ;;  %vm2697_vm14 = vweird.f32 %v2614_v9 }
 0x492   : > { %3099 = vst.msk [vmem:[#allocation2 + $0x18] sm:$0xff] %vm444_vm1, %v3067_v46  ;;  %v3066_v31 = vmax.f32 %v3034_v59, 0.0  ;;  %v2673_v20 = vmul.f32 %v5390_v5, %v2672_v53  ;;  %vm2679_vm3 = vmor %vm2677_vm2, %vm2678_vm0 }
 0x493   : > { %v2351_v49 = vpop.xlane.xlu2 %2350  ;;  %3097 = vst.msk [vmem:[#allocation2 + $0x8] sm:$0xff] %vm444_vm1, %v3065_v24  ;;  %v2538_v47 = vsel %vm444_vm1, %v2468_v0, 0.0 }
 0x494   : > { %v2405_v33 = vmul.f32 %v2351_v49, %v5768_v23  ;;  %3098 = vst.msk [vmem:[#allocation2 + $0x10] sm:$0xff] %vm444_vm1, %v3066_v31  ;;  %v2674_v38 = vmul.f32 0.5, %v2673_v20  ;;  %v2495_v42 = vpop.xlane.xlu0 %2494  ;;  %2539 = vadd.xlane.f32.xlu1 %v2538_v47 }
 0x495   : > { %v2581_v26 = vmul.f32 %v2495_v42, %v5768_v23 }
 0x496   : > { %v5392_v55 = vpop.eup %5391  ;;  %v7128_v12 = vsub.f32 %v6926_v43, %v2405_v33  ;;  %v2675_v52 = vsub.f32 1.5, %v2674_v38 }
 0x497   : > { %v2692_v6 = vmul.f32 %v5392_v55, %v2614_v9  ;;  %v2613_v25 = vadd.f32 1e-05, %v2581_v26  ;;  %vm2698_vm4 = vweird.f32 %v5392_v55 }
 0x498   : > { %v2469_v44 = vmul.f32 %v7128_v12, %v7128_v12  ;;  %v2676_v46 = vmul.f32 %v5390_v5, %v2675_v52  ;;  %vm2699_vm5 = vmor %vm2697_vm14, %vm2698_vm4 }
 0x499   : > { %v2693_v51 = vmul.f32 %v5392_v55, %v2692_v6  ;;  %5393 = vrsqrt.f32 %v2613_v25  ;;  %vm2687_vm8 = vweird.f32 %v2613_v25 }
 0x49a   : > { %v2541_v59 = vsel %vm444_vm1, %v2469_v44, 0.0  ;;  %v2680_v53 = vsel %vm2679_vm3, %v5390_v5, %v2676_v46  ;;  %v3129_v31 = vld [vmem:[#allocation2 + $0x6] sm:$0xff] }
 0x49b   : > { %v2694_v43 = vmul.f32 0.5, %v2693_v51  ;;  %v7134_v24 = vpop.xlane.xlu1 %2353  ;;  %2542 = vadd.xlane.f32.xlu2 %v2541_v59  ;;  %v2964_v20 = vmul.f32 %v2680_v53, %v6894_v27  ;;  %v3770_v49 = vld [vmem:[#allocation2 + $0xa] sm:$0xff]  ;;  %3161 = vst.msk [vmem:[#allocation3] sm:$0xff] %vm444_vm1, %v3129_v31  ;;  %v3771_v4 = vld [vmem:[#allocation2 + $0x12] sm:$0xff] }
 0x49c   : > { %v2507_v33 = vpop.xlane.xlu0 %2506  ;;  %3802 = vst.msk [vmem:[#allocation3 + $0x8] sm:$0xff] %vm444_vm1, %v3770_v49  ;;  %v3131_v47 = vld [vmem:[#allocation2 + $0x16] sm:$0xff]  ;;  %v3130_v42 = vld [vmem:[#allocation2 + $0xe] sm:$0xff] }
 0x49d   : > { %v2695_v0 = vsub.f32 1.5, %v2694_v43  ;;  %v3000_v38 = vmul.f32 %v7091_v35, %v2964_v20  ;;  %v2585_v5 = vmul.f32 %v2507_v33, %v5768_v23  ;;  %3803 = vst.msk [vmem:[#allocation3 + $0x18] sm:$0xff] %vm444_vm1, %v3771_v4  ;;  %v3386_v27 = vld [vmem:[#allocation2 + $0x10] sm:$0xff] }
 0x49e   : > { %3163 = vst.msk [vmem:[#allocation3 + $0x20] sm:$0xff] %vm444_vm1, %v3131_v47 }
 0x49f   : > { %v2696_v26 = vmul.f32 %v5392_v55, %v2695_v0  ;;  %v5394_v52 = vpop.eup %5393  ;;  %v3036_v6 = vadd.f32 %v7102_v32, %v3000_v38  ;;  %v2617_v44 = vadd.f32 1e-05, %v2585_v5  ;;  %3451 = vrot.lane.b32.xlu0 %v3386_v27, %s5530_s27  ;;  %3162 = vst.msk [vmem:[#allocation3 + $0x10] sm:$0xff] %vm444_vm1, %v3130_v42  ;;  %v3195_v38 = vld [vmem:[#allocation2 + $0x17] sm:$0xff] }
 0x4a0   : > { %v2682_v51 = vmul.f32 %v5394_v52, %v2613_v25  ;;  %vm2688_vm6 = vweird.f32 %v5394_v52 }
 0x4a1   : > { %v2700_v46 = vsel %vm2699_vm5, %v5392_v55, %v2696_v26  ;;  %v3068_v59 = vmax.f32 %v3036_v6, 0.0  ;;  %5395 = vrsqrt.f32 %v2617_v44  ;;  %vm2689_vm9 = vmor %vm2687_vm8, %vm2688_vm6  ;;  %vm2727_vm12 = vweird.f32 %v2617_v44 }
 0x4a2   : > { %v2966_v53 = vmul.f32 %v2700_v46, %v6907_v30  ;;  %v2683_v9 = vmul.f32 %v5394_v52, %v2682_v51 }
 0x4a3   : > { %v2501_v43 = vpop.xlane.xlu1 %2500  ;;  %3100 = vst.msk [vmem:[#allocation2 + $0x20] sm:$0xff] %vm444_vm1, %v3068_v59  ;;  %v3835_v49 = vld [vmem:[#allocation3 + $0x8] sm:$0xff]  ;;  %v7155_v6 = vpop.xlane.xlu2 %2356 }
 0x4a4   : > { %v3002_v31 = vmul.f32 %v7091_v35, %v2966_v53  ;;  %v2583_v20 = vmul.f32 %v2501_v43, %v5768_v23  ;;  %v2684_v0 = vmul.f32 0.5, %v2683_v9  ;;  %5245 = vmatmul.msk.f32.vlgmr.msra.gmra.mxu3 %vm444_vm1, %v3835_v49  ;;  %v3837_v9 = vld [vmem:[#allocation3 + $0x18] sm:$0xff]  ;;  %v3194_v49 = vld [vmem:[#allocation2 + $0xf] sm:$0xff] }
 0x4a6   : > { %v3038_v33 = vadd.f32 %v7102_v32, %v3002_v31  ;;  %v2615_v55 = vadd.f32 1e-05, %v2583_v20  ;;  %v2685_v4 = vsub.f32 1.5, %v2684_v0 }
 0x4a7   : > { %v5396_v30 = vpop.eup %5395  ;;  %3261 = vrot.lane.b32.xlu0 %v3195_v38, %s5529_s26 }
 0x4a8   : > { %v3070_v5 = vmax.f32 %v3038_v33, 0.0  ;;  %5397 = vrsqrt.f32 %v2615_v55  ;;  %v2686_v47 = vmul.f32 %v5394_v52, %v2685_v4  ;;  %v2722_v42 = vmul.f32 %v5396_v30, %v2617_v44 }
 0x4a9   : > { %vm2728_vm11 = vweird.f32 %v5396_v30  ;;  %vm2707_vm0 = vweird.f32 %v2615_v55 }
 0x4aa   : > { %3102 = vst.msk [vmem:[#allocation2 + $0x30] sm:$0xff] %vm444_vm1, %v3070_v5  ;;  %v2690_v26 = vsel %vm2689_vm9, %v5394_v52, %v2686_v47  ;;  %v2723_v27 = vmul.f32 %v5396_v30, %v2722_v42  ;;  %v3772_v51 = vld [vmem:[#allocation2 + $0x1a] sm:$0xff]  ;;  %vm2729_vm13 = vmor %vm2727_vm12, %vm2728_vm11  ;;  %v3578_v42 = vld [vmem:[#allocation2 + $0x11] sm:$0xff] }
 0x4ab   : > { %v2504_v46 = vpop.xlane.xlu1 %2503  ;;  %v2965_v59 = vmul.f32 %v2690_v26, %v6920_v1  ;;  %3804 = vst.msk [vmem:[#allocation3 + $0x28] sm:$0xff] %vm444_vm1, %v3772_v51  ;;  %v3132_v43 = vld [vmem:[#allocation2 + $0x1e] sm:$0xff] }
 0x4ac   : > { %v2584_v53 = vmul.f32 %v2504_v46, %v5768_v23  ;;  %v2724_v31 = vmul.f32 0.5, %v2723_v27  ;;  %5246 = vmatmul.msk.f32.gmra.mxu3 %vm444_vm1, %v3837_v9  ;;  %3164 = vst.msk [vmem:[#allocation3 + $0x30] sm:$0xff] %vm444_vm1, %v3132_v43  ;;  %v3196_v33 = vld [vmem:[#allocation2 + $0x1f] sm:$0xff] }
 0x4ad   : > { %v3001_v52 = vmul.f32 %v7091_v35, %v2965_v59  ;;  %3259 = vrot.lane.b32.xlu1 %v3194_v49, %s5529_s26 }
 0x4ae   : > { %v5398_v25 = vpop.eup %5397  ;;  %v7163_v20 = vadd.f32 1e-05, %v2584_v53  ;;  %v2725_v0 = vsub.f32 1.5, %v2724_v31 }
 0x4af   : > { %v2702_v1 = vmul.f32 %v5398_v25, %v2615_v55  ;;  %v3037_v4 = vadd.f32 %v7102_v32, %v3001_v52  ;;  %3263 = vrot.lane.b32.xlu0 %v3196_v33, %s5529_s26  ;;  %vm2708_vm15 = vweird.f32 %v5398_v25 }
 0x4b0   : > { %5399 = vrsqrt.f32 %v7163_v20  ;;  %v2726_v38 = vmul.f32 %v5396_v30, %v2725_v0  ;;  %vm2709_vm2 = vmor %vm2707_vm0, %vm2708_vm15  ;;  %vm2717_vm4 = vweird.f32 %v7163_v20 }
 0x4b1   : > { %v2703_v5 = vmul.f32 %v5398_v25, %v2702_v1  ;;  %v3069_v47 = vmax.f32 %v3037_v4, 0.0 }
 0x4b2   : > { %v2730_v26 = vsel %vm2729_vm13, %v5396_v30, %v2726_v38  ;;  %v3839_v51 = vld [vmem:[#allocation3 + $0x28] sm:$0xff] }
 0x4b3   : > { %v2704_v27 = vmul.f32 0.5, %v2703_v5  ;;  %v7169_v46 = vpop.xlane.xlu2 %2362  ;;  %3643 = vrot.lane.b32.xlu2 %v3578_v42, %s5531_s19  ;;  %3101 = vst.msk [vmem:[#allocation2 + $0x28] sm:$0xff] %vm444_vm1, %v3069_v47  ;;  %v2969_v59 = vmul.f32 %v2730_v26, %v6933_v2  ;;  %v7176_v43 = vpop.xlane.xlu1 %2359 }
 0x4b4   : > { %5247 = vmatmul.msk.f32.gmra.mxu3 %vm444_vm1, %v3839_v51 }
 0x4b5   : > { %v2705_v53 = vsub.f32 1.5, %v2704_v27  ;;  %v3005_v9 = vmul.f32 %v7091_v35, %v2969_v59 }
 0x4b6   : > { %v5400_v44 = vpop.eup %5399 }
 0x4b7   : > { %v2706_v30 = vmul.f32 %v5398_v25, %v2705_v53  ;;  %v2712_v31 = vmul.f32 %v5400_v44, %v7163_v20  ;;  %v3041_v52 = vadd.f32 %v7102_v32, %v3005_v9  ;;  %vm2718_vm3 = vweird.f32 %v5400_v44 }
 0x4b8   : > { %vm2719_vm14 = vmor %vm2717_vm4, %vm2718_vm3 }
 0x4b9   : > { %v2710_v49 = vsel %vm2709_vm2, %v5398_v25, %v2706_v30  ;;  %v2713_v0 = vmul.f32 %v5400_v44, %v2712_v31  ;;  %v3073_v1 = vmax.f32 %v3041_v52, 0.0 }
 0x4ba   : > { %v2967_v2 = vmul.f32 %v2710_v49, %v6943_v11  ;;  %v3197_v38 = vld [vmem:[#allocation2 + $0x27] sm:$0xff] }
 0x4bb   : > { %v2714_v33 = vmul.f32 0.5, %v2713_v0  ;;  %v2510_v4 = vpop.xlane.xlu2 %2509  ;;  %v3773_v5 = vld [vmem:[#allocation2 + $0x22] sm:$0xff]  ;;  %v3774_v47 = vld [vmem:[#allocation2 + $0x2a] sm:$0xff]  ;;  %3105 = vst.msk [vmem:[#allocation2 + $0x58] sm:$0xff] %vm444_vm1, %v3073_v1  ;;  %3265 = vrot.lane.b32.xlu0 %v3197_v38, %s5529_s26  ;;  %v7187_v59 = vpop.xlane.xlu0 %2365 }
 0x4bc   : > { %v3003_v42 = vmul.f32 %v7091_v35, %v2967_v2  ;;  %v2586_v55 = vmul.f32 %v2510_v4, %v5768_v23  ;;  %3805 = vst.msk [vmem:[#allocation3 + $0x38] sm:$0xff] %vm444_vm1, %v3773_v5  ;;  %v3133_v25 = vld [vmem:[#allocation2 + $0x26] sm:$0xff]  ;;  %v3134_v27 = vld [vmem:[#allocation2 + $0x2e] sm:$0xff] }
 0x4bd   : > { %v2715_v26 = vsub.f32 1.5, %v2714_v33  ;;  %3806 = vst.msk [vmem:[#allocation3 + $0x48] sm:$0xff] %vm444_vm1, %v3774_v47 }
 0x4be   : > { %v3039_v11 = vadd.f32 %v7102_v32, %v3003_v42  ;;  %v2618_v51 = vadd.f32 1e-05, %v2586_v55  ;;  %v2513_v53 = vpop.xlane.xlu1 %2512  ;;  %3165 = vst.msk [vmem:[#allocation3 + $0x40] sm:$0xff] %vm444_vm1, %v3133_v25 }
 0x4bf   : > { %v2716_v9 = vmul.f32 %v5400_v44, %v2715_v26  ;;  %v2587_v30 = vmul.f32 %v2513_v53, %v5768_v23  ;;  %3166 = vst.msk [vmem:[#allocation3 + $0x50] sm:$0xff] %vm444_vm1, %v3134_v27 }
 0x4c0   : > { %v3071_v31 = vmax.f32 %v3039_v11, 0.0  ;;  %5401 = vrsqrt.f32 %v2618_v51  ;;  %vm2737_vm6 = vweird.f32 %v2618_v51 }
 0x4c1   : > { %v2720_v52 = vsel %vm2719_vm14, %v5400_v44, %v2716_v9  ;;  %v2619_v49 = vadd.f32 1e-05, %v2587_v30  ;;  %v2406_v9 = vmul.f32 %v7134_v24, %v5768_v23 }
 0x4c2   : > { %3103 = vst.msk [vmem:[#allocation2 + $0x38] sm:$0xff] %vm444_vm1, %v3071_v31  ;;  %v2968_v0 = vmul.f32 %v2720_v52, %v6955_v15  ;;  %v3137_v1 = vld [vmem:[#allocation2 + $0x56] sm:$0xff] }
 0x4c3   : > { %5403 = vrsqrt.f32 %v2619_v49  ;;  %v3841_v20 = vld [vmem:[#allocation3 + $0x38] sm:$0xff]  ;;  %3169 = vst.msk [vmem:[#allocation3 + $0x80] sm:$0xff] %vm444_vm1, %v3137_v1  ;;  %v7200_v38 = vpop.xlane.xlu2 %2368  ;;  %vm2747_vm11 = vweird.f32 %v2619_v49 }
 0x4c4   : > { %v3004_v2 = vmul.f32 %v7091_v35, %v2968_v0  ;;  %5248 = vmatmul.msk.f32.gmra.mxu3 %vm444_vm1, %v3841_v20  ;;  %v3843_v31 = vld [vmem:[#allocation3 + $0x48] sm:$0xff] }
 0x4c6   : > { %v5402_v33 = vpop.eup %5401  ;;  %v3040_v4 = vadd.f32 %v7102_v32, %v3004_v2  ;;  %v2516_v44 = vpop.xlane.xlu0 %2515  ;;  %v2407_v2 = vmul.f32 %v7155_v6, %v5768_v23 }
 0x4c7   : > { %v2732_v5 = vmul.f32 %v5402_v33, %v2618_v51  ;;  %v2588_v47 = vmul.f32 %v2516_v44, %v5768_v23  ;;  %vm2738_vm5 = vweird.f32 %v5402_v33  ;;  %v7216_v44 = vsub.f32 %v6938_v29, %v2406_v9 }
 0x4c8   : > { %v3072_v42 = vmax.f32 %v3040_v4, 0.0  ;;  %vm2739_vm8 = vmor %vm2737_vm6, %vm2738_vm5  ;;  %v7224_v29 = vsub.f32 %v6952_v45, %v2407_v2 }
 0x4c9   : > { %v5404_v15 = vpop.eup %5403  ;;  %v2733_v55 = vmul.f32 %v5402_v33, %v2732_v5  ;;  %v7203_v26 = vadd.f32 1e-05, %v2588_v47  ;;  %v3775_v25 = vld [vmem:[#allocation2 + $0x32] sm:$0xff] }
 0x4ca   : > { %3104 = vst.msk [vmem:[#allocation2 + $0x40] sm:$0xff] %vm444_vm1, %v3072_v42  ;;  %v2742_v27 = vmul.f32 %v5404_v15, %v2619_v49  ;;  %v3135_v11 = vld [vmem:[#allocation2 + $0x36] sm:$0xff]  ;;  %vm2748_vm9 = vweird.f32 %v5404_v15 }
 0x4cb   : > { %v2734_v53 = vmul.f32 0.5, %v2733_v55  ;;  %5405 = vrsqrt.f32 %v7203_v26  ;;  %3807 = vst.msk [vmem:[#allocation3 + $0x58] sm:$0xff] %vm444_vm1, %v3775_v25  ;;  %vm2749_vm12 = vmor %vm2747_vm11, %vm2748_vm9  ;;  %vm2757_vm15 = vweird.f32 %v7203_v26 }
 0x4cc   : > { %v2743_v30 = vmul.f32 %v5404_v15, %v2742_v27  ;;  %3167 = vst.msk [vmem:[#allocation3 + $0x60] sm:$0xff] %vm444_vm1, %v3135_v11  ;;  %5249 = vmatmul.msk.f32.gmra.mxu3 %vm444_vm1, %v3843_v31 }
 0x4cd   : > { %v2735_v52 = vsub.f32 1.5, %v2734_v53 }
 0x4ce   : > { %v2744_v0 = vmul.f32 0.5, %v2743_v30  ;;  %v2519_v1 = vpop.xlane.xlu2 %2518  ;;  %v7227_v51 = vpop.xlane.xlu0 %2371  ;;  %v2470_v30 = vmul.f32 %v7216_v44, %v7216_v44 }
 0x4cf   : > { %v2736_v20 = vmul.f32 %v5402_v33, %v2735_v52  ;;  %v2589_v4 = vmul.f32 %v2519_v1, %v5768_v23 }
 0x4d0   : > { %v2745_v24 = vsub.f32 1.5, %v2744_v0 }
 0x4d1   : > { %v5406_v5 = vpop.eup %5405  ;;  %v2740_v47 = vsel %vm2739_vm8, %v5402_v33, %v2736_v20  ;;  %v7218_v42 = vadd.f32 1e-05, %v2589_v4  ;;  %v3776_v55 = vld [vmem:[#allocation2 + $0x3a] sm:$0xff]  ;;  %v3777_v25 = vld [vmem:[#allocation2 + $0x42] sm:$0xff] }
 0x4d2   : > { %v2970_v27 = vmul.f32 %v2740_v47, %v6971_v61  ;;  %v2746_v11 = vmul.f32 %v5404_v15, %v2745_v24  ;;  %v2752_v6 = vmul.f32 %v5406_v5, %v7203_v26  ;;  %3808 = vst.msk [vmem:[#allocation3 + $0x68] sm:$0xff] %vm444_vm1, %v3776_v55  ;;  %v3136_v33 = vld [vmem:[#allocation2 + $0x3e] sm:$0xff]  ;;  %vm2758_vm13 = vweird.f32 %v5406_v5 }
 0x4d3   : > { %5407 = vrsqrt.f32 %v7218_v42  ;;  %3809 = vst.msk [vmem:[#allocation3 + $0x78] sm:$0xff] %vm444_vm1, %v3777_v25  ;;  %v3845_v49 = vld [vmem:[#allocation3 + $0x58] sm:$0xff]  ;;  %v2544_v24 = vsel %vm444_vm1, %v2470_v30, 0.0  ;;  %vm2759_vm0 = vmor %vm2757_vm15, %vm2758_vm13  ;;  %vm2767_vm3 = vweird.f32 %v7218_v42 }
 0x4d4   : > { %v3006_v53 = vmul.f32 %v7091_v35, %v2970_v27  ;;  %v2750_v61 = vsel %vm2749_vm12, %v5404_v15, %v2746_v11  ;;  %v2753_v9 = vmul.f32 %v5406_v5, %v2752_v6  ;;  %3168 = vst.msk [vmem:[#allocation3 + $0x70] sm:$0xff] %vm444_vm1, %v3136_v33  ;;  %5250 = vmatmul.msk.f32.gmra.mxu3 %vm444_vm1, %v3845_v49 }
 0x4d5   : > { %v2971_v45 = vmul.f32 %v2750_v61, %v6984_v3  ;;  %v2471_v15 = vmul.f32 %v7224_v29, %v7224_v29  ;;  %v2409_v3 = vmul.f32 %v7169_v46, %v5768_v23 }
 0x4d6   : > { %v3042_v31 = vadd.f32 %v7102_v32, %v3006_v53  ;;  %v2754_v52 = vmul.f32 0.5, %v2753_v9  ;;  %v2522_v0 = vpop.xlane.xlu1 %2521  ;;  %v7248_v33 = vpop.xlane.xlu2 %2374 }
 0x4d7   : > { %v3007_v1 = vmul.f32 %v7091_v35, %v2971_v45  ;;  %v2590_v2 = vmul.f32 %v2522_v0, %v5768_v23  ;;  %2545 = vadd.xlane.f32.xlu1 %v2544_v24  ;;  %v2547_v46 = vsel %vm444_vm1, %v2471_v15, 0.0  ;;  %v7254_v30 = vsub.f32 %v6968_v16, %v2409_v3 }
 0x4d8   : > { %v3074_v20 = vmax.f32 %v3042_v31, 0.0  ;;  %v2755_v4 = vsub.f32 1.5, %v2754_v52 }
 0x4d9   : > { %v5408_v47 = vpop.eup %5407  ;;  %v3043_v55 = vadd.f32 %v7102_v32, %v3007_v1  ;;  %v2622_v25 = vadd.f32 1e-05, %v2590_v2  ;;  %v3847_v49 = vld [vmem:[#allocation3 + $0x68] sm:$0xff]  ;;  %v2473_v1 = vmul.f32 %v7254_v30, %v7254_v30 }
 0x4da   : > { %3106 = vst.msk [vmem:[#allocation2 + $0x60] sm:$0xff] %vm444_vm1, %v3074_v20  ;;  %v2756_v27 = vmul.f32 %v5406_v5, %v2755_v4  ;;  %v2762_v11 = vmul.f32 %v5408_v47, %v7218_v42  ;;  %vm2768_vm2 = vweird.f32 %v5408_v47 }
 0x4db   : > { %v3075_v6 = vmax.f32 %v3043_v55, 0.0  ;;  %5409 = vrsqrt.f32 %v2622_v25  ;;  %v7250_v53 = vpop.xlane.xlu0 %2377  ;;  %vm2769_vm4 = vmor %vm2767_vm3, %vm2768_vm2  ;;  %vm2777_vm5 = vweird.f32 %v2622_v25 }
 0x4dc   : > { %v2760_v61 = vsel %vm2759_vm0, %v5406_v5, %v2756_v27  ;;  %v2763_v9 = vmul.f32 %v5408_v47, %v2762_v11  ;;  %2548 = vadd.xlane.f32.xlu2 %v2547_v46  ;;  %5251 = vmatmul.msk.f32.gmra.mxu3 %vm444_vm1, %v3847_v49  ;;  %v3849_v11 = vld [vmem:[#allocation3 + $0x78] sm:$0xff]  ;;  %v2553_v46 = vsel %vm444_vm1, %v2473_v1, 0.0 }
 0x4dd   : > { %3107 = vst.msk [vmem:[#allocation2 + $0x68] sm:$0xff] %vm444_vm1, %v3075_v6  ;;  %v2972_v26 = vmul.f32 %v2760_v61, %v6997_v36 }
 0x4de   : > { %v2764_v45 = vmul.f32 0.5, %v2763_v9 }
 0x4df   : > { %v3008_v31 = vmul.f32 %v7091_v35, %v2972_v26 }
 0x4e0   : > { %v2765_v52 = vsub.f32 1.5, %v2764_v45 }
 0x4e1   : > { %v5410_v0 = vpop.eup %5409  ;;  %v3044_v5 = vadd.f32 %v7102_v32, %v3008_v31  ;;  %v3778_v2 = vld [vmem:[#allocation2 + $0x5a] sm:$0xff] }
 0x4e2   : > { %v2766_v16 = vmul.f32 %v5408_v47, %v2765_v52  ;;  %v2772_v15 = vmul.f32 %v5410_v0, %v2622_v25  ;;  %3810 = vst.msk [vmem:[#allocation3 + $0x88] sm:$0xff] %vm444_vm1, %v3778_v2  ;;  %v3138_v36 = vld [vmem:[#allocation2 + $0x5e] sm:$0xff]  ;;  %vm2778_vm14 = vweird.f32 %v5410_v0 }
 0x4e3   : > { %v3076_v20 = vmax.f32 %v3044_v5, 0.0  ;;  %v7265_v4 = vpop.xlane.xlu2 %2380  ;;  %v2525_v24 = vpop.xlane.xlu0 %2524  ;;  %3170 = vst.msk [vmem:[#allocation3 + $0x90] sm:$0xff] %vm444_vm1, %v3138_v36  ;;  %vm2779_vm6 = vmor %vm2777_vm5, %vm2778_vm14 }
 0x4e4   : > { %v2770_v3 = vsel %vm2769_vm4, %v5408_v47, %v2766_v16  ;;  %v2773_v55 = vmul.f32 %v5410_v0, %v2772_v15  ;;  %v2591_v27 = vmul.f32 %v2525_v24, %v5768_v23  ;;  %v3779_v6 = vld [vmem:[#allocation2 + $0x62] sm:$0xff]  ;;  %5252 = vmatmul.msk.f32.gmra.mxu3 %vm444_vm1, %v3849_v11  ;;  %v3913_v11 = vld [vmem:[%s8717_s9 + $0x78] sm:$0xff] }
 0x4e5   : > { %3108 = vst.msk [vmem:[#allocation2 + $0x70] sm:$0xff] %vm444_vm1, %v3076_v20  ;;  %v2973_v42 = vmul.f32 %v2770_v3, %v7006_v41  ;;  %v3139_v61 = vld [vmem:[#allocation2 + $0x66] sm:$0xff]  ;;  %2554 = vadd.xlane.f32.xlu0 %v2553_v46  ;;  %5279 = vmatpush.msra.mxu2 %v3913_v11  ;;  %v3579_v46 = vld [vmem:[#allocation2 + $0x19] sm:$0xff] }
 0x4e6   : > { %v2774_v9 = vmul.f32 0.5, %v2773_v55  ;;  %v2623_v49 = vadd.f32 1e-05, %v2591_v27  ;;  %3811 = vst.msk [vmem:[#allocation3 + $0x98] sm:$0xff] %vm444_vm1, %v3779_v6  ;;  %4018 = vmatpush.msrb.mxu0 %v3913_v11 }
 0x4e7   : > { %v3009_v47 = vmul.f32 %v7091_v35, %v2973_v42  ;;  %3171 = vst.msk [vmem:[#allocation3 + $0xa0] sm:$0xff] %vm444_vm1, %v3139_v61  ;;  %v3912_v61 = vld [vmem:[%s8717_s9 + $0x70] sm:$0xff] }
 0x4e8   : > { %v2775_v26 = vsub.f32 1.5, %v2774_v9  ;;  %5411 = vrsqrt.f32 %v2623_v49  ;;  %5280 = vmatpush.msra.mxu2 %v3912_v61  ;;  %4019 = vmatpush.msrb.mxu0 %v3912_v61  ;;  %vm2787_vm9 = vweird.f32 %v2623_v49 }
 0x4e9   : > { %v3045_v45 = vadd.f32 %v7102_v32, %v3009_v47  ;;  %v3851_v2 = vld [vmem:[#allocation3 + $0x88] sm:$0xff] }
 0x4ea   : > { %v2776_v41 = vmul.f32 %v5410_v0, %v2775_v26 }
 0x4eb   : > { %v3077_v31 = vmax.f32 %v3045_v45, 0.0  ;;  %v2528_v52 = vpop.xlane.xlu2 %2527  ;;  %v7288_v27 = vpop.xlane.xlu1 %2383  ;;  %v3911_v45 = vld [vmem:[%s8717_s9 + $0x68] sm:$0xff] }
 0x4ec   : > { %v2780_v5 = vsel %vm2779_vm6, %v5410_v0, %v2776_v41  ;;  %v2592_v1 = vmul.f32 %v2528_v52, %v5768_v23  ;;  %v3780_v16 = vld [vmem:[#allocation2 + $0x6a] sm:$0xff]  ;;  %5253 = vmatmul.msk.f32.gmra.mxu3 %vm444_vm1, %v3851_v2  ;;  %5281 = vmatpush.msra.mxu2 %v3911_v45 }
 0x4ed   : > { %3109 = vst.msk [vmem:[#allocation2 + $0x78] sm:$0xff] %vm444_vm1, %v3077_v31  ;;  %v2974_v15 = vmul.f32 %v2780_v5, %v7018_v60  ;;  %v3140_v36 = vld [vmem:[#allocation2 + $0x6e] sm:$0xff]  ;;  %v3387_v60 = vld [vmem:[#allocation2 + $0x18] sm:$0xff]  ;;  %4020 = vmatpush.msrb.mxu0 %v3911_v45 }
 0x4ee   : > { %v5412_v20 = vpop.eup %5411  ;;  %v7281_v24 = vadd.f32 1e-05, %v2592_v1  ;;  %3812 = vst.msk [vmem:[#allocation3 + $0xa8] sm:$0xff] %vm444_vm1, %v3780_v16  ;;  %v3853_v9 = vld [vmem:[#allocation3 + $0x98] sm:$0xff]  ;;  %v3910_v1 = vld [vmem:[%s8717_s9 + $0x60] sm:$0xff] }
 0x4ef   : > { %v3010_v25 = vmul.f32 %v7091_v35, %v2974_v15  ;;  %v2782_v3 = vmul.f32 %v5412_v20, %v2623_v49  ;;  %3172 = vst.msk [vmem:[#allocation3 + $0xb0] sm:$0xff] %vm444_vm1, %v3140_v36  ;;  %vm2788_vm8 = vweird.f32 %v5412_v20  ;;  %5282 = vmatpush.msra.mxu2 %v3910_v1  ;;  %v3388_v49 = vld [vmem:[#allocation2 + $0x20] sm:$0xff]  ;;  %4021 = vmatpush.msrb.mxu0 %v3910_v1 }
 0x4f0   : > { %5413 = vrsqrt.f32 %v7281_v24  ;;  %3453 = vrot.lane.b32.xlu1 %v3387_v60, %s5530_s27  ;;  %vm2789_vm11 = vmor %vm2787_vm9, %vm2788_vm8  ;;  %vm2797_vm13 = vweird.f32 %v7281_v24  ;;  %v3906_v1 = vld [vmem:[%s8717_s9 + $0x40] sm:$0xff] }
 0x4f1   : > { %v3046_v0 = vadd.f32 %v7102_v32, %v3010_v25  ;;  %v2783_v55 = vmul.f32 %v5412_v20, %v2782_v3  ;;  %v3198_v3 = vld [vmem:[#allocation2 + $0x2f] sm:$0xff] }
 0x4f3   : > { %v3078_v6 = vmax.f32 %v3046_v0, 0.0  ;;  %v2784_v42 = vmul.f32 0.5, %v2783_v55  ;;  %v3909_v0 = vld [vmem:[%s8717_s9 + $0x58] sm:$0xff] }
 0x4f4   : > { %3645 = vrot.lane.b32.xlu2 %v3579_v46, %s5531_s19  ;;  %v3781_v47 = vld [vmem:[#allocation2 + $0x72] sm:$0xff]  ;;  %5254 = vmatmul.msk.f32.gmra.mxu3 %vm444_vm1, %v3853_v9 }
 0x4f5   : > { %3110 = vst.msk [vmem:[#allocation2 + $0x80] sm:$0xff] %vm444_vm1, %v3078_v6  ;;  %v2785_v26 = vsub.f32 1.5, %v2784_v42  ;;  %v3141_v31 = vld [vmem:[#allocation2 + $0x76] sm:$0xff]  ;;  %v3580_v6 = vld [vmem:[#allocation2 + $0x21] sm:$0xff]  ;;  %5283 = vmatpush.msra.mxu2 %v3909_v0  ;;  %4022 = vmatpush.msrb.mxu0 %v3909_v0  ;;  %v3581_v0 = vld [vmem:[#allocation2 + $0x29] sm:$0xff] }
 0x4f6   : > { %v7303_v41 = vpop.eup %5413  ;;  %3813 = vst.msk [vmem:[#allocation3 + $0xb8] sm:$0xff] %vm444_vm1, %v3781_v47  ;;  %v3908_v42 = vld [vmem:[%s8717_s9 + $0x50] sm:$0xff] }
 0x4f7   : > { %v2786_v52 = vmul.f32 %v5412_v20, %v2785_v26  ;;  %v2792_v5 = vmul.f32 %v7303_v41, %v7281_v24  ;;  %3173 = vst.msk [vmem:[#allocation3 + $0xc0] sm:$0xff] %vm444_vm1, %v3141_v31  ;;  %v2531_v2 = vpop.xlane.xlu2 %2530  ;;  %vm2798_vm12 = vweird.f32 %v7303_v41  ;;  %5284 = vmatpush.msra.mxu2 %v3908_v42  ;;  %v3907_v26 = vld [vmem:[%s8717_s9 + $0x48] sm:$0xff]  ;;  %4023 = vmatpush.msrb.mxu0 %v3908_v42  ;;  %v3905_v24 = vld [vmem:[%s8717_s9 + $0x38] sm:$0xff] }
 0x4f8   : > { %v2534_v36 = vpop.xlane.xlu1 %2533  ;;  %v2593_v25 = vmul.f32 %v2531_v2, %v5768_v23  ;;  %3455 = vrot.lane.b32.xlu1 %v3388_v49, %s5530_s27  ;;  %vm2799_vm15 = vmor %vm2797_vm13, %vm2798_vm12  ;;  %v3903_v42 = vld [vmem:[%s8717_s9 + $0x28] sm:$0xff] }
 0x4f9   : > { %v2790_v16 = vsel %vm2789_vm11, %v5412_v20, %v2786_v52  ;;  %v2793_v15 = vmul.f32 %v7303_v41, %v2792_v5  ;;  %v2594_v60 = vmul.f32 %v2534_v36, %v5768_v23  ;;  %3267 = vrot.lane.b32.xlu0 %v3198_v3, %s5529_s26  ;;  %5285 = vmatpush.msra.mxu2 %v3907_v26  ;;  %v3199_v36 = vld [vmem:[#allocation2 + $0x37] sm:$0xff] }
 0x4fa   : > { %v2975_v55 = vmul.f32 %v2790_v16, %v7033_v56  ;;  %v7321_v11 = vadd.f32 1e-05, %v2593_v25  ;;  %v3855_v56 = vld [vmem:[#allocation3 + $0xa8] sm:$0xff]  ;;  %4024 = vmatpush.msrb.mxu0 %v3907_v26 }
 0x4fb   : > { %v2794_v20 = vmul.f32 0.5, %v2793_v15  ;;  %v7327_v61 = vadd.f32 1e-05, %v2594_v60  ;;  %5286 = vmatpush.msra.mxu2 %v3906_v1 }
 0x4fc   : > { %v3011_v46 = vmul.f32 %v7091_v35, %v2975_v55  ;;  %3647 = vrot.lane.b32.xlu2 %v3580_v6, %s5531_s19  ;;  %v3782_v9 = vld [vmem:[#allocation2 + $0x7a] sm:$0xff]  ;;  %5415 = vrsqrt.f32 %v7321_v11  ;;  %5255 = vmatmul.msk.f32.gmra.mxu3 %vm444_vm1, %v3855_v56  ;;  %vm2807_vm3 = vweird.f32 %v7321_v11 }
 0x4fd   : > { %v2795_v47 = vsub.f32 1.5, %v2794_v20  ;;  %3814 = vst.msk [vmem:[#allocation3 + $0xc8] sm:$0xff] %vm444_vm1, %v3782_v9  ;;  %5417 = vrsqrt.f32 %v7327_v61  ;;  %v3142_v31 = vld [vmem:[#allocation2 + $0x7e] sm:$0xff]  ;;  %4025 = vmatpush.msrb.mxu0 %v3906_v1  ;;  %5287 = vmatpush.msra.mxu2 %v3905_v24  ;;  %vm2817_vm4 = vweird.f32 %v7327_v61 }
 0x4fe   : > { %v3047_v45 = vadd.f32 %v7102_v32, %v3011_v46  ;;  %v2537_v5 = vpop.xlane.xlu0 %2536  ;;  %3174 = vst.msk [vmem:[#allocation3 + $0xd0] sm:$0xff] %vm444_vm1, %v3142_v31  ;;  %v3857_v20 = vld [vmem:[#allocation3 + $0xb8] sm:$0xff]  ;;  %v3902_v9 = vld [vmem:[%s8717_s9 + $0x20] sm:$0xff] }
 0x4ff   : > { %v2796_v52 = vmul.f32 %v7303_v41, %v2795_v47  ;;  %v2595_v16 = vmul.f32 %v2537_v5, %v5768_v23  ;;  %4026 = vmatpush.msrb.mxu0 %v3905_v24 }
 0x500   : > { %v3079_v2 = vmax.f32 %v3047_v45, 0.0 }
 0x501   : > { %v2800_v15 = vsel %vm2799_vm15, %v7303_v41, %v2796_v52  ;;  %v7354_v49 = vadd.f32 1e-05, %v2595_v16  ;;  %3269 = vrot.lane.b32.xlu0 %v3199_v36, %s5529_s26  ;;  %v3904_v41 = vld [vmem:[%s8717_s9 + $0x30] sm:$0xff]  ;;  %v3583_v52 = vld [vmem:[#allocation2 + $0x39] sm:$0xff] }
 0x502   : > { %3111 = vst.msk [vmem:[#allocation2 + $0x88] sm:$0xff] %vm444_vm1, %v3079_v2  ;;  %v2976_v25 = vmul.f32 %v2800_v15, %v7044_v7  ;;  %v7357_v3 = vpop.eup %5415  ;;  %5288 = vmatpush.msra.mxu2 %v3904_v41  ;;  %4027 = vmatpush.msrb.mxu0 %v3904_v41 }
 0x503   : > { %v7362_v55 = vpop.eup %5417  ;;  %v2802_v7 = vmul.f32 %v7357_v3, %v7321_v11  ;;  %5419 = vrsqrt.f32 %v7354_v49  ;;  %vm2808_vm0 = vweird.f32 %v7357_v3  ;;  %v3899_v11 = vld [vmem:[%s8717_s9 + $0x8] sm:$0xff]  ;;  %vm2827_vm8 = vweird.f32 %v7354_v49 }
 0x504   : > { %v3012_v60 = vmul.f32 %v7091_v35, %v2976_v25  ;;  %3649 = vrot.lane.b32.xlu2 %v3581_v0, %s5531_s19  ;;  %v2812_v6 = vmul.f32 %v7362_v55, %v7327_v61  ;;  %5256 = vmatmul.msk.f32.gmra.mxu3 %vm444_vm1, %v3857_v20  ;;  %vm2818_vm2 = vweird.f32 %v7362_v55  ;;  %v3900_v25 = vld [vmem:[%s8717_s9 + $0x10] sm:$0xff]  ;;  %vm2809_vm14 = vmor %vm2807_vm3, %vm2808_vm0  ;;  %vm3737_vm0 = vcmask 1048320  }
 0x505   : > { %v2803_v46 = vmul.f32 %v7357_v3, %v2802_v7  ;;  %5289 = vmatpush.msra.mxu2 %v3903_v42  ;;  %4028 = vmatpush.msrb.mxu0 %v3903_v42  ;;  %vm2819_vm5 = vmor %vm2817_vm4, %vm2818_vm2  ;;  %v3898_v42 = vld [vmem:[%s8717_s9] sm:$0xff] }
 0x506   : > { %v3048_v35 = vadd.f32 %v7102_v32, %v3012_v60  ;;  %v2813_v56 = vmul.f32 %v7362_v55, %v2812_v6  ;;  %v3901_v32 = vld [vmem:[%s8717_s9 + $0x18] sm:$0xff]  ;;  %v3859_v60 = vld [vmem:[#allocation3 + $0xc8] sm:$0xff] }
 0x507   : > { %v2804_v26 = vmul.f32 0.5, %v2803_v46  ;;  %v2540_v31 = vpop.xlane.xlu1 %2539  ;;  %5290 = vmatpush.msra.mxu2 %v3902_v9  ;;  %4029 = vmatpush.msrb.mxu0 %v3902_v9 }
 0x508   : > { %v3080_v47 = vmax.f32 %v3048_v35, 0.0  ;;  %v2814_v45 = vmul.f32 0.5, %v2813_v56  ;;  %v2596_v16 = vmul.f32 %v2540_v31, %v5768_v23 }
 0x509   : > { %v3783_v5 = vld [vmem:[#allocation2 + $0x82] sm:$0xff]  ;;  %v7384_v1 = vpop.eup %5419  ;;  %v2805_v2 = vsub.f32 1.5, %v2804_v26  ;;  %3653 = vrot.lane.b32.xlu0 %v3583_v52, %s5531_s19  ;;  %5291 = vmatpush.msra.mxu2 %v3901_v32 }
 0x50a   : > { %3112 = vst.msk [vmem:[#allocation2 + $0x90] sm:$0xff] %vm444_vm1, %v3080_v47  ;;  %v3143_v15 = vld [vmem:[#allocation2 + $0x86] sm:$0xff]  ;;  %v2815_v36 = vsub.f32 1.5, %v2814_v45  ;;  %v2822_v24 = vmul.f32 %v7384_v1, %v7354_v49  ;;  %v7399_v41 = vadd.f32 1e-05, %v2596_v16  ;;  %4030 = vmatpush.msrb.mxu0 %v3901_v32  ;;  %vm2828_vm6 = vweird.f32 %v7384_v1 }
 0x50b   : > { %3815 = vst.msk [vmem:[#allocation3 + $0xd8] sm:$0xff] %vm444_vm1, %v3783_v5  ;;  %v2806_v0 = vmul.f32 %v7357_v3, %v2805_v2  ;;  %5292 = vmatpush.msra.mxu2 %v3900_v25  ;;  %v7439_v32 = vld [vmem:[%s8716_s8] ss:$0 sm:$0xff]  ;;  %vm2829_vm9 = vmor %vm2827_vm8, %vm2828_vm6 }
 0x50c   : > { %3175 = vst.msk [vmem:[#allocation3 + $0xe0] sm:$0xff] %vm444_vm1, %v3143_v15  ;;  %v2816_v7 = vmul.f32 %v7362_v55, %v2815_v36  ;;  %v2823_v20 = vmul.f32 %v7384_v1, %v2822_v24  ;;  %5257 = vmatmul.msk.f32.gmra.mxu3 %vm444_vm1, %v3859_v60  ;;  %5421 = vrsqrt.f32 %v7399_v41  ;;  %4031 = vmatpush.msrb.mxu0 %v3900_v25  ;;  %vm2837_vm12 = vweird.f32 %v7399_v41 }
 0x50d   : > { %v2810_v6 = vsel %vm2809_vm14, %v7357_v3, %v2806_v0  ;;  %5293 = vmatpush.msra.mxu2 %v3899_v11  ;;  %v7425_v3 = vld [vmem:[%s8715_s7] ss:$0 sm:$0xff] }
 0x50e   : > { %v2543_v61 = vpop.xlane.xlu2 %2542  ;;  %v2820_v35 = vsel %vm2819_vm5, %v7362_v55, %v2816_v7  ;;  %v2977_v46 = vmul.f32 %v2810_v6, %v7063_v62  ;;  %v2824_v56 = vmul.f32 0.5, %v2823_v20  ;;  %4032 = vmatpush.msrb.mxu0 %v3899_v11  ;;  %v3200_v62 = vld [vmem:[#allocation2 + $0x3f] sm:$0xff]  ;;  %v2408_v11 = vmul.f32 %v7176_v43, %v5768_v23 }
 0x50f   : > { %v2597_v9 = vmul.f32 %v2543_v61, %v5768_v23  ;;  %v2978_v47 = vmul.f32 %v2820_v35, %v7066_v39  ;;  %5294 = vmatpush.msra.mxu2 %v3898_v42 }
 0x510   : > { %v3013_v26 = vmul.f32 %v7425_v3, %v2977_v46  ;;  %v2825_v45 = vsub.f32 1.5, %v2824_v56  ;;  %4033 = vmatpush.msrb.mxu0 %v3898_v42 }
 0x511   : > { %v7429_v55 = vadd.f32 1e-05, %v2597_v9  ;;  %v3784_v31 = vld [vmem:[#allocation2 + $0x8a] sm:$0xff]  ;;  %v3785_v52 = vld [vmem:[#allocation2 + $0x92] sm:$0xff]  ;;  %v3014_v5 = vmul.f32 %v7425_v3, %v2978_v47  ;;  %v7432_v39 = vpop.permute.xlu0 %3451  ;;  %3271 = vrot.lane.b32.xlu0 %v3200_v62, %s5529_s26 }
 0x512   : > { %3816 = vst.msk [vmem:[#allocation3 + $0xe8] sm:$0xff] %vm444_vm1, %v3784_v31  ;;  %v3049_v2 = vadd.f32 %v7439_v32, %v3013_v26  ;;  %v2826_v16 = vmul.f32 %v7384_v1, %v2825_v45  ;;  %v3144_v15 = vld [vmem:[#allocation2 + $0x8e] sm:$0xff]  ;;  %v5422_v36 = vpop.eup %5421  ;;  %v3861_v25 = vld [vmem:[#allocation3 + $0xd8] sm:$0xff] }
 0x513   : > { %5423 = vrsqrt.f32 %v7429_v55  ;;  %3817 = vst.msk [vmem:[#allocation3 + $0xf8] sm:$0xff] %vm444_vm1, %v3785_v52  ;;  %v3050_v24 = vadd.f32 %v7439_v32, %v3014_v5  ;;  %v2832_v7 = vmul.f32 %v5422_v36, %v7399_v41  ;;  %vm2838_vm11 = vweird.f32 %v5422_v36 }
 0x514   : > { %3176 = vst.msk [vmem:[#allocation3 + $0xf0] sm:$0xff] %vm444_vm1, %v3144_v15  ;;  %v3081_v0 = vmax.f32 %v3049_v2, 0.0  ;;  %v2830_v60 = vsel %vm2829_vm9, %v7384_v1, %v2826_v16  ;;  %5258 = vmatmul.msk.f32.gmra.mxu3 %vm444_vm1, %v3861_v25  ;;  %v3392_v1 = vld [vmem:[#allocation2 + $0x40] sm:$0xff]  ;;  %vm2839_vm13 = vmor %vm2837_vm12, %vm2838_vm11  ;;  %v2410_v16 = vmul.f32 %v7187_v59, %v5768_v23  ;;  %vm2847_vm2 = vweird.f32 %v7429_v55 }
 0x515   : > { %v3082_v49 = vmax.f32 %v3050_v24, 0.0  ;;  %v2979_v20 = vmul.f32 %v2830_v60, %v7082_v34  ;;  %v2833_v6 = vmul.f32 %v5422_v36, %v2832_v7  ;;  %v7463_v34 = vsub.f32 %v6964_v63, %v2408_v11 }
 0x516   : > { %3113 = vst.msk [vmem:[#allocation2 + $0xa8] sm:$0xff] %vm444_vm1, %v3081_v0  ;;  %v3584_v0 = vld [vmem:[#allocation2 + $0x41] sm:$0xff] }
 0x517   : > { %3114 = vst.msk [vmem:[#allocation2 + $0xb0] sm:$0xff] %vm444_vm1, %v3082_v49  ;;  %v3015_v61 = vmul.f32 %v7425_v3, %v2979_v20  ;;  %v2834_v35 = vmul.f32 0.5, %v2833_v6  ;;  %v2472_v63 = vmul.f32 %v7463_v34, %v7463_v34  ;;  %v7485_v49 = vsub.f32 %v6981_v28, %v2410_v16  ;;  %v3390_v16 = vld [vmem:[#allocation2 + $0x30] sm:$0xff] }
 0x519   : > { %v5424_v42 = vpop.eup %5423  ;;  %v3051_v46 = vadd.f32 %v7439_v32, %v3015_v61  ;;  %v3262_v9 = vpop.permute.xlu0 %3261  ;;  %3463 = vrot.lane.b32.xlu0 %v3392_v1, %s5530_s27  ;;  %v2835_v43 = vsub.f32 1.5, %v2834_v35  ;;  %v3863_v45 = vld [vmem:[#allocation3 + $0xe8] sm:$0xff]  ;;  %v2550_v7 = vsel %vm444_vm1, %v2472_v63, 0.0  ;;  %v2413_v63 = vmul.f32 %v7248_v33, %v5768_v23 }
 0x51a   : > { %v2842_v56 = vmul.f32 %v5424_v42, %v7429_v55  ;;  %3355 = vst.msk [vmem:[#allocation3 + $0x20] sm:$0xff] %vm1805_vm10, %v3262_v9  ;;  %vm2848_vm15 = vweird.f32 %v5424_v42  ;;  %v3865_v55 = vld [vmem:[#allocation3 + $0xf8] sm:$0xff] }
 0x51b   : > { %v3083_v47 = vmax.f32 %v3051_v46, 0.0  ;;  %v2836_v62 = vmul.f32 %v5422_v36, %v2835_v43  ;;  %vm2849_vm3 = vmor %vm2847_vm2, %vm2848_vm15 }
 0x51c   : > { %v2843_v26 = vmul.f32 %v5424_v42, %v2842_v56  ;;  %5259 = vmatmul.msk.f32.gmra.mxu3 %vm444_vm1, %v3863_v45 }
 0x51d   : > { %3115 = vst.msk [vmem:[#allocation2 + $0xb8] sm:$0xff] %vm444_vm1, %v3083_v47  ;;  %v3145_v52 = vld [vmem:[#allocation2 + $0xa6] sm:$0xff]  ;;  %v2840_v5 = vsel %vm2839_vm13, %v5422_v36, %v2836_v62 }
 0x51e   : > { %v2844_v31 = vmul.f32 0.5, %v2843_v26  ;;  %v3786_v2 = vld [vmem:[#allocation2 + $0xaa] sm:$0xff]  ;;  %3177 = vst.msk [vmem:[#allocation3 + $0x100] sm:$0xff] %vm444_vm1, %v3145_v52  ;;  %v2980_v15 = vmul.f32 %v2840_v5, %v7118_v18  ;;  %v3644_v18 = vpop.permute.xlu2 %3643 }
 0x51f   : > { %3818 = vst.msk [vmem:[#allocation3 + $0x108] sm:$0xff] %vm444_vm1, %v3786_v2  ;;  %v3146_v24 = vld [vmem:[#allocation2 + $0xae] sm:$0xff]  ;;  %v3260_v25 = vpop.permute.xlu1 %3259  ;;  %v7513_v2 = vsub.f32 %v7021_v40, %v2413_v63 }
 0x520   : > { %v2845_v41 = vsub.f32 1.5, %v2844_v31  ;;  %3178 = vst.msk [vmem:[#allocation3 + $0x110] sm:$0xff] %vm444_vm1, %v3146_v24  ;;  %v3016_v36 = vmul.f32 %v7425_v3, %v2980_v15  ;;  %v3389_v52 = vld [vmem:[#allocation2 + $0x28] sm:$0xff] }
 0x521   : > { %3354 = vst.msk [vmem:[#allocation3 + $0x10] sm:$0xff] %vm1805_vm10, %v3260_v25  ;;  %v3264_v59 = vpop.permute.xlu0 %3263  ;;  %3655 = vrot.lane.b32.xlu0 %v3584_v0, %s5531_s19  ;;  %v2477_v24 = vmul.f32 %v7513_v2, %v7513_v2 }
 0x522   : > { %v2846_v60 = vmul.f32 %v5424_v42, %v2845_v41  ;;  %3546 = vst.msk [vmem:[#allocation3 + $0x10] sm:$0xff] %vm1998_vm7, %v7432_v39  ;;  %v3052_v20 = vadd.f32 %v7439_v32, %v3016_v36  ;;  %2551 = vadd.xlane.f32.xlu1 %v2550_v7  ;;  %v3582_v41 = vld [vmem:[#allocation2 + $0x31] sm:$0xff] }
 0x523   : > { %3739 = vst.msk [vmem:[#allocation3 + $0x10] sm:$0xff] %vm3737_vm0, %v3644_v18  ;;  %v2565_v25 = vsel %vm444_vm1, %v2477_v24, 0.0  ;;  %v3391_v36 = vld [vmem:[#allocation2 + $0x38] sm:$0xff]  ;;  %v3203_v24 = vld [vmem:[#allocation2 + $0x67] sm:$0xff] }
 0x524   : > { %v2850_v11 = vsel %vm2849_vm3, %v5424_v42, %v2846_v60  ;;  %3356 = vst.msk [vmem:[#allocation3 + $0x30] sm:$0xff] %vm1805_vm10, %v3264_v59  ;;  %5260 = vmatmul.msk.f32.gmra.mxu3 %vm444_vm1, %v3865_v55  ;;  %v3787_v61 = vld [vmem:[#allocation2 + $0xb2] sm:$0xff]  ;;  %v3084_v39 = vmax.f32 %v3052_v20, 0.0  ;;  %v2474_v42 = vmul.f32 %v7485_v49, %v7485_v49 }
 0x525   : > { %v2981_v6 = vmul.f32 %v2850_v11, %v7128_v12  ;;  %3819 = vst.msk [vmem:[#allocation3 + $0x118] sm:$0xff] %vm444_vm1, %v3787_v61  ;;  %v3147_v35 = vld [vmem:[#allocation2 + $0xb6] sm:$0xff] }
 0x526   : > { %3179 = vst.msk [vmem:[#allocation3 + $0x120] sm:$0xff] %vm444_vm1, %v3147_v35  ;;  %v3867_v56 = vld [vmem:[#allocation3 + $0x108] sm:$0xff]  ;;  %v2556_v9 = vsel %vm444_vm1, %v2474_v42, 0.0 }
 0x527   : > { %v3017_v28 = vmul.f32 %v7425_v3, %v2981_v6  ;;  %3116 = vst.msk [vmem:[#allocation2 + $0xc0] sm:$0xff] %vm444_vm1, %v3084_v39 }
 0x529   : > { %v3053_v12 = vadd.f32 %v7439_v32, %v3017_v28 }
 0x52a   : > { %v3836_v46 = vld [vmem:[#allocation3 + $0x10] sm:$0xff] }
 0x52b   : > { %v3085_v1 = vmax.f32 %v3053_v12, 0.0  ;;  %4037 = vmatmul.f32.vlgmr.msra.gmra.mxu2 %v3836_v46  ;;  %v3394_v46 = vld [vmem:[#allocation2 + $0x60] sm:$0xff] }
 0x52c   : > { %5261 = vmatmul.msk.f32.gmra.mxu3 %vm444_vm1, %v3867_v56  ;;  %v3869_v45 = vld [vmem:[#allocation3 + $0x118] sm:$0xff] }
 0x52d   : > { %3117 = vst.msk [vmem:[#allocation2 + $0xc8] sm:$0xff] %vm444_vm1, %v3085_v1  ;;  %2557 = vadd.xlane.f32.xlu2 %v2556_v9  ;;  %v3266_v43 = vpop.permute.xlu0 %3265 }
 0x52e   : > { %3357 = vst.msk [vmem:[#allocation3 + $0x40] sm:$0xff] %vm1805_vm10, %v3266_v43  ;;  %v3788_v47 = vld [vmem:[#allocation2 + $0xba] sm:$0xff]  ;;  %v2412_v43 = vmul.f32 %v7227_v51, %v5768_v23 }
 0x52f   : > { %3820 = vst.msk [vmem:[#allocation3 + $0x128] sm:$0xff] %vm444_vm1, %v3788_v47  ;;  %v3148_v26 = vld [vmem:[#allocation2 + $0xbe] sm:$0xff] }
 0x530   : > { %3180 = vst.msk [vmem:[#allocation3 + $0x130] sm:$0xff] %vm444_vm1, %v3148_v26 }
 0x534   : > { %v3789_v62 = vld [vmem:[#allocation2 + $0xc2] sm:$0xff]  ;;  %5262 = vmatmul.msk.f32.gmra.mxu3 %vm444_vm1, %v3869_v45 }
 0x535   : > { %3821 = vst.msk [vmem:[#allocation3 + $0x138] sm:$0xff] %vm444_vm1, %v3789_v62  ;;  %v3149_v31 = vld [vmem:[#allocation2 + $0xc6] sm:$0xff] }
 0x536   : > { %3181 = vst.msk [vmem:[#allocation3 + $0x140] sm:$0xff] %vm444_vm1, %v3149_v31  ;;  %v3871_v5 = vld [vmem:[#allocation3 + $0x128] sm:$0xff] }
 0x53b   : > { %3457 = vrot.lane.b32.xlu1 %v3389_v52, %s5530_s27 }
 0x53c   : > { %5263 = vmatmul.msk.f32.gmra.mxu3 %vm444_vm1, %v3871_v5  ;;  %v3873_v15 = vld [vmem:[#allocation3 + $0x138] sm:$0xff] }
 0x543   : > { %3459 = vrot.lane.b32.xlu1 %v3390_v16, %s5530_s27 }
 0x544   : > { %5264 = vmatmul.msk.f32.gmra.mxu3 %vm444_vm1, %v3873_v15  ;;  %v7532_v15 = vsub.f32 %v7009_v10, %v2412_v43 }
 0x545   : > { %3651 = vrot.lane.b32.xlu2 %v3582_v41, %s5531_s19 }
 0x54a   : > { %v2546_v0 = vpop.xlane.xlu1 %2545 }
 0x54b   : > { %2566 = vadd.xlane.f32.xlu0 %v2565_v25  ;;  %v2598_v40 = vmul.f32 %v2546_v0, %v5768_v23  ;;  %3461 = vrot.lane.b32.xlu1 %v3391_v36, %s5530_s27 }
 0x54d   : > { %v2630_v33 = vadd.f32 1e-05, %v2598_v40  ;;  %v2411_v40 = vmul.f32 %v7200_v38, %v5768_v23 }
 0x54f   : > { %v2549_v60 = vpop.xlane.xlu2 %2548  ;;  %5425 = vrsqrt.f32 %v2630_v33  ;;  %vm2857_vm14 = vweird.f32 %v2630_v33 }
 0x550   : > { %v2599_v59 = vmul.f32 %v2549_v60, %v5768_v23 }
 0x552   : > { %v2631_v18 = vadd.f32 1e-05, %v2599_v59 }
 0x554   : > { %5427 = vrsqrt.f32 %v2631_v18  ;;  %vm2867_vm8 = vweird.f32 %v2631_v18 }
 0x555   : > { %v5426_v7 = vpop.eup %5425 }
 0x556   : > { %v2852_v20 = vmul.f32 %v5426_v7, %v2630_v33  ;;  %vm2858_vm4 = vweird.f32 %v5426_v7 }
 0x557   : > { %vm2859_vm5 = vmor %vm2857_vm14, %vm2858_vm4  ;;  %v3646_v31 = vpop.permute.xlu2 %3645 }
 0x558   : > { %v2555_v11 = vpop.xlane.xlu0 %2554  ;;  %v2853_v6 = vmul.f32 %v5426_v7, %v2852_v20 }
 0x559   : > { %v2601_v61 = vmul.f32 %v2555_v11, %v5768_v23  ;;  %v7547_v11 = vsub.f32 %v6994_v50, %v2411_v40  ;;  %v3396_v40 = vld [vmem:[#allocation2 + $0x70] sm:$0xff] }
 0x55a   : > { %v5428_v55 = vpop.eup %5427  ;;  %v2854_v35 = vmul.f32 0.5, %v2853_v6 }
 0x55b   : > { %v2862_v39 = vmul.f32 %v5428_v55, %v2631_v18  ;;  %v2633_v28 = vadd.f32 1e-05, %v2601_v61  ;;  %vm2868_vm6 = vweird.f32 %v5428_v55  ;;  %v3395_v61 = vld [vmem:[#allocation2 + $0x68] sm:$0xff] }
 0x55c   : > { %v2855_v12 = vsub.f32 1.5, %v2854_v35  ;;  %vm2869_vm9 = vmor %vm2867_vm8, %vm2868_vm6  ;;  %v2475_v35 = vmul.f32 %v7547_v11, %v7547_v11 }
 0x55d   : > { %v2863_v42 = vmul.f32 %v5428_v55, %v2862_v39  ;;  %5429 = vrsqrt.f32 %v2633_v28  ;;  %vm2887_vm12 = vweird.f32 %v2633_v28 }
 0x55e   : > { %v2856_v56 = vmul.f32 %v5426_v7, %v2855_v12 }
 0x55f   : > { %v2864_v1 = vmul.f32 0.5, %v2863_v42  ;;  %3467 = vrot.lane.b32.xlu0 %v3394_v46, %s5530_s27  ;;  %v3648_v38 = vpop.permute.xlu2 %3647 }
 0x560   : > { %v2860_v47 = vsel %vm2859_vm5, %v5426_v7, %v2856_v56 }
 0x561   : > { %v2865_v9 = vsub.f32 1.5, %v2864_v1  ;;  %v2982_v26 = vmul.f32 %v2860_v47, %v7216_v44  ;;  %v3587_v47 = vld [vmem:[#allocation2 + $0x69] sm:$0xff] }
 0x562   : > { %v3454_v52 = vpop.permute.xlu1 %3453 }
 0x563   : > { %v2866_v45 = vmul.f32 %v5428_v55, %v2865_v9  ;;  %v5430_v62 = vpop.eup %5429  ;;  %v3018_v5 = vmul.f32 %v7425_v3, %v2982_v26  ;;  %3547 = vst.msk [vmem:[#allocation3 + $0x20] sm:$0xff] %vm1998_vm7, %v3454_v52  ;;  %v2559_v9 = vsel %vm444_vm1, %v2475_v35, 0.0  ;;  %v3398_v35 = vld [vmem:[#allocation2 + $0x80] sm:$0xff] }
 0x564   : > { %v2882_v16 = vmul.f32 %v5430_v62, %v2633_v28  ;;  %3740 = vst.msk [vmem:[#allocation3 + $0x20] sm:$0xff] %vm3737_vm0, %v3646_v31  ;;  %vm2888_vm11 = vweird.f32 %v5430_v62 }
 0x565   : > { %v2870_v63 = vsel %vm2869_vm9, %v5428_v55, %v2866_v45  ;;  %v3054_v44 = vadd.f32 %v7439_v32, %v3018_v5  ;;  %vm2889_vm13 = vmor %vm2887_vm12, %vm2888_vm11 }
 0x566   : > { %v2983_v51 = vmul.f32 %v2870_v63, %v7224_v29  ;;  %v2883_v41 = vmul.f32 %v5430_v62, %v2882_v16  ;;  %v2476_v29 = vmul.f32 %v7532_v15, %v7532_v15  ;;  %v3201_v63 = vld [vmem:[#allocation2 + $0x57] sm:$0xff] }
 0x567   : > { %3277 = vrot.lane.b32.xlu0 %v3203_v24, %s5529_s26  ;;  %v3086_v0 = vmax.f32 %v3054_v44, 0.0  ;;  %v3588_v16 = vld [vmem:[#allocation2 + $0x71] sm:$0xff]  ;;  %v3585_v44 = vld [vmem:[#allocation2 + $0x59] sm:$0xff] }
 0x568   : > { %v3019_v25 = vmul.f32 %v7425_v3, %v2983_v51  ;;  %v2884_v36 = vmul.f32 0.5, %v2883_v41  ;;  %v2562_v55 = vsel %vm444_vm1, %v2476_v29, 0.0  ;;  %v3393_v41 = vld [vmem:[#allocation2 + $0x58] sm:$0xff]  ;;  %v3650_v29 = vpop.permute.xlu2 %3649 }
 0x569   : > { %3118 = vst.msk [vmem:[#allocation2 + $0xd0] sm:$0xff] %vm444_vm1, %v3086_v0  ;;  %v3205_v24 = vld [vmem:[#allocation2 + $0x77] sm:$0xff]  ;;  %v3202_v0 = vld [vmem:[#allocation2 + $0x5f] sm:$0xff] }
 0x56a   : > { %v3055_v10 = vadd.f32 %v7439_v32, %v3019_v25  ;;  %v2885_v33 = vsub.f32 1.5, %v2884_v36  ;;  %v3456_v59 = vpop.permute.xlu1 %3455 }
 0x56b   : > { %v3268_v18 = vpop.permute.xlu0 %3267  ;;  %3548 = vst.msk [vmem:[#allocation3 + $0x30] sm:$0xff] %vm1998_vm7, %v3456_v59  ;;  %v3838_v20 = vld [vmem:[#allocation3 + $0x20] sm:$0xff] }
 0x56c   : > { %v3087_v60 = vmax.f32 %v3055_v10, 0.0  ;;  %v2886_v7 = vmul.f32 %v5430_v62, %v2885_v33  ;;  %4040 = vmatmul.f32.gmra.mxu2 %v3838_v20  ;;  %3741 = vst.msk [vmem:[#allocation3 + $0x30] sm:$0xff] %vm3737_vm0, %v3648_v38  ;;  %v3589_v10 = vld [vmem:[#allocation2 + $0x79] sm:$0xff]  ;;  %v3586_v59 = vld [vmem:[#allocation2 + $0x61] sm:$0xff] }
 0x56d   : > { %3358 = vst.msk [vmem:[#allocation3 + $0x50] sm:$0xff] %vm1805_vm10, %v3268_v18  ;;  %v3206_v18 = vld [vmem:[#allocation2 + $0x7f] sm:$0xff] }
 0x56e   : > { %3119 = vst.msk [vmem:[#allocation2 + $0xd8] sm:$0xff] %vm444_vm1, %v3087_v60  ;;  %v2890_v6 = vsel %vm2889_vm13, %v5430_v62, %v2886_v7  ;;  %2563 = vadd.xlane.f32.xlu2 %v2562_v55  ;;  %v3204_v62 = vld [vmem:[#allocation2 + $0x6f] sm:$0xff] }
 0x56f   : > { %v2985_v39 = vmul.f32 %v2890_v6, %v7254_v30  ;;  %3469 = vrot.lane.b32.xlu0 %v3395_v61, %s5530_s27 }
 0x570   : > { %v3790_v28 = vld [vmem:[#allocation2 + $0xca] sm:$0xff] }
 0x571   : > { %v3021_v50 = vmul.f32 %v7425_v3, %v2985_v39  ;;  %3822 = vst.msk [vmem:[#allocation3 + $0x148] sm:$0xff] %vm444_vm1, %v3790_v28  ;;  %v3150_v42 = vld [vmem:[#allocation2 + $0xce] sm:$0xff]  ;;  %v3397_v39 = vld [vmem:[#allocation2 + $0x78] sm:$0xff] }
 0x572   : > { %3182 = vst.msk [vmem:[#allocation3 + $0x150] sm:$0xff] %vm444_vm1, %v3150_v42 }
 0x573   : > { %v3057_v12 = vadd.f32 %v7439_v32, %v3021_v50  ;;  %v3270_v1 = vpop.permute.xlu0 %3269  ;;  %v3840_v56 = vld [vmem:[#allocation3 + $0x30] sm:$0xff] }
 0x574   : > { %3359 = vst.msk [vmem:[#allocation3 + $0x60] sm:$0xff] %vm1805_vm10, %v3270_v1  ;;  %4043 = vmatmul.f32.gmra.mxu2 %v3840_v56 }
 0x575   : > { %v3791_v30 = vld [vmem:[#allocation2 + $0xd2] sm:$0xff]  ;;  %v3089_v46 = vmax.f32 %v3057_v12, 0.0  ;;  %2560 = vadd.xlane.f32.xlu1 %v2559_v9  ;;  %v3590_v9 = vld [vmem:[#allocation2 + $0x81] sm:$0xff] }
 0x576   : > { %3823 = vst.msk [vmem:[#allocation3 + $0x158] sm:$0xff] %vm444_vm1, %v3791_v30  ;;  %v3151_v43 = vld [vmem:[#allocation2 + $0xd6] sm:$0xff] }
 0x577   : > { %3183 = vst.msk [vmem:[#allocation3 + $0x160] sm:$0xff] %vm444_vm1, %v3151_v43  ;;  %3661 = vrot.lane.b32.xlu0 %v3587_v47, %s5531_s19  ;;  %v3207_v47 = vld [vmem:[#allocation2 + $0x87] sm:$0xff] }
 0x578   : > { %3121 = vst.msk [vmem:[#allocation2 + $0xf8] sm:$0xff] %vm444_vm1, %v3089_v46  ;;  %v3875_v26 = vld [vmem:[#allocation3 + $0x148] sm:$0xff] }
 0x579   : > { %5265 = vmatmul.msk.f32.gmra.mxu3 %vm444_vm1, %v3875_v26 }
 0x57b   : > { %v7568_v45 = vpop.permute.xlu0 %3653 }
 0x57d   : > { %v3877_v52 = vld [vmem:[#allocation3 + $0x158] sm:$0xff] }
 0x57f   : > { %v3153_v31 = vld [vmem:[#allocation2 + $0xf6] sm:$0xff]  ;;  %3279 = vrot.lane.b32.xlu0 %v3204_v62, %s5529_s26 }
 0x580   : > { %3185 = vst.msk [vmem:[#allocation3 + $0x180] sm:$0xff] %vm444_vm1, %v3153_v31 }
 0x581   : > { %5266 = vmatmul.msk.f32.gmra.mxu3 %vm444_vm1, %v3877_v52 }
 0x583   : > { %v3272_v5 = vpop.permute.xlu0 %3271 }
 0x584   : > { %3360 = vst.msk [vmem:[#allocation3 + $0x70] sm:$0xff] %vm1805_vm10, %v3272_v5 }
 0x586   : > { %3273 = vrot.lane.b32.xlu2 %v3201_v63, %s5529_s26  ;;  %v2414_v63 = vmul.f32 %v7250_v53, %v5768_v23 }
 0x587   : > { %3663 = vrot.lane.b32.xlu0 %v3588_v16, %s5531_s19 }
 0x58b   : > { %v3464_v51 = vpop.permute.xlu0 %3463 }
 0x58c   : > { %3552 = vst.msk [vmem:[#allocation3 + $0x70] sm:$0xff] %vm1998_vm7, %v3464_v51  ;;  %v3399_v51 = vld [vmem:[#allocation2 + $0x88] sm:$0xff] }
 0x58e   : > { %3657 = vrot.lane.b32.xlu2 %v3585_v44, %s5531_s19  ;;  %3465 = vrot.lane.b32.xlu1 %v3393_v41, %s5530_s27 }
 0x58f   : > { %3281 = vrot.lane.b32.xlu0 %v3205_v24, %s5529_s26  ;;  %v3592_v24 = vld [vmem:[#allocation2 + $0x91] sm:$0xff] }
 0x593   : > { %v3656_v25 = vpop.permute.xlu0 %3655 }
 0x594   : > { %3745 = vst.msk [vmem:[#allocation3 + $0x70] sm:$0xff] %vm3737_vm0, %v3656_v25 }
 0x595   : > { %v2552_v36 = vpop.xlane.xlu1 %2551 }
 0x596   : > { %3275 = vrot.lane.b32.xlu2 %v3202_v0, %s5529_s26  ;;  %v2600_v33 = vmul.f32 %v2552_v36, %v5768_v23  ;;  %3471 = vrot.lane.b32.xlu1 %v3396_v40, %s5530_s27  ;;  %v7605_v36 = vsub.f32 %v7030_v22, %v2414_v63  ;;  %v3404_v63 = vld [vmem:[#allocation2 + $0xc0] sm:$0xff] }
 0x597   : > { %3665 = vrot.lane.b32.xlu0 %v3589_v10, %s5531_s19 }
 0x598   : > { %v2632_v60 = vadd.f32 1e-05, %v2600_v33  ;;  %v2478_v10 = vmul.f32 %v7605_v36, %v7605_v36  ;;  %v3591_v33 = vld [vmem:[#allocation2 + $0x89] sm:$0xff] }
 0x59a   : > { %5431 = vrsqrt.f32 %v2632_v60  ;;  %vm2877_vm2 = vweird.f32 %v2632_v60 }
 0x59e   : > { %3659 = vrot.lane.b32.xlu2 %v3586_v59, %s5531_s19  ;;  %v3401_v59 = vld [vmem:[#allocation2 + $0xa8] sm:$0xff] }
 0x59f   : > { %3283 = vrot.lane.b32.xlu0 %v3206_v18, %s5529_s26 }
 0x5a0   : > { %v2558_v7 = vpop.xlane.xlu2 %2557  ;;  %v5432_v38 = vpop.eup %5431 }
 0x5a1   : > { %v2602_v20 = vmul.f32 %v2558_v7, %v5768_v23  ;;  %v2872_v55 = vmul.f32 %v5432_v38, %v2632_v60  ;;  %vm2878_vm15 = vweird.f32 %v5432_v38 }
 0x5a2   : > { %vm2879_vm3 = vmor %vm2877_vm2, %vm2878_vm15 }
 0x5a3   : > { %v2634_v6 = vadd.f32 1e-05, %v2602_v20  ;;  %v2873_v61 = vmul.f32 %v5432_v38, %v2872_v55  ;;  %v2568_v55 = vsel %vm444_vm1, %v2478_v10, 0.0 }
 0x5a5   : > { %5433 = vrsqrt.f32 %v2634_v6  ;;  %v2874_v50 = vmul.f32 0.5, %v2873_v61  ;;  %vm2897_vm14 = vweird.f32 %v2634_v6 }
 0x5a6   : > { %3473 = vrot.lane.b32.xlu2 %v3397_v39, %s5530_s27  ;;  %v3209_v39 = vld [vmem:[#allocation2 + $0xa7] sm:$0xff] }
 0x5a7   : > { %3475 = vrot.lane.b32.xlu0 %v3398_v35, %s5530_s27  ;;  %v2875_v28 = vsub.f32 1.5, %v2874_v50  ;;  %v3593_v35 = vld [vmem:[#allocation2 + $0xa9] sm:$0xff] }
 0x5a8   : > { %v3652_v25 = vpop.permute.xlu2 %3651 }
 0x5a9   : > { %v2876_v12 = vmul.f32 %v5432_v38, %v2875_v28 }
 0x5ab   : > { %v5434_v42 = vpop.eup %5433  ;;  %v2880_v30 = vsel %vm2879_vm3, %v5432_v38, %v2876_v12 }
 0x5ac   : > { %v2892_v1 = vmul.f32 %v5434_v42, %v2634_v6  ;;  %v2984_v46 = vmul.f32 %v2880_v30, %v7463_v34  ;;  %vm2898_vm4 = vweird.f32 %v5434_v42 }
 0x5ad   : > { %v3458_v43 = vpop.permute.xlu1 %3457  ;;  %vm2899_vm5 = vmor %vm2897_vm14, %vm2898_vm4 }
 0x5ae   : > { %v2893_v56 = vmul.f32 %v5434_v42, %v2892_v1  ;;  %3667 = vrot.lane.b32.xlu2 %v3590_v9, %s5531_s19  ;;  %v3020_v26 = vmul.f32 %v7425_v3, %v2984_v46  ;;  %3549 = vst.msk [vmem:[#allocation3 + $0x40] sm:$0xff] %vm1998_vm7, %v3458_v43  ;;  %v3403_v46 = vld [vmem:[#allocation2 + $0xb8] sm:$0xff]  ;;  %v3210_v9 = vld [vmem:[#allocation2 + $0xaf] sm:$0xff] }
 0x5af   : > { %3285 = vrot.lane.b32.xlu0 %v3207_v47, %s5529_s26  ;;  %3742 = vst.msk [vmem:[#allocation3 + $0x40] sm:$0xff] %vm3737_vm0, %v3650_v29  ;;  %v3848_v43 = vld [vmem:[#allocation3 + $0x70] sm:$0xff] }
 0x5b0   : > { %v2894_v62 = vmul.f32 0.5, %v2893_v56  ;;  %v3056_v31 = vadd.f32 %v7439_v32, %v3020_v26 }
 0x5b2   : > { %v2895_v52 = vsub.f32 1.5, %v2894_v62  ;;  %v3088_v34 = vmax.f32 %v3056_v31, 0.0 }
 0x5b4   : > { %v2896_v5 = vmul.f32 %v5434_v42, %v2895_v52  ;;  %3120 = vst.msk [vmem:[#allocation2 + $0xe0] sm:$0xff] %vm444_vm1, %v3088_v34  ;;  %v7633_v34 = vpop.f32.mrf.mxu3 }
 0x5b5   : > { %v3460_v41 = vpop.permute.xlu1 %3459 }
 0x5b6   : > { %v2900_v16 = vsel %vm2899_vm5, %v5434_v42, %v2896_v5  ;;  %3477 = vrot.lane.b32.xlu2 %v3399_v51, %s5530_s27  ;;  %3550 = vst.msk [vmem:[#allocation3 + $0x50] sm:$0xff] %vm1998_vm7, %v3460_v41  ;;  %v3842_v0 = vld [vmem:[#allocation3 + $0x40] sm:$0xff]  ;;  %v3208_v41 = vld [vmem:[#allocation2 + $0x8f] sm:$0xff] }
 0x5b7   : > { %v2986_v44 = vmul.f32 %v2900_v16, %v7485_v49  ;;  %3671 = vrot.lane.b32.xlu0 %v3592_v24, %s5531_s19  ;;  %3743 = vst.msk [vmem:[#allocation3 + $0x50] sm:$0xff] %vm3737_vm0, %v3652_v25  ;;  %4046 = vmatmul.f32.gmra.mxu2 %v3842_v0  ;;  %v3402_v16 = vld [vmem:[#allocation2 + $0xb0] sm:$0xff]  ;;  %v3212_v0 = vld [vmem:[#allocation2 + $0xbf] sm:$0xff] }
 0x5b9   : > { %v3022_v53 = vmul.f32 %v7425_v3, %v2986_v44 }
 0x5bb   : > { %v3058_v49 = vadd.f32 %v7439_v32, %v3022_v53  ;;  %v3792_v29 = vld [vmem:[#allocation2 + $0xda] sm:$0xff]  ;;  %v3793_v18 = vld [vmem:[#allocation2 + $0xe2] sm:$0xff] }
 0x5bc   : > { %3824 = vst.msk [vmem:[#allocation3 + $0x168] sm:$0xff] %vm444_vm1, %v3792_v29  ;;  %v3152_v38 = vld [vmem:[#allocation2 + $0xde] sm:$0xff] }
 0x5bd   : > { %v3090_v40 = vmax.f32 %v3058_v49, 0.0  ;;  %v3462_v60 = vpop.permute.xlu1 %3461  ;;  %3825 = vst.msk [vmem:[#allocation3 + $0x178] sm:$0xff] %vm444_vm1, %v3793_v18  ;;  %v3400_v49 = vld [vmem:[#allocation2 + $0x90] sm:$0xff] }
 0x5be   : > { %3669 = vrot.lane.b32.xlu2 %v3591_v33, %s5531_s19  ;;  %v2567_v22 = vpop.xlane.xlu0 %2566  ;;  %3551 = vst.msk [vmem:[#allocation3 + $0x60] sm:$0xff] %vm1998_vm7, %v3462_v60  ;;  %v3844_v20 = vld [vmem:[#allocation3 + $0x50] sm:$0xff]  ;;  %v3213_v33 = vld [vmem:[#allocation2 + $0xc7] sm:$0xff] }
 0x5bf   : > { %3122 = vst.msk [vmem:[#allocation2 + $0x100] sm:$0xff] %vm444_vm1, %v3090_v40  ;;  %v2605_v7 = vmul.f32 %v2567_v22, %v5768_v23  ;;  %3481 = vrot.lane.b32.xlu0 %v3401_v59, %s5530_s27  ;;  %4049 = vmatmul.f32.gmra.mxu2 %v3844_v20  ;;  %v3594_v59 = vld [vmem:[#allocation2 + $0xb1] sm:$0xff] }
 0x5c0   : > { %3744 = vst.msk [vmem:[#allocation3 + $0x60] sm:$0xff] %vm3737_vm0, %v7568_v45  ;;  %2569 = vadd.xlane.f32.xlu1 %v2568_v55 }
 0x5c1   : > { %v2637_v6 = vadd.f32 1e-05, %v2605_v7  ;;  %3184 = vst.msk [vmem:[#allocation3 + $0x170] sm:$0xff] %vm444_vm1, %v3152_v38 }
 0x5c3   : > { %5435 = vrsqrt.f32 %v2637_v6  ;;  %v3879_v61 = vld [vmem:[#allocation3 + $0x168] sm:$0xff]  ;;  %vm2927_vm8 = vweird.f32 %v2637_v6 }
 0x5c4   : > { %5267 = vmatmul.msk.f32.gmra.mxu3 %vm444_vm1, %v3879_v61  ;;  %v3881_v30 = vld [vmem:[#allocation3 + $0x178] sm:$0xff] }
 0x5c6   : > { %v3794_v50 = vld [vmem:[#allocation2 + $0xfa] sm:$0xff]  ;;  %3289 = vrot.lane.b32.xlu2 %v3209_v39, %s5529_s26 }
 0x5c7   : > { %3826 = vst.msk [vmem:[#allocation3 + $0x188] sm:$0xff] %vm444_vm1, %v3794_v50  ;;  %v3154_v45 = vld [vmem:[#allocation2 + $0xfe] sm:$0xff]  ;;  %3673 = vrot.lane.b32.xlu0 %v3593_v35, %s5531_s19 }
 0x5c8   : > { %v3846_v28 = vld [vmem:[#allocation3 + $0x60] sm:$0xff]  ;;  %3186 = vst.msk [vmem:[#allocation3 + $0x190] sm:$0xff] %vm444_vm1, %v3154_v45  ;;  %v3211_v35 = vld [vmem:[#allocation2 + $0xb7] sm:$0xff] }
 0x5c9   : > { %4052 = vmatmul.f32.gmra.mxu2 %v3846_v28  ;;  %v5436_v42 = vpop.eup %5435 }
 0x5ca   : > { %v2922_v12 = vmul.f32 %v5436_v42, %v2637_v6  ;;  %vm2928_vm6 = vweird.f32 %v5436_v42  ;;  %v3405_v6 = vld [vmem:[#allocation2 + $0xc8] sm:$0xff] }
 0x5cb   : > { %vm2929_vm9 = vmor %vm2927_vm8, %vm2928_vm6 }
 0x5cc   : > { %v2923_v1 = vmul.f32 %v5436_v42, %v2922_v12  ;;  %5268 = vmatmul.msk.f32.gmra.mxu3 %vm444_vm1, %v3881_v30 }
 0x5ce   : > { %v2924_v56 = vmul.f32 0.5, %v2923_v1  ;;  %3485 = vrot.lane.b32.xlu2 %v3403_v46, %s5530_s27  ;;  %v3883_v52 = vld [vmem:[#allocation3 + $0x188] sm:$0xff] }
 0x5cf   : > { %3291 = vrot.lane.b32.xlu0 %v3210_v9, %s5529_s26 }
 0x5d0   : > { %v2925_v47 = vsub.f32 1.5, %v2924_v56 }
 0x5d1   : > { %4055 = vmatmul.f32.gmra.mxu2 %v3848_v43  ;;  %v7631_v26 = vpop.permute.xlu0 %3467 }
 0x5d2   : > { %v2926_v62 = vmul.f32 %v5436_v42, %v2925_v47  ;;  %v3595_v47 = vld [vmem:[#allocation2 + $0xb9] sm:$0xff] }
 0x5d4   : > { %v2930_v31 = vsel %vm2929_vm9, %v5436_v42, %v2926_v62  ;;  %5269 = vmatmul.msk.f32.gmra.mxu3 %vm444_vm1, %v3883_v52 }
 0x5d5   : > { %v2989_v5 = vmul.f32 %v2930_v31, %v7513_v2  ;;  %v3596_v2 = vld [vmem:[#allocation2 + $0xc1] sm:$0xff] }
 0x5d6   : > { %3487 = vrot.lane.b32.xlu2 %v3404_v63, %s5530_s27 }
 0x5d7   : > { %v3025_v51 = vmul.f32 %v7425_v3, %v2989_v5  ;;  %3483 = vrot.lane.b32.xlu0 %v3402_v16, %s5530_s27  ;;  %v2415_v5 = vmul.f32 %v7265_v4, %v5768_v23 }
 0x5d9   : > { %v3061_v44 = vadd.f32 %v7439_v32, %v3025_v51  ;;  %v3278_v24 = vpop.permute.xlu0 %3277  ;;  %3287 = vrot.lane.b32.xlu1 %v3208_v41, %s5529_s26 }
 0x5da   : > { %3363 = vst.msk [vmem:[#allocation3 + $0xa0] sm:$0xff] %vm1805_vm10, %v3278_v24 }
 0x5db   : > { %v3093_v25 = vmax.f32 %v3061_v44, 0.0  ;;  %v7667_v44 = vsub.f32 %v7041_v58, %v2415_v5  ;;  %v3600_v5 = vld [vmem:[#allocation2 + $0xe1] sm:$0xff] }
 0x5dd   : > { %3125 = vst.msk [vmem:[#allocation2 + $0x118] sm:$0xff] %vm444_vm1, %v3093_v25  ;;  %v2479_v58 = vmul.f32 %v7667_v44, %v7667_v44 }
 0x5de   : > { %3679 = vrot.lane.b32.xlu2 %v3596_v2, %s5531_s19 }
 0x5df   : > { %3295 = vrot.lane.b32.xlu0 %v3212_v0, %s5529_s26 }
 0x5e1   : > { %v2564_v53 = vpop.xlane.xlu2 %2563  ;;  %v3470_v40 = vpop.permute.xlu0 %3469  ;;  %3479 = vrot.lane.b32.xlu1 %v3400_v49, %s5530_s27 }
 0x5e2   : > { %v2604_v10 = vmul.f32 %v2564_v53, %v5768_v23  ;;  %3555 = vst.msk [vmem:[#allocation3 + $0xa0] sm:$0xff] %vm1998_vm7, %v3470_v40 }
 0x5e4   : > { %v2636_v29 = vadd.f32 1e-05, %v2604_v10  ;;  %v3214_v10 = vld [vmem:[#allocation2 + $0xcf] sm:$0xff] }
 0x5e6   : > { %5437 = vrsqrt.f32 %v2636_v29  ;;  %3297 = vrot.lane.b32.xlu2 %v3213_v33, %s5529_s26  ;;  %vm2917_vm12 = vweird.f32 %v2636_v29 }
 0x5e8   : > { %v2561_v60 = vpop.xlane.xlu1 %2560 }
 0x5e9   : > { %v3274_v22 = vpop.permute.xlu2 %3273  ;;  %v2603_v18 = vmul.f32 %v2561_v60, %v5768_v23  ;;  %3675 = vrot.lane.b32.xlu1 %v3594_v59, %s5531_s19  ;;  %v3662_v7 = vpop.permute.xlu0 %3661 }
 0x5ea   : > { %3361 = vst.msk [vmem:[#allocation3 + $0x80] sm:$0xff] %vm1805_vm10, %v3274_v22 }
 0x5eb   : > { %3748 = vst.msk [vmem:[#allocation3 + $0xa0] sm:$0xff] %vm3737_vm0, %v3662_v7  ;;  %v2635_v38 = vadd.f32 1e-05, %v2603_v18  ;;  %v3598_v7 = vld [vmem:[#allocation2 + $0xd1] sm:$0xff] }
 0x5ec   : > { %v5438_v20 = vpop.eup %5437 }
 0x5ed   : > { %v2912_v55 = vmul.f32 %v5438_v20, %v2636_v29  ;;  %5439 = vrsqrt.f32 %v2635_v38  ;;  %vm2918_vm11 = vweird.f32 %v5438_v20  ;;  %vm2907_vm2 = vweird.f32 %v2635_v38 }
 0x5ee   : > { %3489 = vrot.lane.b32.xlu2 %v3405_v6, %s5530_s27  ;;  %vm2919_vm13 = vmor %vm2917_vm12, %vm2918_vm11 }
 0x5ef   : > { %v2913_v61 = vmul.f32 %v5438_v20, %v2912_v55 }
 0x5f1   : > { %v2914_v39 = vmul.f32 0.5, %v2913_v61  ;;  %v3658_v50 = vpop.permute.xlu2 %3657  ;;  %3293 = vrot.lane.b32.xlu1 %v3211_v35, %s5529_s26  ;;  %v3280_v45 = vpop.permute.xlu0 %3279 }
 0x5f2   : > { %3364 = vst.msk [vmem:[#allocation3 + $0xb0] sm:$0xff] %vm1805_vm10, %v3280_v45  ;;  %v7702_v61 = vpop.f32.mrf.mxu3  ;;  %v3215_v45 = vld [vmem:[#allocation2 + $0xd7] sm:$0xff] }
 0x5f3   : > { %v2915_v28 = vsub.f32 1.5, %v2914_v39  ;;  %v5440_v42 = vpop.eup %5439 }
 0x5f4   : > { %v2902_v1 = vmul.f32 %v5440_v42, %v2635_v38  ;;  %vm2908_vm15 = vweird.f32 %v5440_v42 }
 0x5f5   : > { %v2916_v12 = vmul.f32 %v5438_v20, %v2915_v28  ;;  %vm2909_vm3 = vmor %vm2907_vm2, %vm2908_vm15 }
 0x5f6   : > { %v2903_v46 = vmul.f32 %v5440_v42, %v2902_v1 }
 0x5f7   : > { %v2920_v30 = vsel %vm2919_vm13, %v5438_v20, %v2916_v12  ;;  %v3406_v12 = vld [vmem:[#allocation2 + $0xd0] sm:$0xff] }
 0x5f8   : > { %v2988_v56 = vmul.f32 %v2920_v30, %v7532_v15  ;;  %v2904_v9 = vmul.f32 0.5, %v2903_v46 }
 0x5f9   : > { %v3276_v43 = vpop.permute.xlu2 %3275  ;;  %3677 = vrot.lane.b32.xlu1 %v3595_v47, %s5531_s19  ;;  %v3664_v31 = vpop.permute.xlu0 %3663  ;;  %v3599_v47 = vld [vmem:[#allocation2 + $0xd9] sm:$0xff] }
 0x5fa   : > { %v3024_v62 = vmul.f32 %v7425_v3, %v2988_v56  ;;  %3362 = vst.msk [vmem:[#allocation3 + $0x90] sm:$0xff] %vm1805_vm10, %v3276_v43  ;;  %v2905_v52 = vsub.f32 1.5, %v2904_v9  ;;  %v7710_v30 = vpop.f32.mrf.mxu3  ;;  %v3216_v56 = vld [vmem:[#allocation2 + $0xdf] sm:$0xff] }
 0x5fb   : > { %3554 = vst.msk [vmem:[#allocation3 + $0x90] sm:$0xff] %vm1998_vm7, %v7631_v26  ;;  %v3597_v26 = vld [vmem:[#allocation2 + $0xc9] sm:$0xff] }
 0x5fc   : > { %v3060_v15 = vadd.f32 %v7439_v32, %v3024_v62  ;;  %v2906_v63 = vmul.f32 %v5440_v42, %v2905_v52 }
 0x5fe   : > { %v3092_v16 = vmax.f32 %v3060_v15, 0.0  ;;  %v2910_v51 = vsel %vm2909_vm3, %v5440_v42, %v2906_v63  ;;  %v3854_v42 = vld [vmem:[#allocation3 + $0xa0] sm:$0xff] }
 0x5ff   : > { %v2987_v41 = vmul.f32 %v2910_v51, %v7547_v11  ;;  %v3407_v51 = vld [vmem:[#allocation2 + $0xd8] sm:$0xff] }
 0x600   : > { %3124 = vst.msk [vmem:[#allocation2 + $0x110] sm:$0xff] %vm444_vm1, %v3092_v16  ;;  %v3466_v24 = vpop.permute.xlu1 %3465  ;;  %v3408_v16 = vld [vmem:[#allocation2 + $0xe0] sm:$0xff] }
 0x601   : > { %v3660_v25 = vpop.permute.xlu2 %3659  ;;  %v3023_v2 = vmul.f32 %v7425_v3, %v2987_v41  ;;  %3553 = vst.msk [vmem:[#allocation3 + $0x80] sm:$0xff] %vm1998_vm7, %v3466_v24  ;;  %3681 = vrot.lane.b32.xlu1 %v3597_v26, %s5531_s19  ;;  %v3282_v4 = vpop.permute.xlu0 %3281  ;;  %v2571_v3 = vsel %vm444_vm1, %v2479_v58, 0.0  ;;  %v3409_v24 = vld [vmem:[#allocation2 + $0xf8] sm:$0xff] }
 0x602   : > { %3746 = vst.msk [vmem:[#allocation3 + $0x80] sm:$0xff] %vm3737_vm0, %v3658_v50  ;;  %v3601_v58 = vld [vmem:[#allocation2 + $0xf9] sm:$0xff] }
 0x603   : > { %v3059_v0 = vadd.f32 %v7439_v32, %v3023_v2  ;;  %3747 = vst.msk [vmem:[#allocation3 + $0x90] sm:$0xff] %vm3737_vm0, %v3660_v25  ;;  %v2416_v32 = vmul.f32 %v7288_v27, %v5768_v23 }
 0x604   : > { %3365 = vst.msk [vmem:[#allocation3 + $0xc0] sm:$0xff] %vm1805_vm10, %v3282_v4  ;;  %v3217_v4 = vld [vmem:[#allocation2 + $0xf7] sm:$0xff] }
 0x605   : > { %v3091_v11 = vmax.f32 %v3059_v0, 0.0  ;;  %v7691_v22 = vsub.f32 %v7053_v13, %v2416_v32 }
 0x607   : > { %v3797_v53 = vld [vmem:[#allocation2 + $0x112] sm:$0xff]  ;;  %3123 = vst.msk [vmem:[#allocation2 + $0x108] sm:$0xff] %vm444_vm1, %v3091_v11  ;;  %v2480_v6 = vmul.f32 %v7691_v22, %v7691_v22 }
 0x608   : > { %v3472_v49 = vpop.permute.xlu1 %3471  ;;  %3829 = vst.msk [vmem:[#allocation3 + $0x1b8] sm:$0xff] %vm444_vm1, %v3797_v53  ;;  %v3157_v60 = vld [vmem:[#allocation2 + $0x116] sm:$0xff] }
 0x609   : > { %v3474_v40 = vpop.permute.xlu2 %3473  ;;  %2572 = vadd.xlane.f32.xlu0 %v2571_v3  ;;  %3556 = vst.msk [vmem:[#allocation3 + $0xb0] sm:$0xff] %vm1998_vm7, %v3472_v49  ;;  %3299 = vrot.lane.b32.xlu1 %v3214_v10, %s5529_s26  ;;  %v3666_v29 = vpop.permute.xlu0 %3665  ;;  %v3850_v33 = vld [vmem:[#allocation3 + $0x80] sm:$0xff]  ;;  %v2574_v39 = vsel %vm444_vm1, %v2480_v6, 0.0 }
 0x60a   : > { %3749 = vst.msk [vmem:[#allocation3 + $0xb0] sm:$0xff] %vm3737_vm0, %v3664_v31  ;;  %4058 = vmatmul.f32.gmra.mxu2 %v3850_v33  ;;  %v3852_v55 = vld [vmem:[#allocation3 + $0x90] sm:$0xff]  ;;  %v7718_v31 = vpop.f32.mrf.mxu3  ;;  %v3410_v3 = vld [vmem:[#allocation2 + $0x100] sm:$0xff] }
 0x60b   : > { %3557 = vst.msk [vmem:[#allocation3 + $0xc0] sm:$0xff] %vm1998_vm7, %v3474_v40  ;;  %v3218_v10 = vld [vmem:[#allocation2 + $0xff] sm:$0xff] }
 0x60c   : > { %3750 = vst.msk [vmem:[#allocation3 + $0xc0] sm:$0xff] %vm3737_vm0, %v3666_v29 }
 0x60d   : > { %3189 = vst.msk [vmem:[#allocation3 + $0x1c0] sm:$0xff] %vm444_vm1, %v3157_v60 }
 0x60e   : > { %v3795_v27 = vld [vmem:[#allocation2 + $0x102] sm:$0xff]  ;;  %v3796_v59 = vld [vmem:[#allocation2 + $0x10a] sm:$0xff] }
 0x60f   : > { %3827 = vst.msk [vmem:[#allocation3 + $0x198] sm:$0xff] %vm444_vm1, %v3795_v27  ;;  %v3155_v20 = vld [vmem:[#allocation2 + $0x106] sm:$0xff]  ;;  %v3156_v13 = vld [vmem:[#allocation2 + $0x10e] sm:$0xff]  ;;  %v3889_v62 = vld [vmem:[#allocation3 + $0x1b8] sm:$0xff] }
 0x610   : > { %3828 = vst.msk [vmem:[#allocation3 + $0x1a8] sm:$0xff] %vm444_vm1, %v3796_v59  ;;  %v3602_v32 = vld [vmem:[#allocation2 + $0x101] sm:$0xff] }
 0x611   : > { %v3668_v18 = vpop.permute.xlu2 %3667  ;;  %3683 = vrot.lane.b32.xlu1 %v3598_v7, %s5531_s19  ;;  %v3284_v38 = vpop.permute.xlu0 %3283  ;;  %3187 = vst.msk [vmem:[#allocation3 + $0x1a0] sm:$0xff] %vm444_vm1, %v3155_v20  ;;  %v3856_v43 = vld [vmem:[#allocation3 + $0xb0] sm:$0xff]  ;;  %v3411_v27 = vld [vmem:[#allocation2 + $0x108] sm:$0xff] }
 0x612   : > { %3366 = vst.msk [vmem:[#allocation3 + $0xd0] sm:$0xff] %vm1805_vm10, %v3284_v38  ;;  %4061 = vmatmul.f32.gmra.mxu2 %v3852_v55  ;;  %v3219_v20 = vld [vmem:[#allocation2 + $0x107] sm:$0xff] }
 0x613   : > { %3188 = vst.msk [vmem:[#allocation3 + $0x1b0] sm:$0xff] %vm444_vm1, %v3156_v13  ;;  %v3858_v63 = vld [vmem:[#allocation3 + $0xc0] sm:$0xff]  ;;  %v3603_v55 = vld [vmem:[#allocation2 + $0x109] sm:$0xff] }
 0x616   : > { %v3885_v50 = vld [vmem:[#allocation3 + $0x198] sm:$0xff] }
 0x617   : > { %2575 = vadd.xlane.f32.xlu2 %v2574_v39  ;;  %5270 = vmatmul.msk.f32.gmra.mxu3 %vm444_vm1, %v3885_v50  ;;  %v3887_v1 = vld [vmem:[#allocation3 + $0x1a8] sm:$0xff]  ;;  %v3412_v39 = vld [vmem:[#allocation2 + $0x110] sm:$0xff] }
 0x619   : > { %v3478_v35 = vpop.permute.xlu2 %3477  ;;  %3301 = vrot.lane.b32.xlu1 %v3215_v45, %s5529_s26  ;;  %v3476_v28 = vpop.permute.xlu0 %3475 }
 0x61a   : > { %3558 = vst.msk [vmem:[#allocation3 + $0xd0] sm:$0xff] %vm1998_vm7, %v3476_v28  ;;  %4064 = vmatmul.f32.gmra.mxu2 %v3854_v42  ;;  %v3220_v42 = vld [vmem:[#allocation2 + $0x10f] sm:$0xff] }
 0x61b   : > { %3751 = vst.msk [vmem:[#allocation3 + $0xd0] sm:$0xff] %vm3737_vm0, %v3668_v18 }
 0x61d   : > { %3491 = vrot.lane.b32.xlu0 %v3406_v12, %s5530_s27  ;;  %v7749_v12 = vld [vmem:[%s8715_s7] ss:$0 sm:$0xff] }
 0x61f   : > { %5271 = vmatmul.msk.f32.gmra.mxu3 %vm444_vm1, %v3887_v1 }
 0x621   : > { %v3670_v46 = vpop.permute.xlu2 %3669  ;;  %3303 = vrot.lane.b32.xlu1 %v3216_v56, %s5529_s26  ;;  %v3286_v9 = vpop.permute.xlu0 %3285 }
 0x622   : > { %3367 = vst.msk [vmem:[#allocation3 + $0xe0] sm:$0xff] %vm1805_vm10, %v3286_v9  ;;  %4067 = vmatmul.f32.gmra.mxu2 %v3856_v43  ;;  %v3860_v26 = vld [vmem:[#allocation3 + $0xd0] sm:$0xff] }
 0x623   : > { %3559 = vst.msk [vmem:[#allocation3 + $0xe0] sm:$0xff] %vm1998_vm7, %v3478_v35 }
 0x624   : > { %3752 = vst.msk [vmem:[#allocation3 + $0xe0] sm:$0xff] %vm3737_vm0, %v3670_v46  ;;  %v3604_v46 = vld [vmem:[#allocation2 + $0x111] sm:$0xff] }
 0x625   : > { %3685 = vrot.lane.b32.xlu0 %v3599_v47, %s5531_s19  ;;  %v3413_v47 = vld [vmem:[#allocation2 + $0x118] sm:$0xff] }
 0x627   : > { %5272 = vmatmul.msk.f32.gmra.mxu3 %vm444_vm1, %v3889_v62 }
 0x629   : > { %v3290_v52 = vpop.permute.xlu2 %3289  ;;  %3687 = vrot.lane.b32.xlu1 %v3600_v5, %s5531_s19  ;;  %v7723_v15 = vpop.permute.xlu0 %3671  ;;  %v3221_v5 = vld [vmem:[#allocation2 + $0x117] sm:$0xff] }
 0x62a   : > { %3369 = vst.msk [vmem:[#allocation3 + $0x100] sm:$0xff] %vm1805_vm10, %v3290_v52  ;;  %4070 = vmatmul.f32.gmra.mxu2 %v3858_v63 }
 0x62b   : > { %v3862_v40 = vld [vmem:[#allocation3 + $0xe0] sm:$0xff] }
 0x62d   : > { %3495 = vrot.lane.b32.xlu0 %v3408_v16, %s5530_s27 }
 0x62f   : > { %3493 = vrot.lane.b32.xlu2 %v3407_v51, %s5530_s27 }
 0x631   : > { %v7727_v41 = vpop.permute.xlu2 %3485  ;;  %3497 = vrot.lane.b32.xlu1 %v3409_v24, %s5530_s27  ;;  %v3482_v25 = vpop.permute.xlu0 %3481 }
 0x632   : > { %3561 = vst.msk [vmem:[#allocation3 + $0x100] sm:$0xff] %vm1998_vm7, %v3482_v25  ;;  %4073 = vmatmul.f32.gmra.mxu2 %v3860_v26 }
 0x633   : > { %v2570_v2 = vpop.xlane.xlu1 %2569 }
 0x634   : > { %v2606_v0 = vmul.f32 %v2570_v2, %v5768_v23 }
 0x635   : > { %3305 = vrot.lane.b32.xlu0 %v3217_v4, %s5529_s26  ;;  %v7777_v4 = vpop.f32.mrf.mxu3 }
 0x636   : > { %v2638_v11 = vadd.f32 1e-05, %v2606_v0 }
 0x637   : > { %3689 = vrot.lane.b32.xlu2 %v3601_v58, %s5531_s19 }
 0x638   : > { %5441 = vrsqrt.f32 %v2638_v11  ;;  %vm2937_vm14 = vweird.f32 %v2638_v11 }
 0x639   : > { %v3488_v53 = vpop.permute.xlu2 %3487  ;;  %3499 = vrot.lane.b32.xlu1 %v3410_v3, %s5530_s27  ;;  %v3674_v49 = vpop.permute.xlu0 %3673 }
 0x63a   : > { %3754 = vst.msk [vmem:[#allocation3 + $0x100] sm:$0xff] %vm3737_vm0, %v3674_v49  ;;  %4076 = vmatmul.f32.gmra.mxu2 %v3862_v40  ;;  %v7784_v3 = vpop.f32.mrf.mxu2 }
 0x63d   : > { %3307 = vrot.lane.b32.xlu0 %v3218_v10, %s5529_s26 }
 0x63e   : > { %v5442_v29 = vpop.eup %5441 }
 0x63f   : > { %3691 = vrot.lane.b32.xlu2 %v3602_v32, %s5531_s19  ;;  %v2932_v33 = vmul.f32 %v5442_v29, %v2638_v11  ;;  %vm2938_vm4 = vweird.f32 %v5442_v29 }
 0x640   : > { %vm2939_vm5 = vmor %vm2937_vm14, %vm2938_vm4 }
 0x641   : > { %v3680_v60 = vpop.permute.xlu2 %3679  ;;  %v2933_v59 = vmul.f32 %v5442_v29, %v2932_v33  ;;  %3501 = vrot.lane.b32.xlu1 %v3411_v27, %s5530_s27  ;;  %v3292_v18 = vpop.permute.xlu0 %3291  ;;  %v3866_v58 = vld [vmem:[#allocation3 + $0x100] sm:$0xff] }
 0x642   : > { %3370 = vst.msk [vmem:[#allocation3 + $0x110] sm:$0xff] %vm1805_vm10, %v3292_v18  ;;  %v7787_v10 = vpop.f32.mrf.mxu2 }
 0x643   : > { %v2934_v7 = vmul.f32 0.5, %v2933_v59 }
 0x645   : > { %3309 = vrot.lane.b32.xlu0 %v3219_v20, %s5529_s26  ;;  %v2935_v38 = vsub.f32 1.5, %v2934_v7 }
 0x647   : > { %3693 = vrot.lane.b32.xlu2 %v3603_v55, %s5531_s19  ;;  %v2936_v6 = vmul.f32 %v5442_v29, %v2935_v38 }
 0x649   : > { %v3298_v13 = vpop.permute.xlu2 %3297  ;;  %v2940_v50 = vsel %vm2939_vm5, %v5442_v29, %v2936_v6  ;;  %3503 = vrot.lane.b32.xlu1 %v3412_v39, %s5530_s27  ;;  %v3484_v35 = vpop.permute.xlu0 %3483 }
 0x64a   : > { %3373 = vst.msk [vmem:[#allocation3 + $0x140] sm:$0xff] %vm1805_vm10, %v3298_v13  ;;  %v2990_v45 = vmul.f32 %v2940_v50, %v7605_v36  ;;  %v7757_v36 = vld [vmem:[%s8716_s8] ss:$0 sm:$0xff]  ;;  %v7791_v27 = vpop.f32.mrf.mxu2 }
 0x64b   : > { %3562 = vst.msk [vmem:[#allocation3 + $0x110] sm:$0xff] %vm1998_vm7, %v3484_v35  ;;  %v3288_v28 = vpop.permute.xlu1 %3287 }
 0x64c   : > { %v3026_v1 = vmul.f32 %v7749_v12, %v2990_v45  ;;  %3368 = vst.msk [vmem:[#allocation3 + $0xf0] sm:$0xff] %vm1805_vm10, %v3288_v28 }
 0x64d   : > { %3311 = vrot.lane.b32.xlu0 %v3220_v42, %s5529_s26 }
 0x64e   : > { %v3062_v56 = vadd.f32 %v7757_v36, %v3026_v1 }
 0x64f   : > { %3695 = vrot.lane.b32.xlu2 %v3604_v46, %s5531_s19 }
 0x650   : > { %v3094_v9 = vmax.f32 %v3062_v56, 0.0 }
 0x651   : > { %v3490_v43 = vpop.permute.xlu2 %3489  ;;  %3505 = vrot.lane.b32.xlu1 %v3413_v47, %s5530_s27  ;;  %v3296_v62 = vpop.permute.xlu0 %3295 }
 0x652   : > { %3565 = vst.msk [vmem:[#allocation3 + $0x140] sm:$0xff] %vm1998_vm7, %v3490_v43  ;;  %v7793_v6 = vpop.f32.mrf.mxu2 }
 0x653   : > { %3126 = vst.msk [vmem:[#allocation2 + $0x120] sm:$0xff] %vm444_vm1, %v3094_v9  ;;  %v3480_v52 = vpop.permute.xlu1 %3479 }
 0x654   : > { %3372 = vst.msk [vmem:[#allocation3 + $0x130] sm:$0xff] %vm1805_vm10, %v3296_v62 }
 0x655   : > { %3564 = vst.msk [vmem:[#allocation3 + $0x130] sm:$0xff] %vm1998_vm7, %v3488_v53  ;;  %3313 = vrot.lane.b32.xlu0 %v3221_v5, %s5529_s26 }
 0x656   : > { %3757 = vst.msk [vmem:[#allocation3 + $0x130] sm:$0xff] %vm3737_vm0, %v3680_v60 }
 0x657   : > { %3560 = vst.msk [vmem:[#allocation3 + $0xf0] sm:$0xff] %vm1998_vm7, %v3480_v52  ;;  %v7805_v52 = vpop.f32.mrf.mxu3 }
 0x658   : > { %3753 = vst.msk [vmem:[#allocation3 + $0xf0] sm:$0xff] %vm3737_vm0, %v7723_v15 }
 0x65a   : > { %v3605_v63 = vld [vmem:[#allocation2 + $0x119] sm:$0xff]  ;;  %v7801_v47 = vpop.f32.mrf.mxu2 }
 0x65b   : > { %v3414_v16 = vld [vmem:[#allocation2 + $0x120] sm:$0xff]  ;;  %3697 = vrot.lane.b32.xlu2 %v3605_v63, %s5531_s19  ;;  %v3676_v25 = vpop.permute.xlu1 %3675 }
 0x65c   : > { %3507 = vrot.lane.b32.xlu1 %v3414_v16, %s5530_s27  ;;  %v3798_v51 = vld [vmem:[#allocation2 + $0x11a] sm:$0xff]  ;;  %3755 = vst.msk [vmem:[#allocation3 + $0x110] sm:$0xff] %vm3737_vm0, %v3676_v25 }
 0x65d   : > { %v3158_v24 = vld [vmem:[#allocation2 + $0x11e] sm:$0xff]  ;;  %3830 = vst.msk [vmem:[#allocation3 + $0x1c8] sm:$0xff] %vm444_vm1, %v3798_v51  ;;  %v3872_v60 = vld [vmem:[#allocation3 + $0x130] sm:$0xff] }
 0x65e   : > { %v3222_v26 = vld [vmem:[#allocation2 + $0x11f] sm:$0xff]  ;;  %3190 = vst.msk [vmem:[#allocation3 + $0x1d0] sm:$0xff] %vm444_vm1, %v3158_v24 }
 0x65f   : > { %3315 = vrot.lane.b32.xlu0 %v3222_v26, %s5529_s26  ;;  %v3864_v2 = vld [vmem:[#allocation3 + $0xf0] sm:$0xff] }
 0x660   : > { %4079 = vmatmul.f32.gmra.mxu2 %v3864_v2 }
 0x663   : > { %v3294_v0 = vpop.permute.xlu1 %3293  ;;  %v3868_v53 = vld [vmem:[#allocation3 + $0x110] sm:$0xff] }
 0x664   : > { %v3891_v15 = vld [vmem:[#allocation3 + $0x1c8] sm:$0xff]  ;;  %3371 = vst.msk [vmem:[#allocation3 + $0x120] sm:$0xff] %vm1805_vm10, %v3294_v0  ;;  %v7810_v0 = vpop.f32.mrf.mxu2 }
 0x665   : > { %5273 = vmatmul.msk.f32.gmra.mxu3 %vm444_vm1, %v3891_v15  ;;  %3563 = vst.msk [vmem:[#allocation3 + $0x120] sm:$0xff] %vm1998_vm7, %v7727_v41 }
 0x668   : > { %4082 = vmatmul.f32.gmra.mxu2 %v3866_v58 }
 0x66b   : > { %v3678_v11 = vpop.permute.xlu1 %3677 }
 0x66c   : > { %3756 = vst.msk [vmem:[#allocation3 + $0x120] sm:$0xff] %vm3737_vm0, %v3678_v11 }
 0x670   : > { %4085 = vmatmul.f32.gmra.mxu2 %v3868_v53  ;;  %v7812_v53 = vpop.f32.mrf.mxu3 }
 0x673   : > { %v3682_v49 = vpop.permute.xlu1 %3681  ;;  %v3870_v40 = vld [vmem:[#allocation3 + $0x120] sm:$0xff] }
 0x674   : > { %3758 = vst.msk [vmem:[#allocation3 + $0x140] sm:$0xff] %vm3737_vm0, %v3682_v49 }
 0x678   : > { %4088 = vmatmul.f32.gmra.mxu2 %v3870_v40 }
 0x67b   : > { %v3300_v32 = vpop.permute.xlu1 %3299  ;;  %v3874_v7 = vld [vmem:[#allocation3 + $0x140] sm:$0xff] }
 0x67c   : > { %v2573_v29 = vpop.xlane.xlu0 %2572  ;;  %3374 = vst.msk [vmem:[#allocation3 + $0x150] sm:$0xff] %vm1805_vm10, %v3300_v32 }
 0x67d   : > { %v2607_v41 = vmul.f32 %v2573_v29, %v5768_v23 }
 0x67f   : > { %v2639_v33 = vadd.f32 1e-05, %v2607_v41 }
 0x680   : > { %4091 = vmatmul.f32.gmra.mxu2 %v3872_v60 }
 0x681   : > { %5443 = vrsqrt.f32 %v2639_v33  ;;  %vm2947_vm8 = vweird.f32 %v2639_v33 }
 0x683   : > { %v3684_v59 = vpop.permute.xlu1 %3683 }
 0x687   : > { %v5444_v18 = vpop.eup %5443 }
 0x688   : > { %v2942_v20 = vmul.f32 %v5444_v18, %v2639_v33  ;;  %4094 = vmatmul.f32.gmra.mxu2 %v3874_v7  ;;  %vm2948_vm6 = vweird.f32 %v5444_v18 }
 0x689   : > { %vm2949_vm9 = vmor %vm2947_vm8, %vm2948_vm6 }
 0x68a   : > { %v2943_v38 = vmul.f32 %v5444_v18, %v2942_v20  ;;  %v2576_v55 = vpop.xlane.xlu2 %2575 }
 0x68b   : > { %v2608_v13 = vmul.f32 %v2576_v55, %v5768_v23  ;;  %v3302_v50 = vpop.permute.xlu1 %3301  ;;  %v7825_v55 = vpop.f32.mrf.mxu2 }
 0x68c   : > { %v2944_v39 = vmul.f32 0.5, %v2943_v38  ;;  %3375 = vst.msk [vmem:[#allocation3 + $0x160] sm:$0xff] %vm1805_vm10, %v3302_v50 }
 0x68d   : > { %v2640_v35 = vadd.f32 1e-05, %v2608_v13  ;;  %v7828_v13 = vpop.f32.mrf.mxu3 }
 0x68e   : > { %v2945_v45 = vsub.f32 1.5, %v2944_v39 }
 0x68f   : > { %5445 = vrsqrt.f32 %v2640_v35  ;;  %v3492_v28 = vpop.permute.xlu0 %3491  ;;  %vm2957_vm12 = vweird.f32 %v2640_v35 }
 0x690   : > { %v2946_v42 = vmul.f32 %v5444_v18, %v2945_v45  ;;  %3566 = vst.msk [vmem:[#allocation3 + $0x150] sm:$0xff] %vm1998_vm7, %v3492_v28 }
 0x691   : > { %3759 = vst.msk [vmem:[#allocation3 + $0x150] sm:$0xff] %vm3737_vm0, %v3684_v59 }
 0x692   : > { %v2950_v1 = vsel %vm2949_vm9, %v5444_v18, %v2946_v42  ;;  %v3494_v46 = vpop.permute.xlu2 %3493 }
 0x693   : > { %v2991_v56 = vmul.f32 %v2950_v1, %v7667_v44  ;;  %3567 = vst.msk [vmem:[#allocation3 + $0x160] sm:$0xff] %vm1998_vm7, %v3494_v46  ;;  %v3304_v9 = vpop.permute.xlu1 %3303  ;;  %v7834_v1 = vpop.f32.mrf.mxu2 }
 0x694   : > { %3376 = vst.msk [vmem:[#allocation3 + $0x170] sm:$0xff] %vm1805_vm10, %v3304_v9 }
 0x695   : > { %v5446_v43 = vpop.eup %5445  ;;  %v3027_v62 = vmul.f32 %v7749_v12, %v2991_v56 }
 0x696   : > { %v2952_v5 = vmul.f32 %v5446_v43, %v2640_v35  ;;  %vm2958_vm11 = vweird.f32 %v5446_v43 }
 0x697   : > { %v3063_v63 = vadd.f32 %v7757_v36, %v3027_v62  ;;  %v3686_v16 = vpop.permute.xlu0 %3685  ;;  %vm2959_vm13 = vmor %vm2957_vm12, %vm2958_vm11  ;;  %v7842_v62 = vpop.f32.mrf.mxu3 }
 0x698   : > { %v2953_v51 = vmul.f32 %v5446_v43, %v2952_v5  ;;  %3760 = vst.msk [vmem:[#allocation3 + $0x160] sm:$0xff] %vm3737_vm0, %v3686_v16  ;;  %v3876_v44 = vld [vmem:[#allocation3 + $0x150] sm:$0xff] }
 0x699   : > { %v3095_v24 = vmax.f32 %v3063_v63, 0.0  ;;  %4097 = vmatmul.f32.gmra.mxu2 %v3876_v44  ;;  %v3385_v44 = vld [vmem:[#allocation2 + $0x8] sm:$0xff] }
 0x69a   : > { %v2954_v25 = vmul.f32 0.5, %v2953_v51  ;;  %v3690_v32 = vpop.permute.xlu2 %3689 }
 0x69b   : > { %3127 = vst.msk [vmem:[#allocation2 + $0x128] sm:$0xff] %vm444_vm1, %v3095_v24  ;;  %v3688_v2 = vpop.permute.xlu1 %3687  ;;  %v3193_v24 = vld [vmem:[#allocation2 + $0x7] sm:$0xff] }
 0x69c   : > { %v2955_v26 = vsub.f32 1.5, %v2954_v25 }
 0x69e   : > { %v2956_v15 = vmul.f32 %v5446_v43, %v2955_v26 }
 0x69f   : > { %v3496_v58 = vpop.permute.xlu0 %3495  ;;  %v3878_v11 = vld [vmem:[#allocation3 + $0x160] sm:$0xff] }
 0x6a0   : > { %v2960_v49 = vsel %vm2959_vm13, %v5446_v43, %v2956_v15  ;;  %3568 = vst.msk [vmem:[#allocation3 + $0x170] sm:$0xff] %vm1998_vm7, %v3496_v58  ;;  %v7855_v58 = vpop.f32.mrf.mxu3 }
 0x6a1   : > { %v2992_v40 = vmul.f32 %v2960_v49, %v7691_v22  ;;  %3761 = vst.msk [vmem:[#allocation3 + $0x170] sm:$0xff] %vm3737_vm0, %v3688_v2  ;;  %4100 = vmatmul.f32.gmra.mxu2 %v3878_v11  ;;  %v7852_v2 = vpop.f32.mrf.mxu2 }
 0x6a2   : > { %v3606_v29 = vld [vmem:[#allocation2 + $0x121] sm:$0xff]  ;;  %v3692_v39 = vpop.permute.xlu2 %3691 }
 0x6a3   : > { %v3415_v41 = vld [vmem:[#allocation2 + $0x128] sm:$0xff]  ;;  %v3028_v60 = vmul.f32 %v7749_v12, %v2992_v40  ;;  %3699 = vrot.lane.b32.xlu2 %v3606_v29, %s5531_s19  ;;  %v3498_v7 = vpop.permute.xlu1 %3497 }
 0x6a4   : > { %v3223_v33 = vld [vmem:[#allocation2 + $0x127] sm:$0xff]  ;;  %3509 = vrot.lane.b32.xlu1 %v3415_v41, %s5530_s27 }
 0x6a5   : > { %v3799_v59 = vld [vmem:[#allocation2 + $0x122] sm:$0xff]  ;;  %3317 = vrot.lane.b32.xlu0 %v3223_v33, %s5529_s26  ;;  %v3064_v22 = vadd.f32 %v7757_v36, %v3028_v60 }
 0x6a6   : > { %v3159_v18 = vld [vmem:[#allocation2 + $0x126] sm:$0xff]  ;;  %3831 = vst.msk [vmem:[#allocation3 + $0x1d8] sm:$0xff] %vm444_vm1, %v3799_v59 }
 0x6a7   : > { %3191 = vst.msk [vmem:[#allocation3 + $0x1e0] sm:$0xff] %vm444_vm1, %v3159_v18  ;;  %v3096_v20 = vmax.f32 %v3064_v22, 0.0  ;;  %v3306_v38 = vpop.permute.xlu0 %3305  ;;  %v3577_v40 = vld [vmem:[#allocation2 + $0x9] sm:$0xff] }
 0x6a8   : > { %3377 = vst.msk [vmem:[#allocation3 + $0x180] sm:$0xff] %vm1805_vm10, %v3306_v38  ;;  %v3880_v12 = vld [vmem:[#allocation3 + $0x170] sm:$0xff]  ;;  %v4178_v59 = vpop.f32.mrf.mxu3 }
 0x6a9   : > { %3128 = vst.msk [vmem:[#allocation2 + $0x130] sm:$0xff] %vm444_vm1, %v3096_v20  ;;  %4103 = vmatmul.f32.gmra.mxu2 %v3880_v12  ;;  %v4065_v41 = vpop.f32.mrf.mxu2 }
 0x6aa   : > { %3569 = vst.msk [vmem:[#allocation3 + $0x180] sm:$0xff] %vm1998_vm7, %v3498_v7  ;;  %v3694_v63 = vpop.permute.xlu2 %3693 }
 0x6ab   : > { %3762 = vst.msk [vmem:[#allocation3 + $0x180] sm:$0xff] %vm3737_vm0, %v3690_v32  ;;  %v3500_v50 = vpop.permute.xlu1 %3499 }
 0x6ad   : > { %v3893_v36 = vld [vmem:[#allocation3 + $0x1d8] sm:$0xff] }
 0x6ae   : > { %5274 = vmatmul.msk.f32.gmra.mxu3 %vm444_vm1, %v3893_v36  ;;  %v7870_v36 = vld [vmem:[%s8718_s10] ss:$0 sm:$0xff] }
 0x6af   : > { %v3308_v35 = vpop.permute.xlu0 %3307 }
 0x6b0   : > { %3378 = vst.msk [vmem:[#allocation3 + $0x190] sm:$0xff] %vm1805_vm10, %v3308_v35  ;;  %v3607_v45 = vld [vmem:[#allocation2 + $0x129] sm:$0xff]  ;;  %v3801_v56 = vld [vmem:[#allocation2 + $0x132] sm:$0xff]  ;;  %v4039_v35 = vadd.f32 %v7870_v36, %v7784_v3 }
 0x6b1   : > { %v3416_v28 = vld [vmem:[#allocation2 + $0x130] sm:$0xff]  ;;  %3570 = vst.msk [vmem:[#allocation3 + $0x190] sm:$0xff] %vm1998_vm7, %v3500_v50  ;;  %3701 = vrot.lane.b32.xlu2 %v3607_v45, %s5531_s19  ;;  %v4068_v22 = vpop.f32.mrf.mxu2 }
 0x6b2   : > { %v3224_v42 = vld [vmem:[#allocation2 + $0x12f] sm:$0xff]  ;;  %3511 = vrot.lane.b32.xlu1 %v3416_v28, %s5530_s27  ;;  %3763 = vst.msk [vmem:[#allocation3 + $0x190] sm:$0xff] %vm3737_vm0, %v3692_v39  ;;  %v3882_v9 = vld [vmem:[#allocation3 + $0x180] sm:$0xff]  ;;  %v3696_v11 = vpop.permute.xlu2 %3695  ;;  %v4181_v39 = vpop.f32.mrf.mxu3  ;;  %v7879_v28 = vadd.f32 %v7702_v61, %v4039_v35  ;;  %v4051_v61 = vadd.f32 %v7870_v36, %v7801_v47  ;;  %v4060_v47 = vadd.f32 %v7870_v36, %v7834_v1 }
 0x6b3   : > { %v3800_v46 = vld [vmem:[#allocation2 + $0x12a] sm:$0xff]  ;;  %3319 = vrot.lane.b32.xlu0 %v3224_v42, %s5529_s26  ;;  %4106 = vmatmul.f32.gmra.mxu2 %v3882_v9  ;;  %v3502_v5 = vpop.permute.xlu1 %3501  ;;  %3833 = vst.msk [vmem:[#allocation3 + $0x1f8] sm:$0xff] %vm444_vm1, %v3801_v56  ;;  %v4042_v42 = vadd.f32 %v7870_v36, %v7787_v10 }
 0x6b4   : > { %v3160_v43 = vld [vmem:[#allocation2 + $0x12e] sm:$0xff]  ;;  %3832 = vst.msk [vmem:[#allocation3 + $0x1e8] sm:$0xff] %vm444_vm1, %v3800_v46  ;;  %v4048_v46 = vadd.f32 %v7870_v36, %v7793_v6  ;;  %v4247_v56 = vsel %vm444_vm1, %v7879_v28, 0.0  ;;  %v4057_v6 = vadd.f32 %v7870_v36, %v7825_v55  ;;  %v4066_v55 = vadd.f32 %v7870_v36, %v4065_v41 }
 0x6b5   : > { %3192 = vst.msk [vmem:[#allocation3 + $0x1f0] sm:$0xff] %vm444_vm1, %v3160_v43  ;;  %v3608_v51 = vld [vmem:[#allocation2 + $0x131] sm:$0xff]  ;;  %v7888_v43 = vadd.f32 %v7710_v30, %v4042_v42 }
 0x6b6   : > { %v7891_v3 = vadd.f32 %v7777_v4, %v4048_v46  ;;  %v7905_v4 = vadd.f32 %v7828_v13, %v4057_v6  ;;  %v7919_v13 = vadd.f32 %v4178_v59, %v4066_v55 }
 0x6b7   : > { %v3310_v16 = vpop.permute.xlu0 %3309  ;;  %v4250_v10 = vsel %vm444_vm1, %v7888_v43, 0.0 }
 0x6b8   : > { %3379 = vst.msk [vmem:[#allocation3 + $0x1a0] sm:$0xff] %vm1805_vm10, %v3310_v16  ;;  %v7902_v16 = vadd.f32 %v7805_v52, %v4051_v61  ;;  %v7915_v52 = vadd.f32 %v7842_v62, %v4060_v47 }
 0x6b9   : > { %3571 = vst.msk [vmem:[#allocation3 + $0x1a0] sm:$0xff] %vm1998_vm7, %v3502_v5  ;;  %3703 = vrot.lane.b32.xlu2 %v3608_v51, %s5531_s19  ;;  %v3884_v25 = vld [vmem:[#allocation3 + $0x190] sm:$0xff]  ;;  %v7872_v50 = vpop.f32.mrf.mxu2 }
 0x6ba   : > { %3449 = vrot.lane.b32.xlu1 %v3385_v44, %s5530_s27  ;;  %3764 = vst.msk [vmem:[#allocation3 + $0x1a0] sm:$0xff] %vm3737_vm0, %v3694_v63  ;;  %v3897_v29 = vld [vmem:[#allocation3 + $0x1f8] sm:$0xff]  ;;  %v3698_v18 = vpop.permute.xlu2 %3697  ;;  %v7876_v45 = vpop.f32.mrf.mxu3  ;;  %v4256_v63 = vsel %vm444_vm1, %v7891_v3, 0.0  ;;  %v4259_v44 = vsel %vm444_vm1, %v7902_v16, 0.0  ;;  %v4268_v1 = vsel %vm444_vm1, %v7915_v52, 0.0 }
 0x6bb   : > { %v3895_v26 = vld [vmem:[#allocation3 + $0x1e8] sm:$0xff]  ;;  %3257 = vrot.lane.b32.xlu0 %v3193_v24, %s5529_s26  ;;  %4109 = vmatmul.f32.gmra.mxu2 %v3884_v25  ;;  %v3504_v15 = vpop.permute.xlu1 %3503  ;;  %v4265_v24 = vsel %vm444_vm1, %v7905_v4, 0.0 }
 0x6bc   : > { %5275 = vmatmul.msk.f32.gmra.mxu3 %vm444_vm1, %v3895_v26  ;;  %v4069_v26 = vadd.f32 %v7870_v36, %v4068_v22 }
 0x6be   : > { %v7929_v62 = vadd.f32 %v4181_v39, %v4069_v26 }
 0x6bf   : > { %v3312_v49 = vpop.permute.xlu0 %3311 }
 0x6c0   : > { %3380 = vst.msk [vmem:[#allocation3 + $0x1b0] sm:$0xff] %vm1805_vm10, %v3312_v49 }
 0x6c1   : > { %3572 = vst.msk [vmem:[#allocation3 + $0x1b0] sm:$0xff] %vm1998_vm7, %v3504_v15  ;;  %3641 = vrot.lane.b32.xlu2 %v3577_v40, %s5531_s19  ;;  %v3886_v32 = vld [vmem:[#allocation3 + $0x1a0] sm:$0xff]  ;;  %v4074_v9 = vpop.f32.mrf.mxu2 }
 0x6c2   : > { %3765 = vst.msk [vmem:[#allocation3 + $0x1b0] sm:$0xff] %vm3737_vm0, %v3696_v11  ;;  %v4187_v5 = vpop.f32.mrf.mxu3  ;;  %v4075_v15 = vadd.f32 %v7870_v36, %v4074_v9  ;;  %v4274_v11 = vsel %vm444_vm1, %v7919_v13, 0.0 }
 0x6c3   : > { %4112 = vmatmul.f32.gmra.mxu2 %v3886_v32  ;;  %v3506_v33 = vpop.permute.xlu1 %3505 }
 0x6c4   : > { %5276 = vmatmul.msk.f32.gmra.mxu3 %vm444_vm1, %v3897_v29  ;;  %v7931_v32 = vadd.f32 %v4187_v5, %v4075_v15 }
 0x6c6   : > { %v4283_v59 = vsel %vm444_vm1, %v7931_v32, 0.0 }
 0x6c7   : > { %v3314_v60 = vpop.permute.xlu0 %3313 }
 0x6c8   : > { %3381 = vst.msk [vmem:[#allocation3 + $0x1c0] sm:$0xff] %vm1805_vm10, %v3314_v60 }
 0x6c9   : > { %3573 = vst.msk [vmem:[#allocation3 + $0x1c0] sm:$0xff] %vm1998_vm7, %v3506_v33  ;;  %v3888_v7 = vld [vmem:[#allocation3 + $0x1b0] sm:$0xff]  ;;  %v4077_v30 = vpop.f32.mrf.mxu2  ;;  %v4277_v33 = vsel %vm444_vm1, %v7929_v62, 0.0 }
 0x6ca   : > { %3766 = vst.msk [vmem:[#allocation3 + $0x1c0] sm:$0xff] %vm3737_vm0, %v3698_v18  ;;  %v4190_v51 = vpop.f32.mrf.mxu3  ;;  %v4078_v41 = vadd.f32 %v7870_v36, %v4077_v30 }
 0x6cb   : > { %4115 = vmatmul.f32.gmra.mxu2 %v3888_v7 }
 0x6cc   : > { %v7940_v7 = vadd.f32 %v4190_v51, %v4078_v41 }
 0x6ce   : > { %v3508_v38 = vpop.permute.xlu1 %3507 }
 0x6d1   : > { %v3316_v20 = vpop.permute.xlu0 %3315  ;;  %v3890_v12 = vld [vmem:[#allocation3 + $0x1c0] sm:$0xff] }
 0x6d2   : > { %3382 = vst.msk [vmem:[#allocation3 + $0x1d0] sm:$0xff] %vm1805_vm10, %v3316_v20  ;;  %v7927_v49 = vpop.f32.mrf.mxu3 }
 0x6d3   : > { %3574 = vst.msk [vmem:[#allocation3 + $0x1d0] sm:$0xff] %vm1998_vm7, %v3508_v38  ;;  %4118 = vmatmul.f32.gmra.mxu2 %v3890_v12  ;;  %v4286_v38 = vsel %vm444_vm1, %v7940_v7, 0.0 }
 0x6da   : > { %v4196_v18 = vpop.f32.mrf.mxu3 }
 0x6e2   : > { %v7961_v47 = vpop.f32.mrf.mxu3 }
 0x6e3   : > { %v7917_v25 = vpop.f32.mrf.mxu2 }
 0x6e4   : > { %4248 = vadd.xlane.f32.xlu1 %v4247_v56 }
 0x6ea   : > { %4251 = vadd.xlane.f32.xlu2 %v4250_v10 }
 0x6eb   : > { %v4083_v29 = vpop.f32.mrf.mxu2 }
 0x6ec   : > { %4257 = vadd.xlane.f32.xlu1 %v4256_v63  ;;  %v4084_v60 = vadd.f32 %v7870_v36, %v4083_v29 }
 0x6ee   : > { %v7942_v20 = vadd.f32 %v4196_v18, %v4084_v60 }
 0x6f0   : > { %v4292_v12 = vsel %vm444_vm1, %v7942_v20, 0.0 }
 0x6f2   : > { %4260 = vadd.xlane.f32.xlu2 %v4259_v44 }
 0x6f3   : > { %v7951_v61 = vpop.f32.mrf.mxu2 }
 0x6f4   : > { %4266 = vadd.xlane.f32.xlu1 %v4265_v24  ;;  %v7963_v24 = vpop.f32.mrf.mxu3 }
 0x6fa   : > { %4269 = vadd.xlane.f32.xlu2 %v4268_v1 }
 0x6fb   : > { %v7958_v51 = vpop.f32.mrf.mxu2 }
 0x6fc   : > { %4275 = vadd.xlane.f32.xlu1 %v4274_v11  ;;  %v4205_v1 = vpop.f32.mrf.mxu3 }
 0x6fd   : > { %v3700_v40 = vpop.permute.xlu2 %3699 }
 0x6fe   : > { %3767 = vst.msk [vmem:[#allocation3 + $0x1d0] sm:$0xff] %vm3737_vm0, %v3700_v40 }
 0x702   : > { %4278 = vadd.xlane.f32.xlu2 %v4277_v33 }
 0x703   : > { %v4092_v55 = vpop.f32.mrf.mxu2 }
 0x704   : > { %4284 = vadd.xlane.f32.xlu1 %v4283_v59  ;;  %v7969_v11 = vpop.f32.mrf.mxu3 }
 0x705   : > { %v3892_v22 = vld [vmem:[#allocation3 + $0x1d0] sm:$0xff] }
 0x706   : > { %4121 = vmatmul.f32.gmra.mxu2 %v3892_v22 }
 0x70a   : > { %4287 = vadd.xlane.f32.xlu2 %v4286_v38  ;;  %v4093_v38 = vadd.f32 %v7870_v36, %v4092_v55 }
 0x70b   : > { %v3702_v42 = vpop.permute.xlu2 %3701  ;;  %v7965_v26 = vpop.f32.mrf.mxu2 }
 0x70c   : > { %4293 = vadd.xlane.f32.xlu1 %v4292_v12  ;;  %v7971_v29 = vpop.f32.mrf.mxu3 }
 0x713   : > { %v3704_v9 = vpop.permute.xlu2 %3703 }
 0x714   : > { %v4214_v60 = vpop.f32.mrf.mxu3 }
 0x716   : > { %v3510_v39 = vpop.permute.xlu1 %3509 }
 0x717   : > { %v3318_v35 = vpop.permute.xlu0 %3317 }
 0x718   : > { %3383 = vst.msk [vmem:[#allocation3 + $0x1e0] sm:$0xff] %vm1805_vm10, %v3318_v35  ;;  %v7983_v35 = vadd.f32 %v4205_v1, %v4093_v38 }
 0x719   : > { %3575 = vst.msk [vmem:[#allocation3 + $0x1e0] sm:$0xff] %vm1998_vm7, %v3510_v39 }
 0x71a   : > { %3768 = vst.msk [vmem:[#allocation3 + $0x1e0] sm:$0xff] %vm3737_vm0, %v3702_v42 }
 0x71b   : > { %v3642_v63 = vpop.permute.xlu2 %3641 }
 0x71c   : > { %v7967_v15 = vpop.f32.mrf.mxu2 }
 0x721   : > { %v3894_v46 = vld [vmem:[#allocation3 + $0x1e0] sm:$0xff] }
 0x722   : > { %4124 = vmatmul.f32.gmra.mxu2 %v3894_v46  ;;  %v7986_v46 = vpop.f32.mrf.mxu3 }
 0x724   : > { %v3512_v56 = vpop.permute.xlu1 %3511  ;;  %v4101_v40 = vpop.f32.mrf.mxu2 }
 0x725   : > { %v3320_v5 = vpop.permute.xlu0 %3319 }
 0x726   : > { %3384 = vst.msk [vmem:[#allocation3 + $0x1f0] sm:$0xff] %vm1805_vm10, %v3320_v5 }
 0x727   : > { %3576 = vst.msk [vmem:[#allocation3 + $0x1f0] sm:$0xff] %vm1998_vm7, %v3512_v56 }
 0x728   : > { %3769 = vst.msk [vmem:[#allocation3 + $0x1f0] sm:$0xff] %vm3737_vm0, %v3704_v9  ;;  %v4301_v9 = vsel %vm444_vm1, %v7983_v35, 0.0 }
 0x72c   : > { %v3450_v10 = vpop.permute.xlu1 %3449  ;;  %v7974_v59 = vpop.f32.mrf.mxu2 }
 0x72d   : > { %v3258_v6 = vpop.permute.xlu0 %3257 }
 0x72e   : > { %3353 = vst.msk [vmem:[#allocation3] sm:$0xff] %vm1805_vm10, %v3258_v6 }
 0x72f   : > { %3545 = vst.msk [vmem:[#allocation3] sm:$0xff] %vm1998_vm7, %v3450_v10  ;;  %v3896_v30 = vld [vmem:[#allocation3 + $0x1f0] sm:$0xff]  ;;  %v7997_v10 = vpop.f32.mrf.mxu3 }
 0x730   : > { %3738 = vst.msk [vmem:[#allocation3] sm:$0xff] %vm3737_vm0, %v3642_v63  ;;  %4127 = vmatmul.f32.gmra.mxu2 %v3896_v30  ;;  %v4102_v63 = vadd.f32 %v7870_v36, %v4101_v40 }
 0x732   : > { %v8001_v55 = vadd.f32 %v4214_v60, %v4102_v63 }
 0x736   : > { %v7988_v56 = vpop.f32.mrf.mxu2 }
 0x737   : > { %v3834_v44 = vld [vmem:[#allocation3] sm:$0xff]  ;;  %v4223_v1 = vpop.f32.mrf.mxu3 }
 0x738   : > { %4034 = vmatmul.f32.vlgmr.msrb.gmra.mxu0 %v3834_v44 }
 0x73e   : > { %v4110_v6 = vpop.f32.mrf.mxu2 }
 0x73f   : > { %v4111_v38 = vadd.f32 %v7870_v36, %v4110_v6 }
 0x75d   : > { %v4252_v41 = vpop.xlane.xlu2 %4251 }
 0x75e   : > { %v4342_v33 = vmul.f32 %v4252_v41, %v5768_v23 }
 0x760   : > { %v7977_v18 = vsub.f32 %v7888_v43, %v4342_v33  ;;  %v4310_v33 = vsel %vm444_vm1, %v8001_v55, 0.0 }
 0x762   : > { %v4406_v22 = vmul.f32 %v7977_v18, %v7977_v18 }
 0x764   : > { %v4442_v12 = vsel %vm444_vm1, %v4406_v22, 0.0  ;;  %v8009_v22 = vpop.f32.mrf.mxu2 }
 0x765   : > { %v4261_v39 = vpop.xlane.xlu2 %4260  ;;  %4443 = vadd.xlane.f32.xlu1 %v4442_v12  ;;  %v8015_v12 = vpop.f32.mrf.mxu3 }
 0x766   : > { %v4345_v42 = vmul.f32 %v4261_v39, %v5768_v23  ;;  %8812 = vst [vmem:[#allocation31_spill] sm:$0xff] %v8015_v12 }
 0x768   : > { %v7991_v43 = vsub.f32 %v7902_v16, %v4345_v42 }
 0x76a   : > { %v4409_v5 = vmul.f32 %v7991_v43, %v7991_v43 }
 0x76c   : > { %v4451_v30 = vsel %vm444_vm1, %v4409_v5, 0.0  ;;  %v8017_v42 = vpop.f32.mrf.mxu2 }
 0x76d   : > { %4302 = vadd.xlane.f32.xlu1 %v4301_v9  ;;  %v4270_v44 = vpop.xlane.xlu2 %4269  ;;  %v8027_v6 = vpop.f32.mrf.mxu3 }
 0x76e   : > { %v4348_v16 = vmul.f32 %v4270_v44, %v5768_v23 }
 0x770   : > { %v8005_v41 = vsub.f32 %v7915_v52, %v4348_v16  ;;  %v8019_v52 = vadd.f32 %v4223_v1, %v4111_v38  ;;  %v4249_v38 = vpop.xlane.xlu1 %4248 }
 0x772   : > { %v4412_v40 = vmul.f32 %v8005_v41, %v8005_v41  ;;  %v4319_v63 = vsel %vm444_vm1, %v8019_v52, 0.0 }
 0x774   : > { %v4460_v60 = vsel %vm444_vm1, %v4412_v40, 0.0  ;;  %v4119_v44 = vpop.f32.mrf.mxu2 }
 0x775   : > { %4452 = vadd.xlane.f32.xlu1 %v4451_v30  ;;  %v4279_v39 = vpop.xlane.xlu2 %4278  ;;  %v4120_v16 = vadd.f32 %v7870_v36, %v4119_v44 }
 0x776   : > { %v4351_v9 = vmul.f32 %v4279_v39, %v5768_v23 }
 0x778   : > { %v8023_v5 = vsub.f32 %v7929_v62, %v4351_v9  ;;  %v8041_v9 = vpop.xlane.xlu1 %4257 }
 0x77a   : > { %v4415_v30 = vmul.f32 %v8023_v5, %v8023_v5 }
 0x77c   : > { %v4469_v1 = vsel %vm444_vm1, %v4415_v30, 0.0 }
 0x77d   : > { %4311 = vadd.xlane.f32.xlu1 %v4310_v33  ;;  %v4232_v33 = vpop.f32.mrf.mxu3  ;;  %v4288_v30 = vpop.xlane.xlu2 %4287 }
 0x77e   : > { %v8033_v40 = vadd.f32 %v4232_v33, %v4120_v16  ;;  %v4354_v33 = vmul.f32 %v4288_v30, %v5768_v23  ;;  %v4045_v30 = vadd.f32 %v7870_v36, %v7791_v27 }
 0x780   : > { %v4328_v62 = vsel %vm444_vm1, %v8033_v40, 0.0 }
 0x785   : > { %4461 = vadd.xlane.f32.xlu1 %v4460_v60  ;;  %v8037_v60 = vpop.f32.mrf.mxu3 }
 0x786   : > { %8813 = vst [vmem:[#allocation32_spill] sm:$0xff] %v8037_v60  ;;  %v8055_v60 = vsub.f32 %v7940_v7, %v4354_v33  ;;  %v8071_v7 = vadd.f32 %v7718_v31, %v4045_v30 }
 0x788   : > { %v4253_v27 = vsel %vm444_vm1, %v8071_v7, 0.0 }
 0x789   : > { %v8039_v39 = vpop.f32.mrf.mxu2 }
 0x78a   : > { %8814 = vst [vmem:[#allocation33_spill] sm:$0xff] %v8039_v39 }
 0x78d   : > { %4320 = vadd.xlane.f32.xlu1 %v4319_v63  ;;  %v8043_v63 = vpop.f32.mrf.mxu3 }
 0x795   : > { %4470 = vadd.xlane.f32.xlu1 %v4469_v1  ;;  %v8047_v1 = vpop.xlane.xlu1 %4266 }
 0x79d   : > { %4329 = vadd.xlane.f32.xlu1 %v4328_v62  ;;  %v4241_v62 = vpop.f32.mrf.mxu3 }
 0x7a5   : > { %v8045_v44 = vpop.f32.mrf.mxu2 }
 0x7b3   : > { %v4128_v16 = vpop.f32.mrf.mxu2 }
 0x7b4   : > { %v4129_v37 = vadd.f32 %v7870_v36, %v4128_v16 }
 0x7b5   : > { %v4035_v17 = vpop.f32.mrf.mxu0 }
 0x7b6   : > { %v8051_v21 = vadd.f32 %v4241_v62, %v4129_v37  ;;  %v4036_v14 = vadd.f32 %v7870_v36, %v4035_v17  ;;  %v4418_v17 = vmul.f32 %v8055_v60, %v8055_v60  ;;  %v8068_v37 = vpop.xlane.xlu1 %4275  ;;  %v4063_v62 = vadd.f32 %v7870_v36, %v7852_v2 }
 0x7b8   : > { %v8058_v39 = vadd.f32 %v7633_v34, %v4036_v14  ;;  %v4337_v12 = vsel %vm444_vm1, %v8051_v21, 0.0  ;;  %v4478_v14 = vsel %vm444_vm1, %v4418_v17, 0.0  ;;  %v4054_v34 = vadd.f32 %v7870_v36, %v7810_v0 }
 0x7b9   : > { %4338 = vadd.xlane.f32.xlu1 %v4337_v12  ;;  %v8088_v30 = vadd.f32 %v7855_v58, %v4063_v62  ;;  %v4341_v62 = vmul.f32 %v4249_v38, %v5768_v23  ;;  %v4090_v38 = vadd.f32 %v7870_v36, %v7958_v51  ;;  %v8129_v51 = vld [vmem:[%s8719_s11] ss:$0 sm:$0xff] }
 0x7ba   : > { %v4244_v16 = vsel %vm444_vm1, %v8058_v39, 0.0  ;;  %v8079_v12 = vadd.f32 %v7812_v53, %v4054_v34 }
 0x7bb   : > { %4245 = vadd.xlane.f32.xlu0 %v4244_v16  ;;  %v4072_v16 = vadd.f32 %v7870_v36, %v7872_v50  ;;  %v4271_v53 = vsel %vm444_vm1, %v8088_v30, 0.0 }
 0x7bc   : > { %v4262_v31 = vsel %vm444_vm1, %v8079_v12, 0.0 }
 0x7bd   : > { %v8097_v17 = vadd.f32 %v7876_v45, %v4072_v16  ;;  %v8111_v45 = vsub.f32 %v7879_v28, %v4341_v62 }
 0x7be   : > { %v8081_v33 = vpop.xlane.xlu1 %4284 }
 0x7bf   : > { %8815 = vst [vmem:[#allocation34_spill] sm:$0xff] %v8097_v17  ;;  %v4280_v58 = vsel %vm444_vm1, %v8097_v17, 0.0  ;;  %v8122_v17 = vadd.f32 %v7963_v24, %v4090_v38 }
 0x7c1   : > { %4479 = vadd.xlane.f32.xlu1 %v4478_v14  ;;  %v4081_v14 = vadd.f32 %v7870_v36, %v7917_v25  ;;  %8817 = vst [vmem:[#allocation36_spill] sm:$0xff] %v8122_v17 }
 0x7c3   : > { %4254 = vadd.xlane.f32.xlu0 %v4253_v27  ;;  %v8105_v50 = vadd.f32 %v7927_v49, %v4081_v14 }
 0x7c5   : > { %8816 = vst [vmem:[#allocation35_spill] sm:$0xff] %v8105_v50  ;;  %v4289_v25 = vsel %vm444_vm1, %v8105_v50, 0.0 }
 0x7c6   : > { %v8090_v0 = vpop.xlane.xlu1 %4293 }
 0x7cb   : > { %4263 = vadd.xlane.f32.xlu0 %v4262_v31 }
 0x7d3   : > { %4272 = vadd.xlane.f32.xlu0 %v4271_v53 }
 0x7d8   : > { %v4444_v2 = vpop.xlane.xlu1 %4443 }
 0x7d9   : > { %v4534_v34 = vmul.f32 %v4444_v2, %v5768_v23  ;;  %v4405_v2 = vmul.f32 %v8111_v45, %v8111_v45 }
 0x7db   : > { %4281 = vadd.xlane.f32.xlu0 %v4280_v58  ;;  %v4566_v27 = vadd.f32 1e-05, %v4534_v34  ;;  %v4439_v28 = vsel %vm444_vm1, %v4405_v2, 0.0 }
 0x7dd   : > { %5447 = vrsqrt.f32 %v4566_v27  ;;  %vm4622_vm7 = vweird.f32 %v4566_v27 }
 0x7e0   : > { %v8108_v31 = vpop.xlane.xlu1 %4302 }
 0x7e3   : > { %4290 = vadd.xlane.f32.xlu0 %v4289_v25  ;;  %v5448_v16 = vpop.eup %5447 }
 0x7e4   : > { %v4617_v53 = vmul.f32 %v5448_v16, %v4566_v27  ;;  %vm4623_vm10 = vweird.f32 %v5448_v16 }
 0x7e5   : > { %vm4624_vm0 = vmor %vm4622_vm7, %vm4623_vm10 }
 0x7e6   : > { %v4618_v34 = vmul.f32 %v5448_v16, %v4617_v53  ;;  %v4344_v53 = vmul.f32 %v8041_v9, %v5768_v23 }
 0x7e8   : > { %v4619_v49 = vmul.f32 0.5, %v4618_v34  ;;  %v4453_v14 = vpop.xlane.xlu1 %4452  ;;  %v8134_v34 = vld [vmem:[%s8720_s12] ss:$0 sm:$0xff]  ;;  %v8140_v9 = vsub.f32 %v7891_v3, %v4344_v53 }
 0x7e9   : > { %v4537_v58 = vmul.f32 %v4453_v14, %v5768_v23  ;;  %v4298_v14 = vsel %vm444_vm1, %v8122_v17, 0.0 }
 0x7ea   : > { %v4620_v62 = vsub.f32 1.5, %v4619_v49  ;;  %8818 = vst [vmem:[#allocation37_spill] sm:$0xff] %v8140_v9 }
 0x7eb   : > { %4440 = vadd.xlane.f32.xlu0 %v4439_v28  ;;  %v4569_v50 = vadd.f32 1e-05, %v4537_v58 }
 0x7ec   : > { %v4621_v25 = vmul.f32 %v5448_v16, %v4620_v62  ;;  %v4408_v62 = vmul.f32 %v8140_v9, %v8140_v9 }
 0x7ed   : > { %5449 = vrsqrt.f32 %v4569_v50  ;;  %vm4652_vm2 = vweird.f32 %v4569_v50 }
 0x7ee   : > { %v4625_v2 = vsel %vm4624_vm0, %v5448_v16, %v4621_v25 }
 0x7ef   : > { %v4918_v24 = vmul.f32 %v4625_v2, %v7977_v18  ;;  %v8819_v18 = vmax.f32 %v6109_v54, 0.0 }
 0x7f0   : > { %v8137_v27 = vpop.xlane.xlu1 %4311 }
 0x7f1   : > { %v4954_v49 = vmul.f32 %v8129_v51, %v4918_v24  ;;  %v4099_v24 = vadd.f32 %v7870_v36, %v7967_v15 }
 0x7f3   : > { %4299 = vadd.xlane.f32.xlu0 %v4298_v14  ;;  %v5450_v38 = vpop.eup %5449  ;;  %v4990_v16 = vadd.f32 %v8134_v34, %v4954_v49  ;;  %v4448_v14 = vsel %vm444_vm1, %v4408_v62, 0.0  ;;  %v8164_v54 = vadd.f32 %v7971_v29, %v4099_v24 }
 0x7f4   : > { %v4647_v58 = vmul.f32 %v5450_v38, %v4569_v50  ;;  %vm4653_vm15 = vweird.f32 %v5450_v38 }
 0x7f5   : > { %v5022_v28 = vmax.f32 %v4990_v16, 0.0  ;;  %vm4654_vm3 = vmor %vm4652_vm2, %vm4653_vm15  ;;  %v4307_v29 = vsel %vm444_vm1, %v8164_v54, 0.0 }
 0x7f6   : > { %v4648_v3 = vmul.f32 %v5450_v38, %v4647_v58  ;;  %v4347_v58 = vmul.f32 %v8047_v1, %v5768_v23 }
 0x7f7   : > { %v5054_v25 = vadd.f32 %v5022_v28, %v8819_v18 }
 0x7f8   : > { %v4649_v53 = vmul.f32 0.5, %v4648_v3  ;;  %v4462_v2 = vpop.xlane.xlu1 %4461  ;;  %v8172_v62 = vsub.f32 %v7905_v4, %v4347_v58 }
 0x7f9   : > { %5086 = vst.msk [vmem:[%s8153_s21 + $0x10] sm:$0xff] %vm444_vm1, %v5054_v25  ;;  %v4540_v49 = vmul.f32 %v4462_v2, %v5768_v23 }
 0x7fa   : > { %v4650_v16 = vsub.f32 1.5, %v4649_v53 }
 0x7fb   : > { %4449 = vadd.xlane.f32.xlu0 %v4448_v14  ;;  %v4572_v9 = vadd.f32 1e-05, %v4540_v49  ;;  %v4108_v49 = vadd.f32 %v7870_v36, %v7988_v56 }
 0x7fc   : > { %v4651_v17 = vmul.f32 %v5450_v38, %v4650_v16 }
 0x7fd   : > { %5451 = vrsqrt.f32 %v4572_v9  ;;  %vm4682_vm14 = vweird.f32 %v4572_v9 }
 0x7fe   : > { %v4655_v15 = vsel %vm4654_vm3, %v5450_v38, %v4651_v17  ;;  %v8820_v38 = vmax.f32 %v6159_v8, 0.0  ;;  %v8189_v8 = vadd.f32 %v7997_v10, %v4108_v49 }
 0x7ff   : > { %v4921_v28 = vmul.f32 %v4655_v15, %v7991_v43  ;;  %v4411_v43 = vmul.f32 %v8172_v62, %v8172_v62 }
 0x800   : > { %v8169_v3 = vpop.xlane.xlu1 %4320 }
 0x801   : > { %v4957_v18 = vmul.f32 %v8129_v51, %v4921_v28  ;;  %v4457_v16 = vsel %vm444_vm1, %v4411_v43, 0.0 }
 0x803   : > { %4308 = vadd.xlane.f32.xlu0 %v4307_v29  ;;  %v5452_v50 = vpop.eup %5451  ;;  %v4993_v1 = vadd.f32 %v8134_v34, %v4957_v18  ;;  %v4350_v18 = vmul.f32 %v8068_v37, %v5768_v23 }
 0x804   : > { %v4677_v25 = vmul.f32 %v5452_v50, %v4572_v9  ;;  %vm4683_vm4 = vweird.f32 %v5452_v50  ;;  %v4316_v9 = vsel %vm444_vm1, %v8189_v8, 0.0 }
 0x805   : > { %v5025_v53 = vmax.f32 %v4993_v1, 0.0  ;;  %vm4684_vm5 = vmor %vm4682_vm14, %vm4683_vm4  ;;  %v8195_v1 = vsub.f32 %v7919_v13, %v4350_v18 }
 0x806   : > { %v4678_v17 = vmul.f32 %v5452_v50, %v4677_v25 }
 0x807   : > { %v5057_v2 = vadd.f32 %v5025_v53, %v8820_v38 }
 0x808   : > { %v4679_v4 = vmul.f32 0.5, %v4678_v17  ;;  %v4471_v24 = vpop.xlane.xlu1 %4470  ;;  %v4414_v17 = vmul.f32 %v8195_v1, %v8195_v1 }
 0x809   : > { %5089 = vst.msk [vmem:[%s8153_s21 + $0x28] sm:$0xff] %vm444_vm1, %v5057_v2  ;;  %v4543_v14 = vmul.f32 %v4471_v24, %v5768_v23  ;;  %v4117_v2 = vadd.f32 %v7870_v36, %v8017_v42 }
 0x80a   : > { %v4680_v58 = vsub.f32 1.5, %v4679_v4  ;;  %v4466_v4 = vsel %vm444_vm1, %v4414_v17, 0.0 }
 0x80b   : > { %4458 = vadd.xlane.f32.xlu0 %v4457_v16  ;;  %v4575_v15 = vadd.f32 1e-05, %v4543_v14  ;;  %v8211_v14 = vadd.f32 %v8027_v6, %v4117_v2 }
 0x80c   : > { %v4681_v28 = vmul.f32 %v5452_v50, %v4680_v58 }
 0x80d   : > { %5453 = vrsqrt.f32 %v4575_v15  ;;  %vm4712_vm8 = vweird.f32 %v4575_v15  ;;  %v4325_v18 = vsel %vm444_vm1, %v8211_v14, 0.0 }
 0x80e   : > { %v4685_v56 = vsel %vm4684_vm5, %v5452_v50, %v4681_v28 }
 0x80f   : > { %v4924_v29 = vmul.f32 %v4685_v56, %v8005_v41  ;;  %v8821_v41 = vmax.f32 %v6218_v19, 0.0  ;;  %v4353_v19 = vmul.f32 %v8081_v33, %v5768_v23 }
 0x810   : > { %v8223_v6 = vpop.xlane.xlu1 %4329 }
 0x811   : > { %v4960_v25 = vmul.f32 %v8129_v51, %v4924_v29  ;;  %v8217_v58 = vsub.f32 %v7931_v32, %v4353_v19  ;;  %v8822_v29 = vmax.f32 %v6262_v57, 0.0  ;;  %v4126_v32 = vadd.f32 %v7870_v36, %v8045_v44 }
 0x813   : > { %4317 = vadd.xlane.f32.xlu0 %v4316_v9  ;;  %v5454_v10 = vpop.eup %5453  ;;  %v4996_v53 = vadd.f32 %v8134_v34, %v4960_v25  ;;  %v4417_v33 = vmul.f32 %v8217_v58, %v8217_v58 }
 0x814   : > { %v4707_v43 = vmul.f32 %v5454_v10, %v4575_v15  ;;  %vm4713_vm6 = vweird.f32 %v5454_v10 }
 0x815   : > { %v5028_v37 = vmax.f32 %v4996_v53, 0.0  ;;  %vm4714_vm9 = vmor %vm4712_vm8, %vm4713_vm6  ;;  %v4475_v25 = vsel %vm444_vm1, %v4417_v33, 0.0  ;;  %v8239_v53 = vadd.f32 %v8043_v63, %v4126_v32  ;;  %v4087_v63 = vadd.f32 %v7870_v36, %v7951_v61 }
 0x816   : > { %v4708_v50 = vmul.f32 %v5454_v10, %v4707_v43 }
 0x817   : > { %v5060_v38 = vadd.f32 %v5028_v37, %v8821_v41  ;;  %v4334_v17 = vsel %vm444_vm1, %v8239_v53, 0.0 }
 0x818   : > { %v4709_v13 = vmul.f32 0.5, %v4708_v50 }
 0x819   : > { %5092 = vst.msk [vmem:[%s8153_s21 + $0x40] sm:$0xff] %vm444_vm1, %v5060_v38 }
 0x81a   : > { %v4710_v24 = vsub.f32 1.5, %v4709_v13 }
 0x81b   : > { %4467 = vadd.xlane.f32.xlu0 %v4466_v4  ;;  %v8261_v4 = vadd.f32 %v7961_v47, %v4087_v63 }
 0x81c   : > { %v4711_v49 = vmul.f32 %v5454_v10, %v4710_v24 }
 0x81d   : > { %v4295_v19 = vsel %vm444_vm1, %v8261_v4, 0.0 }
 0x81e   : > { %v4715_v16 = vsel %vm4714_vm9, %v5454_v10, %v4711_v49  ;;  %v4356_v10 = vmul.f32 %v8090_v0, %v5768_v23 }
 0x81f   : > { %v4927_v42 = vmul.f32 %v4715_v16, %v8023_v5  ;;  %v4362_v16 = vmul.f32 %v8137_v27, %v5768_v23  ;;  %v4096_v27 = vadd.f32 %v7870_v36, %v7965_v26 }
 0x820   : > { %v8246_v44 = vsub.f32 %v7942_v20, %v4356_v10 }
 0x821   : > { %v4963_v28 = vmul.f32 %v8129_v51, %v4927_v42 }
 0x822   : > { %v4420_v13 = vmul.f32 %v8246_v44, %v8246_v44 }
 0x823   : > { %4326 = vadd.xlane.f32.xlu0 %v4325_v18  ;;  %v4999_v15 = vadd.f32 %v8134_v34, %v4963_v28 }
 0x824   : > { %v4484_v49 = vsel %vm444_vm1, %v4420_v13, 0.0 }
 0x825   : > { %v5031_v56 = vmax.f32 %v4999_v15, 0.0  ;;  %v8280_v15 = vsub.f32 %v8001_v55, %v4362_v16 }
 0x827   : > { %v5063_v5 = vadd.f32 %v5031_v56, %v8822_v29  ;;  %v4426_v55 = vmul.f32 %v8280_v15, %v8280_v15 }
 0x829   : > { %5095 = vst.msk [vmem:[%s8153_s21 + $0x58] sm:$0xff] %vm444_vm1, %v5063_v5  ;;  %v4365_v5 = vmul.f32 %v8169_v3, %v5768_v23  ;;  %v4502_v3 = vsel %vm444_vm1, %v4426_v55, 0.0 }
 0x82b   : > { %4476 = vadd.xlane.f32.xlu0 %v4475_v25 }
 0x82c   : > { %v8234_v9 = vpop.xlane.xlu1 %4338 }
 0x82e   : > { %v4246_v43 = vpop.xlane.xlu0 %4245 }
 0x82f   : > { %v4340_v57 = vmul.f32 %v4246_v43, %v5768_v23  ;;  %v8291_v43 = vadd.f32 %v7969_v11, %v4096_v27 }
 0x831   : > { %v8243_v37 = vsub.f32 %v8058_v39, %v4340_v57  ;;  %v4359_v39 = vmul.f32 %v8108_v31, %v5768_v23  ;;  %v8295_v57 = vsub.f32 %v8019_v52, %v4365_v5  ;;  %v4304_v11 = vsel %vm444_vm1, %v8291_v43, 0.0  ;;  %v8824_v5 = vld [vmem:[#allocation31_spill] sm:$0xff] }
 0x833   : > { %4335 = vadd.xlane.f32.xlu0 %v4334_v17  ;;  %v4404_v50 = vmul.f32 %v8243_v37, %v8243_v37  ;;  %v8265_v61 = vsub.f32 %v7983_v35, %v4359_v39 }
 0x834   : > { %v4480_v0 = vpop.xlane.xlu1 %4479 }
 0x835   : > { %v4546_v41 = vmul.f32 %v4480_v0, %v5768_v23  ;;  %v4436_v38 = vsel %vm444_vm1, %v4404_v50, 0.0  ;;  %v4423_v42 = vmul.f32 %v8265_v61, %v8265_v61 }
 0x836   : > { %4437 = vadd.xlane.f32.xlu2 %v4436_v38  ;;  %v4255_v20 = vpop.xlane.xlu0 %4254  ;;  %v4429_v38 = vmul.f32 %v8295_v57, %v8295_v57 }
 0x837   : > { %v4578_v2 = vadd.f32 1e-05, %v4546_v41  ;;  %v4343_v24 = vmul.f32 %v4255_v20, %v5768_v23  ;;  %v4493_v56 = vsel %vm444_vm1, %v4423_v42, 0.0  ;;  %v4368_v41 = vmul.f32 %v8223_v6, %v5768_v23 }
 0x838   : > { %v4511_v13 = vsel %vm444_vm1, %v4429_v38, 0.0  ;;  %v4105_v6 = vadd.f32 %v7870_v36, %v7974_v59 }
 0x839   : > { %5455 = vrsqrt.f32 %v4578_v2  ;;  %v8269_v31 = vsub.f32 %v8071_v7, %v4343_v24  ;;  %vm4742_vm12 = vweird.f32 %v4578_v2 }
 0x83b   : > { %4485 = vadd.xlane.f32.xlu0 %v4484_v49  ;;  %v4407_v18 = vmul.f32 %v8269_v31, %v8269_v31 }
 0x83d   : > { %v4445_v29 = vsel %vm444_vm1, %v4407_v18, 0.0 }
 0x83e   : > { %4296 = vadd.xlane.f32.xlu2 %v4295_v19  ;;  %v4264_v47 = vpop.xlane.xlu0 %4263  ;;  %v4371_v19 = vmul.f32 %v8234_v9, %v5768_v23 }
 0x83f   : > { %v5456_v28 = vpop.eup %5455  ;;  %v4346_v26 = vmul.f32 %v4264_v47, %v5768_v23  ;;  %v8328_v47 = vadd.f32 %v7986_v46, %v4105_v6 }
 0x840   : > { %v4737_v35 = vmul.f32 %v5456_v28, %v4578_v2  ;;  %vm4743_vm11 = vweird.f32 %v5456_v28  ;;  %v8823_v2 = vmax.f32 %v6304_v48, 0.0  ;;  %v8332_v42 = vsub.f32 %v8051_v21, %v4371_v19  ;;  %v8827_v19 = vld [vmem:[#allocation32_spill] sm:$0xff] }
 0x841   : > { %vm4744_vm13 = vmor %vm4742_vm12, %vm4743_vm11  ;;  %v8301_v63 = vsub.f32 %v8079_v12, %v4346_v26  ;;  %v8313_v12 = vsub.f32 %v8033_v40, %v4368_v41  ;;  %v4313_v9 = vsel %vm444_vm1, %v8328_v47, 0.0  ;;  %v8825_v26 = vld [vmem:[#allocation34_spill] sm:$0xff] }
 0x842   : > { %v4738_v7 = vmul.f32 %v5456_v28, %v4737_v35  ;;  %v4435_v46 = vmul.f32 %v8332_v42, %v8332_v42 }
 0x843   : > { %4494 = vadd.xlane.f32.xlu0 %v4493_v56  ;;  %v4410_v20 = vmul.f32 %v8301_v63, %v8301_v63  ;;  %v4432_v40 = vmul.f32 %v8313_v12, %v8313_v12 }
 0x844   : > { %v4739_v33 = vmul.f32 0.5, %v4738_v7  ;;  %v4529_v56 = vsel %vm444_vm1, %v4435_v46, 0.0  ;;  %v8828_v46 = vld [vmem:[#allocation35_spill] sm:$0xff] }
 0x845   : > { %v4454_v49 = vsel %vm444_vm1, %v4410_v20, 0.0  ;;  %v4520_v59 = vsel %vm444_vm1, %v4432_v40, 0.0 }
 0x846   : > { %v4740_v32 = vsub.f32 1.5, %v4739_v33  ;;  %4446 = vadd.xlane.f32.xlu2 %v4445_v29  ;;  %v4273_v25 = vpop.xlane.xlu0 %4272 }
 0x847   : > { %v4349_v48 = vmul.f32 %v4273_v25, %v5768_v23 }
 0x848   : > { %v4741_v10 = vmul.f32 %v5456_v28, %v4740_v32 }
 0x84a   : > { %v4745_v17 = vsel %vm4744_vm13, %v5456_v28, %v4741_v10  ;;  %v8336_v28 = vsub.f32 %v8088_v30, %v4349_v48  ;;  %v4114_v30 = vadd.f32 %v7870_v36, %v8009_v22 }
 0x84b   : > { %v4930_v50 = vmul.f32 %v4745_v17, %v8055_v60  ;;  %4503 = vadd.xlane.f32.xlu0 %v4502_v3 }
 0x84c   : > { %v4413_v21 = vmul.f32 %v8336_v28, %v8336_v28  ;;  %v8350_v32 = vadd.f32 %v8824_v5, %v4114_v30 }
 0x84d   : > { %v4966_v0 = vmul.f32 %v8129_v51, %v4930_v50 }
 0x84e   : > { %4305 = vadd.xlane.f32.xlu2 %v4304_v11  ;;  %v4282_v52 = vpop.xlane.xlu0 %4281  ;;  %v4463_v33 = vsel %vm444_vm1, %v4413_v21, 0.0  ;;  %v4322_v3 = vsel %vm444_vm1, %v8350_v32, 0.0 }
 0x84f   : > { %v5002_v60 = vadd.f32 %v8134_v34, %v4966_v0  ;;  %v4352_v25 = vmul.f32 %v4282_v52, %v5768_v23 }
 0x851   : > { %v5034_v39 = vmax.f32 %v5002_v60, 0.0  ;;  %v8354_v17 = vsub.f32 %v8825_v26, %v4352_v25 }
 0x853   : > { %v5066_v24 = vadd.f32 %v5034_v39, %v8823_v2  ;;  %4512 = vadd.xlane.f32.xlu0 %v4511_v13  ;;  %v4416_v38 = vmul.f32 %v8354_v17, %v8354_v17  ;;  %v8826_v39 = vld [vmem:[#allocation33_spill] sm:$0xff] }
 0x854   : > { %v4123_v20 = vadd.f32 %v7870_v36, %v8826_v39 }
 0x855   : > { %5098 = vst.msk [vmem:[%s8153_s21 + $0x70] sm:$0xff] %vm444_vm1, %v5066_v24  ;;  %v4472_v2 = vsel %vm444_vm1, %v4416_v38, 0.0 }
 0x856   : > { %4455 = vadd.xlane.f32.xlu2 %v4454_v49  ;;  %v4291_v16 = vpop.xlane.xlu0 %4290  ;;  %v8367_v40 = vadd.f32 %v8827_v19, %v4123_v20 }
 0x857   : > { %v4355_v48 = vmul.f32 %v4291_v16, %v5768_v23 }
 0x85b   : > { %4521 = vadd.xlane.f32.xlu0 %v4520_v59 }
 0x85e   : > { %4314 = vadd.xlane.f32.xlu2 %v4313_v9  ;;  %v4441_v35 = vpop.xlane.xlu0 %4440 }
 0x85f   : > { %v4533_v18 = vmul.f32 %v4441_v35, %v5768_v23 }
 0x861   : > { %v4565_v7 = vadd.f32 1e-05, %v4533_v18  ;;  %v8829_v18 = vld [vmem:[#allocation5_spill] sm:$0xff] }
 0x863   : > { %5457 = vrsqrt.f32 %v4565_v7  ;;  %4530 = vadd.xlane.f32.xlu0 %v4529_v56  ;;  %vm4612_vm7 = vweird.f32 %v4565_v7  ;;  %v4331_v56 = vsel %vm444_vm1, %v8367_v40, 0.0 }
 0x866   : > { %4464 = vadd.xlane.f32.xlu2 %v4463_v33  ;;  %v4300_v27 = vpop.xlane.xlu0 %4299 }
 0x867   : > { %v4358_v5 = vmul.f32 %v4300_v27, %v5768_v23 }
 0x869   : > { %v5458_v29 = vpop.eup %5457 }
 0x86a   : > { %v4607_v55 = vmul.f32 %v5458_v29, %v4565_v7  ;;  %vm4613_vm10 = vweird.f32 %v5458_v29  ;;  %v8830_v7 = vmax.f32 %v8829_v18, 0.0 }
 0x86b   : > { %vm4614_vm0 = vmor %vm4612_vm7, %vm4613_vm10 }
 0x86c   : > { %v4608_v10 = vmul.f32 %v5458_v29, %v4607_v55 }
 0x86e   : > { %v4609_v50 = vmul.f32 0.5, %v4608_v10  ;;  %4323 = vadd.xlane.f32.xlu2 %v4322_v3  ;;  %v4450_v22 = vpop.xlane.xlu0 %4449  ;;  %v8831_v3 = vld [vmem:[#allocation36_spill] sm:$0xff] }
 0x86f   : > { %v4536_v0 = vmul.f32 %v4450_v22, %v5768_v23  ;;  %v8832_v22 = vld [vmem:[#allocation37_spill] sm:$0xff] }
 0x870   : > { %v4610_v11 = vsub.f32 1.5, %v4609_v50  ;;  %v8385_v50 = vsub.f32 %v8831_v3, %v4358_v5 }
 0x871   : > { %v4568_v41 = vadd.f32 1e-05, %v4536_v0 }
 0x872   : > { %v4611_v52 = vmul.f32 %v5458_v29, %v4610_v11  ;;  %v4422_v39 = vmul.f32 %v8385_v50, %v8385_v50 }
 0x873   : > { %5459 = vrsqrt.f32 %v4568_v41  ;;  %vm4642_vm2 = vweird.f32 %v4568_v41 }
 0x874   : > { %v4615_v60 = vsel %vm4614_vm0, %v5458_v29, %v4611_v52 }
 0x875   : > { %v4917_v13 = vmul.f32 %v4615_v60, %v8111_v45  ;;  %v8372_v45 = vsub.f32 %v8828_v46, %v4355_v48 }
 0x876   : > { %4473 = vadd.xlane.f32.xlu2 %v4472_v2  ;;  %v4309_v24 = vpop.xlane.xlu0 %4308 }
 0x877   : > { %v4953_v6 = vmul.f32 %v8129_v51, %v4917_v13  ;;  %v4419_v55 = vmul.f32 %v8372_v45, %v8372_v45 }
 0x879   : > { %v5460_v49 = vpop.eup %5459  ;;  %v4989_v59 = vadd.f32 %v8134_v34, %v4953_v6  ;;  %v4481_v11 = vsel %vm444_vm1, %v4419_v55, 0.0  ;;  %v8833_v6 = vld [vmem:[#allocation7_spill] sm:$0xff] }
 0x87a   : > { %v4637_v9 = vmul.f32 %v5460_v49, %v4568_v41  ;;  %vm4643_vm15 = vweird.f32 %v5460_v49  ;;  %v4361_v41 = vmul.f32 %v4309_v24, %v5768_v23 }
 0x87b   : > { %v5021_v35 = vmax.f32 %v4989_v59, 0.0  ;;  %vm4644_vm3 = vmor %vm4642_vm2, %vm4643_vm15  ;;  %v4490_v59 = vsel %vm444_vm1, %v4422_v39, 0.0 }
 0x87c   : > { %v4638_v36 = vmul.f32 %v5460_v49, %v4637_v9  ;;  %v8397_v48 = vsub.f32 %v8164_v54, %v4361_v41 }
 0x87d   : > { %v5053_v21 = vadd.f32 %v5021_v35, %v8830_v7 }
 0x87e   : > { %v4639_v30 = vmul.f32 0.5, %v4638_v36  ;;  %4332 = vadd.xlane.f32.xlu2 %v4331_v56  ;;  %v4459_v33 = vpop.xlane.xlu0 %4458  ;;  %v4425_v7 = vmul.f32 %v8397_v48, %v8397_v48 }
 0x87f   : > { %5085 = vst.msk [vmem:[%s8153_s21 + $0x8] sm:$0xff] %vm444_vm1, %v5053_v21  ;;  %v4539_v16 = vmul.f32 %v4459_v33, %v5768_v23 }
 0x880   : > { %v4640_v29 = vsub.f32 1.5, %v4639_v30  ;;  %v4499_v33 = vsel %vm444_vm1, %v4425_v7, 0.0 }
 0x881   : > { %v4571_v25 = vadd.f32 1e-05, %v4539_v16 }
 0x882   : > { %v4641_v10 = vmul.f32 %v5460_v49, %v4640_v29 }
 0x883   : > { %5461 = vrsqrt.f32 %v4571_v25  ;;  %vm4672_vm14 = vweird.f32 %v4571_v25 }
 0x884   : > { %v4645_v26 = vsel %vm4644_vm3, %v5460_v49, %v4641_v10  ;;  %v8834_v49 = vmax.f32 %v8833_v6, 0.0 }
 0x885   : > { %v4920_v0 = vmul.f32 %v4645_v26, %v8832_v22 }
 0x886   : > { %4482 = vadd.xlane.f32.xlu2 %v4481_v11  ;;  %v4318_v38 = vpop.xlane.xlu0 %4317 }
 0x887   : > { %v4956_v27 = vmul.f32 %v8129_v51, %v4920_v0  ;;  %v4364_v46 = vmul.f32 %v4318_v38, %v5768_v23 }
 0x889   : > { %v5462_v52 = vpop.eup %5461  ;;  %v4992_v60 = vadd.f32 %v8134_v34, %v4956_v27  ;;  %v8408_v30 = vsub.f32 %v8189_v8, %v4364_v46  ;;  %v8835_v8 = vld [vmem:[#allocation9_spill] sm:$0xff] }
 0x88a   : > { %v4667_v20 = vmul.f32 %v5462_v52, %v4571_v25  ;;  %vm4673_vm4 = vweird.f32 %v5462_v52  ;;  %v8836_v22 = vmax.f32 %v8835_v8, 0.0 }
 0x88b   : > { %v5024_v13 = vmax.f32 %v4992_v60, 0.0  ;;  %vm4674_vm5 = vmor %vm4672_vm14, %vm4673_vm4  ;;  %v4428_v10 = vmul.f32 %v8408_v30, %v8408_v30 }
 0x88c   : > { %v4668_v2 = vmul.f32 %v5462_v52, %v4667_v20 }
 0x88d   : > { %v5056_v19 = vadd.f32 %v5024_v13, %v8834_v49  ;;  %v4508_v38 = vsel %vm444_vm1, %v4428_v10, 0.0 }
 0x88e   : > { %v4669_v9 = vmul.f32 0.5, %v4668_v2  ;;  %4491 = vadd.xlane.f32.xlu2 %v4490_v59  ;;  %v4468_v35 = vpop.xlane.xlu0 %4467 }
 0x88f   : > { %5088 = vst.msk [vmem:[%s8153_s21 + $0x20] sm:$0xff] %vm444_vm1, %v5056_v19  ;;  %v4542_v24 = vmul.f32 %v4468_v35, %v5768_v23 }
 0x890   : > { %v4670_v36 = vsub.f32 1.5, %v4669_v9 }
 0x891   : > { %v4574_v18 = vadd.f32 1e-05, %v4542_v24 }
 0x892   : > { %v4671_v21 = vmul.f32 %v5462_v52, %v4670_v36 }
 0x893   : > { %5463 = vrsqrt.f32 %v4574_v18  ;;  %vm4702_vm8 = vweird.f32 %v4574_v18 }
 0x894   : > { %v4675_v54 = vsel %vm4674_vm5, %v5462_v52, %v4671_v21 }
 0x895   : > { %v4923_v56 = vmul.f32 %v4675_v54, %v8172_v62 }
 0x896   : > { %4500 = vadd.xlane.f32.xlu2 %v4499_v33  ;;  %v4327_v16 = vpop.xlane.xlu0 %4326 }
 0x897   : > { %v4959_v29 = vmul.f32 %v8129_v51, %v4923_v56  ;;  %v4367_v25 = vmul.f32 %v4327_v16, %v5768_v23  ;;  %v8837_v56 = vld [vmem:[#allocation11_spill] sm:$0xff] }
 0x898   : > { %v8838_v33 = vmax.f32 %v8837_v56, 0.0 }
 0x899   : > { %v5464_v5 = vpop.eup %5463  ;;  %v4995_v55 = vadd.f32 %v8134_v34, %v4959_v29  ;;  %v8419_v11 = vsub.f32 %v8211_v14, %v4367_v25 }
 0x89a   : > { %v4697_v26 = vmul.f32 %v5464_v5, %v4574_v18  ;;  %vm4703_vm6 = vweird.f32 %v5464_v5 }
 0x89b   : > { %v5027_v62 = vmax.f32 %v4995_v55, 0.0  ;;  %v4431_v20 = vmul.f32 %v8419_v11, %v8419_v11  ;;  %vm4704_vm9 = vmor %vm4702_vm8, %vm4703_vm6 }
 0x89c   : > { %v4698_v3 = vmul.f32 %v5464_v5, %v4697_v26 }
 0x89d   : > { %v5059_v0 = vadd.f32 %v5027_v62, %v8836_v22  ;;  %v4517_v6 = vsel %vm444_vm1, %v4431_v20, 0.0 }
 0x89e   : > { %v4699_v27 = vmul.f32 0.5, %v4698_v3  ;;  %4509 = vadd.xlane.f32.xlu2 %v4508_v38  ;;  %v4477_v52 = vpop.xlane.xlu0 %4476 }
 0x89f   : > { %5091 = vst.msk [vmem:[%s8153_s21 + $0x38] sm:$0xff] %vm444_vm1, %v5059_v0  ;;  %v4545_v60 = vmul.f32 %v4477_v52, %v5768_v23 }
 0x8a0   : > { %v4700_v41 = vsub.f32 1.5, %v4699_v27 }
 0x8a1   : > { %v4577_v39 = vadd.f32 1e-05, %v4545_v60 }
 0x8a2   : > { %v4701_v13 = vmul.f32 %v5464_v5, %v4700_v41 }
 0x8a3   : > { %5465 = vrsqrt.f32 %v4577_v39  ;;  %vm4732_vm12 = vweird.f32 %v4577_v39 }
 0x8a4   : > { %v4705_v14 = vsel %vm4704_vm9, %v5464_v5, %v4701_v13 }
 0x8a5   : > { %v4926_v2 = vmul.f32 %v4705_v14, %v8195_v1 }
 0x8a6   : > { %4518 = vadd.xlane.f32.xlu2 %v4517_v6  ;;  %v4336_v49 = vpop.xlane.xlu0 %4335 }
 0x8a7   : > { %v4962_v19 = vmul.f32 %v8129_v51, %v4926_v2  ;;  %v4370_v59 = vmul.f32 %v4336_v49, %v5768_v23 }
 0x8a9   : > { %v5466_v9 = vpop.eup %5465  ;;  %v4998_v35 = vadd.f32 %v8134_v34, %v4962_v19  ;;  %v8433_v24 = vsub.f32 %v8239_v53, %v4370_v59  ;;  %v4438_v36 = vpop.xlane.xlu2 %4437 }
 0x8aa   : > { %v4727_v46 = vmul.f32 %v5466_v9, %v4577_v39  ;;  %v4532_v18 = vmul.f32 %v4438_v36, %v5768_v23  ;;  %vm4733_vm11 = vweird.f32 %v5466_v9 }
 0x8ab   : > { %v5030_v1 = vmax.f32 %v4998_v35, 0.0  ;;  %v4434_v7 = vmul.f32 %v8433_v24, %v8433_v24  ;;  %vm4734_vm13 = vmor %vm4732_vm12, %vm4733_vm11 }
 0x8ac   : > { %v4728_v21 = vmul.f32 %v5466_v9, %v4727_v46  ;;  %v4564_v54 = vadd.f32 1e-05, %v4532_v18  ;;  %v8839_v46 = vld [vmem:[#allocation13_spill] sm:$0xff] }
 0x8ad   : > { %v5062_v16 = vadd.f32 %v5030_v1, %v8838_v33  ;;  %v4526_v29 = vsel %vm444_vm1, %v4434_v7, 0.0  ;;  %v8840_v18 = vmax.f32 %v8839_v46, 0.0 }
 0x8ae   : > { %v4729_v5 = vmul.f32 0.5, %v4728_v21  ;;  %5467 = vrsqrt.f32 %v4564_v54  ;;  %4527 = vadd.xlane.f32.xlu2 %v4526_v29  ;;  %v4486_v53 = vpop.xlane.xlu0 %4485  ;;  %vm4602_vm7 = vweird.f32 %v4564_v54 }
 0x8af   : > { %5094 = vst.msk [vmem:[%s8153_s21 + $0x50] sm:$0xff] %vm444_vm1, %v5062_v16  ;;  %v4548_v55 = vmul.f32 %v4486_v53, %v5768_v23 }
 0x8b0   : > { %v4730_v25 = vsub.f32 1.5, %v4729_v5 }
 0x8b1   : > { %v4580_v10 = vadd.f32 1e-05, %v4548_v55  ;;  %v4297_v26 = vpop.xlane.xlu2 %4296 }
 0x8b2   : > { %v4731_v62 = vmul.f32 %v5466_v9, %v4730_v25  ;;  %v4357_v3 = vmul.f32 %v4297_v26, %v5768_v23 }
 0x8b3   : > { %5469 = vrsqrt.f32 %v4580_v10  ;;  %vm4762_vm2 = vweird.f32 %v4580_v10 }
 0x8b4   : > { %v5468_v8 = vpop.eup %5467  ;;  %v4735_v22 = vsel %vm4734_vm13, %v5466_v9, %v4731_v62  ;;  %v8446_v0 = vsub.f32 %v8261_v4, %v4357_v3 }
 0x8b5   : > { %v4929_v38 = vmul.f32 %v4735_v22, %v8217_v58  ;;  %v4597_v27 = vmul.f32 %v5468_v8, %v4564_v54  ;;  %vm4603_vm10 = vweird.f32 %v5468_v8 }
 0x8b6   : > { %v4495_v52 = vpop.xlane.xlu0 %4494  ;;  %v4421_v60 = vmul.f32 %v8446_v0, %v8446_v0  ;;  %vm4604_vm0 = vmor %vm4602_vm7, %vm4603_vm10 }
 0x8b7   : > { %v4965_v41 = vmul.f32 %v8129_v51, %v4929_v38  ;;  %v4598_v20 = vmul.f32 %v5468_v8, %v4597_v27  ;;  %v4551_v39 = vmul.f32 %v4495_v52, %v5768_v23 }
 0x8b8   : > { %v4487_v13 = vsel %vm444_vm1, %v4421_v60, 0.0 }
 0x8b9   : > { %v5470_v14 = vpop.eup %5469  ;;  %v5001_v2 = vadd.f32 %v8134_v34, %v4965_v41  ;;  %v4599_v6 = vmul.f32 0.5, %v4598_v20  ;;  %v8455_v4 = vadd.f32 1e-05, %v4551_v39  ;;  %4488 = vadd.xlane.f32.xlu1 %v4487_v13  ;;  %v4447_v58 = vpop.xlane.xlu2 %4446 }
 0x8ba   : > { %v4757_v49 = vmul.f32 %v5470_v14, %v4580_v10  ;;  %v4535_v19 = vmul.f32 %v4447_v58, %v5768_v23  ;;  %vm4763_vm15 = vweird.f32 %v5470_v14 }
 0x8bb   : > { %v5033_v59 = vmax.f32 %v5001_v2, 0.0  ;;  %v4600_v9 = vsub.f32 1.5, %v4599_v6  ;;  %5471 = vrsqrt.f32 %v8455_v4  ;;  %vm4764_vm3 = vmor %vm4762_vm2, %vm4763_vm15  ;;  %v8841_v6 = vld [vmem:[#allocation4_spill] sm:$0xff]  ;;  %vm4792_vm14 = vweird.f32 %v8455_v4 }
 0x8bc   : > { %v4758_v35 = vmul.f32 %v5470_v14, %v4757_v49  ;;  %v8459_v36 = vadd.f32 1e-05, %v4535_v19  ;;  %v8842_v58 = vmax.f32 %v8841_v6, 0.0 }
 0x8bd   : > { %v5065_v1 = vadd.f32 %v5033_v59, %v8840_v18  ;;  %v4601_v7 = vmul.f32 %v5468_v8, %v4600_v9 }
 0x8be   : > { %v4759_v21 = vmul.f32 0.5, %v4758_v35  ;;  %5473 = vrsqrt.f32 %v8459_v36  ;;  %v4504_v56 = vpop.xlane.xlu0 %4503  ;;  %vm4632_vm8 = vweird.f32 %v8459_v36 }
 0x8bf   : > { %5097 = vst.msk [vmem:[%s8153_s21 + $0x68] sm:$0xff] %vm444_vm1, %v5065_v1  ;;  %v4605_v33 = vsel %vm4604_vm0, %v5468_v8, %v4601_v7  ;;  %v4554_v16 = vmul.f32 %v4504_v56, %v5768_v23 }
 0x8c0   : > { %v4916_v29 = vmul.f32 %v4605_v33, %v8243_v37  ;;  %v4760_v5 = vsub.f32 1.5, %v4759_v21 }
 0x8c1   : > { %v5472_v53 = vpop.eup %5471  ;;  %v8468_v55 = vadd.f32 1e-05, %v4554_v16  ;;  %v4306_v25 = vpop.xlane.xlu2 %4305 }
 0x8c2   : > { %v4952_v54 = vmul.f32 %v8129_v51, %v4916_v29  ;;  %v4761_v26 = vmul.f32 %v5470_v14, %v4760_v5  ;;  %v4787_v62 = vmul.f32 %v5472_v53, %v8455_v4  ;;  %v4360_v3 = vmul.f32 %v4306_v25, %v5768_v23  ;;  %v8843_v5 = vld [vmem:[#allocation15_spill] sm:$0xff] }
 0x8c3   : > { %5475 = vrsqrt.f32 %v8468_v55  ;;  %vm4793_vm4 = vweird.f32 %v5472_v53  ;;  %v8844_v25 = vmax.f32 %v8843_v5, 0.0  ;;  %vm4822_vm12 = vweird.f32 %v8468_v55 }
 0x8c4   : > { %v5474_v8 = vpop.eup %5473  ;;  %v4988_v37 = vadd.f32 %v8134_v34, %v4952_v54  ;;  %v4765_v22 = vsel %vm4764_vm3, %v5470_v14, %v4761_v26  ;;  %v4788_v38 = vmul.f32 %v5472_v53, %v4787_v62  ;;  %v8478_v60 = vsub.f32 %v8291_v43, %v4360_v3  ;;  %vm4794_vm5 = vmor %vm4792_vm14, %vm4793_vm4 }
 0x8c5   : > { %v4932_v27 = vmul.f32 %v4765_v22, %v8246_v44  ;;  %v4627_v52 = vmul.f32 %v5474_v8, %v8459_v36  ;;  %vm4633_vm6 = vweird.f32 %v5474_v8 }
 0x8c6   : > { %v5020_v10 = vmax.f32 %v4988_v37, 0.0  ;;  %v4789_v41 = vmul.f32 0.5, %v4788_v38  ;;  %v4513_v20 = vpop.xlane.xlu0 %4512  ;;  %v4424_v14 = vmul.f32 %v8478_v60, %v8478_v60  ;;  %vm4634_vm9 = vmor %vm4632_vm8, %vm4633_vm6 }
 0x8c7   : > { %v4968_v39 = vmul.f32 %v8129_v51, %v4932_v27  ;;  %v4628_v13 = vmul.f32 %v5474_v8, %v4627_v52  ;;  %v4557_v2 = vmul.f32 %v4513_v20, %v5768_v23 }
 0x8c8   : > { %v5052_v44 = vadd.f32 %v5020_v10, %v8842_v58  ;;  %v4790_v49 = vsub.f32 1.5, %v4789_v41  ;;  %v4496_v35 = vsel %vm444_vm1, %v4424_v14, 0.0  ;;  %v8845_v58 = vld [vmem:[#allocation18_spill] sm:$0xff] }
 0x8c9   : > { %v5476_v19 = vpop.eup %5475  ;;  %v5004_v43 = vadd.f32 %v8134_v34, %v4968_v39  ;;  %v4629_v59 = vmul.f32 0.5, %v4628_v13  ;;  %v8487_v9 = vadd.f32 1e-05, %v4557_v2  ;;  %v4456_v46 = vpop.xlane.xlu2 %4455  ;;  %4497 = vadd.xlane.f32.xlu1 %v4496_v35 }
 0x8ca   : > { %5084 = vst.msk [vmem:[%s8153_s21] sm:$0xff] %vm444_vm1, %v5052_v44  ;;  %v4791_v18 = vmul.f32 %v5472_v53, %v4790_v49  ;;  %v4817_v1 = vmul.f32 %v5476_v19, %v8468_v55  ;;  %v4538_v7 = vmul.f32 %v4456_v46, %v5768_v23  ;;  %vm4823_vm11 = vweird.f32 %v5476_v19 }
 0x8cb   : > { %v5036_v21 = vmax.f32 %v5004_v43, 0.0  ;;  %v4630_v56 = vsub.f32 1.5, %v4629_v59  ;;  %5477 = vrsqrt.f32 %v8487_v9  ;;  %vm4824_vm13 = vmor %vm4822_vm12, %vm4823_vm11  ;;  %v8846_v44 = vmax.f32 %v8845_v58, 0.0 }
 0x8cc   : > { %v4795_v33 = vsel %vm4794_vm5, %v5472_v53, %v4791_v18  ;;  %v4818_v16 = vmul.f32 %v5476_v19, %v4817_v1  ;;  %v8496_v29 = vadd.f32 1e-05, %v4538_v7  ;;  %vm4852_vm7 = vweird.f32 %v8487_v9 }
 0x8cd   : > { %v5068_v54 = vadd.f32 %v5036_v21, %v8844_v25  ;;  %v4935_v4 = vmul.f32 %v4795_v33, %v8265_v61  ;;  %v4631_v26 = vmul.f32 %v5474_v8, %v4630_v56  ;;  %v8847_v21 = vld [vmem:[#allocation6_spill] sm:$0xff] }
 0x8ce   : > { %v4819_v62 = vmul.f32 0.5, %v4818_v16  ;;  %5479 = vrsqrt.f32 %v8496_v29  ;;  %v4522_v3 = vpop.xlane.xlu0 %4521  ;;  %v8848_v56 = vmax.f32 %v8847_v21, 0.0  ;;  %vm4662_vm2 = vweird.f32 %v8496_v29 }
 0x8cf   : > { %5100 = vst.msk [vmem:[%s8153_s21 + $0x80] sm:$0xff] %vm444_vm1, %v5068_v54  ;;  %v4971_v53 = vmul.f32 %v8129_v51, %v4935_v4  ;;  %v4635_v37 = vsel %vm4634_vm9, %v5474_v8, %v4631_v26  ;;  %v4560_v22 = vmul.f32 %v4522_v3, %v5768_v23 }
 0x8d0   : > { %v4919_v38 = vmul.f32 %v4635_v37, %v8269_v31  ;;  %v4820_v27 = vsub.f32 1.5, %v4819_v62 }
 0x8d1   : > { %v5478_v61 = vpop.eup %5477  ;;  %v5007_v52 = vadd.f32 %v8134_v34, %v4971_v53  ;;  %v8509_v36 = vadd.f32 1e-05, %v4560_v22  ;;  %v4315_v10 = vpop.xlane.xlu2 %4314 }
 0x8d2   : > { %v4955_v41 = vmul.f32 %v8129_v51, %v4919_v38  ;;  %v4821_v20 = vmul.f32 %v5476_v19, %v4820_v27  ;;  %v4847_v39 = vmul.f32 %v5478_v61, %v8487_v9  ;;  %v4363_v31 = vmul.f32 %v4315_v10, %v5768_v23 }
 0x8d3   : > { %v5039_v8 = vmax.f32 %v5007_v52, 0.0  ;;  %5481 = vrsqrt.f32 %v8509_v36  ;;  %vm4853_vm10 = vweird.f32 %v5478_v61  ;;  %v8849_v52 = vld [vmem:[#allocation21_spill] sm:$0xff]  ;;  %vm4882_vm14 = vweird.f32 %v8509_v36 }
 0x8d4   : > { %v5480_v13 = vpop.eup %5479  ;;  %v4991_v2 = vadd.f32 %v8134_v34, %v4955_v41  ;;  %v4825_v14 = vsel %vm4824_vm13, %v5476_v19, %v4821_v20  ;;  %v4848_v6 = vmul.f32 %v5478_v61, %v4847_v39  ;;  %v8522_v46 = vsub.f32 %v8328_v47, %v4363_v31  ;;  %vm4854_vm0 = vmor %vm4852_vm7, %vm4853_vm10 }
 0x8d5   : > { %v5071_v49 = vadd.f32 %v5039_v8, %v8846_v44  ;;  %v4938_v43 = vmul.f32 %v4825_v14, %v8280_v15  ;;  %v4657_v55 = vmul.f32 %v5480_v13, %v8496_v29  ;;  %vm4663_vm15 = vweird.f32 %v5480_v13  ;;  %v8554_v29 = vld [vmem:[%s8719_s11] ss:$0 sm:$0xff] }
 0x8d6   : > { %v5023_v59 = vmax.f32 %v4991_v2, 0.0  ;;  %v4849_v35 = vmul.f32 0.5, %v4848_v6  ;;  %v4531_v18 = vpop.xlane.xlu0 %4530  ;;  %v4427_v16 = vmul.f32 %v8522_v46, %v8522_v46  ;;  %v8850_v10 = vmax.f32 %v8849_v52, 0.0  ;;  %vm4664_vm3 = vmor %vm4662_vm2, %vm4663_vm15  ;;  %v8855_v52 = vld [vmem:[#allocation26_spill] sm:$0xff] }
 0x8d7   : > { %5103 = vst.msk [vmem:[%s8153_s21 + $0x98] sm:$0xff] %vm444_vm1, %v5071_v49  ;;  %v4974_v1 = vmul.f32 %v8129_v51, %v4938_v43  ;;  %v4658_v19 = vmul.f32 %v5480_v13, %v4657_v55  ;;  %v4563_v7 = vmul.f32 %v4531_v18, %v5768_v23 }
 0x8d8   : > { %v5055_v33 = vadd.f32 %v5023_v59, %v8848_v56  ;;  %v4850_v15 = vsub.f32 1.5, %v4849_v35  ;;  %v4505_v3 = vsel %vm444_vm1, %v4427_v16, 0.0  ;;  %v8851_v35 = vld [vmem:[#allocation22_spill] sm:$0xff] }
 0x8d9   : > { %v5482_v5 = vpop.eup %5481  ;;  %v5010_v47 = vadd.f32 %v8134_v34, %v4974_v1  ;;  %v4659_v25 = vmul.f32 0.5, %v4658_v19  ;;  %v8533_v54 = vadd.f32 1e-05, %v4563_v7  ;;  %v4465_v4 = vpop.xlane.xlu2 %4464  ;;  %4506 = vadd.xlane.f32.xlu1 %v4505_v3  ;;  %v8852_v18 = vmax.f32 %v8851_v35, 0.0 }
 0x8da   : > { %5087 = vst.msk [vmem:[%s8153_s21 + $0x18] sm:$0xff] %vm444_vm1, %v5055_v33  ;;  %v4851_v26 = vmul.f32 %v5478_v61, %v4850_v15  ;;  %v4877_v62 = vmul.f32 %v5482_v5, %v8509_v36  ;;  %v4541_v27 = vmul.f32 %v4465_v4, %v5768_v23  ;;  %vm4883_vm4 = vweird.f32 %v5482_v5 }
 0x8db   : > { %v5042_v53 = vmax.f32 %v5010_v47, 0.0  ;;  %v4660_v37 = vsub.f32 1.5, %v4659_v25  ;;  %5483 = vrsqrt.f32 %v8533_v54  ;;  %vm4884_vm5 = vmor %vm4882_vm14, %vm4883_vm4  ;;  %vm4912_vm8 = vweird.f32 %v8533_v54 }
 0x8dc   : > { %v4855_v22 = vsel %vm4854_vm0, %v5478_v61, %v4851_v26  ;;  %v4878_v38 = vmul.f32 %v5482_v5, %v4877_v62  ;;  %v4573_v8 = vadd.f32 1e-05, %v4541_v27 }
 0x8dd   : > { %v5074_v41 = vadd.f32 %v5042_v53, %v8850_v10  ;;  %v4941_v9 = vmul.f32 %v4855_v22, %v8295_v57  ;;  %v4661_v20 = vmul.f32 %v5480_v13, %v4660_v37  ;;  %v8856_v10 = vmax.f32 %v8855_v52, 0.0 }
 0x8de   : > { %v4879_v39 = vmul.f32 0.5, %v4878_v38  ;;  %5485 = vrsqrt.f32 %v4573_v8  ;;  %vm4692_vm12 = vweird.f32 %v4573_v8 }
 0x8df   : > { %5106 = vst.msk [vmem:[%s8153_s21 + $0xb0] sm:$0xff] %vm444_vm1, %v5074_v41  ;;  %v4977_v31 = vmul.f32 %v8129_v51, %v4941_v9  ;;  %v4665_v2 = vsel %vm4664_vm3, %v5480_v13, %v4661_v20 }
 0x8e0   : > { %v4922_v61 = vmul.f32 %v4665_v2, %v8301_v63  ;;  %v4880_v14 = vsub.f32 1.5, %v4879_v39 }
 0x8e1   : > { %v5484_v6 = vpop.eup %5483  ;;  %v5013_v58 = vadd.f32 %v8134_v34, %v4977_v31  ;;  %v4324_v57 = vpop.xlane.xlu2 %4323  ;;  %v8563_v34 = vld [vmem:[%s8720_s12] ss:$0 sm:$0xff] }
 0x8e2   : > { %v4958_v44 = vmul.f32 %v8554_v29, %v4922_v61  ;;  %v4881_v49 = vmul.f32 %v5482_v5, %v4880_v14  ;;  %v4907_v51 = vmul.f32 %v5484_v6, %v8533_v54  ;;  %v4366_v13 = vmul.f32 %v4324_v57, %v5768_v23 }
 0x8e3   : > { %v5045_v63 = vmax.f32 %v5013_v58, 0.0  ;;  %vm4913_vm6 = vweird.f32 %v5484_v6 }
 0x8e4   : > { %v4994_v43 = vadd.f32 %v8563_v34, %v4958_v44  ;;  %v4885_v55 = vsel %vm4884_vm5, %v5482_v5, %v4881_v49  ;;  %v4908_v59 = vmul.f32 %v5484_v6, %v4907_v51  ;;  %v8570_v19 = vsub.f32 %v8350_v32, %v4366_v13  ;;  %v5486_v7 = vpop.eup %5485  ;;  %v8853_v5 = vld [vmem:[#allocation8_spill] sm:$0xff]  ;;  %vm4914_vm9 = vmor %vm4912_vm8, %vm4913_vm6  ;;  %v8857_v49 = vld [vmem:[#allocation29_spill] sm:$0xff] }
 0x8e5   : > { %v5077_v1 = vadd.f32 %v5045_v63, %v8852_v18  ;;  %v4944_v36 = vmul.f32 %v4885_v55, %v8313_v12  ;;  %v4687_v15 = vmul.f32 %v5486_v7, %v4573_v8  ;;  %v8854_v47 = vmax.f32 %v8853_v5, 0.0  ;;  %v8859_v18 = vld [vmem:[#allocation10_spill] sm:$0xff] }
 0x8e6   : > { %v5026_v21 = vmax.f32 %v4994_v43, 0.0  ;;  %v4909_v56 = vmul.f32 0.5, %v4908_v59  ;;  %v4430_v16 = vmul.f32 %v8570_v19, %v8570_v19  ;;  %vm4693_vm11 = vweird.f32 %v5486_v7 }
 0x8e7   : > { %5109 = vst.msk [vmem:[%s8153_s21 + $0xc8] sm:$0xff] %vm444_vm1, %v5077_v1  ;;  %v4980_v33 = vmul.f32 %v8554_v29, %v4944_v36  ;;  %v4688_v32 = vmul.f32 %v5486_v7, %v4687_v15  ;;  %vm4694_vm13 = vmor %vm4692_vm12, %vm4693_vm11  ;;  %v8858_v51 = vmax.f32 %v8857_v49, 0.0  ;;  %v8860_v1 = vmax.f32 %v8859_v18, 0.0 }
 0x8e8   : > { %v5058_v25 = vadd.f32 %v5026_v21, %v8854_v47  ;;  %v4910_v4 = vsub.f32 1.5, %v4909_v56  ;;  %v4514_v26 = vsel %vm444_vm1, %v4430_v16, 0.0 }
 0x8e9   : > { %v5016_v12 = vadd.f32 %v8563_v34, %v4980_v33  ;;  %v4474_v62 = vpop.xlane.xlu2 %4473  ;;  %4515 = vadd.xlane.f32.xlu1 %v4514_v26  ;;  %v4689_v22 = vmul.f32 0.5, %v4688_v32 }
 0x8ea   : > { %5090 = vst.msk [vmem:[%s8153_s21 + $0x30] sm:$0xff] %vm444_vm1, %v5058_v25  ;;  %v4911_v3 = vmul.f32 %v5484_v6, %v4910_v4  ;;  %v4544_v53 = vmul.f32 %v4474_v62, %v5768_v23 }
 0x8eb   : > { %v5048_v37 = vmax.f32 %v5016_v12, 0.0  ;;  %v4690_v20 = vsub.f32 1.5, %v4689_v22 }
 0x8ec   : > { %v4915_v38 = vsel %vm4914_vm9, %v5484_v6, %v4911_v3  ;;  %v4576_v27 = vadd.f32 1e-05, %v4544_v53  ;;  %v8861_v53 = vld [vmem:[#allocation12_spill] sm:$0xff] }
 0x8ed   : > { %v5080_v41 = vadd.f32 %v5048_v37, %v8856_v10  ;;  %v4947_v9 = vmul.f32 %v4915_v38, %v8332_v42  ;;  %v4691_v39 = vmul.f32 %v5486_v7, %v4690_v20  ;;  %v8862_v37 = vmax.f32 %v8861_v53, 0.0 }
 0x8ee   : > { %5487 = vrsqrt.f32 %v4576_v27  ;;  %vm4722_vm7 = vweird.f32 %v4576_v27 }
 0x8ef   : > { %5112 = vst.msk [vmem:[%s8153_s21 + $0xe0] sm:$0xff] %vm444_vm1, %v5080_v41  ;;  %v4983_v54 = vmul.f32 %v8554_v29, %v4947_v9  ;;  %v4695_v2 = vsel %vm4694_vm13, %v5486_v7, %v4691_v39 }
 0x8f0   : > { %v4925_v14 = vmul.f32 %v4695_v2, %v8336_v28 }
 0x8f1   : > { %v5019_v31 = vadd.f32 %v8563_v34, %v4983_v54  ;;  %v4333_v61 = vpop.xlane.xlu2 %4332 }
 0x8f2   : > { %v4369_v6 = vmul.f32 %v4333_v61, %v5768_v23  ;;  %v4961_v57 = vmul.f32 %v8554_v29, %v4925_v14 }
 0x8f3   : > { %v5051_v42 = vmax.f32 %v5019_v31, 0.0 }
 0x8f4   : > { %v5488_v58 = vpop.eup %5487  ;;  %v8596_v44 = vsub.f32 %v8367_v40, %v4369_v6  ;;  %v4997_v13 = vadd.f32 %v8563_v34, %v4961_v57 }
 0x8f5   : > { %v5083_v8 = vadd.f32 %v5051_v42, %v8858_v51  ;;  %v4717_v63 = vmul.f32 %v5488_v58, %v4576_v27  ;;  %vm4723_vm10 = vweird.f32 %v5488_v58 }
 0x8f6   : > { %v4433_v43 = vmul.f32 %v8596_v44, %v8596_v44  ;;  %v5029_v55 = vmax.f32 %v4997_v13, 0.0  ;;  %vm4724_vm0 = vmor %vm4722_vm7, %vm4723_vm10 }
 0x8f7   : > { %5115 = vst.msk [vmem:[%s8153_s21 + $0xf8] sm:$0xff] %vm444_vm1, %v5083_v8  ;;  %v4718_v28 = vmul.f32 %v5488_v58, %v4717_v63 }
 0x8f8   : > { %v4523_v59 = vsel %vm444_vm1, %v4433_v43, 0.0  ;;  %v5061_v36 = vadd.f32 %v5029_v55, %v8860_v1  ;;  %v8863_v43 = vld [vmem:[#allocation14_spill] sm:$0xff] }
 0x8f9   : > { %v4719_v35 = vmul.f32 0.5, %v4718_v28  ;;  %4524 = vadd.xlane.f32.xlu1 %v4523_v59  ;;  %v4483_v40 = vpop.xlane.xlu2 %4482  ;;  %v8864_v28 = vmax.f32 %v8863_v43, 0.0 }
 0x8fa   : > { %v4547_v7 = vmul.f32 %v4483_v40, %v5768_v23  ;;  %5093 = vst.msk [vmem:[%s8153_s21 + $0x48] sm:$0xff] %vm444_vm1, %v5061_v36 }
 0x8fb   : > { %v4720_v21 = vsub.f32 1.5, %v4719_v35 }
 0x8fc   : > { %v4579_v56 = vadd.f32 1e-05, %v4547_v7 }
 0x8fd   : > { %v4721_v33 = vmul.f32 %v5488_v58, %v4720_v21 }
 0x8fe   : > { %5489 = vrsqrt.f32 %v4579_v56  ;;  %vm4752_vm2 = vweird.f32 %v4579_v56 }
 0x8ff   : > { %v4725_v15 = vsel %vm4724_vm0, %v5488_v58, %v4721_v33 }
 0x900   : > { %v4928_v16 = vmul.f32 %v4725_v15, %v8354_v17 }
 0x901   : > { %v4492_v5 = vpop.xlane.xlu2 %4491 }
 0x902   : > { %v4964_v47 = vmul.f32 %v8554_v29, %v4928_v16  ;;  %v4550_v25 = vmul.f32 %v4492_v5, %v5768_v23 }
 0x904   : > { %v5490_v4 = vpop.eup %5489  ;;  %v5000_v12 = vadd.f32 %v8563_v34, %v4964_v47  ;;  %v4582_v32 = vadd.f32 1e-05, %v4550_v25  ;;  %v8865_v47 = vld [vmem:[#allocation17_spill] sm:$0xff] }
 0x905   : > { %v4747_v26 = vmul.f32 %v5490_v4, %v4579_v56  ;;  %vm4753_vm15 = vweird.f32 %v5490_v4  ;;  %v8866_v25 = vmax.f32 %v8865_v47, 0.0 }
 0x906   : > { %v5032_v62 = vmax.f32 %v5000_v12, 0.0  ;;  %5491 = vrsqrt.f32 %v4582_v32  ;;  %vm4754_vm3 = vmor %vm4752_vm2, %vm4753_vm15  ;;  %vm4782_vm14 = vweird.f32 %v4582_v32 }
 0x907   : > { %v4748_v3 = vmul.f32 %v5490_v4, %v4747_v26 }
 0x908   : > { %v5064_v22 = vadd.f32 %v5032_v62, %v8862_v37 }
 0x909   : > { %v4749_v38 = vmul.f32 0.5, %v4748_v3  ;;  %v4501_v27 = vpop.xlane.xlu2 %4500 }
 0x90a   : > { %5096 = vst.msk [vmem:[%s8153_s21 + $0x60] sm:$0xff] %vm444_vm1, %v5064_v22  ;;  %v4553_v17 = vmul.f32 %v4501_v27, %v5768_v23 }
 0x90b   : > { %v4750_v52 = vsub.f32 1.5, %v4749_v38 }
 0x90c   : > { %v5492_v10 = vpop.eup %5491  ;;  %v4585_v41 = vadd.f32 1e-05, %v4553_v17 }
 0x90d   : > { %v4751_v9 = vmul.f32 %v5490_v4, %v4750_v52  ;;  %v4777_v20 = vmul.f32 %v5492_v10, %v4582_v32  ;;  %vm4783_vm4 = vweird.f32 %v5492_v10 }
 0x90e   : > { %5493 = vrsqrt.f32 %v4585_v41  ;;  %vm4784_vm5 = vmor %vm4782_vm14, %vm4783_vm4  ;;  %vm4812_vm8 = vweird.f32 %v4585_v41 }
 0x90f   : > { %v4755_v54 = vsel %vm4754_vm3, %v5490_v4, %v4751_v9  ;;  %v4778_v39 = vmul.f32 %v5492_v10, %v4777_v20 }
 0x910   : > { %v4931_v31 = vmul.f32 %v4755_v54, %v8372_v45 }
 0x911   : > { %v4779_v2 = vmul.f32 0.5, %v4778_v39  ;;  %v4510_v61 = vpop.xlane.xlu2 %4509 }
 0x912   : > { %v4967_v14 = vmul.f32 %v8554_v29, %v4931_v31  ;;  %v4556_v6 = vmul.f32 %v4510_v61, %v5768_v23 }
 0x913   : > { %v4780_v42 = vsub.f32 1.5, %v4779_v2 }
 0x914   : > { %v5494_v58 = vpop.eup %5493  ;;  %v5003_v57 = vadd.f32 %v8563_v34, %v4967_v14  ;;  %v4588_v49 = vadd.f32 1e-05, %v4556_v6 }
 0x915   : > { %v4781_v51 = vmul.f32 %v5492_v10, %v4780_v42  ;;  %v4807_v8 = vmul.f32 %v5494_v58, %v4585_v41  ;;  %vm4813_vm6 = vweird.f32 %v5494_v58  ;;  %v8867_v41 = vld [vmem:[#allocation20_spill] sm:$0xff] }
 0x916   : > { %v5035_v63 = vmax.f32 %v5003_v57, 0.0  ;;  %5495 = vrsqrt.f32 %v4588_v49  ;;  %vm4814_vm9 = vmor %vm4812_vm8, %vm4813_vm6  ;;  %vm4842_vm12 = vweird.f32 %v4588_v49  ;;  %v8868_v9 = vmax.f32 %v8867_v41, 0.0 }
 0x917   : > { %v4785_v45 = vsel %vm4784_vm5, %v5492_v10, %v4781_v51  ;;  %v4808_v13 = vmul.f32 %v5494_v58, %v4807_v8 }
 0x918   : > { %v5067_v55 = vadd.f32 %v5035_v63, %v8864_v28  ;;  %v4934_v59 = vmul.f32 %v4785_v45, %v8385_v50  ;;  %v8869_v63 = vld [vmem:[#allocation23_spill] sm:$0xff] }
 0x919   : > { %v4809_v35 = vmul.f32 0.5, %v4808_v13  ;;  %v4519_v40 = vpop.xlane.xlu2 %4518  ;;  %v8870_v45 = vmax.f32 %v8869_v63, 0.0 }
 0x91a   : > { %5099 = vst.msk [vmem:[%s8153_s21 + $0x78] sm:$0xff] %vm444_vm1, %v5067_v55  ;;  %v4970_v18 = vmul.f32 %v8554_v29, %v4934_v59  ;;  %v4559_v1 = vmul.f32 %v4519_v40, %v5768_v23 }
 0x91b   : > { %v4810_v36 = vsub.f32 1.5, %v4809_v35 }
 0x91c   : > { %v5496_v7 = vpop.eup %5495  ;;  %v5006_v21 = vadd.f32 %v8563_v34, %v4970_v18  ;;  %v4591_v56 = vadd.f32 1e-05, %v4559_v1 }
 0x91d   : > { %v4811_v33 = vmul.f32 %v5494_v58, %v4810_v36  ;;  %v4837_v15 = vmul.f32 %v5496_v7, %v4588_v49  ;;  %vm4843_vm11 = vweird.f32 %v5496_v7 }
 0x91e   : > { %v5038_v16 = vmax.f32 %v5006_v21, 0.0  ;;  %5497 = vrsqrt.f32 %v4591_v56  ;;  %vm4844_vm13 = vmor %vm4842_vm12, %vm4843_vm11  ;;  %vm4872_vm7 = vweird.f32 %v4591_v56 }
 0x91f   : > { %v4815_v50 = vsel %vm4814_vm9, %v5494_v58, %v4811_v33  ;;  %v4838_v5 = vmul.f32 %v5496_v7, %v4837_v15 }
 0x920   : > { %v5070_v4 = vadd.f32 %v5038_v16, %v8866_v25  ;;  %v4937_v12 = vmul.f32 %v4815_v50, %v8397_v48 }
 0x921   : > { %v4839_v32 = vmul.f32 0.5, %v4838_v5  ;;  %v4528_v26 = vpop.xlane.xlu2 %4527 }
 0x922   : > { %5102 = vst.msk [vmem:[%s8153_s21 + $0x90] sm:$0xff] %vm444_vm1, %v5070_v4  ;;  %v4973_v62 = vmul.f32 %v8554_v29, %v4937_v12  ;;  %v4562_v3 = vmul.f32 %v4528_v26, %v5768_v23 }
 0x923   : > { %v4840_v53 = vsub.f32 1.5, %v4839_v32  ;;  %v8873_v32 = vld [vmem:[#allocation30_spill] sm:$0xff] }
 0x924   : > { %v5498_v37 = vpop.eup %5497  ;;  %v5009_v22 = vadd.f32 %v8563_v34, %v4973_v62  ;;  %v4594_v38 = vadd.f32 1e-05, %v4562_v3  ;;  %v8874_v26 = vmax.f32 %v8873_v32, 0.0 }
 0x925   : > { %v4841_v27 = vmul.f32 %v5496_v7, %v4840_v53  ;;  %v4867_v17 = vmul.f32 %v5498_v37, %v4591_v56  ;;  %vm4873_vm10 = vweird.f32 %v5498_v37 }
 0x926   : > { %v5041_v52 = vmax.f32 %v5009_v22, 0.0  ;;  %5499 = vrsqrt.f32 %v4594_v38  ;;  %vm4874_vm0 = vmor %vm4872_vm7, %vm4873_vm10  ;;  %vm4902_vm2 = vweird.f32 %v4594_v38 }
 0x927   : > { %v4845_v48 = vsel %vm4844_vm13, %v5496_v7, %v4841_v27  ;;  %v4868_v10 = vmul.f32 %v5498_v37, %v4867_v17  ;;  %v8871_v7 = vld [vmem:[#allocation27_spill] sm:$0xff] }
 0x928   : > { %v5073_v20 = vadd.f32 %v5041_v52, %v8868_v9  ;;  %v4940_v54 = vmul.f32 %v4845_v48, %v8408_v30  ;;  %v8872_v21 = vmax.f32 %v8871_v7, 0.0  ;;  %v8875_v48 = vld [vmem:[#allocation16_spill] sm:$0xff] }
 0x929   : > { %v4869_v39 = vmul.f32 0.5, %v4868_v10  ;;  %v8876_v10 = vmax.f32 %v8875_v48, 0.0 }
 0x92a   : > { %5105 = vst.msk [vmem:[%s8153_s21 + $0xa8] sm:$0xff] %vm444_vm1, %v5073_v20  ;;  %v4976_v31 = vmul.f32 %v8554_v29, %v4940_v54 }
 0x92b   : > { %v4870_v2 = vsub.f32 1.5, %v4869_v39 }
 0x92c   : > { %v5500_v61 = vpop.eup %5499  ;;  %v5012_v14 = vadd.f32 %v8563_v34, %v4976_v31  ;;  %v4489_v6 = vpop.xlane.xlu1 %4488 }
 0x92d   : > { %v4871_v42 = vmul.f32 %v5498_v37, %v4870_v2  ;;  %v4897_v58 = vmul.f32 %v5500_v61, %v4594_v38  ;;  %v4549_v57 = vmul.f32 %v4489_v6, %v5768_v23  ;;  %vm4903_vm15 = vweird.f32 %v5500_v61 }
 0x92e   : > { %v5044_v49 = vmax.f32 %v5012_v14, 0.0  ;;  %vm4904_vm3 = vmor %vm4902_vm2, %vm4903_vm15 }
 0x92f   : > { %v4875_v30 = vsel %vm4874_vm0, %v5498_v37, %v4871_v42  ;;  %v4898_v51 = vmul.f32 %v5500_v61, %v4897_v58  ;;  %v4581_v8 = vadd.f32 1e-05, %v4549_v57 }
 0x930   : > { %v5076_v13 = vadd.f32 %v5044_v49, %v8870_v45  ;;  %v4943_v43 = vmul.f32 %v4875_v30, %v8419_v11  ;;  %v8877_v30 = vld [vmem:[#allocation19_spill] sm:$0xff] }
 0x931   : > { %v4899_v28 = vmul.f32 0.5, %v4898_v51  ;;  %5501 = vrsqrt.f32 %v4581_v8  ;;  %vm4772_vm14 = vweird.f32 %v4581_v8  ;;  %v8878_v51 = vmax.f32 %v8877_v30, 0.0 }
 0x932   : > { %5108 = vst.msk [vmem:[%s8153_s21 + $0xc0] sm:$0xff] %vm444_vm1, %v5076_v13  ;;  %v4979_v55 = vmul.f32 %v8554_v29, %v4943_v43 }
 0x933   : > { %v4900_v59 = vsub.f32 1.5, %v4899_v28 }
 0x934   : > { %v5015_v35 = vadd.f32 %v8563_v34, %v4979_v55 }
 0x935   : > { %v4901_v40 = vmul.f32 %v5500_v61, %v4900_v59 }
 0x936   : > { %v5047_v18 = vmax.f32 %v5015_v35, 0.0 }
 0x937   : > { %v5502_v1 = vpop.eup %5501  ;;  %v4905_v36 = vsel %vm4904_vm3, %v5500_v61, %v4901_v40 }
 0x938   : > { %v5079_v11 = vadd.f32 %v5047_v18, %v8872_v21  ;;  %v4946_v56 = vmul.f32 %v4905_v36, %v8433_v24  ;;  %v4767_v33 = vmul.f32 %v5502_v1, %v4581_v8  ;;  %vm4773_vm4 = vweird.f32 %v5502_v1 }
 0x939   : > { %vm4774_vm5 = vmor %vm4772_vm14, %vm4773_vm4 }
 0x93a   : > { %5111 = vst.msk [vmem:[%s8153_s21 + $0xd8] sm:$0xff] %vm444_vm1, %v5079_v11  ;;  %v4982_v15 = vmul.f32 %v8554_v29, %v4946_v56  ;;  %v4768_v16 = vmul.f32 %v5502_v1, %v4767_v33  ;;  %v8879_v56 = vld [vmem:[#allocation24_spill] sm:$0xff] }
 0x93b   : > { %v8880_v33 = vmax.f32 %v8879_v56, 0.0 }
 0x93c   : > { %v5018_v50 = vadd.f32 %v8563_v34, %v4982_v15  ;;  %v4769_v5 = vmul.f32 0.5, %v4768_v16  ;;  %v4498_v47 = vpop.xlane.xlu1 %4497 }
 0x93d   : > { %v4552_v12 = vmul.f32 %v4498_v47, %v5768_v23 }
 0x93e   : > { %v5050_v25 = vmax.f32 %v5018_v50, 0.0  ;;  %v4770_v4 = vsub.f32 1.5, %v4769_v5 }
 0x93f   : > { %v4584_v3 = vadd.f32 1e-05, %v4552_v12 }
 0x940   : > { %v5082_v62 = vadd.f32 %v5050_v25, %v8874_v26  ;;  %v4771_v24 = vmul.f32 %v5502_v1, %v4770_v4 }
 0x941   : > { %5503 = vrsqrt.f32 %v4584_v3  ;;  %vm4802_vm8 = vweird.f32 %v4584_v3 }
 0x942   : > { %5114 = vst.msk [vmem:[%s8153_s21 + $0xf0] sm:$0xff] %vm444_vm1, %v5082_v62  ;;  %v4775_v53 = vsel %vm4774_vm5, %v5502_v1, %v4771_v24 }
 0x943   : > { %v4933_v37 = vmul.f32 %v4775_v53, %v8446_v0 }
 0x945   : > { %v4969_v22 = vmul.f32 %v8554_v29, %v4933_v37 }
 0x947   : > { %v5005_v38 = vadd.f32 %v8563_v34, %v4969_v22  ;;  %v5504_v27 = vpop.eup %5503 }
 0x948   : > { %v4797_v52 = vmul.f32 %v5504_v27, %v4584_v3  ;;  %vm4803_vm6 = vweird.f32 %v5504_v27  ;;  %v8881_v3 = vld [vmem:[#allocation25_spill] sm:$0xff] }
 0x949   : > { %v5037_v17 = vmax.f32 %v5005_v38, 0.0  ;;  %vm4804_vm9 = vmor %vm4802_vm8, %vm4803_vm6  ;;  %v8882_v53 = vmax.f32 %v8881_v3, 0.0 }
 0x94a   : > { %v4798_v9 = vmul.f32 %v5504_v27, %v4797_v52 }
 0x94b   : > { %v5069_v41 = vadd.f32 %v5037_v17, %v8876_v10 }
 0x94c   : > { %v4799_v20 = vmul.f32 0.5, %v4798_v9  ;;  %v4507_v54 = vpop.xlane.xlu1 %4506 }
 0x94d   : > { %5101 = vst.msk [vmem:[%s8153_s21 + $0x88] sm:$0xff] %vm444_vm1, %v5069_v41  ;;  %v4555_v31 = vmul.f32 %v4507_v54, %v5768_v23  ;;  %v8883_v41 = vld [vmem:[#allocation28_spill] sm:$0xff] }
 0x94e   : > { %v4800_v39 = vsub.f32 1.5, %v4799_v20  ;;  %v8884_v9 = vmax.f32 %v8883_v41, 0.0 }
 0x94f   : > { %v4587_v2 = vadd.f32 1e-05, %v4555_v31 }
 0x950   : > { %v4801_v0 = vmul.f32 %v5504_v27, %v4800_v39 }
 0x951   : > { %5505 = vrsqrt.f32 %v4587_v2  ;;  %vm4832_vm12 = vweird.f32 %v4587_v2 }
 0x952   : > { %v4805_v61 = vsel %vm4804_vm9, %v5504_v27, %v4801_v0 }
 0x953   : > { %v4936_v14 = vmul.f32 %v4805_v61, %v8478_v60 }
 0x955   : > { %v4972_v6 = vmul.f32 %v8554_v29, %v4936_v14 }
 0x957   : > { %v5008_v42 = vadd.f32 %v8563_v34, %v4972_v6  ;;  %v5506_v58 = vpop.eup %5505 }
 0x958   : > { %v4827_v49 = vmul.f32 %v5506_v58, %v4587_v2  ;;  %vm4833_vm11 = vweird.f32 %v5506_v58 }
 0x959   : > { %v5040_v57 = vmax.f32 %v5008_v42, 0.0  ;;  %vm4834_vm13 = vmor %vm4832_vm12, %vm4833_vm11 }
 0x95a   : > { %v4828_v63 = vmul.f32 %v5506_v58, %v4827_v49 }
 0x95b   : > { %v5072_v8 = vadd.f32 %v5040_v57, %v8878_v51 }
 0x95c   : > { %v4516_v45 = vpop.xlane.xlu1 %4515  ;;  %v4829_v13 = vmul.f32 0.5, %v4828_v63 }
 0x95d   : > { %5104 = vst.msk [vmem:[%s8153_s21 + $0xa0] sm:$0xff] %vm444_vm1, %v5072_v8  ;;  %v4558_v43 = vmul.f32 %v4516_v45, %v5768_v23 }
 0x95e   : > { %v4830_v28 = vsub.f32 1.5, %v4829_v13 }
 0x95f   : > { %v4590_v60 = vadd.f32 1e-05, %v4558_v43 }
 0x960   : > { %v4831_v55 = vmul.f32 %v5506_v58, %v4830_v28 }
 0x961   : > { %5507 = vrsqrt.f32 %v4590_v60  ;;  %vm4862_vm7 = vweird.f32 %v4590_v60 }
 0x962   : > { %v4835_v59 = vsel %vm4834_vm13, %v5506_v58, %v4831_v55 }
 0x963   : > { %v4939_v35 = vmul.f32 %v4835_v59, %v8522_v46 }
 0x965   : > { %v4975_v40 = vmul.f32 %v8554_v29, %v4939_v35 }
 0x967   : > { %v5508_v18 = vpop.eup %5507  ;;  %v5011_v1 = vadd.f32 %v8563_v34, %v4975_v40 }
 0x968   : > { %v4857_v36 = vmul.f32 %v5508_v18, %v4590_v60  ;;  %vm4863_vm10 = vweird.f32 %v5508_v18 }
 0x969   : > { %v5043_v7 = vmax.f32 %v5011_v1, 0.0  ;;  %vm4864_vm0 = vmor %vm4862_vm7, %vm4863_vm10 }
 0x96a   : > { %v4858_v21 = vmul.f32 %v5508_v18, %v4857_v36 }
 0x96b   : > { %v5075_v15 = vadd.f32 %v5043_v7, %v8880_v33 }
 0x96c   : > { %v4525_v11 = vpop.xlane.xlu1 %4524  ;;  %v4859_v16 = vmul.f32 0.5, %v4858_v21 }
 0x96d   : > { %v4561_v50 = vmul.f32 %v4525_v11, %v5768_v23  ;;  %5107 = vst.msk [vmem:[%s8153_s21 + $0xb8] sm:$0xff] %vm444_vm1, %v5075_v15 }
 0x96e   : > { %v4860_v5 = vsub.f32 1.5, %v4859_v16 }
 0x96f   : > { %v4593_v46 = vadd.f32 1e-05, %v4561_v50 }
 0x970   : > { %v4861_v47 = vmul.f32 %v5508_v18, %v4860_v5 }
 0x971   : > { %5509 = vrsqrt.f32 %v4593_v46  ;;  %vm4892_vm2 = vweird.f32 %v4593_v46 }
 0x972   : > { %v4865_v25 = vsel %vm4864_vm0, %v5508_v18, %v4861_v47 }
 0x973   : > { %v4942_v4 = vmul.f32 %v4865_v25, %v8570_v19 }
 0x975   : > { %v4978_v12 = vmul.f32 %v8554_v29, %v4942_v4 }
 0x977   : > { %v5510_v32 = vpop.eup %5509  ;;  %v5014_v26 = vadd.f32 %v8563_v34, %v4978_v12 }
 0x978   : > { %v4887_v62 = vmul.f32 %v5510_v32, %v4593_v46  ;;  %vm4893_vm15 = vweird.f32 %v5510_v32 }
 0x979   : > { %v5046_v23 = vmax.f32 %v5014_v26, 0.0  ;;  %vm4894_vm3 = vmor %vm4892_vm2, %vm4893_vm15 }
 0x97a   : > { %v4888_v24 = vmul.f32 %v5510_v32, %v4887_v62 }
 0x97b   : > { %v5078_v37 = vadd.f32 %v5046_v23, %v8882_v53 }
 0x97c   : > { %v4889_v22 = vmul.f32 0.5, %v4888_v24 }
 0x97d   : > { %5110 = vst.msk [vmem:[%s8153_s21 + $0xd0] sm:$0xff] %vm444_vm1, %v5078_v37 }
 0x97e   : > { %v4890_v38 = vsub.f32 1.5, %v4889_v22 }
 0x980   : > { %v4891_v27 = vmul.f32 %v5510_v32, %v4890_v38 }
 0x982   : > { %v4895_v19 = vsel %vm4894_vm3, %v5510_v32, %v4891_v27 }
 0x983   : > { %v4945_v17 = vmul.f32 %v4895_v19, %v8596_v44 }
 0x985   : > { %v4981_v52 = vmul.f32 %v8554_v29, %v4945_v17 }
 0x987   : > { %v5017_v48 = vadd.f32 %v8563_v34, %v4981_v52 }
 0x989   : > { %v5049_v10 = vmax.f32 %v5017_v48, 0.0 }
 0x98b   : > { %v5081_v20 = vadd.f32 %v5049_v10, %v8884_v9 }
 0x98d   : > { %5113 = vst.msk [vmem:[%s8153_s21 + $0xe8] sm:$0xff] %vm444_vm1, %v5081_v20 }
 0x98e PF: > { %s23_s25 = sadd.s32 1, %s5525_s25  }
 0x98f   : > { %p20_p4 = scmp.ge.s32.totalorder %s23_s25, 4  }
 0x991   :  { %22 = sbr.rel (!%p20_p4) target bundleno = 1 (0x1), region = 102 }

</bundles_post_ra>
